<compile_context>
chip_gen: v5e
topology: v5e:2x2
jax: 0.10.0
libtpu: 0.0.40
codegen_flags: <defaults>
</compile_context>

<pallas_src>
import functools

import jax
import jax.numpy as jnp
from jax.experimental import pallas as pl
from jax.experimental.pallas import tpu as pltpu

LANE = 128
EPS = 1e-5


def _round_up(x, m):
    return (x + m - 1) // m * m


# ----------------------------- activation -----------------------------------
def _apply_act(y, act):
    if act == "relu":
        return jnp.maximum(y, 0.0)
    elif act == "leaky_relu":
        # matches get_act: nn.LeakyReLU(negative_slope=0.2)
        return jnp.where(y >= 0, y, 0.2 * y)
    elif act == "silu":
        return y * jax.nn.sigmoid(y)
    elif act == "mish":
        return y * jnp.tanh(jax.nn.softplus(y))
    else:  # None -> Identity
        return y


# ------------------------------ Pallas kernel --------------------------------
def _stage(buf_ref, img_flat, H, W):
    """Stage an (H*W, C) image into the flat scratch with zeroed halo rows.

    Flat layout (conceptual rows of width W):
      row 0        : slack (zeroed)
      row 1        : top halo (zero)
      rows 2..H+1  : image (contiguous, sublane-aligned store)
      row H+2      : bottom halo (zero)
      row H+3      : slack (zeroed)
    """
    C = buf_ref.shape[-1]
    z = jnp.zeros((2 * W, C), buf_ref.dtype)
    buf_ref[0:2 * W, :] = z                              # slack + top halo
    buf_ref[(H + 2) * W:(H + 4) * W, :] = z              # bottom halo + slack
    buf_ref[2 * W:(H + 2) * W, :] = img_flat.astype(buf_ref.dtype)


def _conv3x3_bn_act(src_ref, w_ref, scale_ref, shift_ref, col, act, H, W):
    """3x3 stride-1 conv + folded BN + activation from a flat staged scratch.

    src_ref:   ((H+4)*W, C) bf16 staged source (see _stage)
    w_ref:     (9, C, Cout) bf16 packed weights, tap (dy,dx) at (dy+1)*3+(dx+1)
    scale_ref: (1, Cout) f32 folded BN scale  = gamma / sqrt(var + eps)
    shift_ref: (1, Cout) f32 folded BN shift  = beta + (bias - mean) * scale
    col:       (H*W, 1) i32  output column index (for the two edge masks)
    returns    (H*W, Cout) f32 activated output

    Every tap operand is a contiguous slice src_ref[(2+dy)*W+dx : ... + H*W]
    read in place (no concat temp, no per-tap reshape copy).  Vertical
    out-of-bounds taps hit the zero halo rows; horizontal ones are masked on
    the f32 partial sums (one mask per dx, applied after summing the 3 dy taps).
    """
    acc = None
    for dx in (-1, 0, 1):
        part = None
        for dy in (-1, 0, 1):
            start = (2 + dy) * W + dx
            tap = src_ref[start:start + H * W, :]        # direct VMEM slice
            d = jnp.dot(tap, w_ref[(dy + 1) * 3 + (dx + 1)],
                        preferred_element_type=jnp.float32)
            part = d if part is None else part + d
        if dx == -1:
            part = jnp.where(col > 0, part, 0.0)         # w==0 has no left tap
        elif dx == 1:
            part = jnp.where(col < W - 1, part, 0.0)     # w==W-1 no right tap
        acc = part if acc is None else acc + part
    y = acc * scale_ref[0] + shift_ref[0]                # folded BN (+ bias)
    return _apply_act(y, act)                            # f32 epilogue


def _double_conv_kernel(x_ref, w1_ref, s1_ref, t1_ref, w2_ref, s2_ref, t2_ref,
                        o_ref, xp_ref, mid_ref, *, act):
    """Fused DoubleConv for one batch element.

    x_ref:   (1, H, W, Cp)   channel-padded bf16 input block
    w*_ref:  (9, Cin_p, Cq)  packed bf16 weights per conv
    s*/t*:   (1, Cq) f32     folded BN scale/shift
    o_ref:   (1, H, W, Cout) f32 output (real channels only)
    xp_ref:  ((H+4)*W, Cp)   bf16 staged conv1 input
    mid_ref: ((H+4)*W, Cq)   bf16 staged intermediate activation
    """
    _, H, W, Cout = o_ref.shape
    Cp = xp_ref.shape[-1]

    col = jax.lax.broadcasted_iota(jnp.int32, (H * W, 1), 0) % W

    # ---- conv1 + BN1 + act : HBM input block -> VMEM-resident intermediate --
    _stage(xp_ref, x_ref[0].reshape(H * W, Cp), H, W)
    y1 = _conv3x3_bn_act(xp_ref, w1_ref, s1_ref, t1_ref, col, act, H, W)

    _stage(mid_ref, y1, H, W)                            # cast to bf16 inside

    # ---- conv2 + BN2 + act : VMEM intermediate -> output --------------------
    y2 = _conv3x3_bn_act(mid_ref, w2_ref, s2_ref, t2_ref, col, act, H, W)
    o_ref[...] = y2[:, :Cout].reshape(1, H, W, Cout).astype(o_ref.dtype)


# ------------------------------ wrapper ---------------------------------------
def _fold_bn(bias, gamma, beta, mean, var):
    scale = gamma / jnp.sqrt(var + EPS)
    b = bias if bias is not None else jnp.zeros_like(mean)
    shift = beta + (b - mean) * scale
    return scale, shift


def _pack_weight(w_oihw, cin_p, cout_p):
    """OIHW -> (9, Cin_p, Cout_p) bf16 tap-major pack with zero channel pad."""
    cout, cin, kh, kw = w_oihw.shape
    w = jnp.transpose(w_oihw, (2, 3, 1, 0))              # (KH, KW, I, O)
    w = jnp.pad(w, ((0, 0), (0, 0), (0, cin_p - cin), (0, cout_p - cout)))
    return w.reshape(kh * kw, cin_p, cout_p).astype(jnp.bfloat16)


def _pad_scale_shift(scale, shift, cout_p):
    cout = scale.shape[0]
    scale = jnp.pad(scale, (0, cout_p - cout), constant_values=1.0)
    shift = jnp.pad(shift, (0, cout_p - cout))
    return (scale.reshape(1, cout_p).astype(jnp.float32),
            shift.reshape(1, cout_p).astype(jnp.float32))


def _vmem_limit_bytes():
    # Generation-aware scoped-VMEM limit: ~3/4 of physical, capped at 96 MiB
    # (v5e/v6e: 128 MiB physical, v7x: 64 MiB).  Falls back to 48 MiB.
    cap = 64 * 1024 * 1024
    try:
        info_cap = int(pltpu.get_tpu_info().vmem_capacity_bytes)
        if info_cap >= 16 * 1024 * 1024:
            cap = info_cap
    except Exception:
        pass
    return min((cap * 3) // 4, 96 * 1024 * 1024)


def double_conv_forward(x_nchw, layers, act):
    """layers: list of two (w_oihw, bias_or_None, gamma, beta, mean, var)."""
    (w1, b1, g1, be1, m1, v1), (w2, b2, g2, be2, m2, v2) = layers
    N, Cin, H, W = x_nchw.shape
    Cout = w1.shape[0]
    Cp = _round_up(Cin, LANE)     # lane-dense input channels
    Cq = _round_up(Cout, LANE)    # lane-dense intermediate/weight channels

    # NCHW -> NHWC; channel pad + bf16 cast fuse into the same XLA layout pass.
    x = jnp.transpose(x_nchw, (0, 2, 3, 1))
    x = jnp.pad(x, ((0, 0), (0, 0), (0, 0), (0, Cp - Cin))).astype(jnp.bfloat16)

    wp1 = _pack_weight(w1, Cp, Cq)
    wp2 = _pack_weight(w2, Cq, Cq)
    s1, t1 = _pad_scale_shift(*_fold_bn(b1, g1, be1, m1, v1), Cq)
    s2, t2 = _pad_scale_shift(*_fold_bn(b2, g2, be2, m2, v2), Cq)

    kernel = functools.partial(_double_conv_kernel, act=act)
    out = pl.pallas_call(
        kernel,
        out_shape=jax.ShapeDtypeStruct((N, H, W, Cout), jnp.float32),
        grid_spec=pltpu.PrefetchScalarGridSpec(
            num_scalar_prefetch=0,
            grid=(N,),
            in_specs=[
                pl.BlockSpec((1, H, W, Cp), lambda n: (n, 0, 0, 0)),
                pl.BlockSpec((9, Cp, Cq), lambda n: (0, 0, 0)),
                pl.BlockSpec((1, Cq), lambda n: (0, 0)),
                pl.BlockSpec((1, Cq), lambda n: (0, 0)),
                pl.BlockSpec((9, Cq, Cq), lambda n: (0, 0, 0)),
                pl.BlockSpec((1, Cq), lambda n: (0, 0)),
                pl.BlockSpec((1, Cq), lambda n: (0, 0)),
            ],
            out_specs=pl.BlockSpec((1, H, W, Cout), lambda n: (n, 0, 0, 0)),
            scratch_shapes=[
                pltpu.VMEM(((H + 4) * W, Cp), jnp.bfloat16),   # staged input
                pltpu.VMEM(((H + 4) * W, Cq), jnp.bfloat16),   # staged mid act
            ],
        ),
        compiler_params=pltpu.CompilerParams(
            dimension_semantics=("parallel",),
            vmem_limit_bytes=_vmem_limit_bytes(),
        ),
    )(x, wp1, s1, t1, wp2, s2, t2)

    return jnp.transpose(out, (0, 3, 1, 2))     # NHWC -> NCHW


# ------------------------------ pure-JAX reference ----------------------------
def ref_forward(x_nchw, layers, act):
    x = x_nchw
    for (w_oihw, bias, gamma, beta, mean, var) in layers:
        y = jax.lax.conv_general_dilated(
            x, w_oihw, window_strides=(1, 1), padding=((1, 1), (1, 1)),
            dimension_numbers=("NCHW", "OIHW", "NCHW"),
        )
        if bias is not None:
            y = y + bias[None, :, None, None]
        y = (y - mean[None, :, None, None]) / jnp.sqrt(
            var[None, :, None, None] + EPS
        ) * gamma[None, :, None, None] + beta[None, :, None, None]
        x = _apply_act(y, act)
    return x


# ----------------------------------- main --------------------------------------
if __name__ == "__main__":
    N, CIN, COUT, H, W = 2, 4, 8, 16, 16
    ACT = "mish"          # truthy activation -> conv bias=False (as in PyTorch)

    key = jax.random.PRNGKey(0)
    ks = jax.random.split(key, 13)

    x = jax.random.normal(ks[0], (N, CIN, H, W), jnp.float32)

    def make_layer(kw, kbias, kg, kb, km, kv, cin, cout, use_bias):
        w = 0.1 * jax.random.normal(kw, (cout, cin, 3, 3), jnp.float32)
        bias = (0.1 * jax.random.normal(kbias, (cout,), jnp.float32)
                if use_bias else None)
        gamma = 0.5 + jax.random.uniform(kg, (cout,), jnp.float32)
        beta = 0.1 * jax.random.normal(kb, (cout,), jnp.float32)
        mean = 0.1 * jax.random.normal(km, (cout,), jnp.float32)
        var = 0.5 + jax.random.uniform(kv, (cout,), jnp.float32)
        return (w, bias, gamma, beta, mean, var)

    use_bias = not bool(ACT)  # bias = False if activation else True
    layer1 = make_layer(ks[1], ks[2], ks[3], ks[4], ks[5], ks[6],
                        CIN, COUT, use_bias)
    layer2 = make_layer(ks[7], ks[8], ks[9], ks[10], ks[11], ks[12],
                        COUT, COUT, use_bias)
    layers = [layer1, layer2]

    out = jax.block_until_ready(double_conv_forward(x, layers, ACT))
    ref = jax.block_until_ready(ref_forward(x, layers, ACT))

    assert out.shape == (N, COUT, H, W), out.shape
    # bf16 MXU operands + bf16 intermediate vs. f32 reference -> documented
    # looser tolerance (observed error is ~1e-2 worst case at these scales).
    max_err = float(jnp.max(jnp.abs(out - ref)))
    assert jnp.allclose(out, ref, atol=5e-2, rtol=5e-2), max_err

    print("KERNEL_OK")
</pallas_src>

<mosaic_0001>
module attributes {stable_mosaic.version = 11 : i64} {
  func.func @_double_conv_kernel(%arg0: i32, %arg1: memref<1x16x16x128xbf16, #tpu.memory_space<vmem>>, %arg2: memref<9x128x128xbf16, #tpu.memory_space<vmem>>, %arg3: memref<1x128xf32, #tpu.memory_space<vmem>>, %arg4: memref<1x128xf32, #tpu.memory_space<vmem>>, %arg5: memref<9x128x128xbf16, #tpu.memory_space<vmem>>, %arg6: memref<1x128xf32, #tpu.memory_space<vmem>>, %arg7: memref<1x128xf32, #tpu.memory_space<vmem>>, %arg8: memref<1x16x16x8xf32, #tpu.memory_space<vmem>>, %arg9: memref<320x128xbf16, #tpu.memory_space<vmem>>, %arg10: memref<320x128xbf16, #tpu.memory_space<vmem>>) attributes {dimension_semantics = [#tpu.dimension_semantics<parallel>], iteration_bounds = array<i64: 2>, scalar_prefetch = 0 : i64, scratch_operands = 2 : i64, tpu.core_type = #tpu.core_type<tc>, window_params = [{transform_indices = @transform_0, window_bounds = array<i64: 1, 16, 16, 128>}, {pipeline_mode = #tpu.pipeline_mode<synchronous>, transform_indices = @transform_1, window_bounds = array<i64: 9, 128, 128>}, {pipeline_mode = #tpu.pipeline_mode<synchronous>, transform_indices = @transform_2, window_bounds = array<i64: 1, 128>}, {pipeline_mode = #tpu.pipeline_mode<synchronous>, transform_indices = @transform_3, window_bounds = array<i64: 1, 128>}, {pipeline_mode = #tpu.pipeline_mode<synchronous>, transform_indices = @transform_4, window_bounds = array<i64: 9, 128, 128>}, {pipeline_mode = #tpu.pipeline_mode<synchronous>, transform_indices = @transform_5, window_bounds = array<i64: 1, 128>}, {pipeline_mode = #tpu.pipeline_mode<synchronous>, transform_indices = @transform_6, window_bounds = array<i64: 1, 128>}, {transform_indices = @transform_7, window_bounds = array<i64: 1, 16, 16, 8>}]} {
    %0 = tpu.iota {dimensions = array<i32: 0>} : vector<256x1xi32>
    %c16_i32 = arith.constant 16 : i32
    %c0_i32 = arith.constant 0 : i32
    %1 = arith.cmpi eq, %c16_i32, %c0_i32 : i32
    %c1_i32 = arith.constant 1 : i32
    %2 = arith.select %1, %c1_i32, %c16_i32 : i32
    %3 = vector.broadcast %2 : i32 to vector<256x1xi32>
    %4 = arith.remsi %0, %3 : vector<256x1xi32>
    %c0_i32_0 = arith.constant 0 : i32
    %5 = vector.broadcast %c0_i32_0 : i32 to vector<256x1xi32>
    %6 = arith.cmpi ne, %4, %5 : vector<256x1xi32>
    %c0_i32_1 = arith.constant 0 : i32
    %7 = vector.broadcast %c0_i32_1 : i32 to vector<256x1xi32>
    %8 = arith.cmpi slt, %4, %7 : vector<256x1xi32>
    %c0_i32_2 = arith.constant 0 : i32
    %9 = arith.cmpi slt, %2, %c0_i32_2 : i32
    %10 = vector.broadcast %9 : i1 to vector<256x1xi1>
    %11 = vector.broadcast %10 : vector<256x1xi1> to vector<256x1xi1>
    %12 = arith.xori %8, %11 : vector<256x1xi1>
    %13 = arith.andi %12, %6 : vector<256x1xi1>
    %14 = vector.broadcast %2 : i32 to vector<256x1xi32>
    %15 = arith.addi %4, %14 : vector<256x1xi32>
    %16 = arith.select %13, %15, %4 : vector<256x1xi1>, vector<256x1xi32>
    %c0 = arith.constant 0 : index
    %c0_3 = arith.constant 0 : index
    %c0_4 = arith.constant 0 : index
    %c0_5 = arith.constant 0 : index
    %17 = vector.load %arg1[%c0, %c0_3, %c0_4, %c0_5] : memref<1x16x16x128xbf16, #tpu.memory_space<vmem>>, vector<1x16x16x128xbf16>
    %18 = vector.shape_cast %17 : vector<1x16x16x128xbf16> to vector<16x16x128xbf16>
    %19 = vector.shape_cast %18 : vector<16x16x128xbf16> to vector<256x128xbf16>
    %cst = arith.constant 0.000000e+00 : bf16
    %20 = vector.broadcast %cst : bf16 to vector<32x128xbf16>
    %c0_6 = arith.constant 0 : index
    %c0_7 = arith.constant 0 : index
    %21 = vector.load %arg9[%c0_6, %c0_7] : memref<320x128xbf16, #tpu.memory_space<vmem>>, vector<32x128xbf16>
    tpu.vector_store %arg9[%c0_6, %c0_7], %20 {strides = array<i32>} : memref<320x128xbf16, #tpu.memory_space<vmem>>, vector<32x128xbf16>,
    %c288 = arith.constant 288 : index
    %c0_8 = arith.constant 0 : index
    %22 = vector.load %arg9[%c288, %c0_8] : memref<320x128xbf16, #tpu.memory_space<vmem>>, vector<32x128xbf16>
    tpu.vector_store %arg9[%c288, %c0_8], %20 {strides = array<i32>} : memref<320x128xbf16, #tpu.memory_space<vmem>>, vector<32x128xbf16>,
    %c32 = arith.constant 32 : index
    %c0_9 = arith.constant 0 : index
    %23 = vector.load %arg9[%c32, %c0_9] : memref<320x128xbf16, #tpu.memory_space<vmem>>, vector<256x128xbf16>
    tpu.vector_store %arg9[%c32, %c0_9], %19 {strides = array<i32>} : memref<320x128xbf16, #tpu.memory_space<vmem>>, vector<256x128xbf16>,
    %c15 = arith.constant 15 : index
    %c0_10 = arith.constant 0 : index
    %24 = vector.load %arg9[%c15, %c0_10] : memref<320x128xbf16, #tpu.memory_space<vmem>>, vector<256x128xbf16>
    %c0_11 = arith.constant 0 : index
    %c0_12 = arith.constant 0 : index
    %c0_13 = arith.constant 0 : index
    %25 = vector.load %arg2[%c0_11, %c0_12, %c0_13] : memref<9x128x128xbf16, #tpu.memory_space<vmem>>, vector<1x128x128xbf16>
    %26 = vector.shape_cast %25 : vector<1x128x128xbf16> to vector<128x128xbf16>
    %cst_14 = arith.constant dense<0.000000e+00> : vector<256x128xf32>
    %27 = tpu.matmul %24, %26, %cst_14 {dimension_numbers = #tpu.dot_dimension_numbers<[1], [0], [0], [1], [0, 0, 1, 1], [], []>} : vector<256x128xbf16>, vector<128x128xbf16>, vector<256x128xf32> -> vector<256x128xf32>
    %c31 = arith.constant 31 : index
    %c0_15 = arith.constant 0 : index
    %28 = vector.load %arg9[%c31, %c0_15] : memref<320x128xbf16, #tpu.memory_space<vmem>>, vector<256x128xbf16>
    %c3 = arith.constant 3 : index
    %c0_16 = arith.constant 0 : index
    %c0_17 = arith.constant 0 : index
    %29 = vector.load %arg2[%c3, %c0_16, %c0_17] : memref<9x128x128xbf16, #tpu.memory_space<vmem>>, vector<1x128x128xbf16>
    %30 = vector.shape_cast %29 : vector<1x128x128xbf16> to vector<128x128xbf16>
    %cst_18 = arith.constant dense<0.000000e+00> : vector<256x128xf32>
    %31 = tpu.matmul %28, %30, %cst_18 {dimension_numbers = #tpu.dot_dimension_numbers<[1], [0], [0], [1], [0, 0, 1, 1], [], []>} : vector<256x128xbf16>, vector<128x128xbf16>, vector<256x128xf32> -> vector<256x128xf32>
    %32 = arith.addf %27, %31 : vector<256x128xf32>
    %c47 = arith.constant 47 : index
    %c0_19 = arith.constant 0 : index
    %33 = vector.load %arg9[%c47, %c0_19] : memref<320x128xbf16, #tpu.memory_space<vmem>>, vector<256x128xbf16>
    %c6 = arith.constant 6 : index
    %c0_20 = arith.constant 0 : index
    %c0_21 = arith.constant 0 : index
    %34 = vector.load %arg2[%c6, %c0_20, %c0_21] : memref<9x128x128xbf16, #tpu.memory_space<vmem>>, vector<1x128x128xbf16>
    %35 = vector.shape_cast %34 : vector<1x128x128xbf16> to vector<128x128xbf16>
    %cst_22 = arith.constant dense<0.000000e+00> : vector<256x128xf32>
    %36 = tpu.matmul %33, %35, %cst_22 {dimension_numbers = #tpu.dot_dimension_numbers<[1], [0], [0], [1], [0, 0, 1, 1], [], []>} : vector<256x128xbf16>, vector<128x128xbf16>, vector<256x128xf32> -> vector<256x128xf32>
    %37 = arith.addf %32, %36 : vector<256x128xf32>
    %c0_i32_23 = arith.constant 0 : i32
    %38 = vector.broadcast %c0_i32_23 : i32 to vector<256x1xi32>
    %39 = arith.cmpi sgt, %16, %38 : vector<256x1xi32>
    %cst_24 = arith.constant 0.000000e+00 : f32
    %40 = vector.shape_cast %39 : vector<256x1xi1> to vector<256x1xi1>
    %41 = vector.broadcast %40 : vector<256x1xi1> to vector<256x128xi1>
    %42 = vector.broadcast %cst_24 : f32 to vector<256x128xf32>
    %43 = arith.select %41, %37, %42 : vector<256x128xi1>, vector<256x128xf32>
    %c16 = arith.constant 16 : index
    %c0_25 = arith.constant 0 : index
    %44 = vector.load %arg9[%c16, %c0_25] : memref<320x128xbf16, #tpu.memory_space<vmem>>, vector<256x128xbf16>
    %c1 = arith.constant 1 : index
    %c0_26 = arith.constant 0 : index
    %c0_27 = arith.constant 0 : index
    %45 = vector.load %arg2[%c1, %c0_26, %c0_27] : memref<9x128x128xbf16, #tpu.memory_space<vmem>>, vector<1x128x128xbf16>
    %46 = vector.shape_cast %45 : vector<1x128x128xbf16> to vector<128x128xbf16>
    %cst_28 = arith.constant dense<0.000000e+00> : vector<256x128xf32>
    %47 = tpu.matmul %44, %46, %cst_28 {dimension_numbers = #tpu.dot_dimension_numbers<[1], [0], [0], [1], [0, 0, 1, 1], [], []>} : vector<256x128xbf16>, vector<128x128xbf16>, vector<256x128xf32> -> vector<256x128xf32>
    %c32_29 = arith.constant 32 : index
    %c0_30 = arith.constant 0 : index
    %48 = vector.load %arg9[%c32_29, %c0_30] : memref<320x128xbf16, #tpu.memory_space<vmem>>, vector<256x128xbf16>
    %c4 = arith.constant 4 : index
    %c0_31 = arith.constant 0 : index
    %c0_32 = arith.constant 0 : index
    %49 = vector.load %arg2[%c4, %c0_31, %c0_32] : memref<9x128x128xbf16, #tpu.memory_space<vmem>>, vector<1x128x128xbf16>
    %50 = vector.shape_cast %49 : vector<1x128x128xbf16> to vector<128x128xbf16>
    %cst_33 = arith.constant dense<0.000000e+00> : vector<256x128xf32>
    %51 = tpu.matmul %48, %50, %cst_33 {dimension_numbers = #tpu.dot_dimension_numbers<[1], [0], [0], [1], [0, 0, 1, 1], [], []>} : vector<256x128xbf16>, vector<128x128xbf16>, vector<256x128xf32> -> vector<256x128xf32>
    %52 = arith.addf %47, %51 : vector<256x128xf32>
    %c48 = arith.constant 48 : index
    %c0_34 = arith.constant 0 : index
    %53 = vector.load %arg9[%c48, %c0_34] : memref<320x128xbf16, #tpu.memory_space<vmem>>, vector<256x128xbf16>
    %c7 = arith.constant 7 : index
    %c0_35 = arith.constant 0 : index
    %c0_36 = arith.constant 0 : index
    %54 = vector.load %arg2[%c7, %c0_35, %c0_36] : memref<9x128x128xbf16, #tpu.memory_space<vmem>>, vector<1x128x128xbf16>
    %55 = vector.shape_cast %54 : vector<1x128x128xbf16> to vector<128x128xbf16>
    %cst_37 = arith.constant dense<0.000000e+00> : vector<256x128xf32>
    %56 = tpu.matmul %53, %55, %cst_37 {dimension_numbers = #tpu.dot_dimension_numbers<[1], [0], [0], [1], [0, 0, 1, 1], [], []>} : vector<256x128xbf16>, vector<128x128xbf16>, vector<256x128xf32> -> vector<256x128xf32>
    %57 = arith.addf %52, %56 : vector<256x128xf32>
    %58 = arith.addf %43, %57 : vector<256x128xf32>
    %c17 = arith.constant 17 : index
    %c0_38 = arith.constant 0 : index
    %59 = vector.load %arg9[%c17, %c0_38] : memref<320x128xbf16, #tpu.memory_space<vmem>>, vector<256x128xbf16>
    %c2 = arith.constant 2 : index
    %c0_39 = arith.constant 0 : index
    %c0_40 = arith.constant 0 : index
    %60 = vector.load %arg2[%c2, %c0_39, %c0_40] : memref<9x128x128xbf16, #tpu.memory_space<vmem>>, vector<1x128x128xbf16>
    %61 = vector.shape_cast %60 : vector<1x128x128xbf16> to vector<128x128xbf16>
    %cst_41 = arith.constant dense<0.000000e+00> : vector<256x128xf32>
    %62 = tpu.matmul %59, %61, %cst_41 {dimension_numbers = #tpu.dot_dimension_numbers<[1], [0], [0], [1], [0, 0, 1, 1], [], []>} : vector<256x128xbf16>, vector<128x128xbf16>, vector<256x128xf32> -> vector<256x128xf32>
    %c33 = arith.constant 33 : index
    %c0_42 = arith.constant 0 : index
    %63 = vector.load %arg9[%c33, %c0_42] : memref<320x128xbf16, #tpu.memory_space<vmem>>, vector<256x128xbf16>
    %c5 = arith.constant 5 : index
    %c0_43 = arith.constant 0 : index
    %c0_44 = arith.constant 0 : index
    %64 = vector.load %arg2[%c5, %c0_43, %c0_44] : memref<9x128x128xbf16, #tpu.memory_space<vmem>>, vector<1x128x128xbf16>
    %65 = vector.shape_cast %64 : vector<1x128x128xbf16> to vector<128x128xbf16>
    %cst_45 = arith.constant dense<0.000000e+00> : vector<256x128xf32>
    %66 = tpu.matmul %63, %65, %cst_45 {dimension_numbers = #tpu.dot_dimension_numbers<[1], [0], [0], [1], [0, 0, 1, 1], [], []>} : vector<256x128xbf16>, vector<128x128xbf16>, vector<256x128xf32> -> vector<256x128xf32>
    %67 = arith.addf %62, %66 : vector<256x128xf32>
    %c49 = arith.constant 49 : index
    %c0_46 = arith.constant 0 : index
    %68 = vector.load %arg9[%c49, %c0_46] : memref<320x128xbf16, #tpu.memory_space<vmem>>, vector<256x128xbf16>
    %c8 = arith.constant 8 : index
    %c0_47 = arith.constant 0 : index
    %c0_48 = arith.constant 0 : index
    %69 = vector.load %arg2[%c8, %c0_47, %c0_48] : memref<9x128x128xbf16, #tpu.memory_space<vmem>>, vector<1x128x128xbf16>
    %70 = vector.shape_cast %69 : vector<1x128x128xbf16> to vector<128x128xbf16>
    %cst_49 = arith.constant dense<0.000000e+00> : vector<256x128xf32>
    %71 = tpu.matmul %68, %70, %cst_49 {dimension_numbers = #tpu.dot_dimension_numbers<[1], [0], [0], [1], [0, 0, 1, 1], [], []>} : vector<256x128xbf16>, vector<128x128xbf16>, vector<256x128xf32> -> vector<256x128xf32>
    %72 = arith.addf %67, %71 : vector<256x128xf32>
    %c15_i32 = arith.constant 15 : i32
    %73 = vector.broadcast %c15_i32 : i32 to vector<256x1xi32>
    %74 = arith.cmpi slt, %16, %73 : vector<256x1xi32>
    %cst_50 = arith.constant 0.000000e+00 : f32
    %75 = vector.shape_cast %74 : vector<256x1xi1> to vector<256x1xi1>
    %76 = vector.broadcast %75 : vector<256x1xi1> to vector<256x128xi1>
    %77 = vector.broadcast %cst_50 : f32 to vector<256x128xf32>
    %78 = arith.select %76, %72, %77 : vector<256x128xi1>, vector<256x128xf32>
    %79 = arith.addf %58, %78 : vector<256x128xf32>
    %c0_51 = arith.constant 0 : index
    %c0_52 = arith.constant 0 : index
    %80 = vector.load %arg3[%c0_51, %c0_52] : memref<1x128xf32, #tpu.memory_space<vmem>>, vector<1x128xf32>
    %81 = vector.shape_cast %80 : vector<1x128xf32> to vector<128xf32>
    %82 = vector.shape_cast %81 : vector<128xf32> to vector<1x128xf32>
    %83 = vector.broadcast %82 : vector<1x128xf32> to vector<256x128xf32>
    %84 = arith.mulf %79, %83 : vector<256x128xf32>
    %c0_53 = arith.constant 0 : index
    %c0_54 = arith.constant 0 : index
    %85 = vector.load %arg4[%c0_53, %c0_54] : memref<1x128xf32, #tpu.memory_space<vmem>>, vector<1x128xf32>
    %86 = vector.shape_cast %85 : vector<1x128xf32> to vector<128xf32>
    %87 = vector.shape_cast %86 : vector<128xf32> to vector<1x128xf32>
    %88 = vector.broadcast %87 : vector<1x128xf32> to vector<256x128xf32>
    %89 = arith.addf %84, %88 : vector<256x128xf32>
    %cst_55 = arith.constant 0.000000e+00 : f32
    %90 = vector.broadcast %cst_55 : f32 to vector<256x128xf32>
    %91 = arith.maximumf %89, %90 : vector<256x128xf32>
    %92 = vector.broadcast %cst_55 : f32 to vector<256x128xf32>
    %93 = arith.subf %89, %92 : vector<256x128xf32>
    %94 = arith.cmpf one, %93, %93 : vector<256x128xf32>
    %95 = vector.broadcast %cst_55 : f32 to vector<256x128xf32>
    %96 = arith.addf %89, %95 : vector<256x128xf32>
    %97 = math.absf %93 : vector<256x128xf32>
    %cst_56 = arith.constant 0.000000e+00 : f32
    %98 = vector.broadcast %cst_56 : f32 to vector<256x128xf32>
    %99 = arith.subf %98, %97 : vector<256x128xf32>
    %100 = math.exp %99 : vector<256x128xf32>
    %101 = math.log1p %100 : vector<256x128xf32>
    %102 = arith.addf %91, %101 : vector<256x128xf32>
    %103 = arith.select %94, %96, %102 : vector<256x128xi1>, vector<256x128xf32>
    %104 = math.tanh %103 : vector<256x128xf32>
    %105 = arith.mulf %89, %104 : vector<256x128xf32>
    %cst_57 = arith.constant 0.000000e+00 : bf16
    %106 = vector.broadcast %cst_57 : bf16 to vector<32x128xbf16>
    %c0_58 = arith.constant 0 : index
    %c0_59 = arith.constant 0 : index
    %107 = vector.load %arg10[%c0_58, %c0_59] : memref<320x128xbf16, #tpu.memory_space<vmem>>, vector<32x128xbf16>
    tpu.vector_store %arg10[%c0_58, %c0_59], %106 {strides = array<i32>} : memref<320x128xbf16, #tpu.memory_space<vmem>>, vector<32x128xbf16>,
    %c288_60 = arith.constant 288 : index
    %c0_61 = arith.constant 0 : index
    %108 = vector.load %arg10[%c288_60, %c0_61] : memref<320x128xbf16, #tpu.memory_space<vmem>>, vector<32x128xbf16>
    tpu.vector_store %arg10[%c288_60, %c0_61], %106 {strides = array<i32>} : memref<320x128xbf16, #tpu.memory_space<vmem>>, vector<32x128xbf16>,
    %109 = arith.truncf %105 : vector<256x128xf32> to vector<256x128xbf16>
    %c32_62 = arith.constant 32 : index
    %c0_63 = arith.constant 0 : index
    %110 = vector.load %arg10[%c32_62, %c0_63] : memref<320x128xbf16, #tpu.memory_space<vmem>>, vector<256x128xbf16>
    tpu.vector_store %arg10[%c32_62, %c0_63], %109 {strides = array<i32>} : memref<320x128xbf16, #tpu.memory_space<vmem>>, vector<256x128xbf16>,
    %c15_64 = arith.constant 15 : index
    %c0_65 = arith.constant 0 : index
    %111 = vector.load %arg10[%c15_64, %c0_65] : memref<320x128xbf16, #tpu.memory_space<vmem>>, vector<256x128xbf16>
    %c0_66 = arith.constant 0 : index
    %c0_67 = arith.constant 0 : index
    %c0_68 = arith.constant 0 : index
    %112 = vector.load %arg5[%c0_66, %c0_67, %c0_68] : memref<9x128x128xbf16, #tpu.memory_space<vmem>>, vector<1x128x128xbf16>
    %113 = vector.shape_cast %112 : vector<1x128x128xbf16> to vector<128x128xbf16>
    %cst_69 = arith.constant dense<0.000000e+00> : vector<256x128xf32>
    %114 = tpu.matmul %111, %113, %cst_69 {dimension_numbers = #tpu.dot_dimension_numbers<[1], [0], [0], [1], [0, 0, 1, 1], [], []>} : vector<256x128xbf16>, vector<128x128xbf16>, vector<256x128xf32> -> vector<256x128xf32>
    %c31_70 = arith.constant 31 : index
    %c0_71 = arith.constant 0 : index
    %115 = vector.load %arg10[%c31_70, %c0_71] : memref<320x128xbf16, #tpu.memory_space<vmem>>, vector<256x128xbf16>
    %c3_72 = arith.constant 3 : index
    %c0_73 = arith.constant 0 : index
    %c0_74 = arith.constant 0 : index
    %116 = vector.load %arg5[%c3_72, %c0_73, %c0_74] : memref<9x128x128xbf16, #tpu.memory_space<vmem>>, vector<1x128x128xbf16>
    %117 = vector.shape_cast %116 : vector<1x128x128xbf16> to vector<128x128xbf16>
    %cst_75 = arith.constant dense<0.000000e+00> : vector<256x128xf32>
    %118 = tpu.matmul %115, %117, %cst_75 {dimension_numbers = #tpu.dot_dimension_numbers<[1], [0], [0], [1], [0, 0, 1, 1], [], []>} : vector<256x128xbf16>, vector<128x128xbf16>, vector<256x128xf32> -> vector<256x128xf32>
    %119 = arith.addf %114, %118 : vector<256x128xf32>
    %c47_76 = arith.constant 47 : index
    %c0_77 = arith.constant 0 : index
    %120 = vector.load %arg10[%c47_76, %c0_77] : memref<320x128xbf16, #tpu.memory_space<vmem>>, vector<256x128xbf16>
    %c6_78 = arith.constant 6 : index
    %c0_79 = arith.constant 0 : index
    %c0_80 = arith.constant 0 : index
    %121 = vector.load %arg5[%c6_78, %c0_79, %c0_80] : memref<9x128x128xbf16, #tpu.memory_space<vmem>>, vector<1x128x128xbf16>
    %122 = vector.shape_cast %121 : vector<1x128x128xbf16> to vector<128x128xbf16>
    %cst_81 = arith.constant dense<0.000000e+00> : vector<256x128xf32>
    %123 = tpu.matmul %120, %122, %cst_81 {dimension_numbers = #tpu.dot_dimension_numbers<[1], [0], [0], [1], [0, 0, 1, 1], [], []>} : vector<256x128xbf16>, vector<128x128xbf16>, vector<256x128xf32> -> vector<256x128xf32>
    %124 = arith.addf %119, %123 : vector<256x128xf32>
    %c0_i32_82 = arith.constant 0 : i32
    %125 = vector.broadcast %c0_i32_82 : i32 to vector<256x1xi32>
    %126 = arith.cmpi sgt, %16, %125 : vector<256x1xi32>
    %cst_83 = arith.constant 0.000000e+00 : f32
    %127 = vector.shape_cast %126 : vector<256x1xi1> to vector<256x1xi1>
    %128 = vector.broadcast %127 : vector<256x1xi1> to vector<256x128xi1>
    %129 = vector.broadcast %cst_83 : f32 to vector<256x128xf32>
    %130 = arith.select %128, %124, %129 : vector<256x128xi1>, vector<256x128xf32>
    %c16_84 = arith.constant 16 : index
    %c0_85 = arith.constant 0 : index
    %131 = vector.load %arg10[%c16_84, %c0_85] : memref<320x128xbf16, #tpu.memory_space<vmem>>, vector<256x128xbf16>
    %c1_86 = arith.constant 1 : index
    %c0_87 = arith.constant 0 : index
    %c0_88 = arith.constant 0 : index
    %132 = vector.load %arg5[%c1_86, %c0_87, %c0_88] : memref<9x128x128xbf16, #tpu.memory_space<vmem>>, vector<1x128x128xbf16>
    %133 = vector.shape_cast %132 : vector<1x128x128xbf16> to vector<128x128xbf16>
    %cst_89 = arith.constant dense<0.000000e+00> : vector<256x128xf32>
    %134 = tpu.matmul %131, %133, %cst_89 {dimension_numbers = #tpu.dot_dimension_numbers<[1], [0], [0], [1], [0, 0, 1, 1], [], []>} : vector<256x128xbf16>, vector<128x128xbf16>, vector<256x128xf32> -> vector<256x128xf32>
    %c32_90 = arith.constant 32 : index
    %c0_91 = arith.constant 0 : index
    %135 = vector.load %arg10[%c32_90, %c0_91] : memref<320x128xbf16, #tpu.memory_space<vmem>>, vector<256x128xbf16>
    %c4_92 = arith.constant 4 : index
    %c0_93 = arith.constant 0 : index
    %c0_94 = arith.constant 0 : index
    %136 = vector.load %arg5[%c4_92, %c0_93, %c0_94] : memref<9x128x128xbf16, #tpu.memory_space<vmem>>, vector<1x128x128xbf16>
    %137 = vector.shape_cast %136 : vector<1x128x128xbf16> to vector<128x128xbf16>
    %cst_95 = arith.constant dense<0.000000e+00> : vector<256x128xf32>
    %138 = tpu.matmul %135, %137, %cst_95 {dimension_numbers = #tpu.dot_dimension_numbers<[1], [0], [0], [1], [0, 0, 1, 1], [], []>} : vector<256x128xbf16>, vector<128x128xbf16>, vector<256x128xf32> -> vector<256x128xf32>
    %139 = arith.addf %134, %138 : vector<256x128xf32>
    %c48_96 = arith.constant 48 : index
    %c0_97 = arith.constant 0 : index
    %140 = vector.load %arg10[%c48_96, %c0_97] : memref<320x128xbf16, #tpu.memory_space<vmem>>, vector<256x128xbf16>
    %c7_98 = arith.constant 7 : index
    %c0_99 = arith.constant 0 : index
    %c0_100 = arith.constant 0 : index
    %141 = vector.load %arg5[%c7_98, %c0_99, %c0_100] : memref<9x128x128xbf16, #tpu.memory_space<vmem>>, vector<1x128x128xbf16>
    %142 = vector.shape_cast %141 : vector<1x128x128xbf16> to vector<128x128xbf16>
    %cst_101 = arith.constant dense<0.000000e+00> : vector<256x128xf32>
    %143 = tpu.matmul %140, %142, %cst_101 {dimension_numbers = #tpu.dot_dimension_numbers<[1], [0], [0], [1], [0, 0, 1, 1], [], []>} : vector<256x128xbf16>, vector<128x128xbf16>, vector<256x128xf32> -> vector<256x128xf32>
    %144 = arith.addf %139, %143 : vector<256x128xf32>
    %145 = arith.addf %130, %144 : vector<256x128xf32>
    %c17_102 = arith.constant 17 : index
    %c0_103 = arith.constant 0 : index
    %146 = vector.load %arg10[%c17_102, %c0_103] : memref<320x128xbf16, #tpu.memory_space<vmem>>, vector<256x128xbf16>
    %c2_104 = arith.constant 2 : index
    %c0_105 = arith.constant 0 : index
    %c0_106 = arith.constant 0 : index
    %147 = vector.load %arg5[%c2_104, %c0_105, %c0_106] : memref<9x128x128xbf16, #tpu.memory_space<vmem>>, vector<1x128x128xbf16>
    %148 = vector.shape_cast %147 : vector<1x128x128xbf16> to vector<128x128xbf16>
    %cst_107 = arith.constant dense<0.000000e+00> : vector<256x128xf32>
    %149 = tpu.matmul %146, %148, %cst_107 {dimension_numbers = #tpu.dot_dimension_numbers<[1], [0], [0], [1], [0, 0, 1, 1], [], []>} : vector<256x128xbf16>, vector<128x128xbf16>, vector<256x128xf32> -> vector<256x128xf32>
    %c33_108 = arith.constant 33 : index
    %c0_109 = arith.constant 0 : index
    %150 = vector.load %arg10[%c33_108, %c0_109] : memref<320x128xbf16, #tpu.memory_space<vmem>>, vector<256x128xbf16>
    %c5_110 = arith.constant 5 : index
    %c0_111 = arith.constant 0 : index
    %c0_112 = arith.constant 0 : index
    %151 = vector.load %arg5[%c5_110, %c0_111, %c0_112] : memref<9x128x128xbf16, #tpu.memory_space<vmem>>, vector<1x128x128xbf16>
    %152 = vector.shape_cast %151 : vector<1x128x128xbf16> to vector<128x128xbf16>
    %cst_113 = arith.constant dense<0.000000e+00> : vector<256x128xf32>
    %153 = tpu.matmul %150, %152, %cst_113 {dimension_numbers = #tpu.dot_dimension_numbers<[1], [0], [0], [1], [0, 0, 1, 1], [], []>} : vector<256x128xbf16>, vector<128x128xbf16>, vector<256x128xf32> -> vector<256x128xf32>
    %154 = arith.addf %149, %153 : vector<256x128xf32>
    %c49_114 = arith.constant 49 : index
    %c0_115 = arith.constant 0 : index
    %155 = vector.load %arg10[%c49_114, %c0_115] : memref<320x128xbf16, #tpu.memory_space<vmem>>, vector<256x128xbf16>
    %c8_116 = arith.constant 8 : index
    %c0_117 = arith.constant 0 : index
    %c0_118 = arith.constant 0 : index
    %156 = vector.load %arg5[%c8_116, %c0_117, %c0_118] : memref<9x128x128xbf16, #tpu.memory_space<vmem>>, vector<1x128x128xbf16>
    %157 = vector.shape_cast %156 : vector<1x128x128xbf16> to vector<128x128xbf16>
    %cst_119 = arith.constant dense<0.000000e+00> : vector<256x128xf32>
    %158 = tpu.matmul %155, %157, %cst_119 {dimension_numbers = #tpu.dot_dimension_numbers<[1], [0], [0], [1], [0, 0, 1, 1], [], []>} : vector<256x128xbf16>, vector<128x128xbf16>, vector<256x128xf32> -> vector<256x128xf32>
    %159 = arith.addf %154, %158 : vector<256x128xf32>
    %c15_i32_120 = arith.constant 15 : i32
    %160 = vector.broadcast %c15_i32_120 : i32 to vector<256x1xi32>
    %161 = arith.cmpi slt, %16, %160 : vector<256x1xi32>
    %cst_121 = arith.constant 0.000000e+00 : f32
    %162 = vector.shape_cast %161 : vector<256x1xi1> to vector<256x1xi1>
    %163 = vector.broadcast %162 : vector<256x1xi1> to vector<256x128xi1>
    %164 = vector.broadcast %cst_121 : f32 to vector<256x128xf32>
    %165 = arith.select %163, %159, %164 : vector<256x128xi1>, vector<256x128xf32>
    %166 = arith.addf %145, %165 : vector<256x128xf32>
    %c0_122 = arith.constant 0 : index
    %c0_123 = arith.constant 0 : index
    %167 = vector.load %arg6[%c0_122, %c0_123] : memref<1x128xf32, #tpu.memory_space<vmem>>, vector<1x128xf32>
    %168 = vector.shape_cast %167 : vector<1x128xf32> to vector<128xf32>
    %169 = vector.shape_cast %168 : vector<128xf32> to vector<1x128xf32>
    %170 = vector.broadcast %169 : vector<1x128xf32> to vector<256x128xf32>
    %171 = arith.mulf %166, %170 : vector<256x128xf32>
    %c0_124 = arith.constant 0 : index
    %c0_125 = arith.constant 0 : index
    %172 = vector.load %arg7[%c0_124, %c0_125] : memref<1x128xf32, #tpu.memory_space<vmem>>, vector<1x128xf32>
    %173 = vector.shape_cast %172 : vector<1x128xf32> to vector<128xf32>
    %174 = vector.shape_cast %173 : vector<128xf32> to vector<1x128xf32>
    %175 = vector.broadcast %174 : vector<1x128xf32> to vector<256x128xf32>
    %176 = arith.addf %171, %175 : vector<256x128xf32>
    %cst_126 = arith.constant 0.000000e+00 : f32
    %177 = vector.broadcast %cst_126 : f32 to vector<256x128xf32>
    %178 = arith.maximumf %176, %177 : vector<256x128xf32>
    %179 = vector.broadcast %cst_126 : f32 to vector<256x128xf32>
    %180 = arith.subf %176, %179 : vector<256x128xf32>
    %181 = arith.cmpf one, %180, %180 : vector<256x128xf32>
    %182 = vector.broadcast %cst_126 : f32 to vector<256x128xf32>
    %183 = arith.addf %176, %182 : vector<256x128xf32>
    %184 = math.absf %180 : vector<256x128xf32>
    %cst_127 = arith.constant 0.000000e+00 : f32
    %185 = vector.broadcast %cst_127 : f32 to vector<256x128xf32>
    %186 = arith.subf %185, %184 : vector<256x128xf32>
    %187 = math.exp %186 : vector<256x128xf32>
    %188 = math.log1p %187 : vector<256x128xf32>
    %189 = arith.addf %178, %188 : vector<256x128xf32>
    %190 = arith.select %181, %183, %189 : vector<256x128xi1>, vector<256x128xf32>
    %191 = math.tanh %190 : vector<256x128xf32>
    %192 = arith.mulf %176, %191 : vector<256x128xf32>
    %193 = vector.extract_strided_slice %192 {offsets = [0, 0], sizes = [256, 8], strides = [1, 1]} : vector<256x128xf32> to vector<256x8xf32>
    %194 = vector.shape_cast %193 : vector<256x8xf32> to vector<1x16x16x8xf32>
    %c0_128 = arith.constant 0 : index
    %c0_129 = arith.constant 0 : index
    %c0_130 = arith.constant 0 : index
    %c0_131 = arith.constant 0 : index
    %195 = vector.load %arg8[%c0_128, %c0_129, %c0_130, %c0_131] : memref<1x16x16x8xf32, #tpu.memory_space<vmem>>, vector<1x16x16x8xf32>
    tpu.vector_store %arg8[%c0_128, %c0_129, %c0_130, %c0_131], %194 {strides = array<i32>} : memref<1x16x16x8xf32, #tpu.memory_space<vmem>>, vector<1x16x16x8xf32>,
    return
  }
  func.func @transform_0(%arg0: i32) -> (i32, i32, i32, i32) {
    %c0_i32 = arith.constant 0 : i32
    %c0_i32_0 = arith.constant 0 : i32
    %c0_i32_1 = arith.constant 0 : i32
    %c0_i32_2 = arith.constant 0 : i32
    return %arg0, %c0_i32, %c0_i32_0, %c0_i32_1 : i32, i32, i32, i32
  }
  func.func @transform_1(%arg0: i32) -> (i32, i32, i32) {
    %c0_i32 = arith.constant 0 : i32
    %c0_i32_0 = arith.constant 0 : i32
    %c0_i32_1 = arith.constant 0 : i32
    %c0_i32_2 = arith.constant 0 : i32
    return %c0_i32, %c0_i32_0, %c0_i32_1 : i32, i32, i32
  }
  func.func @transform_2(%arg0: i32) -> (i32, i32) {
    %c0_i32 = arith.constant 0 : i32
    %c0_i32_0 = arith.constant 0 : i32
    %c0_i32_1 = arith.constant 0 : i32
    return %c0_i32, %c0_i32_0 : i32, i32
  }
  func.func @transform_3(%arg0: i32) -> (i32, i32) {
    %c0_i32 = arith.constant 0 : i32
    %c0_i32_0 = arith.constant 0 : i32
    %c0_i32_1 = arith.constant 0 : i32
    return %c0_i32, %c0_i32_0 : i32, i32
  }
  func.func @transform_4(%arg0: i32) -> (i32, i32, i32) {
    %c0_i32 = arith.constant 0 : i32
    %c0_i32_0 = arith.constant 0 : i32
    %c0_i32_1 = arith.constant 0 : i32
    %c0_i32_2 = arith.constant 0 : i32
    return %c0_i32, %c0_i32_0, %c0_i32_1 : i32, i32, i32
  }
  func.func @transform_5(%arg0: i32) -> (i32, i32) {
    %c0_i32 = arith.constant 0 : i32
    %c0_i32_0 = arith.constant 0 : i32
    %c0_i32_1 = arith.constant 0 : i32
    return %c0_i32, %c0_i32_0 : i32, i32
  }
  func.func @transform_6(%arg0: i32) -> (i32, i32) {
    %c0_i32 = arith.constant 0 : i32
    %c0_i32_0 = arith.constant 0 : i32
    %c0_i32_1 = arith.constant 0 : i32
    return %c0_i32, %c0_i32_0 : i32, i32
  }
  func.func @transform_7(%arg0: i32) -> (i32, i32, i32, i32) {
    %c0_i32 = arith.constant 0 : i32
    %c0_i32_0 = arith.constant 0 : i32
    %c0_i32_1 = arith.constant 0 : i32
    %c0_i32_2 = arith.constant 0 : i32
    return %arg0, %c0_i32, %c0_i32_0, %c0_i32_1 : i32, i32, i32, i32
  }
}

</mosaic_0001>

<bundles_post_ra>
// kernel: tpu_custom_call.1
= control target key start
LH: loop header
LB: loop body
LE: loop exit
PB: predicated region body
PF: predicated region fallthrough
CT: control target
= control target key end

     0   :  { %12 = vsyncpa [#allocation5], 0  ;;  %s13412_s0 = inlined_call_operand.hbm [shape: bf16[2,16,16,128], index: 0, kind: input, shape index: {}]   ;;  %s13413_s1 = inlined_call_operand.hbm [shape: bf16[9,128,128], index: 1, kind: input, shape index: {}]   ;;  %s13414_s2 = inlined_call_operand.vmem [shape: f32[1,128], index: 2, kind: input, shape index: {}]   ;;  %s13415_s3 = inlined_call_operand.vmem [shape: f32[1,128], index: 3, kind: input, shape index: {}]   ;;  %s13416_s4 = inlined_call_operand.hbm [shape: bf16[9,128,128], index: 4, kind: input, shape index: {}]   ;;  %s13417_s5 = inlined_call_operand.vmem [shape: f32[1,128], index: 5, kind: input, shape index: {}]   ;;  %s13418_s6 = inlined_call_operand.vmem [shape: f32[1,128], index: 6, kind: input, shape index: {}]   ;;  %s13419_s7 = inlined_call_operand.vmem [shape: f32[2,16,16,8], index: 7, kind: output, shape index: {}]  }
   0x1   :  { %14 = vsyncpa [#allocation5 + $0x1], 0 }
   0x2   :  { %15 = vsyncpa [#allocation7], 0  ;;  %s10897_s24 = smov 0   ;;  %s10899_s25 = smov 0  }
   0x3   :  { %s10901_s26 = smov 0   ;;  %s10903_s27 = smov 0  }
   0x4 LB: > { %s10916_s28 = sadd.s32 4294967295, %s10850_s27   ;;  %p41_p0 = scmp.ne.s32.totalorder %s10842_s25, %s10838_s24  ;;  %s10850_s27 = sphi %s10903_s27, %s13817_s27   ;;  %s10846_s26 = sphi %s10901_s26, %s13816_s26   ;;  %s10842_s25 = sphi %s10899_s25, %s13815_s25   ;;  %s10838_s24 = sphi %s10897_s24, %s13814_s24  }
   0x5   : > { %p42_p1 = scmp.eq.s32.totalorder %s10916_s28, 0  ;;  %p8312_p2 = scmp.ge.s32.totalorder %s10850_s27, 1 }
   0x6   : > { %p204_p3 = scmp.lt.s32.totalorder %s10850_s27, 3  ;;  %s215_s9 = sshll.u32 %s13413_s1, 4  ;;  %s216_s9 = int_to_ptr.hbm [resolvable:$true] %s215_s9 }
   0x7   : > { %p10924_p4 = por %p42_p1, %p41_p0  ;;  %s10852_s11 = smov [#allocation6]  }
   0x8   : > { %p10931_p5 = pnand %p8312_p2, %p204_p3  ;;  %s217_s12 = sshll.u32 %s10852_s11, 4  ;;  %s218_s12 = int_to_ptr.vmem [resolvable:$true] %s217_s12 }
   0x9   : > { %s235_s15 = sshll.u32 %s13416_s4, 4  ;;  %s10853_s16 = smov 64   ;;  %s236_s15 = int_to_ptr.hbm [resolvable:$true] %s235_s15 }
   0xa   : > { %p10257_p6 = pneg %p10931_p5  ;;  %s10854_s17 = smov 4  }
   0xb   : > { %s10855_s18 = smov [#allocation8]   ;;  %s10949_s20 = sadd.s32 1, %s10850_s27  }
   0xc   : > { %p10258_p7 = pnand %p10257_p6, %p42_p1  ;;  %s237_s19 = sshll.u32 %s10855_s18, 4  ;;  %s238_s19 = int_to_ptr.vmem [resolvable:$true] %s237_s19 }
   0xd   : > { %s28_s21 = sadd.s32 1, %s10846_s26  ;;  %s25_s22 = ssub.s32 %s10850_s27, %s10949_s20 }
   0xe   : > { %10260 = dma.hbm_to_vmem [thread:$0]  (!%p10258_p7), %s216_s9, 9216, %s218_s12, [#allocation7], %s10853_s16, %s10853_s16, %s10854_s17  }
   0xf   : > { %10263 = dma.hbm_to_vmem [thread:$0]  (!%p10258_p7), %s236_s15, 9216, %s238_s19, [#allocation7], %s10853_s16, %s10853_s16, %s10854_s17  }
  0x10   : > { %p35_p8 = scmp.ne.s32.totalorder %s10846_s26, %s10842_s25  ;;  %p26_p9 = scmp.eq.s32.totalorder %s25_s22, 0 }
  0x11   : > { %p36_p10 = scmp.eq.s32.totalorder %s10850_s27, 0  ;;  %s257_s23 = sand.u32 1, %s10846_s26  }
  0x12   : > { %s10959_s24 = scalar_select %p26_p9, %s10846_s26, %s28_s21  }
  0x13   : > { %p37_p11 = por %p36_p10, %p35_p8  ;;  %p10270_p12 = scmp.lt.s32.totalorder %s10850_s27, 2 }
  0x14   : > { %s8316_s30 = sshll.u32 %s257_s23, 7  ;;  %s9167_s8 = sshll.u32 %s10850_s27, 7 }
  0x15   : > { %s266_s12 = scalar_lea.hbm %s13412_s0, %s9167_s8  ;;  %s261_s14 = scalar_lea.vmem [#allocation4], %s8316_s30 }
  0x16   : > { %s267_s13 = sshll.u32 %s266_s12, 4  ;;  %s269_s15 = sshll.u32 %s261_s14, 4  ;;  %s268_s13 = int_to_ptr.hbm [resolvable:$true] %s267_s13  ;;  %s270_s15 = int_to_ptr.vmem [resolvable:$true] %s269_s15 }
  0x17   : > { %p10966_p13 = pnand %p10270_p12, %p37_p11  ;;  %s258_s19 = scalar_lea.sflag [#allocation5], %s257_s23 }
  0x18   : > { %s10782_s21 = sshra.s32 %s268_s13, 4  ;;  %s10789_s30 = scalar_lea.hbm %s13412_s0, 256  ;;  %s10783_s21 = int_to_ptr.hbm [resolvable:$true] %s10782_s21 }
  0x19   : > { %s10784_s22 = scalar_lea.hbm %s10783_s21, 128  ;;  %p10786_p2 = pneg %p10966_p13 }
  0x1a   : > { %p10785_p0 = scmp.ne.s32.totalorder %s10783_s21, %s10784_s22  ;;  %p10790_p7 = scmp.lt.s32.totalorder %s10783_s21, %s13412_s0 }
  0x1b   : > { %p10791_p8 = scmp.lt.s32.totalorder %s10789_s30, %s10784_s22 }
  0x1c   : > { %p10787_p3 = pnand %p10786_p2, %p10785_p0 }
  0x1d   : > { %p10792_p9 = por %p10791_p8, %p10790_p7 }
  0x1e   : > { %p10788_p6 = pneg %p10787_p3 }
  0x20   : > { %p10793_p10 = pnand %p10792_p9, %p10788_p6 }
  0x22   : > { %10796 = shalt.err (!%p10793_p10)
}
  0x23   : > { %10267 = dma.hbm_to_vmem [thread:$0]  (!%p10966_p13), %s268_s13, 2048, %s270_s15, %s258_s19, %s10853_s16, %s10853_s16, %s10854_s17  }
  0x24   : > { %281 = sbr.rel (%p10931_p5) target bundleno = 1744 (0x6d0), region = 48 }
  0x29   : > { %s283_s23 = sand.u32 1, %s10842_s25  }
  0x2a   : > { %s8320_s12 = sshll.u32 %s283_s23, 7  ;;  %s284_s14 = scalar_lea.sflag [#allocation5], %s283_s23 }
  0x2b   : > { %s10986_s27 = scalar_lea.vmem [#allocation4], %s8320_s12 }
  0x2c   : > { %10829 = dma.done.wait (%p10924_p4), %s284_s14, 2048  }
  0x2d   : > { %10831 = vsyncadd (%p10924_p4), %s284_s14, 4294965248 }
  0x2e   : > { %10833 = dma.done.wait (%p42_p1), [#allocation7], 18432  }
  0x2f   : > { %10835 = vsyncadd (%p42_p1), [#allocation7], 4294948864  ;;  %v10856_v0 = vmov 0   ;;  %v9184_v1 = vld [vmem:[#allocation6 + $0xf8] sm:$0xff]  ;;  %v9183_v3 = vld [vmem:[#allocation6 + $0xf0] sm:$0xff]  ;;  %p329_p1 = scmp.lt.s32.totalorder %s10916_s28, 1 }
  0x30   : > { %787 = vst [vmem:[#allocation2 + $0xc] sm:$0xf] %v10856_v0  ;;  %v9176_v2 = vld [vmem:[#allocation6 + $0x38] sm:$0xff]  ;;  %1193 = vmatpush.bf16.msra.mxu0 %v9184_v1  ;;  %10111 = vmatpush.bf16.msra.mxu2 %v9184_v1  ;;  %v9175_v4 = vld [vmem:[#allocation6 + $0x30] sm:$0xff]  ;;  %v752_v5 = vld [vmem:[%s10986_s27] sm:$0xff]  }
  0x31   : > { %785 = vst [vmem:[#allocation2 + $0x4] sm:$0xf] %v10856_v0  ;;  %1369 = vmatpush.bf16.msra.mxu1 %v9176_v2  ;;  %10119 = vmatpush.bf16.msra.mxu3 %v9176_v2  ;;  %v754_v6 = vld [vmem:[%s10986_s27 + $0x8] sm:$0xff]   ;;  %v9181_v9 = vld [vmem:[#allocation6 + $0xe0] sm:$0xff]  ;;  %v765_v17 = vld [vmem:[%s10986_s27 + $0x34] sm:$0xff]   ;;  %s13819_s28 = smov (!%p329_p1, %s10916_s28), 1 }
  0x32   : > { %786 = vst [vmem:[#allocation2 + $0x8] sm:$0xf] %v10856_v0  ;;  %v9182_v7 = vld [vmem:[#allocation6 + $0xe8] sm:$0xff]  ;;  %v9173_v12 = vld [vmem:[#allocation6 + $0x20] sm:$0xff]  ;;  %v756_v21 = vld [vmem:[%s10986_s27 + $0x10] sm:$0xff]   ;;  %s9168_s14 = sshll.u32 %s13819_s28, 8 }
  0x33   : > { %788 = vst [vmem:[#allocation2 + $0x90] sm:$0xf] %v10856_v0  ;;  %v9174_v8 = vld [vmem:[#allocation6 + $0x28] sm:$0xff]  ;;  %v767_v14 = vld [vmem:[%s10986_s27 + $0x3c] sm:$0xff]   ;;  %v773_v35 = vld [vmem:[%s10986_s27 + $0x54] sm:$0xff]   ;;  %s12862_s10 = scalar_lea.vmem %s13419_s7, %s9168_s14 }
  0x34   : > { %789 = vst [vmem:[#allocation2 + $0x94] sm:$0xf] %v10856_v0  ;;  %1194 = vmatpush.bf16.msra.mxu0 %v9183_v3  ;;  %10112 = vmatpush.bf16.msra.mxu2 %v9183_v3  ;;  %v769_v16 = vld [vmem:[%s10986_s27 + $0x44] sm:$0xff]   ;;  %v771_v23 = vld [vmem:[%s10986_s27 + $0x4c] sm:$0xff]   ;;  %v9180_v24 = vld [vmem:[#allocation6 + $0xd8] sm:$0xff] }
  0x35   : > { %790 = vst [vmem:[#allocation2 + $0x98] sm:$0xf] %v10856_v0  ;;  %1370 = vmatpush.bf16.msra.mxu1 %v9175_v4  ;;  %10120 = vmatpush.bf16.msra.mxu3 %v9175_v4  ;;  %v9172_v27 = vld [vmem:[#allocation6 + $0x18] sm:$0xff]  ;;  %v9179_v36 = vld [vmem:[#allocation6 + $0xd0] sm:$0xff]  ;;  %v9178_v52 = vld [vmem:[#allocation6 + $0xc8] sm:$0xff] }
  0x36   : > { %4570 = vst [vmem:[#allocation3 + $0x4] sm:$0xf] %v10856_v0  ;;  %v758_v34 = vld [vmem:[%s10986_s27 + $0x18] sm:$0xff]   ;;  %v9171_v39 = vld [vmem:[#allocation6 + $0x10] sm:$0xff]  ;;  %v9170_v57 = vld [vmem:[#allocation6 + $0x8] sm:$0xff] }
  0x37   : > { %4571 = vst [vmem:[#allocation3 + $0x8] sm:$0xf] %v10856_v0  ;;  %v873_v13 = vld [vmem:[#allocation2 + $0xc] sm:$0x8]  ;;  %v9177_v3 = vld [vmem:[#allocation6 + $0xc0] sm:$0xff] }
  0x38   : > { %792 = vst [vmem:[#allocation2 + $0x10] sm:$0xff] %v752_v5   ;;  %v9877_v10 = vld [vmem:[#allocation2 + $0x4] sm:$0x8]  ;;  %1195 = vmatpush.bf16.msra.mxu0 %v9182_v7  ;;  %10113 = vmatpush.bf16.msra.mxu2 %v9182_v7  ;;  %v926_v19 = vunpack.c.l.b16 %v873_v13  ;;  %vm13431_vm0 = vsmask.f32 4352  ;;  %v9208_v13 = vld [vmem:[#allocation6 + $0x138] sm:$0xff] }
  0x39   : > { %794 = vst [vmem:[#allocation2 + $0x18] sm:$0xff] %v754_v6   ;;  %v10127_v11 = vld [vmem:[#allocation2 + $0x4] sm:$0xf0]   ;;  %1371 = vmatpush.bf16.msra.mxu1 %v9174_v8  ;;  %10121 = vmatpush.bf16.msra.mxu3 %v9174_v8  ;;  %v9169_v8 = vld [vmem:[#allocation6] sm:$0xff]  ;;  %vm13442_vm9 = vsmask.f32 7424 }
  0x3a   : > { %4572 = vst [vmem:[#allocation3 + $0xc] sm:$0xf] %v10856_v0  ;;  %v10999_v15 = vld [vmem:[#allocation2 + $0x8] sm:$0xff]   ;;  %v9878_v18 = vor.u32 %v10127_v11, %v9877_v10 }
  0x3b   : > { %4573 = vst [vmem:[#allocation3 + $0x90] sm:$0xf] %v10856_v0  ;;  %v9382_v20 = vunpack.c.h.b16 %v10999_v15 }
  0x3c   : > { %4574 = vst [vmem:[#allocation3 + $0x94] sm:$0xf] %v10856_v0  ;;  %1196 = vmatpush.bf16.msra.mxu0 %v9181_v9  ;;  %10114 = vmatpush.bf16.msra.mxu2 %v9181_v9  ;;  %v1292_v28 = vshrl.u32 %v9878_v18, 16  ;;  %v1295_v32 = vshll.u32 %v9878_v18, 16 }
  0x3d   : > { %4575 = vst [vmem:[#allocation3 + $0x98] sm:$0xf] %v10856_v0  ;;  %1372 = vmatpush.bf16.msra.mxu1 %v9173_v12  ;;  %10122 = vmatpush.bf16.msra.mxu3 %v9173_v12  ;;  %v9192_v12 = vld [vmem:[#allocation6 + $0x1b8] sm:$0xff] }
  0x3e   : > { %807 = vst [vmem:[#allocation2 + $0x4c] sm:$0xff] %v767_v14   ;;  %v1294_v45 = vrot.slane %v1292_v28, 3  ;;  %v1297_v46 = vrot.slane %v1295_v32, 4  ;;  %v9190_v32 = vld [vmem:[#allocation6 + $0x1a8] sm:$0xff] }
  0x3f   : > { %v11005_v22 = vld [vmem:[#allocation2 + $0x10] sm:$0xff]   ;;  %809 = vst [vmem:[#allocation2 + $0x54] sm:$0xff] %v769_v16  }
  0x40   : > { %v9385_v25 = vunpack.c.l.b16 %v11005_v22  ;;  %v10130_v26 = vld [vmem:[#allocation2 + $0x14] sm:$0xff]   ;;  %805 = vst [vmem:[#allocation2 + $0x44] sm:$0xff] %v765_v17   ;;  %1197 = vmatpush.bf16.msra.mxu0 %v9180_v24  ;;  %10115 = vmatpush.bf16.msra.mxu2 %v9180_v24  ;;  %v1298_v9 = vor.u32 %v1297_v46, %v1294_v45 }
  0x41   : > { %796 = vst [vmem:[#allocation2 + $0x20] sm:$0xff] %v756_v21   ;;  %v986_v30 = vshrl.u32 %v10130_v26, 16  ;;  %v989_v33 = vshll.u32 %v10130_v26, 16  ;;  %1373 = vmatpush.bf16.msra.mxu1 %v9172_v27  ;;  %10123 = vmatpush.bf16.msra.mxu3 %v9172_v27  ;;  %v9200_v21 = vld [vmem:[#allocation6 + $0x78] sm:$0xff]  ;;  %v9207_v24 = vld [vmem:[#allocation6 + $0x130] sm:$0xff] }
  0x42   : > { %v959_v29 = vpack.c.b16 %v9385_v25, %v926_v19  ;;  %v1289_v31 = vpack.c.b16 %v9385_v25, %v9382_v20  ;;  %811 = vst [vmem:[#allocation2 + $0x5c] sm:$0xff] %v771_v23   ;;  %v9191_v23 = vld [vmem:[#allocation6 + $0x1b0] sm:$0xff]  ;;  %v760_v25 = vld [vmem:[%s10986_s27 + $0x20] sm:$0xff]  }
  0x43   : > { %798 = vst [vmem:[#allocation2 + $0x28] sm:$0xff] %v758_v34   ;;  %v988_v43 = vrot.slane %v986_v30, 3  ;;  %v991_v48 = vrot.slane %v989_v33, 4  ;;  %v775_v26 = vld [vmem:[%s10986_s27 + $0x5c] sm:$0xff]   ;;  %v9206_v33 = vld [vmem:[#allocation6 + $0x128] sm:$0xff] }
  0x44   : > { %v978_v37 = vshrl.u32 %v959_v29, 16  ;;  %v981_v38 = vshll.u32 %v959_v29, 16  ;;  %v1300_v41 = vshrl.u32 %v1289_v31, 16  ;;  %v1303_v42 = vshll.u32 %v1289_v31, 16  ;;  %813 = vst [vmem:[#allocation2 + $0x64] sm:$0xff] %v773_v35   ;;  %1198 = vmatpush.bf16.msra.mxu0 %v9179_v36  ;;  %10116 = vmatpush.bf16.msra.mxu2 %v9179_v36  ;;  %v9199_v31 = vld [vmem:[#allocation6 + $0x70] sm:$0xff] }
  0x45   : > { %v10144_v40 = vld [vmem:[#allocation2 + $0x4c] sm:$0xff]   ;;  %1374 = vmatpush.bf16.msra.mxu1 %v9171_v39  ;;  %10124 = vmatpush.bf16.msra.mxu3 %v9171_v39  ;;  %v11011_v1 = vor.u32 %v991_v48, %v988_v43  ;;  %800 = vst [vmem:[#allocation2 + $0x30] sm:$0xff] %v760_v25   ;;  %v783_v25 = vld [vmem:[%s10986_s27 + $0x7c] sm:$0xf] }
  0x46   : > { %v10146_v44 = vld [vmem:[#allocation2 + $0x54] sm:$0xff]   ;;  %v980_v47 = vrot.slane %v978_v37, 3  ;;  %v1049_v49 = vshrl.u32 %v10144_v40, 16  ;;  %v1052_v50 = vshll.u32 %v10144_v40, 16  ;;  %v983_v53 = vrot.slane %v981_v38, 4  ;;  %815 = vst [vmem:[#allocation2 + $0x6c] sm:$0xff] %v775_v26  }
  0x47   : > { %v10142_v51 = vld [vmem:[#allocation2 + $0x44] sm:$0xff]   ;;  %v1058_v54 = vshrl.u32 %v10146_v44, 16  ;;  %v1061_v55 = vshll.u32 %v10146_v44, 16  ;;  %v1302_v56 = vrot.slane %v1300_v41, 3  ;;  %v1305_v60 = vrot.slane %v1303_v42, 4 }
  0x48   : > { %v1051_v58 = vrot.slane %v1049_v49, 3  ;;  %v1054_v59 = vrot.slane %v1052_v50, 4  ;;  %v1040_v61 = vshrl.u32 %v10142_v51, 16  ;;  %v1043_v0 = vshll.u32 %v10142_v51, 16  ;;  %1199 = vmatpush.bf16.msra.mxu0 %v9178_v52  ;;  %10117 = vmatpush.bf16.msra.mxu2 %v9178_v52  ;;  %v10132_v17 = vld [vmem:[#allocation2 + $0x1c] sm:$0xff]   ;;  %v9198_v38 = vld [vmem:[#allocation6 + $0x68] sm:$0xff] }
  0x49   : > { %v1060_v62 = vrot.slane %v1058_v54, 3  ;;  %v1063_v63 = vrot.slane %v1061_v55, 4  ;;  %v984_v4 = vor.u32 %v983_v53, %v980_v47  ;;  %1375 = vmatpush.bf16.msra.mxu1 %v9170_v57  ;;  %10125 = vmatpush.bf16.msra.mxu3 %v9170_v57  ;;  %v1306_v10 = vor.u32 %v1305_v60, %v1302_v56  ;;  %v10148_v18 = vld [vmem:[#allocation2 + $0x5c] sm:$0xff]   ;;  %v762_v48 = vld [vmem:[%s10986_s27 + $0x28] sm:$0xff]   ;;  %823 = vst [vmem:[#allocation2 + $0x8c] sm:$0xf] %v783_v25 }
  0x4a   : > { %v1042_v2 = vrot.slane %v1040_v61, 3  ;;  %v1055_v5 = vor.u32 %v1054_v59, %v1051_v58  ;;  %v1045_v7 = vrot.slane %v1043_v0, 4  ;;  %v995_v27 = vshrl.u32 %v10132_v17, 16  ;;  %v10134_v41 = vld [vmem:[#allocation2 + $0x24] sm:$0xff]   ;;  %802 = vst [vmem:[#allocation2 + $0x38] sm:$0xff] %v762_v48   ;;  %v9249_v25 = vld [vmem:[#allocation6 + $0x178] sm:$0xff] }
  0x4b   : > { %v1064_v6 = vor.u32 %v1063_v63, %v1060_v62  ;;  %v993_v14 = vsel %vm13431_vm0, %v984_v4, %v11011_v1  ;;  %v1307_v19 = vsel %vm13431_vm0, %v1298_v9, %v1306_v10  ;;  %v998_v28 = vshll.u32 %v10132_v17, 16  ;;  %v10150_v44 = vld [vmem:[#allocation2 + $0x64] sm:$0xff]   ;;  %v764_v4 = vld [vmem:[%s10986_s27 + $0x30] sm:$0xf]  ;;  %v9196_v9 = vld [vmem:[#allocation6 + $0x58] sm:$0xff] }
  0x4c   : > { %v11013_v11 = vor.u32 %v1045_v7, %v1042_v2  ;;  %1200 = vmatpush.bf16.msra.mxu0 %v9177_v3  ;;  %10118 = vmatpush.bf16.msra.mxu2 %v9177_v3  ;;  %v1067_v29 = vshrl.u32 %v10148_v18, 16  ;;  %v1070_v30 = vshll.u32 %v10148_v18, 16  ;;  %v997_v34 = vrot.slane %v995_v27, 3  ;;  %v777_v49 = vld [vmem:[%s10986_s27 + $0x64] sm:$0xff]   ;;  %v10136_v61 = vld [vmem:[#allocation2 + $0x2c] sm:$0xff]   ;;  %v9188_v7 = vld [vmem:[#allocation6 + $0x198] sm:$0xff] }
  0x4d   : > { %v1065_v16 = vsel %vm13431_vm0, %v1055_v5, %v1064_v6  ;;  %1376 = vmatpush.bf16.msra.mxu1 %v9169_v8  ;;  %10126 = vmatpush.bf16.msra.mxu3 %v9169_v8  ;;  %v1000_v35 = vrot.slane %v998_v28, 4  ;;  %v1308_v45 = vsel %vm13431_vm0, %v1306_v10, %v11011_v1  ;;  %v1004_v46 = vshrl.u32 %v10134_v41, 16  ;;  %v9189_v52 = vld [vmem:[#allocation6 + $0x1a0] sm:$0xff]  ;;  %817 = vst [vmem:[#allocation2 + $0x74] sm:$0xff] %v777_v49   ;;  %v10152_v62 = vld [vmem:[#allocation2 + $0x6c] sm:$0xff]   ;;  %v9204_v8 = vld [vmem:[#allocation6 + $0x118] sm:$0xff] }
  0x4e   : > { %v11021_v20 = vsel %vm13431_vm0, %v11013_v11, %v1055_v5  ;;  %v1069_v36 = vrot.slane %v1067_v29, 3  ;;  %v1072_v37 = vrot.slane %v1070_v30, 4  ;;  %v1007_v47 = vshll.u32 %v10134_v41, 16  ;;  %v9205_v53 = vld [vmem:[#allocation6 + $0x120] sm:$0xff]  ;;  %v779_v5 = vld [vmem:[%s10986_s27 + $0x6c] sm:$0xff]  }
  0x4f   : > { %1201 = vmatmul.bf16.vlgmr.msra.gmra.mxu0 %v993_v14  ;;  %1241 = vmatmul.bf16.vlgmr.msra.gmra.mxu2 %v1065_v16  ;;  %v1001_v39 = vor.u32 %v1000_v35, %v997_v34  ;;  %v1076_v50 = vshrl.u32 %v10150_v44, 16  ;;  %v1079_v51 = vshll.u32 %v10150_v44, 16  ;;  %v9197_v54 = vld [vmem:[#allocation6 + $0x60] sm:$0xff]  ;;  %v1006_v55 = vrot.slane %v1004_v46, 3  ;;  %804 = vst [vmem:[#allocation2 + $0x40] sm:$0xf] %v764_v4 }
  0x50   : > { %1807 = vmatpush.bf16.msrb.mxu2 %v9192_v12  ;;  %1377 = vmatmul.bf16.vlgmr.msra.gmra.mxu1 %v1307_v19  ;;  %v1073_v40 = vor.u32 %v1072_v37, %v1069_v36  ;;  %v1009_v56 = vrot.slane %v1007_v47, 4  ;;  %v1016_v2 = vshll.u32 %v10136_v61, 16  ;;  %v1085_v3 = vshrl.u32 %v10152_v62, 16  ;;  %819 = vst [vmem:[#allocation2 + $0x7c] sm:$0xff] %v779_v5   ;;  %v9187_v30 = vld [vmem:[#allocation6 + $0x190] sm:$0xff]  ;;  %v9186_v47 = vld [vmem:[#allocation6 + $0x188] sm:$0xff] }
  0x51   : > { %2170 = vmatpush.bf16.msrb.mxu3 %v9208_v13  ;;  %2309 = vmatpush.bf16.msrb.mxu0 %v9200_v21  ;;  %v1002_v42 = vsel %vm13431_vm0, %v11011_v1, %v1001_v39  ;;  %v1078_v57 = vrot.slane %v1076_v50, 3  ;;  %v1081_v58 = vrot.slane %v1079_v51, 4  ;;  %v1013_v1 = vshrl.u32 %v10136_v61, 16  ;;  %v10138_v18 = vld [vmem:[#allocation2 + $0x34] sm:$0xff]   ;;  %v9202_v48 = vld [vmem:[#allocation6 + $0x108] sm:$0xff]  ;;  %v9185_v4 = vld [vmem:[#allocation6 + $0x180] sm:$0xff] }
  0x52   : > { %1417 = vmatmul.bf16.vlgmr.msra.gmra.mxu3 %v11021_v20  ;;  %v1074_v43 = vsel %vm13431_vm0, %v1064_v6, %v1073_v40  ;;  %v1010_v59 = vor.u32 %v1009_v56, %v1006_v55  ;;  %v1088_v6 = vshll.u32 %v10152_v62, 16  ;;  %v1018_v12 = vrot.slane %v1016_v2, 4  ;;  %v9194_v49 = vld [vmem:[#allocation6 + $0x48] sm:$0xff]  ;;  %v9216_v50 = vld [vmem:[#allocation6 + $0x1f8] sm:$0xff]  ;;  %v9215_v51 = vld [vmem:[#allocation6 + $0x1f0] sm:$0xff] }
  0x53   : > { %v1082_v60 = vor.u32 %v1081_v58, %v1078_v57  ;;  %v1015_v10 = vrot.slane %v1013_v1, 3  ;;  %v1087_v13 = vrot.slane %v1085_v3, 3  ;;  %v1022_v26 = vshrl.u32 %v10138_v18, 16  ;;  %2495 = vmatpush.bf16.msrb.mxu1 %v9216_v50  ;;  %v9214_v1 = vld [vmem:[#allocation6 + $0x1e8] sm:$0xff]  ;;  %v9201_v5 = vld [vmem:[#allocation6 + $0x100] sm:$0xff] }
  0x54   : > { %1808 = vmatpush.bf16.msrb.mxu2 %v9191_v23  ;;  %v1011_v63 = vsel %vm13431_vm0, %v1001_v39, %v1010_v59  ;;  %v1090_v14 = vrot.slane %v1088_v6, 4  ;;  %v10154_v23 = vld [vmem:[#allocation2 + $0x74] sm:$0xff]   ;;  %v1025_v27 = vshll.u32 %v10138_v18, 16  ;;  %v9213_v6 = vld [vmem:[#allocation6 + $0x1e0] sm:$0xff] }
  0x55   : > { %2171 = vmatpush.bf16.msrb.mxu3 %v9207_v24  ;;  %2310 = vmatpush.bf16.msrb.mxu0 %v9199_v31  ;;  %v1083_v0 = vsel %vm13431_vm0, %v1073_v40, %v1082_v60  ;;  %v781_v24 = vld [vmem:[%s10986_s27 + $0x74] sm:$0xff]   ;;  %v1094_v28 = vshrl.u32 %v10154_v23, 16  ;;  %v1097_v29 = vshll.u32 %v10154_v23, 16 }
  0x56   : > { %v1091_v17 = vor.u32 %v1090_v14, %v1087_v13  ;;  %821 = vst [vmem:[#allocation2 + $0x84] sm:$0xff] %v781_v24   ;;  %v9203_v31 = vld [vmem:[#allocation6 + $0x110] sm:$0xff]  ;;  %v1027_v34 = vrot.slane %v1025_v27, 4  ;;  %v10140_v39 = vld [vmem:[#allocation2 + $0x3c] sm:$0xff]  }
  0x57   : > { %v1096_v35 = vrot.slane %v1094_v28, 3  ;;  %v1099_v36 = vrot.slane %v1097_v29, 4  ;;  %v1034_v44 = vshll.u32 %v10140_v39, 16  ;;  %2496 = vmatpush.bf16.msrb.mxu1 %v9215_v51  ;;  %v9211_v14 = vld [vmem:[#allocation6 + $0x1d0] sm:$0xff] }
  0x58   : > { %1809 = vmatpush.bf16.msrb.mxu2 %v9190_v32  ;;  %v1092_v21 = vsel %vm13431_vm0, %v1082_v60, %v1091_v17  ;;  %v9195_v32 = vld [vmem:[#allocation6 + $0x50] sm:$0xff] }
  0x59   : > { %2172 = vmatpush.bf16.msrb.mxu3 %v9206_v33  ;;  %2311 = vmatpush.bf16.msrb.mxu0 %v9198_v38  ;;  %v1024_v33 = vrot.slane %v1022_v26, 3  ;;  %v1100_v38 = vor.u32 %v1099_v36, %v1096_v35  ;;  %v9240_v26 = vld [vmem:[#allocation6 + $0xb8] sm:$0xff]  ;;  %v9881_v36 = vld [vmem:[#allocation2 + $0x14] sm:$0x8] }
  0x5b   : > { %v1028_v37 = vor.u32 %v1027_v34, %v1024_v33  ;;  %v1101_v41 = vsel %vm13431_vm0, %v1091_v17, %v1100_v38  ;;  %2497 = vmatpush.bf16.msrb.mxu1 %v9214_v1  ;;  %v9273_v33 = vld [vmem:[#allocation6 + $0x238] sm:$0xff] }
  0x5c   : > { %1810 = vmatpush.bf16.msrb.mxu2 %v9189_v52 }
  0x5d   : > { %2173 = vmatpush.bf16.msrb.mxu3 %v9205_v53  ;;  %2312 = vmatpush.bf16.msrb.mxu0 %v9197_v54  ;;  %v1036_v53 = vrot.slane %v1034_v44, 4  ;;  %v9738_v56 = vld [vmem:[#allocation2 + $0x80] sm:$0xff]   ;;  %v9739_v57 = vld [vmem:[#allocation2 + $0x88] sm:$0xff]  }
  0x5e   : > { %v9442_v60 = vunpack.c.h.b16 %v9738_v56  ;;  %v9445_v61 = vunpack.c.l.b16 %v9739_v57  ;;  %v9446_v13 = vunpack.c.h.b16 %v9739_v57  ;;  %v9740_v56 = vld [vmem:[#allocation2 + $0x18] sm:$0xff]  }
  0x5f   : > { %1206 = vmatmul.bf16.gmra.mxu0 %v1002_v42  ;;  %1246 = vmatmul.bf16.gmra.mxu2 %v1074_v43 }
  0x60   : > { %1382 = vmatmul.bf16.gmra.mxu1 %v1308_v45  ;;  %1811 = vmatpush.bf16.msrb.mxu2 %v9188_v7  ;;  %v9193_v7 = vld [vmem:[#allocation6 + $0x40] sm:$0xff]  ;;  %v975_v18 = vpack.c.b16 %v9446_v13, %v9446_v13 }
  0x61   : > { %2174 = vmatpush.bf16.msrb.mxu3 %v9204_v8  ;;  %2313 = vmatpush.bf16.msrb.mxu0 %v9196_v9 }
  0x62   : > { %1422 = vmatmul.bf16.gmra.mxu3 %v1065_v16  ;;  %v1019_v16 = vor.u32 %v1018_v12, %v1015_v10  ;;  %2498 = vmatpush.bf16.msrb.mxu1 %v9213_v6  ;;  %v9212_v10 = vld [vmem:[#allocation6 + $0x1d8] sm:$0xff]  ;;  %v1121_v23 = vshrl.u32 %v975_v18, 16  ;;  %v1124_v24 = vshll.u32 %v975_v18, 16 }
  0x64   : > { %v1020_v19 = vsel %vm13431_vm0, %v1010_v59, %v1019_v16  ;;  %1812 = vmatpush.bf16.msrb.mxu2 %v9187_v30  ;;  %v1029_v40 = vsel %vm13431_vm0, %v1019_v16, %v1028_v37  ;;  %v1123_v29 = vrot.slane %v1121_v23, 3  ;;  %v1126_v30 = vrot.slane %v1124_v24, 4 }
  0x65   : > { %2175 = vmatpush.bf16.msrb.mxu3 %v9203_v31  ;;  %2314 = vmatpush.bf16.msrb.mxu0 %v9195_v32 }
  0x66   : > { %2499 = vmatpush.bf16.msrb.mxu1 %v9212_v10  ;;  %v1127_v34 = vor.u32 %v1126_v30, %v1123_v29 }
  0x68   : > { %1813 = vmatpush.bf16.msrb.mxu2 %v9186_v47 }
  0x69   : > { %2176 = vmatpush.bf16.msrb.mxu3 %v9202_v48  ;;  %2315 = vmatpush.bf16.msrb.mxu0 %v9194_v49 }
  0x6a   : > { %2500 = vmatpush.bf16.msrb.mxu1 %v9211_v14  ;;  %v9741_v14 = vld [vmem:[#allocation2 + $0x20] sm:$0xff]  }
  0x6c   : > { %1814 = vmatpush.bf16.msrb.mxu2 %v9185_v4 }
  0x6d   : > { %2177 = vmatpush.bf16.msrb.mxu3 %v9201_v5  ;;  %2316 = vmatpush.bf16.msrb.mxu0 %v9193_v7 }
  0x6f   : > { %1211 = vmatmul.bf16.gmra.mxu0 %v1011_v63  ;;  %1251 = vmatmul.bf16.gmra.mxu2 %v1083_v0 }
  0x70   : > { %1387 = vmatmul.bf16.gmra.mxu1 %v1002_v42  ;;  %v10155_v42 = vld [vmem:[#allocation2 + $0x7c] sm:$0xff]   ;;  %2998 = vmatpush.bf16.msra.mxu2 %v9249_v25 }
  0x71   : > { %v1103_v45 = vshrl.u32 %v10155_v42, 16  ;;  %v1106_v46 = vshll.u32 %v10155_v42, 16  ;;  %3158 = vmatpush.bf16.msra.mxu3 %v9240_v26  ;;  %3576 = vmatpush.bf16.msra.mxu0 %v9273_v33  ;;  %v10165_v33 = vld [vmem:[#allocation2 + $0x34] sm:$0xff]  }
  0x72   : > { %1427 = vmatmul.bf16.gmra.mxu3 %v1074_v43  ;;  %v1031_v43 = vshrl.u32 %v10140_v39, 16  ;;  %v10159_v39 = vld [vmem:[#allocation2 + $0x1c] sm:$0xff]  }
  0x73   : > { %v1105_v54 = vrot.slane %v1103_v45, 3  ;;  %v1108_v55 = vrot.slane %v1106_v46, 4  ;;  %v1600_v44 = vshrl.u32 %v10159_v39, 16  ;;  %v1603_v45 = vshll.u32 %v10159_v39, 16  ;;  %v9247_v39 = vld [vmem:[#allocation6 + $0x168] sm:$0xff] }
  0x74   : > { %v1033_v52 = vrot.slane %v1031_v43, 3 }
  0x75   : > { %v11043_v59 = vor.u32 %v1108_v55, %v1105_v54  ;;  %v1602_v48 = vrot.slane %v1600_v44, 3  ;;  %v1605_v49 = vrot.slane %v1603_v45, 4  ;;  %v10161_v54 = vld [vmem:[#allocation2 + $0x24] sm:$0xff]  }
  0x76   : > { %v1037_v58 = vor.u32 %v1036_v53, %v1033_v52  ;;  %v1609_v57 = vshrl.u32 %v10161_v54, 16 }
  0x77   : > { %v1606_v51 = vor.u32 %v1605_v49, %v1602_v48  ;;  %v9271_v49 = vld [vmem:[#allocation6 + $0x228] sm:$0xff] }
  0x78   : > { %v1038_v62 = vsel %vm13431_vm0, %v1028_v37, %v1037_v58  ;;  %v1047_v16 = vsel %vm13431_vm0, %v1037_v58, %v11013_v11  ;;  %v9209_v11 = vld [vmem:[#allocation6 + $0x1c0] sm:$0xff]  ;;  %v10157_v37 = vld [vmem:[#allocation2 + $0x14] sm:$0xf0]   ;;  %v1612_v58 = vshll.u32 %v10161_v54, 16  ;;  %v1611_v1 = vrot.slane %v1609_v57, 3 }
  0x7f   : > { %1216 = vmatmul.bf16.gmra.mxu0 %v1020_v19  ;;  %1256 = vmatmul.bf16.gmra.mxu2 %v1092_v21 }
  0x80   : > { %1392 = vmatmul.bf16.gmra.mxu1 %v1011_v63  ;;  %v1110_v63 = vsel %vm13431_vm0, %v1100_v38, %v11043_v59 }
  0x82   : > { %1432 = vmatmul.bf16.gmra.mxu3 %v1083_v0  ;;  %v974_v0 = vpack.c.b16 %v9445_v61, %v9442_v60 }
  0x84   : > { %v1112_v2 = vshrl.u32 %v974_v0, 16  ;;  %v1115_v3 = vshll.u32 %v974_v0, 16 }
  0x86   : > { %v1114_v8 = vrot.slane %v1112_v2, 3  ;;  %v1117_v9 = vrot.slane %v1115_v3, 4  ;;  %v1614_v2 = vrot.slane %v1612_v58, 4  ;;  %v9743_v58 = vld [vmem:[#allocation2 + $0x30] sm:$0xff]  }
  0x88   : > { %v1118_v12 = vor.u32 %v1117_v9, %v1114_v8  ;;  %v1615_v5 = vor.u32 %v1614_v2, %v1611_v1 }
  0x8a   : > { %v1119_v17 = vsel %vm13431_vm0, %v11043_v59, %v1118_v12  ;;  %v1128_v38 = vsel %vm13431_vm0, %v1118_v12, %v1127_v34  ;;  %v1616_v10 = vsel %vm13431_vm0, %v1606_v51, %v1615_v5  ;;  %v10163_v12 = vld [vmem:[#allocation2 + $0x2c] sm:$0xff]  }
  0x8b   : > { %v1621_v18 = vshll.u32 %v10163_v12, 16 }
  0x8d   : > { %v1623_v26 = vrot.slane %v1621_v18, 4 }
  0x8f   : > { %1221 = vmatmul.bf16.gmra.mxu0 %v1029_v40  ;;  %1261 = vmatmul.bf16.gmra.mxu2 %v1101_v41 }
  0x90   : > { %1397 = vmatmul.bf16.gmra.mxu1 %v1020_v19  ;;  %v1290_v19 = vpack.c.b16 %v9442_v60, %v9442_v60  ;;  %v9239_v60 = vld [vmem:[#allocation6 + $0xb0] sm:$0xff] }
  0x91   : > { %3159 = vmatpush.bf16.msra.mxu3 %v9239_v60 }
  0x92   : > { %1437 = vmatmul.bf16.gmra.mxu3 %v1092_v21  ;;  %v9210_v21 = vld [vmem:[#allocation6 + $0x1c8] sm:$0xff]  ;;  %v1310_v27 = vshrl.u32 %v1290_v19, 16  ;;  %v1313_v28 = vshll.u32 %v1290_v19, 16 }
  0x93   : > { %2501 = vmatpush.bf16.msrb.mxu1 %v9210_v21 }
  0x94   : > { %v1312_v31 = vrot.slane %v1310_v27, 3  ;;  %v1315_v32 = vrot.slane %v1313_v28, 4 }
  0x96   : > { %v1316_v35 = vor.u32 %v1315_v32, %v1312_v31 }
  0x97   : > { %2502 = vmatpush.bf16.msrb.mxu1 %v9209_v11 }
  0x9f   : > { %1226 = vmatmul.bf16.gmra.mxu0 %v1038_v62  ;;  %1266 = vmatmul.bf16.gmra.mxu2 %v1110_v63 }
  0xa0   : > { %1402 = vmatmul.bf16.gmra.mxu1 %v1029_v40  ;;  %v9882_v40 = vor.u32 %v10157_v37, %v9881_v36  ;;  %v1627_v37 = vshrl.u32 %v10165_v33, 16 }
  0xa2   : > { %1442 = vmatmul.bf16.gmra.mxu3 %v1101_v41  ;;  %v1317_v41 = vsel %vm13431_vm0, %v11043_v59, %v1316_v35  ;;  %v1592_v42 = vshrl.u32 %v9882_v40, 16  ;;  %v1595_v43 = vshll.u32 %v9882_v40, 16  ;;  %v9248_v59 = vld [vmem:[#allocation6 + $0x170] sm:$0xff]  ;;  %v9742_v35 = vld [vmem:[#allocation2 + $0x28] sm:$0xff]   ;;  %v1629_v45 = vrot.slane %v1627_v37, 3 }
  0xa3   : > { %2999 = vmatpush.bf16.msra.mxu2 %v9248_v59  ;;  %v9238_v40 = vld [vmem:[#allocation6 + $0xa8] sm:$0xff] }
  0xa4   : > { %v1594_v46 = vrot.slane %v1592_v42, 3  ;;  %v1597_v47 = vrot.slane %v1595_v43, 4  ;;  %3160 = vmatpush.bf16.msra.mxu3 %v9238_v40 }
  0xa6   : > { %v1598_v50 = vor.u32 %v1597_v47, %v1594_v46 }
  0xa7   : > { %3000 = vmatpush.bf16.msra.mxu2 %v9247_v39 }
  0xa8   : > { %v1607_v53 = vsel %vm13431_vm0, %v1598_v50, %v1606_v51 }
  0xaf   : > { %1231 = vmatmul.bf16.gmra.mxu0 %v1047_v16  ;;  %1271 = vmatmul.bf16.gmra.mxu2 %v1119_v17  ;;  %v1618_v17 = vshrl.u32 %v10163_v12, 16 }
  0xb0   : > { %1407 = vmatmul.bf16.gmra.mxu1 %v1038_v62 }
  0xb1   : > { %v1620_v25 = vrot.slane %v1618_v17, 3  ;;  %v10169_v17 = vld [vmem:[#allocation2 + $0x44] sm:$0xff]  }
  0xb2   : > { %1447 = vmatmul.bf16.gmra.mxu3 %v1110_v63 }
  0xb3   : > { %v1624_v11 = vor.u32 %v1623_v26, %v1620_v25  ;;  %v1648_v25 = vshll.u32 %v10169_v17, 16  ;;  %v9246_v26 = vld [vmem:[#allocation6 + $0x160] sm:$0xff] }
  0xb4   : > { %3001 = vmatpush.bf16.msra.mxu2 %v9246_v26 }
  0xb5   : > { %v1625_v32 = vsel %vm13431_vm0, %v1615_v5, %v1624_v11 }
  0xbf   : > { %1236 = vmatmul.bf16.gmra.mxu0 %v11021_v20  ;;  %1276 = vmatmul.bf16.gmra.mxu2 %v1128_v38  ;;  %v1630_v38 = vshll.u32 %v10165_v33, 16  ;;  %v1650_v33 = vrot.slane %v1648_v25, 4 }
  0xc0   : > { %1412 = vmatmul.bf16.gmra.mxu1 %v1047_v16 }
  0xc1   : > { %v1632_v46 = vrot.slane %v1630_v38, 4  ;;  %v9270_v38 = vld [vmem:[#allocation6 + $0x220] sm:$0xff] }
  0xc2   : > { %1452 = vmatmul.bf16.gmra.mxu3 %v1317_v41 }
  0xc3   : > { %v1633_v50 = vor.u32 %v1632_v46, %v1629_v45  ;;  %v10171_v45 = vld [vmem:[#allocation2 + $0x4c] sm:$0xff]  }
  0xcc   : > { %v1202_v52 = vpop.f32.mrf.mxu0 }
  0xcd   : > { %v1378_v55 = vpop.f32.mrf.mxu1 }
  0xce   : > { %v11057_v20 = vadd.f32 %v1378_v55, %v1202_v52  ;;  %v1634_v55 = vsel %vm13431_vm0, %v1624_v11, %v1633_v50 }
  0xcf   : > { %1815 = vmatmul.bf16.vlgmr.msrb.gmra.mxu2 %v1607_v53  ;;  %2317 = vmatmul.bf16.vlgmr.msrb.gmra.mxu0 %v10999_v15  ;;  %v9272_v15 = vld [vmem:[#allocation6 + $0x230] sm:$0xff] }
  0xd0   : > { %2503 = vmatmul.bf16.vlgmr.msrb.gmra.mxu1 %v9740_v56  ;;  %3577 = vmatpush.bf16.msra.mxu0 %v9272_v15 }
  0xd2   : > { %2178 = vmatmul.bf16.vlgmr.msrb.gmra.mxu3 %v11005_v22  ;;  %v1242_v61 = vpop.f32.mrf.mxu2 }
  0xd4   : > { %v1204_v0 = vpop.f32.mrf.mxu0  ;;  %3578 = vmatpush.bf16.msra.mxu0 %v9271_v49 }
  0xd5   : > { %v1418_v62 = vpop.f32.mrf.mxu3  ;;  %v1380_v3 = vpop.f32.mrf.mxu1 }
  0xd6   : > { %v11061_v63 = vadd.f32 %v1418_v62, %v1242_v61  ;;  %v11063_v4 = vadd.f32 %v1380_v3, %v1204_v0 }
  0xd8   : > { %3579 = vmatpush.bf16.msra.mxu0 %v9270_v38 }
  0xda   : > { %v1244_v6 = vpop.f32.mrf.mxu2 }
  0xdc   : > { %v1207_v9 = vpop.f32.mrf.mxu0 }
  0xdd   : > { %v1420_v7 = vpop.f32.mrf.mxu3  ;;  %v1383_v13 = vpop.f32.mrf.mxu1 }
  0xde   : > { %v11065_v8 = vadd.f32 %v1420_v7, %v1244_v6  ;;  %v11068_v16 = vadd.f32 %v1383_v13, %v1207_v9 }
  0xdf   : > { %1820 = vmatmul.bf16.gmra.mxu2 %v1616_v10  ;;  %2322 = vmatmul.bf16.gmra.mxu0 %v11005_v22 }
  0xe0   : > { %2508 = vmatmul.bf16.gmra.mxu1 %v9741_v14 }
  0xe2   : > { %2183 = vmatmul.bf16.gmra.mxu3 %v9740_v56  ;;  %v1247_v19 = vpop.f32.mrf.mxu2 }
  0xe4   : > { %v1209_v24 = vpop.f32.mrf.mxu0 }
  0xe5   : > { %v1423_v21 = vpop.f32.mrf.mxu3  ;;  %v1385_v27 = vpop.f32.mrf.mxu1 }
  0xe6   : > { %v11071_v23 = vadd.f32 %v1423_v21, %v1247_v19  ;;  %v11073_v28 = vadd.f32 %v1385_v27, %v1209_v24  ;;  %v9744_v19 = vld [vmem:[#allocation2 + $0x38] sm:$0xff]   ;;  %v1645_v24 = vshrl.u32 %v10169_v17, 16  ;;  %v9237_v27 = vld [vmem:[#allocation6 + $0xa0] sm:$0xff] }
  0xe7   : > { %3161 = vmatpush.bf16.msra.mxu3 %v9237_v27 }
  0xea   : > { %v1249_v29 = vpop.f32.mrf.mxu2 }
  0xec   : > { %v1212_v22 = vpop.f32.mrf.mxu0 }
  0xed   : > { %v1425_v30 = vpop.f32.mrf.mxu3  ;;  %v1388_v34 = vpop.f32.mrf.mxu1 }
  0xee   : > { %v11075_v31 = vadd.f32 %v1425_v30, %v1249_v29  ;;  %v11078_v36 = vadd.f32 %v1388_v34, %v1212_v22 }
  0xef   : > { %1825 = vmatmul.bf16.gmra.mxu2 %v1625_v32  ;;  %2327 = vmatmul.bf16.gmra.mxu0 %v9740_v56  ;;  %v10167_v56 = vld [vmem:[#allocation2 + $0x3c] sm:$0xff]   ;;  %v1647_v32 = vrot.slane %v1645_v24, 3 }
  0xf0   : > { %2513 = vmatmul.bf16.gmra.mxu1 %v9742_v35  ;;  %v1636_v60 = vshrl.u32 %v10167_v56, 16  ;;  %v1639_v61 = vshll.u32 %v10167_v56, 16  ;;  %v9236_v24 = vld [vmem:[#allocation6 + $0x98] sm:$0xff] }
  0xf1   : > { %3162 = vmatpush.bf16.msra.mxu3 %v9236_v24  ;;  %v10177_v24 = vld [vmem:[#allocation2 + $0x64] sm:$0xff]  }
  0xf2   : > { %2188 = vmatmul.bf16.gmra.mxu3 %v9741_v14  ;;  %v1252_v41 = vpop.f32.mrf.mxu2  ;;  %v1638_v3 = vrot.slane %v1636_v60, 3  ;;  %v1641_v15 = vrot.slane %v1639_v61, 4 }
  0xf4   : > { %v1214_v44 = vpop.f32.mrf.mxu0  ;;  %v1642_v7 = vor.u32 %v1641_v15, %v1638_v3 }
  0xf5   : > { %v1428_v42 = vpop.f32.mrf.mxu3  ;;  %v1390_v47 = vpop.f32.mrf.mxu1 }
  0xf6   : > { %v11080_v43 = vadd.f32 %v1428_v42, %v1252_v41  ;;  %v11082_v48 = vadd.f32 %v1390_v47, %v1214_v44  ;;  %v9745_v47 = vld [vmem:[#allocation2 + $0x40] sm:$0xff]  }
  0xfa   : > { %v1254_v51 = vpop.f32.mrf.mxu2 }
  0xfc   : > { %v1217_v54 = vpop.f32.mrf.mxu0 }
  0xfd   : > { %v1430_v52 = vpop.f32.mrf.mxu3  ;;  %v1393_v57 = vpop.f32.mrf.mxu1 }
  0xfe   : > { %v11084_v53 = vadd.f32 %v1430_v52, %v1254_v51  ;;  %v11087_v59 = vadd.f32 %v1393_v57, %v1217_v54  ;;  %v1657_v51 = vshll.u32 %v10171_v45, 16 }
  0xff   : > { %1830 = vmatmul.bf16.gmra.mxu2 %v1634_v55  ;;  %2332 = vmatmul.bf16.gmra.mxu0 %v9741_v14  ;;  %v1643_v14 = vsel %vm13431_vm0, %v1633_v50, %v1642_v7  ;;  %v1654_v50 = vshrl.u32 %v10171_v45, 16 }
 0x100   : > { %2518 = vmatmul.bf16.gmra.mxu1 %v9743_v58  ;;  %v1659_v60 = vrot.slane %v1657_v51, 4 }
 0x101   : > { %v1656_v57 = vrot.slane %v1654_v50, 3 }
 0x102   : > { %2193 = vmatmul.bf16.gmra.mxu3 %v9742_v35  ;;  %v1257_v62 = vpop.f32.mrf.mxu2 }
 0x104   : > { %v1219_v2 = vpop.f32.mrf.mxu0 }
 0x105   : > { %v1433_v0 = vpop.f32.mrf.mxu3  ;;  %v1395_v5 = vpop.f32.mrf.mxu1 }
 0x106   : > { %v11089_v1 = vadd.f32 %v1433_v0, %v1257_v62  ;;  %v11091_v6 = vadd.f32 %v1395_v5, %v1219_v2  ;;  %v1660_v0 = vor.u32 %v1659_v60, %v1656_v57 }
 0x10a   : > { %v1259_v9 = vpop.f32.mrf.mxu2 }
 0x10c   : > { %v1222_v13 = vpop.f32.mrf.mxu0 }
 0x10d   : > { %v1435_v10 = vpop.f32.mrf.mxu3  ;;  %v1398_v18 = vpop.f32.mrf.mxu1 }
 0x10e   : > { %v11093_v12 = vadd.f32 %v1435_v10, %v1259_v9  ;;  %v11096_v21 = vadd.f32 %v1398_v18, %v1222_v13  ;;  %v9746_v10 = vld [vmem:[#allocation2 + $0x48] sm:$0xff]   ;;  %v9245_v18 = vld [vmem:[#allocation6 + $0x158] sm:$0xff] }
 0x10f   : > { %1835 = vmatmul.bf16.gmra.mxu2 %v1643_v14  ;;  %2337 = vmatmul.bf16.gmra.mxu0 %v9742_v35  ;;  %v1651_v35 = vor.u32 %v1650_v33, %v1647_v32 }
 0x110   : > { %2523 = vmatmul.bf16.gmra.mxu1 %v9744_v19  ;;  %3002 = vmatpush.bf16.msra.mxu2 %v9245_v18 }
 0x111   : > { %v1652_v44 = vsel %vm13431_vm0, %v1642_v7, %v1651_v35  ;;  %v1661_v5 = vsel %vm13431_vm0, %v1651_v35, %v1660_v0  ;;  %v10173_v7 = vld [vmem:[#allocation2 + $0x54] sm:$0xff]  }
 0x112   : > { %2198 = vmatmul.bf16.gmra.mxu3 %v9743_v58  ;;  %v1262_v11 = vpop.f32.mrf.mxu2  ;;  %v1663_v14 = vshrl.u32 %v10173_v7, 16  ;;  %v1666_v17 = vshll.u32 %v10173_v7, 16 }
 0x114   : > { %v1224_v22 = vpop.f32.mrf.mxu0 }
 0x115   : > { %v1438_v29 = vpop.f32.mrf.mxu3  ;;  %v1400_v34 = vpop.f32.mrf.mxu1 }
 0x116   : > { %v11098_v30 = vadd.f32 %v1438_v29, %v1262_v11  ;;  %v11100_v37 = vadd.f32 %v1400_v34, %v1224_v22  ;;  %v1665_v29 = vrot.slane %v1663_v14, 3  ;;  %v1668_v22 = vrot.slane %v1666_v17, 4 }
 0x118   : > { %v1669_v34 = vor.u32 %v1668_v22, %v1665_v29  ;;  %v1681_v29 = vshrl.u32 %v10177_v24, 16  ;;  %v1684_v22 = vshll.u32 %v10177_v24, 16 }
 0x11a   : > { %v1264_v39 = vpop.f32.mrf.mxu2 }
 0x11c   : > { %v1227_v42 = vpop.f32.mrf.mxu0 }
 0x11d   : > { %v1440_v40 = vpop.f32.mrf.mxu3  ;;  %v1403_v46 = vpop.f32.mrf.mxu1 }
 0x11e   : > { %v11102_v41 = vadd.f32 %v1440_v40, %v1264_v39  ;;  %v11105_v49 = vadd.f32 %v1403_v46, %v1227_v42  ;;  %v1670_v42 = vsel %vm13431_vm0, %v1660_v0, %v1669_v34  ;;  %v11123_v46 = vld [vmem:[#allocation2 + $0x50] sm:$0xff]  }
 0x11f   : > { %1840 = vmatmul.bf16.gmra.mxu2 %v1652_v44  ;;  %2342 = vmatmul.bf16.gmra.mxu0 %v9743_v58  ;;  %v10175_v44 = vld [vmem:[#allocation2 + $0x5c] sm:$0xff]  }
 0x120   : > { %2528 = vmatmul.bf16.gmra.mxu1 %v9745_v47  ;;  %v1672_v51 = vshrl.u32 %v10175_v44, 16 }
 0x122   : > { %2203 = vmatmul.bf16.gmra.mxu3 %v9744_v19  ;;  %v1267_v52 = vpop.f32.mrf.mxu2 }
 0x124   : > { %v1229_v56 = vpop.f32.mrf.mxu0 }
 0x125   : > { %v1443_v54 = vpop.f32.mrf.mxu3  ;;  %v1405_v61 = vpop.f32.mrf.mxu1 }
 0x126   : > { %v11107_v55 = vadd.f32 %v1443_v54, %v1267_v52  ;;  %v11109_v62 = vadd.f32 %v1405_v61, %v1229_v56  ;;  %v1675_v52 = vshll.u32 %v10175_v44, 16  ;;  %v1674_v61 = vrot.slane %v1672_v51, 3 }
 0x127   : > { %v1683_v44 = vrot.slane %v1681_v29, 3 }
 0x128   : > { %v1677_v0 = vrot.slane %v1675_v52, 4 }
 0x12a   : > { %v1269_v2 = vpop.f32.mrf.mxu2 }
 0x12c   : > { %v1232_v58 = vpop.f32.mrf.mxu0 }
 0x12d   : > { %v1445_v3 = vpop.f32.mrf.mxu3  ;;  %v1408_v9 = vpop.f32.mrf.mxu1 }
 0x12e   : > { %v11111_v15 = vadd.f32 %v1445_v3, %v1269_v2  ;;  %v11114_v13 = vadd.f32 %v1408_v9, %v1232_v58  ;;  %v335_v58 = vlaneseq }
 0x12f   : > { %1845 = vmatmul.bf16.gmra.mxu2 %v1661_v5  ;;  %2347 = vmatmul.bf16.gmra.mxu0 %v9744_v19  ;;  %v9269_v19 = vld [vmem:[#allocation6 + $0x218] sm:$0xff]  ;;  %v1678_v5 = vor.u32 %v1677_v0, %v1674_v61  ;;  %v9268_v61 = vld [vmem:[#allocation6 + $0x210] sm:$0xff] }
 0x130   : > { %2533 = vmatmul.bf16.gmra.mxu1 %v9746_v10  ;;  %3580 = vmatpush.bf16.msra.mxu0 %v9269_v19  ;;  %v11132_v9 = vshrl.u32 %v335_v58, 7  ;;  %v9235_v19 = vld [vmem:[#allocation6 + $0x90] sm:$0xff] }
 0x131   : > { %v1679_v18 = vsel %vm13431_vm0, %v1669_v34, %v1678_v5  ;;  %3163 = vmatpush.bf16.msra.mxu3 %v9235_v19 }
 0x132   : > { %2208 = vmatmul.bf16.gmra.mxu3 %v9745_v47  ;;  %v1272_v25 = vpop.f32.mrf.mxu2 }
 0x134   : > { %v1234_v11 = vpop.f32.mrf.mxu0  ;;  %3581 = vmatpush.bf16.msra.mxu0 %v9268_v61 }
 0x135   : > { %v1448_v26 = vpop.f32.mrf.mxu3  ;;  %v1410_v32 = vpop.f32.mrf.mxu1 }
 0x136   : > { %v11116_v27 = vadd.f32 %v1448_v26, %v1272_v25  ;;  %v11118_v33 = vadd.f32 %v1410_v32, %v1234_v11  ;;  %v11137_v26 = vld [vmem:[#allocation2 + $0x58] sm:$0xff]   ;;  %v372_v11 = vand.u32 15, %v11132_v9  ;;  %v9244_v32 = vld [vmem:[#allocation6 + $0x150] sm:$0xff] }
 0x137   : > { %3003 = vmatpush.bf16.msra.mxu2 %v9244_v32 }
 0x138   : > { %vm11142_vm1 = vcmp.gt.s32.totalorder %v372_v11, 0  ;;  %v11154_v11 = vld [vmem:[#allocation2 + $0x60] sm:$0xff]  }
 0x13a   : > { %v1274_v38 = vpop.f32.mrf.mxu2 }
 0x13c   : > { %v1237_v40 = vpop.f32.mrf.mxu0 }
 0x13d   : > { %v1450_v35 = vpop.f32.mrf.mxu3  ;;  %v1413_v45 = vpop.f32.mrf.mxu1 }
 0x13e   : > { %v11120_v39 = vadd.f32 %v1450_v35, %v1274_v38  ;;  %v11125_v50 = vadd.f32 %v1413_v45, %v1237_v40  ;;  %v13479_v35 = vmov 0  ;;  %v1686_v45 = vrot.slane %v1684_v22, 4 }
 0x13f   : > { %1850 = vmatmul.bf16.gmra.mxu2 %v1670_v42  ;;  %2352 = vmatmul.bf16.gmra.mxu0 %v9745_v47  ;;  %v13480_v35 = vsel %vm11142_vm1, 4294967295, %v13479_v35 }
 0x140   : > { %2538 = vmatmul.bf16.gmra.mxu1 %v11123_v46  ;;  %13481 = vst [vmem:[#allocation11_spill] sm:$0xff] %v13480_v35 }
 0x142   : > { %2213 = vmatmul.bf16.gmra.mxu3 %v9746_v10  ;;  %v1277_v54 = vpop.f32.mrf.mxu2 }
 0x144   : > { %v1239_v60 = vpop.f32.mrf.mxu0 }
 0x145   : > { %v1453_v56 = vpop.f32.mrf.mxu3  ;;  %v1415_v2 = vpop.f32.mrf.mxu1 }
 0x146   : > { %v11128_v57 = vadd.f32 %v1453_v56, %v1277_v54  ;;  %v11130_v3 = vadd.f32 %v1415_v2, %v1239_v60  ;;  %v1687_v60 = vor.u32 %v1686_v45, %v1683_v44  ;;  %v338_v2 = vadd.s32 16, %v11132_v9 }
 0x148   : > { %v386_v29 = vand.u32 15, %v338_v2 }
 0x14a   : > { %v1279_v7 = vpop.f32.mrf.mxu2  ;;  %vm11161_vm2 = vcmp.gt.s32.totalorder %v386_v29, 0 }
 0x14c   : > { %v2318_v17 = vpop.f32.mrf.mxu0 }
 0x14d   : > { %v1455_v47 = vpop.f32.mrf.mxu3  ;;  %v2504_v25 = vpop.f32.mrf.mxu1 }
 0x14e   : > { %v11134_v14 = vadd.f32 %v1455_v47, %v1279_v7 }
 0x14f   : > { %1855 = vmatmul.bf16.gmra.mxu2 %v1679_v18  ;;  %2357 = vmatmul.bf16.gmra.mxu0 %v9746_v10  ;;  %v10179_v18 = vld [vmem:[#allocation2 + $0x6c] sm:$0xff]  }
 0x150   : > { %2543 = vmatmul.bf16.gmra.mxu1 %v11137_v26  ;;  %v1693_v32 = vshll.u32 %v10179_v18, 16 }
 0x152   : > { %2218 = vmatmul.bf16.gmra.mxu3 %v11123_v46  ;;  %v1816_v38 = vpop.f32.mrf.mxu2 }
 0x153   : > { %v1896_v34 = vadd.f32 %v1816_v38, %v11057_v20 }
 0x154   : > { %v2320_v10 = vpop.f32.mrf.mxu0 }
 0x155   : > { %v2179_v40 = vpop.f32.mrf.mxu3  ;;  %v2024_v51 = vsel %vm11142_vm1, %v1896_v34, 0.0  ;;  %v2506_v52 = vpop.f32.mrf.mxu1 }
 0x156   : > { %v2319_v42 = vadd.f32 %v2318_v17, %v2179_v40  ;;  %v1688_v17 = vsel %vm13431_vm0, %v1678_v5, %v1687_v60  ;;  %v13482_v5 = vmov 0 }
 0x157   : > { %v13483_v5 = vsel %vm11161_vm2, 4294967295, %v13482_v5 }
 0x158   : > { %v2584_v54 = vadd.f32 %v2504_v25, %v2319_v42  ;;  %13484 = vst [vmem:[#allocation12_spill] sm:$0xff] %v13483_v5 }
 0x15a   : > { %v11149_v56 = vadd.f32 %v2584_v54, %v2024_v51  ;;  %v1818_v0 = vpop.f32.mrf.mxu2 }
 0x15b   : > { %v1897_v20 = vadd.f32 %v1818_v0, %v11063_v4  ;;  %v1690_v4 = vshrl.u32 %v10179_v18, 16  ;;  %v340_v0 = vadd.s32 32, %v11132_v9  ;;  %v11173_v18 = vld [vmem:[#allocation2 + $0x68] sm:$0xff]  }
 0x15c   : > { %v2323_v47 = vpop.f32.mrf.mxu0 }
 0x15d   : > { %v2181_v58 = vpop.f32.mrf.mxu3  ;;  %v2509_v24 = vpop.f32.mrf.mxu1  ;;  %v400_v29 = vand.u32 15, %v340_v0 }
 0x15e   : > { %v2321_v7 = vadd.f32 %v2320_v10, %v2181_v58  ;;  %v1692_v10 = vrot.slane %v1690_v4, 3 }
 0x15f   : > { %1860 = vmatmul.bf16.gmra.mxu2 %v1688_v17  ;;  %2362 = vmatmul.bf16.gmra.mxu0 %v11123_v46  ;;  %v1695_v46 = vrot.slane %v1693_v32, 4  ;;  %v9243_v32 = vld [vmem:[#allocation6 + $0x148] sm:$0xff]  ;;  %vm11180_vm3 = vcmp.gt.s32.totalorder %v400_v29, 0  ;;  %v10183_v29 = vld [vmem:[#allocation2 + $0x7c] sm:$0xff]  }
 0x160   : > { %v2585_v25 = vadd.f32 %v2506_v52, %v2321_v7  ;;  %2548 = vmatmul.bf16.gmra.mxu1 %v11154_v11  ;;  %3004 = vmatpush.bf16.msra.mxu2 %v9243_v32 }
 0x161   : > { %v1696_v54 = vor.u32 %v1695_v46, %v1692_v10 }
 0x162   : > { %v11157_v22 = vadd.f32 %v2585_v25, %v1897_v20  ;;  %2223 = vmatmul.bf16.gmra.mxu3 %v11137_v26  ;;  %v1821_v19 = vpop.f32.mrf.mxu2 }
 0x163   : > { %v1898_v38 = vadd.f32 %v1821_v19, %v11068_v16  ;;  %v1697_v7 = vsel %vm13431_vm0, %v1687_v60, %v1696_v54  ;;  %v9234_v19 = vld [vmem:[#allocation6 + $0x88] sm:$0xff] }
 0x164   : > { %v2325_v42 = vpop.f32.mrf.mxu0  ;;  %3164 = vmatpush.bf16.msra.mxu3 %v9234_v19 }
 0x165   : > { %v2184_v34 = vpop.f32.mrf.mxu3  ;;  %v2026_v44 = vsel %vm11161_vm2, %v1898_v38, 0.0  ;;  %v2511_v45 = vpop.f32.mrf.mxu1  ;;  %v13485_v38 = vmov 0 }
 0x166   : > { %v2324_v40 = vadd.f32 %v2323_v47, %v2184_v34  ;;  %v10181_v47 = vld [vmem:[#allocation2 + $0x74] sm:$0xff]   ;;  %v13486_v38 = vsel %vm11180_vm3, 4294967295, %v13485_v38 }
 0x167   : > { %v1702_v4 = vshll.u32 %v10181_v47, 16  ;;  %13487 = vst [vmem:[#allocation13_spill] sm:$0xff] %v13486_v38 }
 0x168   : > { %v2586_v51 = vadd.f32 %v2509_v24, %v2324_v40 }
 0x169   : > { %v1704_v46 = vrot.slane %v1702_v4, 4  ;;  %v11192_v4 = vld [vmem:[#allocation2 + $0x70] sm:$0xff]  }
 0x16a   : > { %v11168_v52 = vadd.f32 %v2586_v51, %v2026_v44  ;;  %v1823_v61 = vpop.f32.mrf.mxu2 }
 0x16b   : > { %v1899_v2 = vadd.f32 %v1823_v61, %v11073_v28  ;;  %v1699_v28 = vshrl.u32 %v10181_v47, 16 }
 0x16c   : > { %v2328_v58 = vpop.f32.mrf.mxu0 }
 0x16d   : > { %v2186_v20 = vpop.f32.mrf.mxu3  ;;  %v2514_v17 = vpop.f32.mrf.mxu1  ;;  %v1701_v10 = vrot.slane %v1699_v28, 3 }
 0x16e   : > { %v2326_v16 = vadd.f32 %v2325_v42, %v2186_v20 }
 0x16f   : > { %1865 = vmatmul.bf16.gmra.mxu2 %v1697_v7  ;;  %2367 = vmatmul.bf16.gmra.mxu0 %v11137_v26  ;;  %v1705_v0 = vor.u32 %v1704_v46, %v1701_v10 }
 0x170   : > { %v2587_v25 = vadd.f32 %v2511_v45, %v2326_v16  ;;  %2553 = vmatmul.bf16.gmra.mxu1 %v11173_v18  ;;  %v342_v16 = vadd.s32 48, %v11132_v9 }
 0x172   : > { %v11176_v24 = vadd.f32 %v2587_v25, %v1899_v2  ;;  %2228 = vmatmul.bf16.gmra.mxu3 %v11154_v11  ;;  %v1826_v60 = vpop.f32.mrf.mxu2  ;;  %v9267_v2 = vld [vmem:[#allocation6 + $0x208] sm:$0xff]  ;;  %v1706_v25 = vsel %vm13431_vm0, %v1696_v54, %v1705_v0  ;;  %v414_v32 = vand.u32 15, %v342_v16  ;;  %v13488_v54 = vmov 0 }
 0x173   : > { %v1900_v34 = vadd.f32 %v1826_v60, %v11078_v36  ;;  %3582 = vmatpush.bf16.msra.mxu0 %v9267_v2  ;;  %v1711_v60 = vshll.u32 %v10183_v29, 16 }
 0x174   : > { %v2330_v42 = vpop.f32.mrf.mxu0  ;;  %vm11199_vm4 = vcmp.gt.s32.totalorder %v414_v32, 0  ;;  %v11211_v32 = vld [vmem:[#allocation2 + $0x78] sm:$0xff]  }
 0x175   : > { %v2189_v26 = vpop.f32.mrf.mxu3  ;;  %v2028_v44 = vsel %vm11180_vm3, %v1900_v34, 0.0  ;;  %v2516_v45 = vpop.f32.mrf.mxu1  ;;  %v13489_v54 = vsel %vm11199_vm4, 4294967295, %v13488_v54 }
 0x176   : > { %v2329_v40 = vadd.f32 %v2328_v58, %v2189_v26  ;;  %13490 = vst [vmem:[#allocation14_spill] sm:$0xff] %v13489_v54 }
 0x178   : > { %v2588_v51 = vadd.f32 %v2514_v17, %v2329_v40 }
 0x17a   : > { %v11187_v61 = vadd.f32 %v2588_v51, %v2028_v44  ;;  %v1828_v20 = vpop.f32.mrf.mxu2 }
 0x17b   : > { %v1901_v36 = vadd.f32 %v1828_v20, %v11082_v48  ;;  %v1708_v48 = vshrl.u32 %v10183_v29, 16  ;;  %v10185_v29 = vld [vmem:[#allocation2 + $0x84] sm:$0xff]  }
 0x17c   : > { %v2333_v47 = vpop.f32.mrf.mxu0 }
 0x17d   : > { %v2191_v7 = vpop.f32.mrf.mxu3  ;;  %v2519_v28 = vpop.f32.mrf.mxu1  ;;  %v1710_v46 = vrot.slane %v1708_v48, 3 }
 0x17e   : > { %v2331_v58 = vadd.f32 %v2330_v42, %v2191_v7 }
 0x17f   : > { %1870 = vmatmul.bf16.gmra.mxu2 %v1706_v25  ;;  %2372 = vmatmul.bf16.gmra.mxu0 %v11154_v11  ;;  %v1713_v11 = vrot.slane %v1711_v60, 4 }
 0x180   : > { %v2589_v17 = vadd.f32 %v2516_v45, %v2331_v58  ;;  %2558 = vmatmul.bf16.gmra.mxu1 %v11192_v4 }
 0x181   : > { %v1714_v20 = vor.u32 %v1713_v11, %v1710_v46 }
 0x182   : > { %v11195_v19 = vadd.f32 %v2589_v17, %v1901_v36  ;;  %2233 = vmatmul.bf16.gmra.mxu3 %v11173_v18  ;;  %v1831_v34 = vpop.f32.mrf.mxu2  ;;  %v344_v36 = vadd.s32 64, %v11132_v9 }
 0x183   : > { %v1902_v26 = vadd.f32 %v1831_v34, %v11087_v59  ;;  %v1720_v34 = vshll.u32 %v10185_v29, 16 }
 0x184   : > { %v2335_v10 = vpop.f32.mrf.mxu0  ;;  %v428_v60 = vand.u32 15, %v344_v36 }
 0x185   : > { %v2194_v40 = vpop.f32.mrf.mxu3  ;;  %v2030_v44 = vsel %vm11199_vm4, %v1902_v26, 0.0  ;;  %v2521_v45 = vpop.f32.mrf.mxu1  ;;  %v9242_v26 = vld [vmem:[#allocation6 + $0x140] sm:$0xff] }
 0x186   : > { %v2334_v42 = vadd.f32 %v2333_v47, %v2194_v40  ;;  %v1715_v47 = vsel %vm13431_vm0, %v1705_v0, %v1714_v20  ;;  %v9233_v40 = vld [vmem:[#allocation6 + $0x80] sm:$0xff]  ;;  %v9289_v0 = vld [vmem:[#allocation8 + $0xf8] sm:$0xff]  ;;  %vm11218_vm5 = vcmp.gt.s32.totalorder %v428_v60, 0  ;;  %3005 = vmatpush.bf16.msra.mxu2 %v9242_v26 }
 0x187   : > { %3165 = vmatpush.bf16.msra.mxu3 %v9233_v40  ;;  %5009 = vmatpush.bf16.msra.mxu1 %v9289_v0  ;;  %v9753_v0 = vld [vmem:[#allocation2 + $0x80] sm:$0xff]  }
 0x188   : > { %v2590_v51 = vadd.f32 %v2519_v28, %v2334_v42 }
 0x18a   : > { %v11206_v2 = vadd.f32 %v2590_v51, %v2030_v44  ;;  %v1833_v16 = vpop.f32.mrf.mxu2  ;;  %v1722_v51 = vrot.slane %v1720_v34, 4  ;;  %v10186_v34 = vld [vmem:[#allocation2 + $0x8c] sm:$0xff]  }
 0x18b   : > { %v1903_v7 = vadd.f32 %v1833_v16, %v11091_v6  ;;  %v1717_v6 = vshrl.u32 %v10185_v29, 16 }
 0x18c   : > { %v2338_v25 = vpop.f32.mrf.mxu0 }
 0x18d   : > { %v2196_v58 = vpop.f32.mrf.mxu3  ;;  %v2524_v17 = vpop.f32.mrf.mxu1 }
 0x18e   : > { %v2336_v59 = vadd.f32 %v2335_v10, %v2196_v58  ;;  %v13491_v10 = vmov 0 }
 0x18f   : > { %1875 = vmatmul.bf16.gmra.mxu2 %v1715_v47  ;;  %2377 = vmatmul.bf16.gmra.mxu0 %v11173_v18  ;;  %v13492_v10 = vsel %vm11218_vm5, 4294967295, %v13491_v10  ;;  %v9266_v47 = vld [vmem:[#allocation6 + $0x200] sm:$0xff] }
 0x190   : > { %v2591_v48 = vadd.f32 %v2521_v45, %v2336_v59  ;;  %2563 = vmatmul.bf16.gmra.mxu1 %v11211_v32  ;;  %13493 = vst [vmem:[#allocation15_spill] sm:$0xff] %v13492_v10  ;;  %v1719_v45 = vrot.slane %v1717_v6, 3  ;;  %3583 = vmatpush.bf16.msra.mxu0 %v9266_v47 }
 0x192   : > { %v11214_v28 = vadd.f32 %v2591_v48, %v1903_v7  ;;  %2238 = vmatmul.bf16.gmra.mxu3 %v11192_v4  ;;  %v1836_v42 = vpop.f32.mrf.mxu2  ;;  %v1723_v59 = vor.u32 %v1722_v51, %v1719_v45  ;;  %v346_v48 = vadd.s32 80, %v11132_v9 }
 0x193   : > { %v1904_v18 = vadd.f32 %v1836_v42, %v11096_v21 }
 0x194   : > { %v2340_v44 = vpop.f32.mrf.mxu0  ;;  %v1724_v6 = vsel %vm13431_vm0, %v1714_v20, %v1723_v59 }
 0x195   : > { %v2199_v46 = vpop.f32.mrf.mxu3  ;;  %v2032_v16 = vsel %vm11218_vm5, %v1904_v18, 0.0  ;;  %v2526_v36 = vpop.f32.mrf.mxu1 }
 0x196   : > { %v2339_v11 = vadd.f32 %v2338_v25, %v2199_v46  ;;  %v1726_v46 = vshrl.u32 %v10186_v34, 16 }
 0x198   : > { %v2592_v7 = vadd.f32 %v2524_v17, %v2339_v11  ;;  %v442_v17 = vand.u32 15, %v346_v48 }
 0x19a   : > { %v11225_v58 = vadd.f32 %v2592_v7, %v2032_v16  ;;  %v1838_v29 = vpop.f32.mrf.mxu2  ;;  %vm11234_vm6 = vcmp.gt.s32.totalorder %v442_v17, 0 }
 0x19b   : > { %v1905_v21 = vadd.f32 %v1838_v29, %v11100_v37  ;;  %v1729_v37 = vshll.u32 %v10186_v34, 16  ;;  %v9755_v29 = vld [vmem:[#allocation2 + $0x90] sm:$0xff]   ;;  %v348_v34 = vadd.s32 96, %v11132_v9 }
 0x19c   : > { %v2343_v26 = vpop.f32.mrf.mxu0 }
 0x19d   : > { %v2201_v60 = vpop.f32.mrf.mxu3  ;;  %v2529_v40 = vpop.f32.mrf.mxu1  ;;  %v1731_v7 = vrot.slane %v1729_v37, 4 }
 0x19e   : > { %v2341_v25 = vadd.f32 %v2340_v44, %v2201_v60  ;;  %v13494_v44 = vmov 0 }
 0x19f   : > { %1880 = vmatmul.bf16.gmra.mxu2 %v1724_v6  ;;  %2382 = vmatmul.bf16.gmra.mxu0 %v11192_v4  ;;  %v13495_v44 = vsel %vm11234_vm6, 4294967295, %v13494_v44 }
 0x1a0   : > { %v2593_v42 = vadd.f32 %v2526_v36, %v2341_v25  ;;  %2568 = vmatmul.bf16.gmra.mxu1 %v9753_v0  ;;  %13496 = vst [vmem:[#allocation16_spill] sm:$0xff] %v13495_v44  ;;  %v1728_v36 = vrot.slane %v1726_v46, 3  ;;  %v9510_v25 = vunpack.c.h.b16 %v9755_v29 }
 0x1a2   : > { %v11231_v18 = vadd.f32 %v2593_v42, %v1905_v21  ;;  %2243 = vmatmul.bf16.gmra.mxu3 %v11211_v32  ;;  %v1841_v11 = vpop.f32.mrf.mxu2  ;;  %v1732_v60 = vor.u32 %v1731_v7, %v1728_v36  ;;  %v1590_v46 = vpack.c.b16 %v9510_v25, %v9510_v25  ;;  %v9288_v7 = vld [vmem:[#allocation8 + $0xf0] sm:$0xff] }
 0x1a3   : > { %v1906_v20 = vadd.f32 %v1841_v11, %v11105_v49  ;;  %v9754_v11 = vld [vmem:[#allocation2 + $0x88] sm:$0xff]   ;;  %5010 = vmatpush.bf16.msra.mxu1 %v9288_v7 }
 0x1a4   : > { %v2345_v16 = vpop.f32.mrf.mxu0  ;;  %v1733_v17 = vsel %vm13431_vm0, %v1723_v59, %v1732_v60  ;;  %v1735_v36 = vshrl.u32 %v1590_v46, 16 }
 0x1a5   : > { %v2204_v45 = vpop.f32.mrf.mxu3  ;;  %v2034_v4 = vsel %vm11234_vm6, %v1906_v20, 0.0  ;;  %v2531_v47 = vpop.f32.mrf.mxu1 }
 0x1a6   : > { %v2344_v51 = vadd.f32 %v2343_v26, %v2204_v45  ;;  %v456_v45 = vand.u32 15, %v348_v34 }
 0x1a8   : > { %v2594_v48 = vadd.f32 %v2529_v40, %v2344_v51  ;;  %v10698_v51 = vld [vmem:[#allocation2 + $0x80] sm:$0xff]   ;;  %vm11249_vm7 = vcmp.gt.s32.totalorder %v456_v45, 0 }
 0x1aa   : > { %v11241_v21 = vadd.f32 %v2594_v48, %v2034_v4  ;;  %v1843_v6 = vpop.f32.mrf.mxu2  ;;  %v13497_v4 = vmov 0 }
 0x1ab   : > { %v1907_v49 = vadd.f32 %v1843_v6, %v11109_v62  ;;  %v1738_v62 = vshll.u32 %v1590_v46, 16  ;;  %v13498_v4 = vsel %vm11249_vm7, 4294967295, %v13497_v4 }
 0x1ac   : > { %v2348_v42 = vpop.f32.mrf.mxu0  ;;  %13499 = vst [vmem:[#allocation17_spill] sm:$0xff] %v13498_v4 }
 0x1ad   : > { %v2206_v0 = vpop.f32.mrf.mxu3  ;;  %v2534_v37 = vpop.f32.mrf.mxu1  ;;  %v1740_v6 = vrot.slane %v1738_v62, 4  ;;  %v9250_v62 = vld [vmem:[#allocation2 + $0x18] sm:$0xff] }
 0x1ae   : > { %v2346_v26 = vadd.f32 %v2345_v16, %v2206_v0 }
 0x1af   : > { %1885 = vmatmul.bf16.gmra.mxu2 %v1733_v17  ;;  %2387 = vmatmul.bf16.gmra.mxu0 %v11211_v32  ;;  %v1737_v32 = vrot.slane %v1735_v36, 3 }
 0x1b0   : > { %v2595_v20 = vadd.f32 %v2531_v47, %v2346_v26  ;;  %2573 = vmatmul.bf16.gmra.mxu1 %v9754_v11  ;;  %v350_v11 = vadd.s32 112, %v11132_v9 }
 0x1b1   : > { %v1741_v17 = vor.u32 %v1740_v6, %v1737_v32  ;;  %v10699_v6 = vld [vmem:[#allocation2 + $0x88] sm:$0xff]  }
 0x1b2   : > { %v11247_v40 = vadd.f32 %v2595_v20, %v1907_v49  ;;  %2248 = vmatmul.bf16.gmra.mxu3 %v10698_v51  ;;  %v1846_v16 = vpop.f32.mrf.mxu2  ;;  %v470_v4 = vand.u32 15, %v350_v11 }
 0x1b3   : > { %v1908_v59 = vadd.f32 %v1846_v16, %v11114_v13  ;;  %v9218_v13 = vld [vmem:[#allocation2 + $0x10] sm:$0xff]  ;;  %v1742_v36 = vsel %vm13431_vm0, %v1732_v60, %v1741_v17 }
 0x1b4   : > { %v2350_v25 = vpop.f32.mrf.mxu0  ;;  %vm11267_vm8 = vcmp.gt.s32.totalorder %v470_v4, 0  ;;  %v2803_v17 = vshrl.u32 %v9218_v13, 16 }
 0x1b5   : > { %v2209_v47 = vpop.f32.mrf.mxu3  ;;  %v2036_v34 = vsel %vm11249_vm7, %v1908_v59, 0.0  ;;  %v2536_v49 = vpop.f32.mrf.mxu1 }
 0x1b6   : > { %v2349_v48 = vadd.f32 %v2348_v42, %v2209_v47  ;;  %v9217_v47 = vld [vmem:[#allocation2 + $0x8] sm:$0xff] }
 0x1b8   : > { %v2596_v0 = vadd.f32 %v2534_v37, %v2349_v48  ;;  %v11261_v37 = vld [vmem:[#allocation2 + $0x18] sm:$0xff]  ;;  %v2805_v48 = vshll.u32 %v9218_v13, 16 }
 0x1b9   : > { %v2810_v11 = vshll.u32 %v11261_v37, 16 }
 0x1ba   : > { %v11256_v26 = vadd.f32 %v2596_v0, %v2036_v34  ;;  %v1848_v46 = vpop.f32.mrf.mxu2  ;;  %v3098_v34 = vshll.u32 %v9217_v47, 16  ;;  %v13500_v0 = vmov 0 }
 0x1bb   : > { %v1909_v20 = vadd.f32 %v1848_v46, %v11118_v33  ;;  %v11265_v33 = vld [vmem:[#allocation2 + $0x20] sm:$0xff]  ;;  %v13501_v0 = vsel %vm11267_vm8, 4294967295, %v13500_v0  ;;  %v2807_v46 = vrot.slane %v2805_v48, 1  ;;  %v2812_v13 = vrot.slane %v2810_v11, 1 }
 0x1bc   : > { %v2353_v42 = vpop.f32.mrf.mxu0  ;;  %13502 = vst [vmem:[#allocation18_spill] sm:$0xff] %v13501_v0  ;;  %v3100_v44 = vrot.slane %v3098_v34, 1 }
 0x1bd   : > { %v2211_v45 = vpop.f32.mrf.mxu3  ;;  %v2539_v16 = vpop.f32.mrf.mxu1  ;;  %v2808_v54 = vor.u32 %v2807_v46, %v2803_v17 }
 0x1be   : > { %v2351_v7 = vadd.f32 %v2350_v25, %v2211_v45  ;;  %v3383_v25 = vshll.u32 %v9250_v62, 16 }
 0x1bf   : > { %1890 = vmatmul.bf16.gmra.mxu2 %v1742_v36  ;;  %2392 = vmatmul.bf16.gmra.mxu0 %v10698_v51  ;;  %v3388_v36 = vshll.u32 %v11265_v33, 16 }
 0x1c0   : > { %v2597_v59 = vadd.f32 %v2536_v49, %v2351_v7  ;;  %2578 = vmatmul.bf16.gmra.mxu1 %v9755_v29  ;;  %v3381_v7 = vshrl.u32 %v9250_v62, 16  ;;  %v3385_v29 = vrot.slane %v3383_v25, 1  ;;  %v352_v62 = vadd.s32 128, %v11132_v9 }
 0x1c2   : > { %v11263_v32 = vadd.f32 %v2597_v59, %v1909_v20  ;;  %2253 = vmatmul.bf16.gmra.mxu3 %v10699_v6  ;;  %v1851_v60 = vpop.f32.mrf.mxu2  ;;  %v3096_v6 = vshrl.u32 %v9217_v47, 16  ;;  %v3386_v48 = vor.u32 %v3385_v29, %v3381_v7  ;;  %v2813_v47 = vsel %vm13442_vm9, %v2808_v54, %v2812_v13  ;;  %v9252_v7 = vld [vmem:[#allocation2 + $0x28] sm:$0xff] }
 0x1c3   : > { %v1910_v49 = vadd.f32 %v1851_v60, %v11125_v50  ;;  %v3390_v60 = vrot.slane %v3388_v36, 1  ;;  %v484_v11 = vand.u32 15, %v352_v62 }
 0x1c4   : > { %v2355_v45 = vpop.f32.mrf.mxu0 }
 0x1c5   : > { %v2214_v51 = vpop.f32.mrf.mxu3  ;;  %v2038_v59 = vsel %vm11267_vm8, %v1910_v49, 0.0  ;;  %v2541_v4 = vpop.f32.mrf.mxu1  ;;  %vm11285_vm10 = vcmp.gt.s32.totalorder %v484_v11, 0 }
 0x1c6   : > { %v2354_v20 = vadd.f32 %v2353_v42, %v2214_v51  ;;  %v3101_v42 = vor.u32 %v3100_v44, %v3096_v6  ;;  %v3396_v6 = vshll.u32 %v9252_v7, 16 }
 0x1c8   : > { %v2598_v10 = vadd.f32 %v2539_v16, %v2354_v20  ;;  %v3391_v16 = vsel %vm13442_vm9, %v3386_v48, %v3390_v60  ;;  %v9220_v20 = vld [vmem:[#allocation2 + $0x20] sm:$0xff] }
 0x1ca   : > { %v11276_v50 = vadd.f32 %v2598_v10, %v2038_v59  ;;  %v1853_v51 = vpop.f32.mrf.mxu2  ;;  %v3102_v10 = vsel %vm13442_vm9, %v3101_v42, %v2807_v46  ;;  %v2818_v59 = vshll.u32 %v9220_v20, 16 }
 0x1cb   : > { %v1911_v25 = vadd.f32 %v1853_v51, %v11130_v3  ;;  %v9287_v3 = vld [vmem:[#allocation8 + $0xe8] sm:$0xff] }
 0x1cc   : > { %v2358_v49 = vpop.f32.mrf.mxu0  ;;  %5011 = vmatpush.bf16.msra.mxu1 %v9287_v3 }
 0x1cd   : > { %v2216_v38 = vpop.f32.mrf.mxu3  ;;  %v2544_v34 = vpop.f32.mrf.mxu1 }
 0x1ce   : > { %v2356_v0 = vadd.f32 %v2355_v45, %v2216_v38  ;;  %v13503_v38 = vmov 0 }
 0x1cf   : > { %3006 = vmatmul.bf16.vlgmr.msra.gmra.mxu2 %v2813_v47  ;;  %3584 = vmatmul.bf16.vlgmr.msra.gmra.mxu0 %v3391_v16  ;;  %v13504_v38 = vsel %vm11285_vm10, 4294967295, %v13503_v38  ;;  %v2820_v16 = vrot.slane %v2818_v59, 1 }
 0x1d0   : > { %v2599_v17 = vadd.f32 %v2541_v4, %v2356_v0  ;;  %13505 = vst [vmem:[#allocation19_spill] sm:$0xff] %v13504_v38  ;;  %v2814_v0 = vshrl.u32 %v11261_v37, 16  ;;  %v3392_v4 = vshrl.u32 %v11265_v33, 16  ;;  %v354_v37 = vadd.s32 144, %v11132_v9 }
 0x1d2   : > { %v11283_v44 = vadd.f32 %v2599_v17, %v1911_v25  ;;  %3166 = vmatmul.bf16.vlgmr.msra.gmra.mxu3 %v3102_v10  ;;  %v1856_v29 = vpop.f32.mrf.mxu2  ;;  %v2816_v62 = vor.u32 %v2814_v0, %v2812_v13  ;;  %v3394_v10 = vor.u32 %v3392_v4, %v3390_v60  ;;  %v498_v13 = vand.u32 15, %v354_v37  ;;  %v9221_v60 = vld [vmem:[#allocation2 + $0x28] sm:$0xff] }
 0x1d3   : > { %v1912_v54 = vadd.f32 %v1856_v29, %v11061_v63  ;;  %v3398_v63 = vrot.slane %v3396_v6, 1  ;;  %v2822_v6 = vshrl.u32 %v9220_v20, 16 }
 0x1d4   : > { %v2360_v36 = vpop.f32.mrf.mxu0  ;;  %v2821_v29 = vsel %vm13442_vm9, %v2816_v62, %v2820_v16  ;;  %vm11302_vm11 = vcmp.gt.s32.totalorder %v498_v13, 0  ;;  %v3400_v62 = vshrl.u32 %v9252_v7, 16 }
 0x1d5   : > { %v2219_v46 = vpop.f32.mrf.mxu3  ;;  %v2040_v48 = vsel %vm11285_vm10, %v1912_v54, 0.0  ;;  %v2546_v42 = vpop.f32.mrf.mxu1  ;;  %v3399_v54 = vsel %vm13442_vm9, %v3394_v10, %v3398_v63 }
 0x1d6   : > { %v2359_v45 = vadd.f32 %v2358_v49, %v2219_v46 }
 0x1d8   : > { %v2600_v51 = vadd.f32 %v2544_v34, %v2359_v45  ;;  %v9253_v45 = vld [vmem:[#allocation2 + $0x30] sm:$0xff] }
 0x1d9   : > { %v3404_v10 = vshll.u32 %v9253_v45, 16 }
 0x1da   : > { %v11294_v25 = vadd.f32 %v2600_v51, %v2040_v48  ;;  %v1858_v17 = vpop.f32.mrf.mxu2 }
 0x1db   : > { %v1913_v49 = vadd.f32 %v1858_v17, %v11065_v8  ;;  %v13506_v8 = vmov 0 }
 0x1dc   : > { %v2363_v33 = vpop.f32.mrf.mxu0  ;;  %v13507_v8 = vsel %vm11302_vm11, 4294967295, %v13506_v8 }
 0x1dd   : > { %v2221_v11 = vpop.f32.mrf.mxu3  ;;  %v2549_v46 = vpop.f32.mrf.mxu1  ;;  %13508 = vst [vmem:[#allocation20_spill] sm:$0xff] %v13507_v8 }
 0x1de   : > { %v2361_v3 = vadd.f32 %v2360_v36, %v2221_v11 }
 0x1df   : > { %3011 = vmatmul.bf16.gmra.mxu2 %v2821_v29  ;;  %3589 = vmatmul.bf16.gmra.mxu0 %v3399_v54  ;;  %v3402_v54 = vor.u32 %v3400_v62, %v3398_v63  ;;  %v9222_v63 = vld [vmem:[#allocation2 + $0x30] sm:$0xff] }
 0x1e0   : > { %v2601_v34 = vadd.f32 %v2546_v42, %v2361_v3  ;;  %v2826_v42 = vshll.u32 %v9221_v60, 16 }
 0x1e2   : > { %v11300_v0 = vadd.f32 %v2601_v34, %v1913_v49  ;;  %3171 = vmatmul.bf16.gmra.mxu3 %v2813_v47  ;;  %v1861_v59 = vpop.f32.mrf.mxu2  ;;  %v2824_v49 = vor.u32 %v2822_v6, %v2820_v16  ;;  %v2828_v3 = vrot.slane %v2826_v42, 1  ;;  %v3406_v34 = vrot.slane %v3404_v10, 1  ;;  %v9286_v42 = vld [vmem:[#allocation8 + $0xe0] sm:$0xff] }
 0x1e3   : > { %v1914_v36 = vadd.f32 %v1861_v59, %v11071_v23  ;;  %v356_v23 = vadd.s32 160, %v11132_v9  ;;  %5012 = vmatpush.bf16.msra.mxu1 %v9286_v42 }
 0x1e4   : > { %v2365_v51 = vpop.f32.mrf.mxu0 }
 0x1e5   : > { %v2224_v4 = vpop.f32.mrf.mxu3  ;;  %v2042_v17 = vsel %vm11302_vm11, %v1914_v36, 0.0  ;;  %v2551_v47 = vpop.f32.mrf.mxu1  ;;  %v3407_v36 = vsel %vm13442_vm9, %v3402_v54, %v3406_v34  ;;  %v512_v16 = vand.u32 15, %v356_v23  ;;  %v3408_v54 = vshrl.u32 %v9253_v45, 16 }
 0x1e6   : > { %v2364_v48 = vadd.f32 %v2363_v33, %v2224_v4  ;;  %v2829_v4 = vsel %vm13442_vm9, %v2824_v49, %v2828_v3  ;;  %v2834_v49 = vshll.u32 %v9222_v63, 16 }
 0x1e7   : > { %vm11317_vm12 = vcmp.gt.s32.totalorder %v512_v16, 0 }
 0x1e8   : > { %v2602_v37 = vadd.f32 %v2549_v46, %v2364_v48  ;;  %v9254_v48 = vld [vmem:[#allocation2 + $0x38] sm:$0xff] }
 0x1ea   : > { %v11309_v11 = vadd.f32 %v2602_v37, %v2042_v17  ;;  %v1863_v13 = vpop.f32.mrf.mxu2  ;;  %v2830_v17 = vshrl.u32 %v9221_v60, 16 }
 0x1eb   : > { %v1915_v20 = vadd.f32 %v1863_v13, %v11075_v31  ;;  %v13509_v31 = vmov 0  ;;  %v3412_v13 = vshll.u32 %v9254_v48, 16 }
 0x1ec   : > { %v2368_v7 = vpop.f32.mrf.mxu0  ;;  %v13510_v31 = vsel %vm11317_vm12, 4294967295, %v13509_v31 }
 0x1ed   : > { %v2226_v33 = vpop.f32.mrf.mxu3  ;;  %v2554_v8 = vpop.f32.mrf.mxu1  ;;  %13511 = vst [vmem:[#allocation21_spill] sm:$0xff] %v13510_v31  ;;  %v3414_v16 = vrot.slane %v3412_v13, 1  ;;  %v2838_v13 = vshrl.u32 %v9222_v63, 16 }
 0x1ee   : > { %v2366_v59 = vadd.f32 %v2365_v51, %v2226_v33  ;;  %v2832_v33 = vor.u32 %v2830_v17, %v2828_v3 }
 0x1ef   : > { %3016 = vmatmul.bf16.gmra.mxu2 %v2829_v4  ;;  %3594 = vmatmul.bf16.gmra.mxu0 %v3407_v36  ;;  %v2836_v36 = vrot.slane %v2834_v49, 1 }
 0x1f0   : > { %v2603_v46 = vadd.f32 %v2551_v47, %v2366_v59 }
 0x1f2   : > { %v11315_v6 = vadd.f32 %v2603_v46, %v1915_v20  ;;  %3176 = vmatmul.bf16.gmra.mxu3 %v2821_v29  ;;  %v1866_v62 = vpop.f32.mrf.mxu2  ;;  %v3410_v46 = vor.u32 %v3408_v54, %v3406_v34  ;;  %v9223_v34 = vld [vmem:[#allocation2 + $0x38] sm:$0xff] }
 0x1f3   : > { %v1916_v51 = vadd.f32 %v1866_v62, %v11080_v43  ;;  %v358_v43 = vadd.s32 176, %v11132_v9 }
 0x1f4   : > { %v2370_v37 = vpop.f32.mrf.mxu0 }
 0x1f5   : > { %v2229_v10 = vpop.f32.mrf.mxu3  ;;  %v2044_v29 = vsel %vm11317_vm12, %v1916_v51, 0.0  ;;  %v2556_v23 = vpop.f32.mrf.mxu1  ;;  %v3415_v51 = vsel %vm13442_vm9, %v3410_v46, %v3414_v16  ;;  %v526_v3 = vand.u32 15, %v358_v43 }
 0x1f6   : > { %v2369_v47 = vadd.f32 %v2368_v7, %v2229_v10  ;;  %v2837_v10 = vsel %vm13442_vm9, %v2832_v33, %v2836_v36  ;;  %v3416_v33 = vshrl.u32 %v9254_v48, 16 }
 0x1f7   : > { %vm11332_vm13 = vcmp.gt.s32.totalorder %v526_v3, 0 }
 0x1f8   : > { %v2604_v20 = vadd.f32 %v2554_v8, %v2369_v47  ;;  %v9255_v47 = vld [vmem:[#allocation2 + $0x40] sm:$0xff] }
 0x1f9   : > { %v3420_v46 = vshll.u32 %v9255_v47, 16 }
 0x1fa   : > { %v11324_v59 = vadd.f32 %v2604_v20, %v2044_v29  ;;  %v1868_v42 = vpop.f32.mrf.mxu2 }
 0x1fb   : > { %v1917_v60 = vadd.f32 %v1868_v42, %v11084_v53  ;;  %v13512_v53 = vmov 0 }
 0x1fc   : > { %v2373_v45 = vpop.f32.mrf.mxu0  ;;  %v13513_v53 = vsel %vm11332_vm13, 4294967295, %v13512_v53 }
 0x1fd   : > { %v2231_v7 = vpop.f32.mrf.mxu3  ;;  %v2559_v31 = vpop.f32.mrf.mxu1  ;;  %13514 = vst [vmem:[#allocation22_spill] sm:$0xff] %v13513_v53 }
 0x1fe   : > { %v2371_v62 = vadd.f32 %v2370_v37, %v2231_v7 }
 0x1ff   : > { %3021 = vmatmul.bf16.gmra.mxu2 %v2837_v10  ;;  %3599 = vmatmul.bf16.gmra.mxu0 %v3415_v51  ;;  %v3418_v51 = vor.u32 %v3416_v33, %v3414_v16  ;;  %v9224_v16 = vld [vmem:[#allocation2 + $0x40] sm:$0xff] }
 0x200   : > { %v2605_v8 = vadd.f32 %v2556_v23, %v2371_v62  ;;  %v2842_v23 = vshll.u32 %v9223_v34, 16 }
 0x202   : > { %v11330_v17 = vadd.f32 %v2605_v8, %v1917_v60  ;;  %3181 = vmatmul.bf16.gmra.mxu3 %v2829_v4  ;;  %v1871_v49 = vpop.f32.mrf.mxu2  ;;  %v2840_v60 = vor.u32 %v2838_v13, %v2836_v36  ;;  %v2844_v62 = vrot.slane %v2842_v23, 1  ;;  %v3422_v8 = vrot.slane %v3420_v46, 1  ;;  %v9285_v23 = vld [vmem:[#allocation8 + $0xd8] sm:$0xff] }
 0x203   : > { %v1918_v37 = vadd.f32 %v1871_v49, %v11089_v1  ;;  %v360_v1 = vadd.s32 192, %v11132_v9  ;;  %5013 = vmatpush.bf16.msra.mxu1 %v9285_v23 }
 0x204   : > { %v2375_v20 = vpop.f32.mrf.mxu0 }
 0x205   : > { %v2234_v54 = vpop.f32.mrf.mxu3  ;;  %v2046_v42 = vsel %vm11332_vm13, %v1918_v37, 0.0  ;;  %v2561_v4 = vpop.f32.mrf.mxu1  ;;  %v3423_v37 = vsel %vm13442_vm9, %v3418_v51, %v3422_v8  ;;  %v540_v36 = vand.u32 15, %v360_v1  ;;  %v3424_v51 = vshrl.u32 %v9255_v47, 16 }
 0x206   : > { %v2374_v29 = vadd.f32 %v2373_v45, %v2234_v54  ;;  %v2845_v54 = vsel %vm13442_vm9, %v2840_v60, %v2844_v62  ;;  %v2850_v60 = vshll.u32 %v9224_v16, 16 }
 0x207   : > { %vm11347_vm14 = vcmp.gt.s32.totalorder %v540_v36, 0 }
 0x208   : > { %v2606_v43 = vadd.f32 %v2559_v31, %v2374_v29  ;;  %v9256_v29 = vld [vmem:[#allocation2 + $0x48] sm:$0xff] }
 0x20a   : > { %v11339_v7 = vadd.f32 %v2606_v43, %v2046_v42  ;;  %v1873_v3 = vpop.f32.mrf.mxu2  ;;  %v2846_v42 = vshrl.u32 %v9223_v34, 16 }
 0x20b   : > { %v1919_v63 = vadd.f32 %v1873_v3, %v11093_v12  ;;  %v13516_v12 = vmov 0  ;;  %v3428_v3 = vshll.u32 %v9256_v29, 16 }
 0x20c   : > { %v2378_v48 = vpop.f32.mrf.mxu0  ;;  %v13517_v12 = vsel %vm11347_vm14, 4294967295, %v13516_v12 }
 0x20d   : > { %v2236_v45 = vpop.f32.mrf.mxu3  ;;  %v2564_v53 = vpop.f32.mrf.mxu1  ;;  %13518 = vst [vmem:[#allocation24_spill] sm:$0xff] %v13517_v12  ;;  %v3430_v36 = vrot.slane %v3428_v3, 1  ;;  %v2854_v3 = vshrl.u32 %v9224_v16, 16 }
 0x20e   : > { %v2376_v49 = vadd.f32 %v2375_v20, %v2236_v45  ;;  %v2848_v45 = vor.u32 %v2846_v42, %v2844_v62 }
 0x20f   : > { %3026 = vmatmul.bf16.gmra.mxu2 %v2845_v54  ;;  %3604 = vmatmul.bf16.gmra.mxu0 %v3423_v37  ;;  %v2852_v37 = vrot.slane %v2850_v60, 1 }
 0x210   : > { %v2607_v31 = vadd.f32 %v2561_v4, %v2376_v49 }
 0x212   : > { %v11345_v13 = vadd.f32 %v2607_v31, %v1919_v63  ;;  %3186 = vmatmul.bf16.gmra.mxu3 %v2837_v10  ;;  %v1876_v33 = vpop.f32.mrf.mxu2  ;;  %v3426_v31 = vor.u32 %v3424_v51, %v3422_v8  ;;  %v9225_v8 = vld [vmem:[#allocation2 + $0x48] sm:$0xff] }
 0x213   : > { %v1920_v20 = vadd.f32 %v1876_v33, %v11098_v30  ;;  %v362_v30 = vadd.s32 208, %v11132_v9 }
 0x214   : > { %13515 = vst [vmem:[#allocation23_spill] sm:$0xff] %v11345_v13  ;;  %v2380_v43 = vpop.f32.mrf.mxu0 }
 0x215   : > { %v2239_v46 = vpop.f32.mrf.mxu3  ;;  %v2048_v10 = vsel %vm11347_vm14, %v1920_v20, 0.0  ;;  %v2566_v1 = vpop.f32.mrf.mxu1  ;;  %v3431_v20 = vsel %vm13442_vm9, %v3426_v31, %v3430_v36  ;;  %v554_v62 = vand.u32 15, %v362_v30  ;;  %vm13547_vm14 = vsmask.f32 7424 }
 0x216   : > { %v2379_v4 = vadd.f32 %v2378_v48, %v2239_v46  ;;  %v2853_v46 = vsel %vm13442_vm9, %v2848_v45, %v2852_v37  ;;  %v3432_v45 = vshrl.u32 %v9256_v29, 16  ;;  %vm13548_vm13 = vmmov %vm13547_vm14 }
 0x217   : > { %vm11362_vm15 = vcmp.gt.s32.totalorder %v554_v62, 0 }
 0x218   : > { %v2608_v63 = vadd.f32 %v2564_v53, %v2379_v4  ;;  %v9257_v4 = vld [vmem:[#allocation2 + $0x50] sm:$0xff] }
 0x219   : > { %v3436_v31 = vshll.u32 %v9257_v4, 16 }
 0x21a   : > { %v11354_v49 = vadd.f32 %v2608_v63, %v2048_v10  ;;  %v1878_v23 = vpop.f32.mrf.mxu2 }
 0x21b   : > { %v1921_v34 = vadd.f32 %v1878_v23, %v11102_v41  ;;  %v13521_v41 = vmov 0 }
 0x21c   : > { %13519 = vst [vmem:[#allocation25_spill] sm:$0xff] %v11354_v49  ;;  %v2383_v47 = vpop.f32.mrf.mxu0  ;;  %v13522_v41 = vsel %vm11362_vm15, 4294967295, %v13521_v41 }
 0x21d   : > { %v2241_v48 = vpop.f32.mrf.mxu3  ;;  %v2569_v12 = vpop.f32.mrf.mxu1  ;;  %13523 = vst [vmem:[#allocation27_spill] sm:$0xff] %v13522_v41 }
 0x21e   : > { %v2381_v33 = vadd.f32 %v2380_v43, %v2241_v48 }
 0x21f   : > { %3031 = vmatmul.bf16.gmra.mxu2 %v2853_v46  ;;  %3609 = vmatmul.bf16.gmra.mxu0 %v3431_v20  ;;  %v3434_v20 = vor.u32 %v3432_v45, %v3430_v36  ;;  %v9226_v36 = vld [vmem:[#allocation2 + $0x50] sm:$0xff] }
 0x220   : > { %v2609_v53 = vadd.f32 %v2566_v1, %v2381_v33  ;;  %v2858_v1 = vshll.u32 %v9225_v8, 16 }
 0x222   : > { %v11360_v42 = vadd.f32 %v2609_v53, %v1921_v34  ;;  %3191 = vmatmul.bf16.gmra.mxu3 %v2845_v54  ;;  %v1881_v60 = vpop.f32.mrf.mxu2  ;;  %v2856_v34 = vor.u32 %v2854_v3, %v2852_v37  ;;  %v2860_v33 = vrot.slane %v2858_v1, 1  ;;  %v3438_v53 = vrot.slane %v3436_v31, 1  ;;  %v9284_v1 = vld [vmem:[#allocation8 + $0xd0] sm:$0xff] }
 0x223   : > { %v1922_v43 = vadd.f32 %v1881_v60, %v11107_v55  ;;  %v364_v55 = vadd.s32 224, %v11132_v9  ;;  %5014 = vmatpush.bf16.msra.mxu1 %v9284_v1 }
 0x224   : > { %13520 = vst [vmem:[#allocation26_spill] sm:$0xff] %v11360_v42  ;;  %v2385_v63 = vpop.f32.mrf.mxu0 }
 0x225   : > { %v2244_v51 = vpop.f32.mrf.mxu3  ;;  %v2050_v23 = vsel %vm11362_vm15, %v1922_v43, 0.0  ;;  %v2571_v54 = vpop.f32.mrf.mxu1  ;;  %v3439_v43 = vsel %vm13442_vm9, %v3434_v20, %v3438_v53  ;;  %v568_v37 = vand.u32 15, %v364_v55  ;;  %v3440_v20 = vshrl.u32 %v9257_v4, 16 }
 0x226   : > { %v2384_v10 = vadd.f32 %v2383_v47, %v2244_v51  ;;  %v2861_v51 = vsel %vm13442_vm9, %v2856_v34, %v2860_v33  ;;  %v2866_v34 = vshll.u32 %v9226_v36, 16 }
 0x227   : > { %vm11377_vm0 = vcmp.gt.s32.totalorder %v568_v37, 0 }
 0x228   : > { %v2610_v30 = vadd.f32 %v2569_v12, %v2384_v10  ;;  %v9258_v10 = vld [vmem:[#allocation2 + $0x58] sm:$0xff] }
 0x22a   : > { %v11369_v48 = vadd.f32 %v2610_v30, %v2050_v23  ;;  %v1883_v62 = vpop.f32.mrf.mxu2  ;;  %v2862_v23 = vshrl.u32 %v9225_v8, 16 }
 0x22b   : > { %v1923_v16 = vadd.f32 %v1883_v62, %v11111_v15  ;;  %v13526_v15 = vmov 0  ;;  %v3444_v62 = vshll.u32 %v9258_v10, 16 }
 0x22c   : > { %13524 = vst [vmem:[#allocation28_spill] sm:$0xff] %v11369_v48  ;;  %v2388_v29 = vpop.f32.mrf.mxu0  ;;  %v13527_v15 = vsel %vm11377_vm0, 4294967295, %v13526_v15 }
 0x22d   : > { %v2246_v47 = vpop.f32.mrf.mxu3  ;;  %v2574_v41 = vpop.f32.mrf.mxu1  ;;  %13528 = vst [vmem:[#allocation30_spill] sm:$0xff] %v13527_v15  ;;  %v3446_v37 = vrot.slane %v3444_v62, 1 }
 0x22e   : > { %v2386_v60 = vadd.f32 %v2385_v63, %v2246_v47  ;;  %v2864_v47 = vor.u32 %v2862_v23, %v2860_v33  ;;  %v9259_v23 = vld [vmem:[#allocation2 + $0x60] sm:$0xff] }
 0x22f   : > { %3036 = vmatmul.bf16.gmra.mxu2 %v2861_v51  ;;  %3614 = vmatmul.bf16.gmra.mxu0 %v3439_v43  ;;  %v2868_v43 = vrot.slane %v2866_v34, 1 }
 0x230   : > { %v2611_v12 = vadd.f32 %v2571_v54, %v2386_v60 }
 0x232   : > { %v11375_v3 = vadd.f32 %v2611_v12, %v1923_v16  ;;  %3196 = vmatmul.bf16.gmra.mxu3 %v2853_v46  ;;  %v1886_v45 = vpop.f32.mrf.mxu2  ;;  %v3442_v12 = vor.u32 %v3440_v20, %v3438_v53  ;;  %v9227_v53 = vld [vmem:[#allocation2 + $0x58] sm:$0xff] }
 0x233   : > { %v1924_v63 = vadd.f32 %v1886_v45, %v11116_v27  ;;  %v366_v27 = vadd.s32 240, %v11132_v9 }
 0x234   : > { %13525 = vst [vmem:[#allocation29_spill] sm:$0xff] %v11375_v3  ;;  %v2390_v30 = vpop.f32.mrf.mxu0 }
 0x235   : > { %v2249_v31 = vpop.f32.mrf.mxu3  ;;  %v2052_v46 = vsel %vm11377_vm0, %v1924_v63, 0.0  ;;  %v2576_v16 = vpop.f32.mrf.mxu1  ;;  %v3447_v63 = vsel %vm13442_vm9, %v3442_v12, %v3446_v37  ;;  %v3448_v12 = vshrl.u32 %v9258_v10, 16 }
 0x236   : > { %v2389_v54 = vadd.f32 %v2388_v29, %v2249_v31  ;;  %v2869_v31 = vsel %vm13442_vm9, %v2864_v47, %v2868_v43  ;;  %v2874_v47 = vshll.u32 %v9227_v53, 16 }
 0x238   : > { %v2612_v55 = vadd.f32 %v2574_v41, %v2389_v54  ;;  %v582_v54 = vand.u32 15, %v366_v27 }
 0x23a   : > { %v11384_v60 = vadd.f32 %v2612_v55, %v2052_v46  ;;  %v1888_v1 = vpop.f32.mrf.mxu2  ;;  %vm11392_vm0 = vcmp.gt.s32.totalorder %v582_v54, 0  ;;  %v2870_v46 = vshrl.u32 %v9226_v36, 16 }
 0x23b   : > { %v1925_v8 = vadd.f32 %v1888_v1, %v11120_v39  ;;  %v13531_v39 = vmov 0  ;;  %v3452_v1 = vshll.u32 %v9259_v23, 16 }
 0x23c   : > { %13529 = vst [vmem:[#allocation31_spill] sm:$0xff] %v11384_v60  ;;  %v2393_v4 = vpop.f32.mrf.mxu0  ;;  %v13532_v39 = vsel %vm11392_vm0, 4294967295, %v13531_v39 }
 0x23d   : > { %v2251_v29 = vpop.f32.mrf.mxu3  ;;  %v2579_v34 = vpop.f32.mrf.mxu1  ;;  %13533 = vst [vmem:[#allocation33_spill] sm:$0xff] %v13532_v39 }
 0x23e   : > { %v2391_v45 = vadd.f32 %v2390_v30, %v2251_v29 }
 0x23f   : > { %3041 = vmatmul.bf16.gmra.mxu2 %v2869_v31  ;;  %3619 = vmatmul.bf16.gmra.mxu0 %v3447_v63  ;;  %v3450_v63 = vor.u32 %v3448_v12, %v3446_v37  ;;  %v9260_v37 = vld [vmem:[#allocation2 + $0x68] sm:$0xff] }
 0x240   : > { %v2613_v41 = vadd.f32 %v2576_v16, %v2391_v45  ;;  %v2876_v45 = vrot.slane %v2874_v47, 1 }
 0x242   : > { %v11390_v33 = vadd.f32 %v2613_v41, %v1925_v8  ;;  %3201 = vmatmul.bf16.gmra.mxu3 %v2861_v51  ;;  %v1891_v20 = vpop.f32.mrf.mxu2  ;;  %v2872_v8 = vor.u32 %v2870_v46, %v2868_v43  ;;  %v3454_v41 = vrot.slane %v3452_v1, 1  ;;  %v3460_v1 = vshll.u32 %v9260_v37, 16 }
 0x243   : > { %v1926_v30 = vadd.f32 %v1891_v20, %v11128_v57 }
 0x244   : > { %13530 = vst [vmem:[#allocation32_spill] sm:$0xff] %v11390_v33  ;;  %v2395_v16 = vpop.f32.mrf.mxu0  ;;  %v2877_v10 = vsel %vm13442_vm9, %v2872_v8, %v2876_v45  ;;  %v3455_v15 = vsel %vm13442_vm9, %v3450_v63, %v3454_v41 }
 0x245   : > { %v2254_v62 = vpop.f32.mrf.mxu3  ;;  %v2054_v51 = vsel %vm11392_vm0, %v1926_v30, 0.0  ;;  %v2581_v36 = vpop.f32.mrf.mxu1 }
 0x246   : > { %v2394_v55 = vadd.f32 %v2393_v4, %v2254_v62 }
 0x248   : > { %v2614_v27 = vadd.f32 %v2579_v34, %v2394_v55  ;;  %v9228_v34 = vld [vmem:[#allocation2 + $0x60] sm:$0xff]  ;;  %v2878_v55 = vshrl.u32 %v9227_v53, 16 }
 0x249   : > { %v2882_v12 = vshll.u32 %v9228_v34, 16  ;;  %v11416_v53 = vld [vmem:[%s13415_s3] ss:$0 sm:$0xff] }
 0x24a   : > { %v11399_v29 = vadd.f32 %v2614_v27, %v2054_v51  ;;  %v1893_v54 = vpop.f32.mrf.mxu2  ;;  %v337_v51 = vadd.s32 8, %v11132_v9 }
 0x24b   : > { %v1927_v57 = vadd.f32 %v1893_v54, %v11134_v14  ;;  %v2884_v8 = vrot.slane %v2882_v12, 1 }
 0x24c   : > { %13534 = vst [vmem:[#allocation34_spill] sm:$0xff] %v11399_v29  ;;  %v3585_v62 = vpop.f32.mrf.mxu0  ;;  %v379_v54 = vand.u32 15, %v337_v51 }
 0x24d   : > { %v2256_v20 = vpop.f32.mrf.mxu3 }
 0x24e   : > { %v2396_v4 = vadd.f32 %v2395_v16, %v2256_v20  ;;  %v3456_v16 = vshrl.u32 %v9259_v23, 16  ;;  %v3462_v23 = vrot.slane %v3460_v1, 1  ;;  %vm11424_vm0 = vcmp.lt.s32.totalorder %v379_v54, 15  ;;  %v11433_v1 = vld [vmem:[#allocation2 + $0x70] sm:$0xff] }
 0x24f   : > { %3046 = vmatmul.bf16.gmra.mxu2 %v2877_v10  ;;  %3624 = vmatmul.bf16.gmra.mxu0 %v3455_v15  ;;  %v11410_v15 = vld [vmem:[%s13414_s2] ss:$0 sm:$0xff]  ;;  %v2886_v54 = vshrl.u32 %v9228_v34, 16 }
 0x250   : > { %v2615_v39 = vadd.f32 %v2581_v36, %v2396_v4  ;;  %v3458_v63 = vor.u32 %v3456_v16, %v3454_v41 }
 0x252   : > { %v11404_v43 = vadd.f32 %v2615_v39, %v1927_v57  ;;  %3206 = vmatmul.bf16.gmra.mxu3 %v2869_v31  ;;  %v3007_v30 = vpop.f32.mrf.mxu2  ;;  %v2880_v39 = vor.u32 %v2878_v55, %v2876_v45 }
 0x254   : > { %13535 = vst [vmem:[#allocation35_spill] sm:$0xff] %v11404_v43  ;;  %v3587_v47 = vpop.f32.mrf.mxu0 }
 0x255   : > { %v3167_v46 = vpop.f32.mrf.mxu3 }
 0x256   : > { %v3168_v14 = vadd.f32 %v3167_v46, %v3007_v30  ;;  %v3463_v30 = vsel %vm13442_vm9, %v3458_v63, %v3462_v23  ;;  %v13536_v46 = vmov 0 }
 0x257   : > { %v13537_v46 = vsel %vm11424_vm0, 4294967295, %v13536_v46 }
 0x258   : > { %v3665_v27 = vadd.f32 %v3585_v62, %v3168_v14  ;;  %13538 = vst [vmem:[#allocation36_spill] sm:$0xff] %v13537_v46  ;;  %v11429_v14 = vld [vmem:[#allocation2 + $0x68] sm:$0xff] }
 0x25a   : > { %v3825_v31 = vadd.f32 %v3665_v27, %v11149_v56  ;;  %v3009_v20 = vpop.f32.mrf.mxu2  ;;  %v2885_v56 = vsel %vm13442_vm9, %v2880_v39, %v2884_v8 }
 0x25c   : > { %v3861_v57 = vmul.f32 %v11410_v15, %v3825_v31  ;;  %v3590_v45 = vpop.f32.mrf.mxu0 }
 0x25d   : > { %v3169_v36 = vpop.f32.mrf.mxu3 }
 0x25e   : > { %v11420_v4 = vadd.f32 %v11416_v53, %v3861_v57  ;;  %v3170_v62 = vadd.f32 %v3169_v36, %v3009_v20  ;;  %v3464_v36 = vshrl.u32 %v9260_v37, 16 }
 0x25f   : > { %3051 = vmatmul.bf16.gmra.mxu2 %v2885_v56  ;;  %3629 = vmatmul.bf16.gmra.mxu0 %v3463_v30 }
 0x260   : > { %v4025_v41 = vand.u32 2147483647, %v11420_v4  ;;  %v3666_v55 = vadd.f32 %v3587_v47, %v3170_v62  ;;  %v2890_v47 = vshll.u32 %v11429_v14, 16  ;;  %v3468_v62 = vshll.u32 %v11433_v1, 16 }
 0x262   : > { %v4057_v12 = vsub.f32 0.0, %v4025_v41  ;;  %v3794_v16 = vsel %vm11424_vm0, %v3666_v55, 0.0  ;;  %3211 = vmatmul.bf16.gmra.mxu3 %v2877_v10  ;;  %v3012_v39 = vpop.f32.mrf.mxu2  ;;  %v2888_v55 = vor.u32 %v2886_v54, %v2884_v8  ;;  %v2892_v34 = vrot.slane %v2890_v47, 1  ;;  %v11455_v54 = vld [vmem:[#allocation2 + $0x78] sm:$0xff] }
 0x263   : > { %v3826_v51 = vadd.f32 %v3794_v16, %v11157_v22  ;;  %v339_v22 = vadd.s32 24, %v11132_v9  ;;  %v3466_v16 = vor.u32 %v3464_v36, %v3462_v23  ;;  %v11453_v23 = vld [vmem:[#allocation2 + $0x70] sm:$0xff] }
 0x264   : > { %v4089_v27 = vmul.f32 1.442695, %v4057_v12  ;;  %v3592_v20 = vpop.f32.mrf.mxu0  ;;  %v11450_v8 = vsel %vm13442_vm9, %v2888_v55, %v2892_v34  ;;  %v2898_v55 = vshll.u32 %v11453_v23, 16 }
 0x265   : > { %v3862_v31 = vmul.f32 %v11410_v15, %v3826_v51  ;;  %v3172_v63 = vpop.f32.mrf.mxu3  ;;  %v3470_v51 = vrot.slane %v3468_v62, 1  ;;  %v393_v46 = vand.u32 15, %v339_v22  ;;  %v13539_v62 = vmov 0 }
 0x266   : > { %10314 = vpow2.f32 %v4089_v27  ;;  %v3173_v57 = vadd.f32 %v3172_v63, %v3012_v39  ;;  %v2900_v29 = vrot.slane %v2898_v55, 1 }
 0x267   : > { %v11440_v10 = vadd.f32 %v11416_v53, %v3862_v31  ;;  %vm11458_vm0 = vcmp.lt.s32.totalorder %v393_v46, 15  ;;  %v3472_v46 = vshrl.u32 %v11433_v1, 16 }
 0x268   : > { %v3667_v30 = vadd.f32 %v3590_v45, %v3173_v57  ;;  %v13540_v62 = vsel %vm11458_vm0, 4294967295, %v13539_v62 }
 0x269   : > { %v4026_v41 = vand.u32 2147483647, %v11440_v10  ;;  %13541 = vst [vmem:[#allocation37_spill] sm:$0xff] %v13540_v62  ;;  %v3474_v33 = vor.u32 %v3472_v46, %v3470_v51  ;;  %v3930_v55 = vmax.f32 %v11440_v10, 0.0 }
 0x26a   : > { %v3827_v12 = vadd.f32 %v3667_v30, %v11168_v52  ;;  %v3014_v63 = vpop.f32.mrf.mxu2  ;;  %v3471_v52 = vsel %vm13442_vm9, %v3466_v16, %v3470_v51  ;;  %v341_v30 = vadd.s32 40, %v11132_v9 }
 0x26b   : > { %v4058_v27 = vsub.f32 0.0, %v4026_v41 }
 0x26c   : > { %v10315_v39 = vpop.eup %10314  ;;  %v3863_v37 = vmul.f32 %v11410_v15, %v3827_v12  ;;  %v3595_v35 = vpop.f32.mrf.mxu0  ;;  %v3476_v12 = vshll.u32 %v11455_v54, 16 }
 0x26d   : > { %v4153_v38 = vadd.f32 1.0, %v10315_v39  ;;  %v4091_v31 = vmul.f32 1.442695, %v4058_v27  ;;  %v3174_v5 = vpop.f32.mrf.mxu3  ;;  %v4156_v47 = vmul.f32 -0.5, %v10315_v39 }
 0x26e   : > { %v11447_v45 = vadd.f32 %v11416_v53, %v3863_v37  ;;  %v3175_v57 = vadd.f32 %v3174_v5, %v3014_v63 }
 0x26f   : > { %10316 = vlog2.f32 %v4153_v38  ;;  %3056 = vmatmul.bf16.gmra.mxu2 %v11450_v8  ;;  %3634 = vmatmul.bf16.gmra.mxu0 %v3471_v52  ;;  %v2894_v38 = vshrl.u32 %v11429_v14, 16  ;;  %v4157_v16 = vadd.f32 1.0, %v4156_v47  ;;  %v407_v14 = vand.u32 15, %v341_v30 }
 0x270   : > { %10318 = vpow2.f32 %v4091_v31  ;;  %v4027_v36 = vand.u32 2147483647, %v11447_v45  ;;  %v3668_v5 = vadd.f32 %v3592_v20, %v3175_v57  ;;  %v4159_v31 = vand.u32 2147483647, %v10315_v39 }
 0x271   : > { %v2896_v52 = vor.u32 %v2894_v38, %v2892_v34  ;;  %v11472_v47 = vrot.slane %v3476_v12, 1  ;;  %v3929_v34 = vmax.f32 %v11420_v4, 0.0  ;;  %vm11489_vm15 = vcmp.lt.s32.totalorder %v407_v14, 15  ;;  %v11498_v12 = vld [vmem:[#allocation2 + $0x78] sm:$0xff] }
 0x272   : > { %v4059_v22 = vsub.f32 0.0, %v4027_v36  ;;  %3216 = vmatmul.bf16.gmra.mxu3 %v2885_v56  ;;  %v3796_v41 = vsel %vm11458_vm0, %v3668_v5, 0.0  ;;  %v3017_v37 = vpop.f32.mrf.mxu2  ;;  %vm11478_vm9 = vcmp.lt.f32.partialorder %v4159_v31, 0.0004427343  ;;  %vm3961_vm0 = vcmp.ne.f32.partialorder %v11420_v4, %v11420_v4 }
 0x273   : > { %v3828_v27 = vadd.f32 %v3796_v41, %v11176_v24  ;;  %v3479_v46 = vsel %vm13548_vm13, %v3474_v33, %v11472_v47  ;;  %v11506_v33 = vadd.s32 56, %v11132_v9 }
 0x274   : > { %v4093_v20 = vmul.f32 1.442695, %v4059_v22  ;;  %v3597_v43 = vpop.f32.mrf.mxu0  ;;  %v4158_v22 = vmul.f32 %v10315_v39, %v4157_v16  ;;  %v11500_v16 = vld [vmem:[#allocation2 + $0x80] sm:$0xff] }
 0x275   : > { %v10317_v63 = vpop.eup %10316  ;;  %v3177_v57 = vpop.f32.mrf.mxu3  ;;  %v3864_v5 = vmul.f32 %v11410_v15, %v3828_v27 }
 0x276   : > { %v10319_v56 = vpop.eup %10318  ;;  %v4155_v36 = vmul.f32 0.6931472, %v10317_v63  ;;  %10320 = vpow2.f32 %v4093_v20  ;;  %v3178_v62 = vadd.f32 %v3177_v57, %v3017_v37 }
 0x277   : > { %v4162_v1 = vadd.f32 1.0, %v10319_v56  ;;  %v4165_v24 = vmul.f32 -0.5, %v10319_v56  ;;  %v11475_v41 = vadd.f32 %v11416_v53, %v3864_v5 }
 0x278   : > { %v3669_v60 = vadd.f32 %v3595_v35, %v3178_v62  ;;  %v4161_v51 = vsel %vm11478_vm9, %v4158_v22, %v4155_v36  ;;  %v13544_v35 = vmov 0  ;;  %v11494_v62 = vsel %vm13547_vm14, %v2896_v52, %v2900_v29 }
 0x279   : > { %10322 = vlog2.f32 %v4162_v1  ;;  %v4028_v39 = vand.u32 2147483647, %v11475_v41  ;;  %v13545_v35 = vsel %vm11489_vm15, 4294967295, %v13544_v35  ;;  %vm3962_vm9 = vcmp.ne.f32.partialorder %v11440_v10, %v11440_v10 }
 0x27a   : > { %v3829_v38 = vadd.f32 %v3669_v60, %v11187_v61  ;;  %13546 = vst [vmem:[#allocation38_spill] sm:$0xff] %v13545_v35  ;;  %v4166_v61 = vadd.f32 1.0, %v4165_v24  ;;  %v4168_v60 = vand.u32 2147483647, %v10319_v56  ;;  %v3019_v63 = vpop.f32.mrf.mxu2  ;;  %v4441_v31 = vadd.f32 %v4161_v51, %v3929_v34 }
 0x27b   : > { %v4060_v27 = vsub.f32 0.0, %v4028_v39  ;;  %v2902_v24 = vshrl.u32 %v11453_v23, 16  ;;  %v2906_v39 = vshll.u32 %v11498_v12, 16  ;;  %v3480_v34 = vshrl.u32 %v11455_v54, 16 }
 0x27c   : > { %v10321_v20 = vpop.eup %10320  ;;  %v3865_v37 = vmul.f32 %v11410_v15, %v3829_v38  ;;  %v3600_v22 = vpop.f32.mrf.mxu0  ;;  %v3484_v51 = vshll.u32 %v11500_v16, 16  ;;  %v4167_v3 = vmul.f32 %v10319_v56, %v4166_v61  ;;  %vm4169_vm13 = vcmp.lt.f32.partialorder %v4168_v60, 0.0004427343 }
 0x27d   : > { %v4171_v57 = vadd.f32 1.0, %v10321_v20  ;;  %v4174_v14 = vmul.f32 -0.5, %v10321_v20  ;;  %v3179_v52 = vpop.f32.mrf.mxu3  ;;  %v4095_v36 = vmul.f32 1.442695, %v4060_v27  ;;  %v4473_v27 = vsel %vm3961_vm0, %v11420_v4, %v4441_v31 }
 0x27e   : > { %v11509_v5 = vadd.f32 %v11416_v53, %v3865_v37  ;;  %v3180_v1 = vadd.f32 %v3179_v52, %v3019_v63  ;;  %v9283_v63 = vld [vmem:[#allocation8 + $0xc8] sm:$0xff]  ;;  %v3931_v52 = vmax.f32 %v11447_v45, 0.0  ;;  %v421_v56 = vand.u32 15, %v11506_v33 }
 0x27f   : > { %v10323_v30 = vpop.eup %10322  ;;  %10324 = vlog2.f32 %v4171_v57  ;;  %v4175_v37 = vadd.f32 1.0, %v4174_v14  ;;  %3061 = vmatmul.bf16.gmra.mxu2 %v11494_v62  ;;  %3639 = vmatmul.bf16.gmra.mxu0 %v3479_v46  ;;  %v2904_v61 = vor.u32 %v2902_v24, %v2900_v29  ;;  %v4177_v31 = vand.u32 2147483647, %v10321_v20 }
 0x280   : > { %v4164_v38 = vmul.f32 0.6931472, %v10323_v30  ;;  %10326 = vpow2.f32 %v4095_v36  ;;  %v4029_v23 = vand.u32 2147483647, %v11509_v5  ;;  %v3670_v57 = vadd.f32 %v3597_v43, %v3180_v1  ;;  %5015 = vmatpush.bf16.msra.mxu1 %v9283_v63  ;;  %v11530_v1 = vld [vmem:[#allocation3 + $0xc] sm:$0x8] }
 0x281   : > { %10328 = vtanh.f32 %v4473_v27  ;;  %v2908_v36 = vrot.slane %v2906_v39, 1  ;;  %v4176_v33 = vmul.f32 %v10321_v20, %v4175_v37  ;;  %vm4178_vm14 = vcmp.lt.f32.partialorder %v4177_v31, 0.0004427343 }
 0x282   : > { %v4170_v54 = vsel %vm4169_vm13, %v4167_v3, %v4164_v38  ;;  %3221 = vmatmul.bf16.gmra.mxu3 %v11450_v8  ;;  %v4061_v14 = vsub.f32 0.0, %v4029_v23  ;;  %v3798_v43 = vsel %vm11489_vm15, %v3670_v57, 0.0  ;;  %v3022_v46 = vpop.f32.mrf.mxu2  ;;  %v3482_v8 = vor.u32 %v3480_v34, %v11472_v47  ;;  %v11541_v23 = vld [vmem:[#allocation2 + $0x80] sm:$0xff]  ;;  %v11577_v57 = vld [vmem:[#allocation2 + $0x88] sm:$0xff] }
 0x283   : > { %v4442_v60 = vadd.f32 %v4170_v54, %v3930_v55  ;;  %v3830_v3 = vadd.f32 %v3798_v43, %v11195_v19  ;;  %v11536_v38 = vrot.slane %v3484_v51, 1  ;;  %v13549_v43 = vmov 0 }
 0x284   : > { %v4097_v24 = vmul.f32 1.442695, %v4061_v14  ;;  %v11539_v47 = vpop.f32.mrf.mxu0  ;;  %vm13552_vm13 = vsmask.f32 7424 }
 0x285   : > { %v10325_v29 = vpop.eup %10324  ;;  %v4474_v55 = vsel %vm3962_vm9, %v11440_v10, %v4442_v60  ;;  %v3182_v30 = vpop.f32.mrf.mxu3  ;;  %v3866_v39 = vmul.f32 %v11410_v15, %v3830_v3  ;;  %v11547_v60 = vld [vmem:[#allocation3 + $0x8] sm:$0xff]   ;;  %vm11549_vm9 = vcmp.lt.s32.totalorder %v421_v56, 15  ;;  %v11554_v31 = vsel %vm13552_vm13, %v2904_v61, %v2908_v36  ;;  %vm13553_vm0 = vmmov %vm13552_vm13  ;;  %v9282_v56 = vld [vmem:[#allocation8 + $0xc0] sm:$0xff] }
 0x286   : > { %v10327_v27 = vpop.eup %10326  ;;  %10330 = vtanh.f32 %v4474_v55  ;;  %v4173_v19 = vmul.f32 0.6931472, %v10325_v29  ;;  %v3183_v63 = vadd.f32 %v3182_v30, %v3022_v46  ;;  %v13550_v43 = vsel %vm11549_vm9, 4294967295, %v13549_v43  ;;  %5016 = vmatpush.bf16.msra.mxu1 %v9282_v56 }
 0x287   : > { %v4180_v34 = vadd.f32 1.0, %v10327_v27  ;;  %10332 = vpow2.f32 %v4097_v24  ;;  %v4183_v37 = vmul.f32 -0.5, %v10327_v27  ;;  %v11545_v51 = vadd.f32 %v11416_v53, %v3866_v39  ;;  %13551 = vst [vmem:[#allocation39_spill] sm:$0xff] %v13550_v43  ;;  %v10329_v46 = vpop.eup %10328 }
 0x288   : > { %v4179_v20 = vsel %vm4178_vm14, %v4176_v33, %v4173_v19  ;;  %v3671_v54 = vadd.f32 %v3600_v22, %v3183_v63  ;;  %v3487_v3 = vsel %vm13553_vm0, %v3482_v8, %v11536_v38  ;;  %v3932_v29 = vmax.f32 %v11475_v41, 0.0 }
 0x289   : > { %v4443_v14 = vadd.f32 %v4179_v20, %v3931_v52  ;;  %10334 = vlog2.f32 %v4180_v34  ;;  %v4030_v55 = vand.u32 2147483647, %v11545_v51  ;;  %v2910_v52 = vshrl.u32 %v11498_v12, 16 }
 0x28a   : > { %v3831_v22 = vadd.f32 %v3671_v54, %v11206_v2  ;;  %v11564_v33 = vadd.s32 72, %v11132_v9  ;;  %v2914_v61 = vshll.u32 %v11541_v23, 16  ;;  %vm13554_vm0 = vcmp.ne.f32.partialorder %v11447_v45, %v11447_v45  ;;  %v3024_v39 = vpop.f32.mrf.mxu2 }
 0x28b   : > { %v4475_v8 = vsel %vm13554_vm0, %v11447_v45, %v4443_v14  ;;  %v4184_v2 = vadd.f32 1.0, %v4183_v37  ;;  %v4062_v12 = vsub.f32 0.0, %v4030_v55  ;;  %v4537_v34 = vmul.f32 %v10329_v46, %v11420_v4 }
 0x28c   : > { %v10331_v30 = vpop.eup %10330  ;;  %v3867_v19 = vmul.f32 %v11410_v15, %v3831_v22  ;;  %v4186_v54 = vand.u32 2147483647, %v10327_v27  ;;  %v3488_v14 = vshrl.u32 %v11500_v16, 16  ;;  %v3605_v37 = vpop.f32.mrf.mxu0  ;;  %v2912_v55 = vor.u32 %v2910_v52, %v2908_v36 }
 0x28d   : > { %v10333_v63 = vpop.eup %10332  ;;  %v4538_v20 = vmul.f32 %v10331_v30, %v11440_v10  ;;  %v3184_v24 = vpop.f32.mrf.mxu3  ;;  %v4099_v42 = vmul.f32 1.442695, %v4062_v12  ;;  %10336 = vtanh.f32 %v4475_v8  ;;  %v4185_v30 = vmul.f32 %v10327_v27, %v4184_v2 }
 0x28e   : > { %v4189_v35 = vadd.f32 1.0, %v10333_v63  ;;  %v4192_v48 = vmul.f32 -0.5, %v10333_v63  ;;  %v11583_v4 = vadd.f32 %v11416_v53, %v3867_v19  ;;  %v3185_v10 = vadd.f32 %v3184_v24, %v3024_v39 }
 0x28f   : > { %v10335_v49 = vpop.eup %10334  ;;  %v11580_v22 = vpack.c.bf16 %v4538_v20, %v4537_v34  ;;  %v11585_v13 = vrot.slane %v2914_v61, 1  ;;  %vm4187_vm13 = vcmp.lt.f32.partialorder %v4186_v54, 0.0004427343  ;;  %3066 = vmatmul.bf16.gmra.mxu2 %v11554_v31  ;;  %3644 = vmatmul.bf16.gmra.mxu0 %v3487_v3  ;;  %v3492_v36 = vshll.u32 %v11577_v57, 16 }
 0x290   : > { %v4182_v46 = vmul.f32 0.6931472, %v10335_v49  ;;  %10338 = vlog2.f32 %v4189_v35  ;;  %v4031_v16 = vand.u32 2147483647, %v11583_v4  ;;  %v4193_v8 = vadd.f32 1.0, %v4192_v48 }
 0x291   : > { %9756 = vst [vmem:[#allocation3 + $0x10] sm:$0xff] %v11580_v22   ;;  %10340 = vpow2.f32 %v4099_v42  ;;  %v4195_v24 = vand.u32 2147483647, %v10333_v63  ;;  %v3672_v49 = vadd.f32 %v11539_v47, %v3185_v10  ;;  %v435_v42 = vand.u32 15, %v11564_v33 }
 0x292   : > { %v4188_v52 = vsel %vm4187_vm13, %v4185_v30, %v4182_v46  ;;  %3226 = vmatmul.bf16.gmra.mxu3 %v11494_v62  ;;  %v4063_v27 = vsub.f32 0.0, %v4031_v16  ;;  %v3027_v3 = vpop.f32.mrf.mxu2  ;;  %vm13555_vm14 = vsmask.f32 7424  ;;  %v3490_v48 = vor.u32 %v3488_v14, %v11536_v38  ;;  %v9297_v14 = vld [vmem:[#allocation8 + $0x1b8] sm:$0xff] }
 0x293   : > { %v4444_v35 = vadd.f32 %v4188_v52, %v3932_v29  ;;  %v3800_v56 = vsel %vm11549_vm9, %v3672_v49, 0.0  ;;  %v11600_v61 = vsel %vm13555_vm14, %v2912_v55, %v11585_v13  ;;  %v13448_v47 = vunpack.c.l.b16 %v11580_v22  ;;  %v10337_v62 = vpop.eup %10336  ;;  %v9281_v55 = vld [vmem:[#allocation8 + $0x38] sm:$0xff]  ;;  %5623 = vmatpush.bf16.msrb.mxu3 %v9297_v14 }
 0x294   : > { %vm13556_vm13 = vcmp.ne.f32.partialorder %v11475_v41, %v11475_v41  ;;  %v4101_v2 = vmul.f32 1.442695, %v4063_v27  ;;  %v3832_v33 = vadd.f32 %v3800_v56, %v11214_v28  ;;  %v11609_v19 = vrot.slane %v3492_v36, 1  ;;  %v3607_v54 = vpop.f32.mrf.mxu0  ;;  %5185 = vmatpush.bf16.msrb.mxu2 %v9281_v55  ;;  %v9313_v49 = vld [vmem:[#allocation8 + $0x138] sm:$0xff]  ;;  %v9280_v55 = vld [vmem:[#allocation8 + $0x30] sm:$0xff] }
 0x295   : > { %v4476_v29 = vsel %vm13556_vm13, %v11475_v41, %v4444_v35  ;;  %v3187_v12 = vpop.f32.mrf.mxu3  ;;  %v4194_v34 = vmul.f32 %v10333_v63, %v4193_v8  ;;  %vm11611_vm14 = vcmp.lt.f32.partialorder %v4195_v24, 0.0004427343  ;;  %vm11618_vm13 = vcmp.lt.s32.totalorder %v435_v42, 15  ;;  %v11631_v35 = vld [vmem:[#allocation2 + $0x88] sm:$0xff]  ;;  %5890 = vmatpush.bf16.msrb.mxu0 %v9313_v49 }
 0x296   : > { %v10339_v39 = vpop.eup %10338  ;;  %10342 = vtanh.f32 %v4476_v29  ;;  %v3188_v38 = vadd.f32 %v3187_v12, %v3027_v3  ;;  %v3868_v28 = vmul.f32 %v11410_v15, %v3832_v33  ;;  %v13559_v30 = vmov 0 }
 0x297   : > { %v11615_v10 = vpop.eup %10340  ;;  %v4191_v46 = vmul.f32 0.6931472, %v10339_v39  ;;  %10344 = vpow2.f32 %v4101_v2  ;;  %v13560_v30 = vsel %vm11618_vm13, 4294967295, %v13559_v30  ;;  %v11623_v63 = vadd.s32 88, %v11132_v9 }
 0x298   : > { %13561 = vst [vmem:[#allocation40_spill] sm:$0xff] %v13560_v30  ;;  %v4198_v16 = vadd.f32 1.0, %v11615_v10  ;;  %v4201_v36 = vmul.f32 -0.5, %v11615_v10  ;;  %v3673_v52 = vadd.f32 %v3605_v37, %v3188_v38  ;;  %v13562_v8 = vunpack.c.l.b16 %v11530_v1  ;;  %5186 = vmatpush.bf16.msrb.mxu2 %v9280_v55  ;;  %v9311_v55 = vld [vmem:[#allocation8 + $0x128] sm:$0xff] }
 0x299   : > { %v4197_v27 = vsel %vm11611_vm14, %v4194_v34, %v4191_v46  ;;  %v3934_v42 = vmax.f32 %v11545_v51, 0.0  ;;  %v11637_v56 = vadd.f32 %v11416_v53, %v3868_v28  ;;  %vm13563_vm0 = vsmask.f32 7424  ;;  %v9296_v46 = vld [vmem:[#allocation8 + $0x1b0] sm:$0xff] }
 0x29a   : > { %v4776_v24 = vpack.c.b16 %v13448_v47, %v13562_v8  ;;  %v3495_v37 = vsel %vm13563_vm0, %v3490_v48, %v11609_v19  ;;  %v4539_v3 = vmul.f32 %v10337_v62, %v11447_v45  ;;  %v13564_v1 = vmax.f32 %v11509_v5, 0.0  ;;  %v3029_v62 = vpop.f32.mrf.mxu2  ;;  %v9312_v28 = vld [vmem:[#allocation8 + $0x130] sm:$0xff]  ;;  %5624 = vmatpush.bf16.msrb.mxu3 %v9296_v46 }
 0x29b   : > { %10346 = vlog2.f32 %v4198_v16  ;;  %v4032_v33 = vand.u32 2147483647, %v11637_v56  ;;  %v3833_v12 = vadd.f32 %v3673_v52, %v11225_v58  ;;  %v2918_v34 = vshrl.u32 %v11541_v23, 16  ;;  %5891 = vmatpush.bf16.msrb.mxu0 %v9312_v28 }
 0x29c   : > { %v4445_v29 = vadd.f32 %v4197_v27, %v13564_v1  ;;  %v10343_v20 = vpop.eup %10342  ;;  %vm13565_vm0 = vcmp.ne.f32.partialorder %v11509_v5, %v11509_v5  ;;  %v4202_v48 = vadd.f32 1.0, %v4201_v36  ;;  %v4794_v38 = vshrl.u32 %v4776_v24, 16  ;;  %v11663_v47 = vpop.f32.mrf.mxu0 }
 0x29d   : > { %v11654_v16 = vpop.eup %10344  ;;  %v4540_v58 = vmul.f32 %v10343_v20, %v11475_v41  ;;  %v4064_v23 = vsub.f32 0.0, %v4032_v33  ;;  %v3869_v52 = vmul.f32 %v11410_v15, %v3833_v12  ;;  %v3189_v8 = vpop.f32.mrf.mxu3  ;;  %v4797_v49 = vshll.u32 %v4776_v24, 16  ;;  %v11668_v12 = vld [vmem:[#allocation2 + $0x90] sm:$0xff] }
 0x29e   : > { %v4477_v45 = vsel %vm13565_vm0, %v11509_v5, %v4445_v29  ;;  %v4204_v36 = vand.u32 2147483647, %v11615_v10  ;;  %v4207_v27 = vadd.f32 1.0, %v11654_v16  ;;  %v4210_v1 = vmul.f32 -0.5, %v11654_v16 }
 0x29f   : > { %v3190_v29 = vadd.f32 %v3189_v8, %v3029_v62  ;;  %v9519_v41 = vpack.c.bf16 %v4540_v58, %v4539_v3  ;;  %10348 = vtanh.f32 %v4477_v45  ;;  %v4103_v20 = vmul.f32 1.442695, %v4064_v23  ;;  %v9279_v62 = vld [vmem:[#allocation8 + $0x28] sm:$0xff]  ;;  %3071 = vmatmul.bf16.gmra.mxu2 %v11600_v61  ;;  %3649 = vmatmul.bf16.gmra.mxu0 %v3495_v37 }
 0x2a0   : > { %v11666_v33 = vadd.f32 %v11416_v53, %v3869_v52  ;;  %v4203_v2 = vmul.f32 %v11615_v10, %v4202_v48  ;;  %10350 = vlog2.f32 %v4207_v27  ;;  %v11671_v14 = vrot.slane %v4794_v38, 3  ;;  %v9295_v8 = vld [vmem:[#allocation8 + $0x1a8] sm:$0xff]  ;;  %5187 = vmatpush.bf16.msrb.mxu2 %v9279_v62  ;;  %5892 = vmatpush.bf16.msrb.mxu0 %v9311_v55  ;;  %v9310_v27 = vld [vmem:[#allocation8 + $0x120] sm:$0xff] }
 0x2a1   : > { %v10347_v24 = vpop.eup %10346  ;;  %v3674_v39 = vadd.f32 %v3607_v54, %v3190_v29  ;;  %9757 = vst [vmem:[#allocation3 + $0x18] sm:$0xff] %v9519_v41   ;;  %v4213_v45 = vand.u32 2147483647, %v11654_v16  ;;  %10352 = vpow2.f32 %v4103_v20  ;;  %v11675_v46 = vrot.slane %v4797_v49, 4  ;;  %5625 = vmatpush.bf16.msrb.mxu3 %v9295_v8  ;;  %v9278_v49 = vld [vmem:[#allocation8 + $0x20] sm:$0xff] }
 0x2a2   : > { %v4200_v3 = vmul.f32 0.6931472, %v10347_v24  ;;  %vm4205_vm0 = vcmp.lt.f32.partialorder %v4204_v36, 0.0004427343  ;;  %v4211_v28 = vadd.f32 1.0, %v4210_v1  ;;  %3231 = vmatmul.bf16.gmra.mxu3 %v11554_v31  ;;  %v11685_v37 = vor.u32 %v2918_v34, %v11585_v13  ;;  %v3032_v52 = vpop.f32.mrf.mxu2  ;;  %v9294_v36 = vld [vmem:[#allocation8 + $0x1a0] sm:$0xff] }
 0x2a3   : > { %v4033_v10 = vand.u32 2147483647, %v11666_v33  ;;  %v3802_v54 = vsel %vm11618_vm13, %v3674_v39, 0.0  ;;  %v3496_v58 = vshrl.u32 %v11577_v57, 16  ;;  %v13568_v1 = vshll.u32 %v11631_v35, 16 }
 0x2a4   : > { %v4206_v48 = vsel %vm4205_vm0, %v4203_v2, %v4200_v3  ;;  %v3834_v38 = vadd.f32 %v3802_v54, %v11231_v18  ;;  %v3500_v2 = vshll.u32 %v11668_v12, 16  ;;  %vm11692_vm0 = vcmp.lt.f32.partialorder %v4213_v45, 0.0004427343  ;;  %5188 = vmatpush.bf16.msrb.mxu2 %v9278_v49  ;;  %5893 = vmatpush.bf16.msrb.mxu0 %v9310_v27 }
 0x2a5   : > { %v4446_v23 = vadd.f32 %v4206_v48, %v3934_v42  ;;  %v4065_v31 = vsub.f32 0.0, %v4033_v10  ;;  %v10349_v18 = vpop.eup %10348  ;;  %v3192_v34 = vpop.f32.mrf.mxu3  ;;  %v11701_v29 = vrot.slane %v13568_v1, 1  ;;  %vm13569_vm14 = vcmp.ne.f32.partialorder %v11545_v51, %v11545_v51  ;;  %5626 = vmatpush.bf16.msrb.mxu3 %v9294_v36 }
 0x2a6   : > { %v3870_v57 = vmul.f32 %v11410_v15, %v3834_v38  ;;  %v10351_v41 = vpop.eup %10350  ;;  %v4212_v24 = vmul.f32 %v11654_v16, %v4211_v28  ;;  %v3498_v8 = vor.u32 %v3496_v58, %v11609_v19  ;;  %v3193_v10 = vadd.f32 %v3192_v34, %v3032_v52  ;;  %v2700_v16 = vld [vmem:[#allocation2 + $0x90] sm:$0x1]  ;;  %v3612_v38 = vpop.f32.mrf.mxu0 }
 0x2a7   : > { %v4478_v20 = vsel %vm13569_vm14, %v11545_v51, %v4446_v23  ;;  %v4105_v62 = vmul.f32 1.442695, %v4065_v31  ;;  %v11709_v55 = vpop.eup %10352  ;;  %v4209_v3 = vmul.f32 0.6931472, %v10351_v41  ;;  %v13570_v54 = vand.u32 15, %v11623_v63 }
 0x2a8   : > { %10354 = vtanh.f32 %v4478_v20  ;;  %v11712_v45 = vadd.f32 %v11416_v53, %v3870_v57  ;;  %v13571_v48 = vmov 0  ;;  %v4216_v19 = vadd.f32 1.0, %v11709_v55  ;;  %v10190_v58 = vld [vmem:[#allocation3 + $0x14] sm:$0xff]  }
 0x2a9   : > { %vm11716_vm13 = vcmp.lt.s32.totalorder %v13570_v54, 15  ;;  %v4219_v28 = vmul.f32 -0.5, %v11709_v55  ;;  %10356 = vpow2.f32 %v4105_v62  ;;  %v11722_v23 = vrot.slane %v3500_v2, 1  ;;  %v9293_v54 = vld [vmem:[#allocation8 + $0x198] sm:$0xff] }
 0x2aa   : > { %v13572_v48 = vsel %vm11716_vm13, 4294967295, %v13571_v48  ;;  %v4541_v31 = vmul.f32 %v10349_v18, %v11509_v5  ;;  %v4215_v63 = vsel %vm11692_vm0, %v4212_v24, %v4209_v3  ;;  %v4034_v52 = vand.u32 2147483647, %v11712_v45  ;;  %v3034_v20 = vpop.f32.mrf.mxu2  ;;  %v9277_v3 = vld [vmem:[#allocation8 + $0x18] sm:$0xff]  ;;  %5627 = vmatpush.bf16.msrb.mxu3 %v9293_v54 }
 0x2ab   : > { %13573 = vst [vmem:[#allocation41_spill] sm:$0xff] %v13572_v48  ;;  %vm13574_vm14 = vsmask.f32 7424  ;;  %v13575_v36 = vmax.f32 %v11583_v4, 0.0  ;;  %10358 = vlog2.f32 %v4216_v19  ;;  %v4220_v57 = vadd.f32 1.0, %v4219_v28  ;;  %5189 = vmatpush.bf16.msrb.mxu2 %v9277_v3  ;;  %v9375_v48 = vld [vmem:[#allocation8 + $0x220] sm:$0xff] }
 0x2ac   : > { %v2925_v49 = vsel %vm13574_vm14, %v11685_v37, %v11701_v29  ;;  %v2783_v34 = vunpack.c.l.b16 %v2700_v16  ;;  %v4066_v1 = vsub.f32 0.0, %v4034_v52  ;;  %v3675_v2 = vadd.f32 %v11663_v47, %v3193_v10  ;;  %v9309_v16 = vld [vmem:[#allocation8 + $0x118] sm:$0xff] }
 0x2ad   : > { %v4447_v27 = vadd.f32 %v4215_v63, %v13575_v36  ;;  %v4802_v41 = vshrl.u32 %v10190_v58, 16  ;;  %v4805_v5 = vshll.u32 %v10190_v58, 16  ;;  %vm13576_vm0 = vcmp.ne.f32.partialorder %v11583_v4, %v11583_v4  ;;  %v3194_v58 = vpop.f32.mrf.mxu3  ;;  %5894 = vmatpush.bf16.msrb.mxu0 %v9309_v16 }
 0x2ae   : > { %v4222_v13 = vand.u32 2147483647, %v11709_v55  ;;  %v3503_v24 = vsel %vm13574_vm14, %v3498_v8, %v11722_v23  ;;  %v11742_v62 = vadd.s32 104, %v11132_v9  ;;  %v10355_v47 = vpop.eup %10354  ;;  %v4221_v10 = vmul.f32 %v11709_v55, %v4220_v57 }
 0x2af   : > { %v4479_v18 = vsel %vm13576_vm0, %v11583_v4, %v4447_v27  ;;  %v4107_v19 = vmul.f32 1.442695, %v4066_v1  ;;  %v3835_v28 = vadd.f32 %v3675_v2, %v11241_v21  ;;  %v4804_v63 = vrot.slane %v4802_v41, 3  ;;  %v10357_v52 = vpop.eup %10356  ;;  %v9276_v2 = vld [vmem:[#allocation8 + $0x10] sm:$0xff]  ;;  %3076 = vmatmul.bf16.gmra.mxu2 %v2925_v49  ;;  %3654 = vmatmul.bf16.gmra.mxu0 %v3503_v24 }
 0x2b0   : > { %v4542_v8 = vmul.f32 %v10355_v47, %v11545_v51  ;;  %10360 = vtanh.f32 %v4479_v18  ;;  %v3195_v36 = vadd.f32 %v3194_v58, %v3034_v20  ;;  %v4807_v27 = vrot.slane %v4805_v5, 4  ;;  %v9292_v41 = vld [vmem:[#allocation8 + $0x190] sm:$0xff]  ;;  %5190 = vmatpush.bf16.msrb.mxu2 %v9276_v2 }
 0x2b1   : > { %v4225_v39 = vadd.f32 1.0, %v10357_v52  ;;  %v4228_v42 = vmul.f32 -0.5, %v10357_v52  ;;  %10362 = vpow2.f32 %v4107_v19  ;;  %v2800_v30 = vpack.c.b16 %v2783_v34, %v2783_v34  ;;  %v10359_v43 = vpop.eup %10358  ;;  %v9308_v51 = vld [vmem:[#allocation8 + $0x110] sm:$0xff]  ;;  %5628 = vmatpush.bf16.msrb.mxu3 %v9292_v41 }
 0x2b2   : > { %v9524_v55 = vpack.c.bf16 %v4542_v8, %v4541_v31  ;;  %v3871_v57 = vmul.f32 %v11410_v15, %v3835_v28  ;;  %v3676_v21 = vadd.f32 %v3612_v38, %v3195_v36  ;;  %v11750_v1 = vor.u32 %v4807_v27, %v4804_v63  ;;  %v3615_v38 = vpop.f32.mrf.mxu0  ;;  %3236 = vmatmul.bf16.gmra.mxu3 %v11600_v61  ;;  %v2680_v27 = vld [vmem:[#allocation2 + $0x88] sm:$0x1] }
 0x2b3   : > { %v4218_v18 = vmul.f32 0.6931472, %v10359_v43  ;;  %10364 = vlog2.f32 %v4225_v39  ;;  %v4229_v5 = vadd.f32 1.0, %v4228_v42  ;;  %v4231_v20 = vand.u32 2147483647, %v10357_v52  ;;  %5895 = vmatpush.bf16.msrb.mxu0 %v9308_v51 }
 0x2b4   : > { %9758 = vst [vmem:[#allocation3 + $0x20] sm:$0xff] %v9524_v55   ;;  %vm4223_vm0 = vcmp.lt.f32.partialorder %v4222_v13, 0.0004427343  ;;  %v11753_v34 = vadd.f32 %v11416_v53, %v3871_v57  ;;  %v3804_v31 = vsel %vm11716_vm13, %v3676_v21, 0.0  ;;  %v13577_v3 = vor.u32 %v11675_v46, %v11671_v14  ;;  %v3037_v46 = vpop.f32.mrf.mxu2 }
 0x2b5   : > { %vm13578_vm14 = vsmask.f32 4352  ;;  %v4224_v39 = vsel %vm4223_vm0, %v4221_v10, %v4218_v18  ;;  %v3937_v42 = vmax.f32 %v11666_v33, 0.0  ;;  %v3836_v49 = vadd.f32 %v3804_v31, %v11247_v40  ;;  %v9275_v40 = vld [vmem:[#allocation8 + $0x8] sm:$0xff]  ;;  %v3197_v36 = vpop.f32.mrf.mxu3 }
 0x2b6   : > { %v4809_v43 = vsel %vm13578_vm14, %v13577_v3, %v11750_v1  ;;  %v2930_v13 = vshll.u32 %v2800_v30, 16  ;;  %v10361_v24 = vpop.eup %10360  ;;  %v13579_v54 = vmax.f32 %v11637_v56, 0.0  ;;  %v3938_v14 = vmax.f32 %v11712_v45, 0.0  ;;  %v9291_v10 = vld [vmem:[#allocation8 + $0x188] sm:$0xff]  ;;  %5191 = vmatpush.bf16.msrb.mxu2 %v9275_v40 }
 0x2b7   : > { %5017 = vmatmul.bf16.vlgmr.msra.gmra.mxu1 %v4809_v43  ;;  %v463_v61 = vand.u32 15, %v11742_v62  ;;  %v2926_v47 = vshrl.u32 %v11631_v35, 16  ;;  %v9307_v30 = vld [vmem:[#allocation8 + $0x108] sm:$0xff]  ;;  %v10363_v19 = vpop.eup %10362  ;;  %v4230_v28 = vmul.f32 %v10357_v52, %v4229_v5  ;;  %vm11772_vm0 = vcmp.lt.f32.partialorder %v4231_v20, 0.0004427343  ;;  %5629 = vmatpush.bf16.msrb.mxu3 %v9291_v10  ;;  %v9274_v5 = vld [vmem:[#allocation8] sm:$0xff] }
 0x2b8   : > { %v4448_v16 = vadd.f32 %v4224_v39, %v13579_v54  ;;  %v4035_v63 = vand.u32 2147483647, %v11753_v34  ;;  %v3872_v8 = vmul.f32 %v11410_v15, %v3836_v49  ;;  %vm13582_vm14 = vcmp.ne.f32.partialorder %v11637_v56, %v11637_v56  ;;  %5896 = vmatpush.bf16.msrb.mxu0 %v9307_v30 }
 0x2b9   : > { %v4234_v62 = vadd.f32 1.0, %v10363_v19  ;;  %v4237_v55 = vmul.f32 -0.5, %v10363_v19  ;;  %v2932_v57 = vrot.slane %v2930_v13, 1  ;;  %v10365_v21 = vpop.eup %10364  ;;  %v3198_v41 = vadd.f32 %v3197_v36, %v3037_v46  ;;  %v9306_v46 = vld [vmem:[#allocation8 + $0x100] sm:$0xff] }
 0x2ba   : > { %v4480_v35 = vsel %vm13582_vm14, %v11637_v56, %v4448_v16  ;;  %v4067_v52 = vsub.f32 0.0, %v4035_v63  ;;  %v11783_v2 = vadd.f32 %v11416_v53, %v3872_v8  ;;  %v4227_v51 = vmul.f32 0.6931472, %v10365_v21  ;;  %v9290_v16 = vld [vmem:[#allocation8 + $0x180] sm:$0xff]  ;;  %5192 = vmatpush.bf16.msrb.mxu2 %v9274_v5  ;;  %v9305_v5 = vld [vmem:[#allocation8 + $0x78] sm:$0xff] }
 0x2bb   : > { %10366 = vtanh.f32 %v4480_v35  ;;  %v4240_v15 = vand.u32 2147483647, %v10363_v19  ;;  %v3092_v18 = vunpack.c.l.b16 %v2680_v27  ;;  %v4238_v20 = vadd.f32 1.0, %v4237_v55  ;;  %v10192_v43 = vld [vmem:[#allocation3 + $0x1c] sm:$0xff]   ;;  %5630 = vmatpush.bf16.msrb.mxu3 %v9290_v16  ;;  %v3279_v27 = vld [vmem:[#allocation2 + $0x98] sm:$0x1]  ;;  %6029 = vmatpush.bf16.msrb.mxu1 %v9305_v5 }
 0x2bc   : > { %10368 = vlog2.f32 %v4234_v62  ;;  %v4109_v31 = vmul.f32 1.442695, %v4067_v52  ;;  %v4036_v3 = vand.u32 2147483647, %v11783_v2  ;;  %v2928_v39 = vor.u32 %v2926_v47, %v11701_v29  ;;  %v3617_v29 = vpop.f32.mrf.mxu0  ;;  %5897 = vmatpush.bf16.msrb.mxu0 %v9306_v46  ;;  %v11808_v62 = vld [vmem:[%s13414_s2] ss:$0 sm:$0xff] }
 0x2bd   : > { %v4543_v49 = vmul.f32 %v10361_v24, %v11583_v4  ;;  %v4233_v53 = vsel %vm11772_vm0, %v4230_v28, %v4227_v51  ;;  %v3677_v13 = vadd.f32 %v3615_v38, %v3198_v41  ;;  %vm11790_vm14 = vcmp.lt.s32.totalorder %v463_v61, 15  ;;  %v3039_v24 = vpop.f32.mrf.mxu2  ;;  %v3199_v8 = vpop.f32.mrf.mxu3  ;;  %v10030_v41 = vld [vmem:[#allocation3 + $0x4] sm:$0x8]  ;;  %v10187_v51 = vld [vmem:[#allocation3 + $0x4] sm:$0xf0]  }
 0x2be   : > { %v13583_v54 = vmov 0  ;;  %v4449_v40 = vadd.f32 %v4233_v53, %v3937_v42  ;;  %10370 = vpow2.f32 %v4109_v31  ;;  %v4068_v10 = vsub.f32 0.0, %v4036_v3 }
 0x2bf   : > { %v13584_v54 = vsel %vm11790_vm14, 4294967295, %v13583_v54  ;;  %v4811_v30 = vshrl.u32 %v10192_v43, 16  ;;  %vm11794_vm9 = vcmp.lt.f32.partialorder %v4240_v15, 0.0004427343  ;;  %v3837_v4 = vadd.f32 %v3677_v13, %v11256_v26 }
 0x2c0   : > { %13585 = vst [vmem:[#allocation42_spill] sm:$0xff] %v13584_v54  ;;  %v4814_v38 = vshll.u32 %v10192_v43, 16  ;;  %v3094_v61 = vpack.c.b16 %v3092_v18, %v3092_v18  ;;  %vm13588_vm0 = vcmp.ne.f32.partialorder %v11666_v33, %v11666_v33  ;;  %v4239_v28 = vmul.f32 %v10363_v19, %v4238_v20 }
 0x2c1   : > { %v10367_v47 = vpop.eup %10366  ;;  %v4481_v42 = vsel %vm13588_vm0, %v11666_v33, %v4449_v40  ;;  %v4111_v58 = vmul.f32 1.442695, %v4068_v10  ;;  %vm13589_vm13 = vsmask.f32 7424  ;;  %v3873_v55 = vmul.f32 %v11808_v62, %v3837_v4 }
 0x2c2   : > { %v2933_v36 = vsel %vm13589_vm13, %v2928_v39, %v2932_v57  ;;  %v10369_v35 = vpop.eup %10368  ;;  %v4544_v26 = vmul.f32 %v10367_v47, %v11637_v56  ;;  %v3200_v21 = vadd.f32 %v3199_v8, %v3039_v24  ;;  %v4813_v52 = vrot.slane %v4811_v30, 3  ;;  %v11814_v56 = vld [vmem:[%s13415_s3] ss:$0 sm:$0xff] }
 0x2c3   : > { %v4236_v19 = vmul.f32 0.6931472, %v10369_v35  ;;  %10372 = vpow2.f32 %v4111_v58  ;;  %v4816_v15 = vrot.slane %v4814_v38, 4  ;;  %v3104_v18 = vshll.u32 %v3094_v61, 16  ;;  %3081 = vmatmul.bf16.gmra.mxu2 %v2933_v36 }
 0x2c4   : > { %v9529_v57 = vpack.c.bf16 %v4544_v26, %v4543_v49  ;;  %v11817_v20 = vadd.f32 %v11814_v56, %v3873_v55  ;;  %v3678_v31 = vadd.f32 %v3617_v29, %v3200_v21  ;;  %v3362_v3 = vunpack.c.l.b16 %v3279_v27  ;;  %v10371_v43 = vpop.eup %10370  ;;  %v3620_v35 = vpop.f32.mrf.mxu0 }
 0x2c5   : > { %10374 = vtanh.f32 %v4481_v42  ;;  %vm3970_vm13 = vcmp.ne.f32.partialorder %v11712_v45, %v11712_v45  ;;  %v4242_v39 = vsel %vm11794_vm9, %v4239_v28, %v4236_v19  ;;  %v11823_v49 = vor.u32 %v10187_v51, %v10030_v41  ;;  %v3202_v28 = vpop.f32.mrf.mxu3 }
 0x2c6   : > { %9759 = vst [vmem:[#allocation3 + $0x28] sm:$0xff] %v9529_v57   ;;  %v4450_v53 = vadd.f32 %v4242_v39, %v3938_v14  ;;  %v3939_v13 = vmax.f32 %v11753_v34, 0.0  ;;  %v4243_v16 = vadd.f32 1.0, %v10371_v43  ;;  %v4246_v46 = vmul.f32 -0.5, %v10371_v43  ;;  %v3042_v14 = vpop.f32.mrf.mxu2 }
 0x2c7   : > { %v4037_v40 = vand.u32 2147483647, %v11817_v20  ;;  %v3806_v10 = vsel %vm11790_vm14, %v3678_v31, 0.0  ;;  %v11831_v30 = vor.u32 %v4816_v15, %v4813_v52  ;;  %v3106_v63 = vrot.slane %v3104_v18, 1 }
 0x2c8   : > { %v4482_v4 = vsel %vm3970_vm13, %v11712_v45, %v4450_v53  ;;  %10376 = vlog2.f32 %v4243_v16  ;;  %v3379_v29 = vpack.c.b16 %v3362_v3, %v3362_v3  ;;  %v3504_v24 = vshrl.u32 %v11668_v12, 16 }
 0x2c9   : > { %v10373_v38 = vpop.eup %10372  ;;  %10378 = vtanh.f32 %v4482_v4  ;;  %v4249_v61 = vand.u32 2147483647, %v10371_v43  ;;  %v4069_v47 = vsub.f32 0.0, %v4037_v40  ;;  %v3838_v42 = vadd.f32 %v3806_v10, %v11263_v32 }
 0x2ca   : > { %v4247_v58 = vadd.f32 1.0, %v4246_v46  ;;  %v4252_v8 = vadd.f32 1.0, %v10373_v38  ;;  %v4255_v36 = vmul.f32 -0.5, %v10373_v38  ;;  %v4258_v27 = vand.u32 2147483647, %v10373_v38 }
 0x2cb   : > { %v10375_v26 = vpop.eup %10374  ;;  %v4113_v55 = vmul.f32 1.442695, %v4069_v47  ;;  %v3874_v12 = vmul.f32 %v11808_v62, %v3838_v42  ;;  %vm13590_vm0 = vsmask.f32 4352  ;;  %vm13591_vm13 = vsmask.f32 7424 }
 0x2cc   : > { %v11842_v21 = vsel %vm13590_vm0, %v11750_v1, %v11831_v30  ;;  %v3107_v32 = vsel %vm13591_vm13, %v11685_v37, %v3106_v63  ;;  %10380 = vlog2.f32 %v4252_v8  ;;  %v4256_v52 = vadd.f32 1.0, %v4255_v36 }
 0x2cd   : > { %5022 = vmatmul.bf16.gmra.mxu1 %v11842_v21  ;;  %3241 = vmatmul.bf16.gmra.mxu3 %v3107_v32  ;;  %v3506_v41 = vor.u32 %v3504_v24, %v11722_v23  ;;  %v3508_v51 = vshll.u32 %v3379_v29, 16  ;;  %10382 = vpow2.f32 %v4113_v55  ;;  %v11849_v19 = vadd.f32 %v11814_v56, %v3874_v12  ;;  %v10194_v57 = vld [vmem:[#allocation3 + $0x24] sm:$0xff]  }
 0x2ce   : > { %v3203_v15 = vadd.f32 %v3202_v28, %v3042_v14  ;;  %v351_v18 = vadd.s32 120, %v11132_v9  ;;  %v10377_v5 = vpop.eup %10376  ;;  %v4545_v31 = vmul.f32 %v10375_v26, %v11666_v33  ;;  %vm11853_vm0 = vcmp.lt.f32.partialorder %v4249_v61, 0.0004427343  ;;  %v3044_v4 = vpop.f32.mrf.mxu2 }
 0x2cf   : > { %v3940_v3 = vmax.f32 %v11783_v2, 0.0  ;;  %v3510_v39 = vrot.slane %v3508_v51, 1  ;;  %v10379_v23 = vpop.eup %10378  ;;  %v4245_v53 = vmul.f32 0.6931472, %v10377_v5  ;;  %v4248_v16 = vmul.f32 %v10371_v43, %v4247_v58  ;;  %v3204_v61 = vpop.f32.mrf.mxu3 }
 0x2d0   : > { %vm3972_vm13 = vcmp.ne.f32.partialorder %v11783_v2, %v11783_v2  ;;  %vm11860_vm9 = vcmp.lt.f32.partialorder %v4258_v27, 0.0004427343  ;;  %v4038_v40 = vand.u32 2147483647, %v11849_v19  ;;  %v4546_v33 = vmul.f32 %v10379_v23, %v11712_v45 }
 0x2d1   : > { %vm13596_vm14 = vsmask.f32 7424  ;;  %v3679_v63 = vadd.f32 %v3620_v35, %v3203_v15  ;;  %v477_v29 = vand.u32 15, %v351_v18  ;;  %v4251_v24 = vsel %vm11853_vm0, %v4248_v16, %v4245_v53 }
 0x2d2   : > { %v3511_v10 = vsel %vm13596_vm14, %v3506_v41, %v3510_v39  ;;  %v4257_v43 = vmul.f32 %v10373_v38, %v4256_v52  ;;  %v4070_v14 = vsub.f32 0.0, %v4038_v40  ;;  %v4820_v47 = vshrl.u32 %v10194_v57, 16  ;;  %v10381_v42 = vpop.eup %10380  ;;  %v3622_v41 = vpop.f32.mrf.mxu0 }
 0x2d3   : > { %3659 = vmatmul.bf16.gmra.mxu0 %v3511_v10  ;;  %v9534_v28 = vpack.c.bf16 %v4546_v33, %v4545_v31  ;;  %v4451_v58 = vadd.f32 %v4251_v24, %v3939_v13  ;;  %v3839_v45 = vadd.f32 %v3679_v63, %v11276_v50  ;;  %v3205_v8 = vadd.f32 %v3204_v61, %v3044_v4  ;;  %v10383_v36 = vpop.eup %10382 }
 0x2d4   : > { %v4254_v27 = vmul.f32 0.6931472, %v10381_v42  ;;  %v4115_v35 = vmul.f32 1.442695, %v4070_v14  ;;  %v4823_v26 = vshll.u32 %v10194_v57, 16  ;;  %v13597_v55 = vunpack.c.h.b16 %v11547_v60 }
 0x2d5   : > { %v13598_v38 = vunpack.c.l.b16 %v11580_v22  ;;  %9760 = vst [vmem:[#allocation3 + $0x30] sm:$0xff] %v9534_v28   ;;  %vm13599_vm14 = vcmp.ne.f32.partialorder %v11753_v34, %v11753_v34  ;;  %v4261_v52 = vadd.f32 1.0, %v10383_v36  ;;  %v4264_v13 = vmul.f32 -0.5, %v10383_v36  ;;  %v10217_v14 = vld [vmem:[#allocation3 + $0x14] sm:$0xf0]  }
 0x2d6   : > { %v4483_v32 = vsel %vm13599_vm14, %v11753_v34, %v4451_v58  ;;  %vm11880_vm0 = vcmp.lt.s32.totalorder %v477_v29, 15  ;;  %v13600_v50 = vmov 0  ;;  %v4260_v60 = vsel %vm11860_vm9, %v4257_v43, %v4254_v27  ;;  %v10034_v58 = vld [vmem:[#allocation3 + $0x14] sm:$0x8] }
 0x2d7   : > { %v5105_v12 = vpack.c.b16 %v13598_v38, %v13597_v55  ;;  %v13601_v50 = vsel %vm11880_vm0, 4294967295, %v13600_v50  ;;  %10384 = vtanh.f32 %v4483_v32  ;;  %v3875_v51 = vmul.f32 %v11808_v62, %v3839_v45 }
 0x2d8   : > { %13602 = vst [vmem:[#allocation43_spill] sm:$0xff] %v13601_v50  ;;  %v3680_v15 = vadd.f32 %v3622_v41, %v3205_v8  ;;  %v4452_v18 = vadd.f32 %v4260_v60, %v3940_v3  ;;  %10386 = vlog2.f32 %v4261_v52  ;;  %v4265_v57 = vadd.f32 1.0, %v4264_v13  ;;  %v10219_v60 = vld [vmem:[#allocation3 + $0x1c] sm:$0xff]  }
 0x2d9   : > { %v4822_v5 = vrot.slane %v4820_v47, 3  ;;  %10388 = vpow2.f32 %v4115_v35  ;;  %v11888_v31 = vadd.f32 %v11814_v56, %v3875_v51  ;;  %v4825_v39 = vrot.slane %v4823_v26, 4 }
 0x2da   : > { %v3808_v37 = vsel %vm11880_vm0, %v3680_v15, 0.0  ;;  %v4484_v23 = vsel %vm3972_vm13, %v11783_v2, %v4452_v18  ;;  %v5108_v3 = vshrl.u32 %v11823_v49, 16  ;;  %v4267_v16 = vand.u32 2147483647, %v10383_v36 }
 0x2db   : > { %v3840_v53 = vadd.f32 %v3808_v37, %v11283_v44  ;;  %10390 = vtanh.f32 %v4484_v23  ;;  %v4039_v46 = vand.u32 2147483647, %v11888_v31  ;;  %v11900_v33 = vor.u32 %v4825_v39, %v4822_v5 }
 0x2dc   : > { %v5111_v10 = vshll.u32 %v11823_v49, 16  ;;  %v5116_v63 = vshrl.u32 %v5105_v12, 16  ;;  %v4266_v29 = vmul.f32 %v10383_v36, %v4265_v57  ;;  %v5119_v43 = vshll.u32 %v5105_v12, 16 }
 0x2dd   : > { %v3876_v40 = vmul.f32 %v11808_v62, %v3840_v53  ;;  %v10385_v4 = vpop.eup %10384  ;;  %v4071_v24 = vsub.f32 0.0, %v4039_v46  ;;  %vm13603_vm9 = vsmask.f32 4352  ;;  %v5110_v42 = vrot.slane %v5108_v3, 3 }
 0x2de   : > { %v10387_v61 = vpop.eup %10386  ;;  %v11909_v47 = vsel %vm13603_vm9, %v11831_v30, %v11900_v33  ;;  %v5113_v28 = vrot.slane %v5111_v10, 4  ;;  %v5118_v36 = vrot.slane %v5116_v63, 3  ;;  %v5121_v27 = vrot.slane %v5119_v43, 4  ;;  %vm13606_vm14 = vmmov %vm13603_vm9  ;;  %v9304_v43 = vld [vmem:[#allocation8 + $0x70] sm:$0xff] }
 0x2df   : > { %v11904_v44 = vadd.f32 %v11814_v56, %v3876_v40  ;;  %v10389_v45 = vpop.eup %10388  ;;  %v4263_v49 = vmul.f32 0.6931472, %v10387_v61  ;;  %v4117_v8 = vmul.f32 1.442695, %v4071_v24  ;;  %5027 = vmatmul.bf16.gmra.mxu1 %v11909_v47  ;;  %vm11912_vm13 = vcmp.lt.f32.partialorder %v4267_v16, 0.0004427343  ;;  %v3207_v61 = vpop.f32.mrf.mxu3 }
 0x2e0   : > { %v4270_v26 = vadd.f32 1.0, %v10389_v45  ;;  %v4273_v55 = vmul.f32 -0.5, %v10389_v45  ;;  %v10035_v38 = vor.u32 %v10217_v14, %v10034_v58  ;;  %v4547_v52 = vmul.f32 %v10385_v4, %v11753_v34  ;;  %v3047_v14 = vpop.f32.mrf.mxu2  ;;  %6030 = vmatpush.bf16.msrb.mxu1 %v9304_v43 }
 0x2e1   : > { %v10391_v12 = vpop.eup %10390  ;;  %v4269_v30 = vsel %vm11912_vm13, %v4266_v29, %v4263_v49  ;;  %10392 = vpow2.f32 %v4117_v8  ;;  %v4040_v32 = vand.u32 2147483647, %v11904_v44  ;;  %v3941_v41 = vmax.f32 %v11817_v20, 0.0 }
 0x2e2   : > { %v4548_v13 = vmul.f32 %v10391_v12, %v11783_v2  ;;  %10394 = vlog2.f32 %v4270_v26  ;;  %v5114_v15 = vor.u32 %v5113_v28, %v5110_v42  ;;  %v11922_v18 = vor.u32 %v5121_v27, %v5118_v36  ;;  %v3625_v36 = vpop.f32.mrf.mxu0 }
 0x2e3   : > { %v4072_v51 = vsub.f32 0.0, %v4040_v32  ;;  %5898 = vmatmul.bf16.vlgmr.msrb.gmra.mxu0 %v11580_v22  ;;  %v4453_v5 = vadd.f32 %v4269_v30, %v3941_v41  ;;  %v4274_v37 = vadd.f32 1.0, %v4273_v55  ;;  %v5408_v39 = vshrl.u32 %v10035_v38, 16 }
 0x2e4   : > { %v9539_v57 = vpack.c.bf16 %v4548_v13, %v4547_v52  ;;  %v5123_v34 = vsel %vm13606_vm14, %v5114_v15, %v11922_v18  ;;  %v5411_v53 = vshll.u32 %v10035_v38, 16  ;;  %v4276_v2 = vand.u32 2147483647, %v10389_v45 }
 0x2e5   : > { %v4119_v23 = vmul.f32 1.442695, %v4072_v51  ;;  %5193 = vmatmul.bf16.vlgmr.msrb.gmra.mxu2 %v5123_v34  ;;  %v5416_v3 = vshrl.u32 %v10219_v60, 16  ;;  %v5419_v16 = vshll.u32 %v10219_v60, 16  ;;  %vm3973_vm9 = vcmp.ne.f32.partialorder %v11817_v20, %v11817_v20 }
 0x2e6   : > { %9761 = vst [vmem:[#allocation3 + $0x38] sm:$0xff] %v9539_v57   ;;  %v5410_v22 = vrot.slane %v5408_v39, 3  ;;  %v5413_v40 = vrot.slane %v5411_v53, 4  ;;  %v4485_v63 = vsel %vm3973_vm9, %v11817_v20, %v4453_v5  ;;  %v4275_v4 = vmul.f32 %v10389_v45, %v4274_v37  ;;  %v9774_v39 = vld [vmem:[#allocation3 + $0x18] sm:$0xff]   ;;  %v10221_v53 = vld [vmem:[#allocation3 + $0x24] sm:$0xff]  }
 0x2e7   : > { %v10393_v46 = vpop.eup %10392  ;;  %10396 = vpow2.f32 %v4119_v23  ;;  %v5418_v24 = vrot.slane %v5416_v3, 3  ;;  %v5421_v58 = vrot.slane %v5419_v16, 4  ;;  %v3208_v49 = vadd.f32 %v3207_v61, %v3047_v14 }
 0x2e8   : > { %v10395_v10 = vpop.eup %10394  ;;  %v4279_v29 = vadd.f32 1.0, %v10393_v46  ;;  %v4282_v28 = vmul.f32 -0.5, %v10393_v46  ;;  %v3942_v8 = vmax.f32 %v11849_v19, 0.0  ;;  %vm4277_vm13 = vcmp.lt.f32.partialorder %v4276_v2, 0.0004427343 }
 0x2e9   : > { %v4272_v42 = vmul.f32 0.6931472, %v10395_v10  ;;  %v5414_v35 = vor.u32 %v5413_v40, %v5410_v22  ;;  %v11931_v26 = vor.u32 %v5421_v58, %v5418_v24  ;;  %v3681_v45 = vadd.f32 %v3625_v36, %v3208_v49  ;;  %v3209_v36 = vpop.f32.mrf.mxu3 }
 0x2ea   : > { %10398 = vlog2.f32 %v4279_v29  ;;  %vm3974_vm14 = vcmp.ne.f32.partialorder %v11849_v19, %v11849_v19  ;;  %v4283_v12 = vadd.f32 1.0, %v4282_v28  ;;  %vm13607_vm9 = vsmask.f32 4352 }
 0x2eb   : > { %v4278_v27 = vsel %vm4277_vm13, %v4275_v4, %v4272_v42  ;;  %10400 = vtanh.f32 %v4485_v63  ;;  %v5423_v30 = vsel %vm13607_vm9, %v5414_v35, %v11931_v26  ;;  %v3841_v32 = vadd.f32 %v3681_v45, %v11294_v25  ;;  %v3049_v42 = vpop.f32.mrf.mxu2 }
 0x2ec   : > { %v4454_v55 = vadd.f32 %v4278_v27, %v3942_v8  ;;  %v4285_v13 = vand.u32 2147483647, %v10393_v46  ;;  %5631 = vmatmul.bf16.vlgmr.msrb.gmra.mxu3 %v5423_v30  ;;  %v4284_v5 = vmul.f32 %v10393_v46, %v4283_v12  ;;  %v3943_v25 = vmax.f32 %v11888_v31, 0.0 }
 0x2ed   : > { %v10397_v38 = vpop.eup %10396  ;;  %v3877_v51 = vmul.f32 %v11808_v62, %v3841_v32  ;;  %v5425_v46 = vshrl.u32 %v10221_v53, 16  ;;  %v5428_v40 = vshll.u32 %v10221_v53, 16  ;;  %v3944_v4 = vmax.f32 %v11904_v44, 0.0 }
 0x2ee   : > { %v4486_v52 = vsel %vm3974_vm14, %v11849_v19, %v4454_v55  ;;  %v4288_v41 = vadd.f32 1.0, %v10397_v38  ;;  %v4291_v60 = vmul.f32 -0.5, %v10397_v38  ;;  %vm4286_vm13 = vcmp.lt.f32.partialorder %v4285_v13, 0.0004427343  ;;  %v3627_v55 = vpop.f32.mrf.mxu0 }
 0x2ef   : > { %10402 = vtanh.f32 %v4486_v52  ;;  %v11941_v37 = vadd.f32 %v11814_v56, %v3877_v51  ;;  %v4294_v34 = vand.u32 2147483647, %v10397_v38  ;;  %vm3975_vm14 = vcmp.ne.f32.partialorder %v11888_v31, %v11888_v31 }
 0x2f0   : > { %v10399_v15 = vpop.eup %10398  ;;  %10404 = vlog2.f32 %v4288_v41  ;;  %v4292_v3 = vadd.f32 1.0, %v4291_v60  ;;  %v5124_v24 = vsel %vm13607_vm9, %v11922_v18, %v11750_v1  ;;  %v353_v28 = vadd.s32 136, %v11132_v9 }
 0x2f1   : > { %v4281_v57 = vmul.f32 0.6931472, %v10399_v15  ;;  %v10401_v23 = vpop.eup %10400  ;;  %v4041_v16 = vand.u32 2147483647, %v11941_v37  ;;  %v5427_v58 = vrot.slane %v5425_v46, 3  ;;  %v5430_v27 = vrot.slane %v5428_v40, 4 }
 0x2f2   : > { %v4549_v63 = vmul.f32 %v10401_v23, %v11817_v20  ;;  %v4293_v49 = vmul.f32 %v10397_v38, %v4292_v3  ;;  %v3210_v18 = vadd.f32 %v3209_v36, %v3049_v42  ;;  %v13610_v32 = vmov 0  ;;  %v10196_v23 = vld [vmem:[#allocation3 + $0x2c] sm:$0xff]  }
 0x2f3   : > { %v4287_v2 = vsel %vm4286_vm13, %v4284_v5, %v4281_v57  ;;  %5903 = vmatmul.bf16.gmra.mxu0 %v9774_v39  ;;  %v4073_v29 = vsub.f32 0.0, %v4041_v16  ;;  %vm11953_vm13 = vcmp.lt.f32.partialorder %v4294_v34, 0.0004427343  ;;  %v5431_v12 = vor.u32 %v5430_v27, %v5427_v58  ;;  %v9775_v34 = vld [vmem:[#allocation3 + $0x20] sm:$0xff]  }
 0x2f4   : > { %v4455_v22 = vadd.f32 %v4287_v2, %v3943_v25  ;;  %v3682_v38 = vadd.f32 %v3627_v55, %v3210_v18  ;;  %vm3976_vm0 = vcmp.ne.f32.partialorder %v11904_v44, %v11904_v44  ;;  %v10223_v25 = vld [vmem:[#allocation3 + $0x2c] sm:$0xff]   ;;  %v4829_v3 = vshrl.u32 %v10196_v23, 16 }
 0x2f5   : > { %v10403_v10 = vpop.eup %10402  ;;  %5198 = vmatmul.bf16.gmra.mxu2 %v5124_v24  ;;  %v4121_v8 = vmul.f32 1.442695, %v4073_v29  ;;  %v4832_v16 = vshll.u32 %v10196_v23, 16  ;;  %v5434_v46 = vshrl.u32 %v10223_v25, 16  ;;  %v5437_v40 = vshll.u32 %v10223_v25, 16 }
 0x2f6   : > { %v10405_v43 = vpop.eup %10404  ;;  %v4550_v14 = vmul.f32 %v10403_v10, %v11849_v19  ;;  %v4487_v1 = vsel %vm3975_vm14, %v11888_v31, %v4455_v22  ;;  %v491_v19 = vand.u32 15, %v353_v28  ;;  %vm13613_vm14 = vsmask.f32 4352  ;;  %v3630_v28 = vpop.f32.mrf.mxu0 }
 0x2f7   : > { %v4290_v20 = vmul.f32 0.6931472, %v10405_v43  ;;  %10406 = vpow2.f32 %v4121_v8  ;;  %v5432_v60 = vsel %vm13613_vm14, %v11931_v26, %v5431_v12  ;;  %v4834_v29 = vrot.slane %v4832_v16, 4 }
 0x2f8   : > { %v9544_v35 = vpack.c.bf16 %v4550_v14, %v4549_v63  ;;  %vm11964_vm9 = vcmp.lt.s32.totalorder %v491_v19, 15  ;;  %10408 = vtanh.f32 %v4487_v1  ;;  %v5436_v43 = vrot.slane %v5434_v46, 3 }
 0x2f9   : > { %v4296_v45 = vsel %vm11953_vm13, %v4293_v49, %v4290_v20  ;;  %v13611_v32 = vsel %vm11964_vm9, 4294967295, %v13610_v32  ;;  %v3810_v13 = vsel %vm11964_vm9, %v3682_v38, 0.0  ;;  %v5439_v14 = vrot.slane %v5437_v40, 4  ;;  %v3052_v20 = vpop.f32.mrf.mxu2 }
 0x2fa   : > { %9762 = vst [vmem:[#allocation3 + $0x40] sm:$0xff] %v9544_v35   ;;  %v4456_v30 = vadd.f32 %v4296_v45, %v3944_v4  ;;  %v3842_v41 = vadd.f32 %v3810_v13, %v11300_v0  ;;  %v4831_v4 = vrot.slane %v4829_v3, 3  ;;  %v10198_v13 = vld [vmem:[#allocation3 + $0x34] sm:$0xff]  }
 0x2fb   : > { %13612 = vst [vmem:[#allocation44_spill] sm:$0xff] %v13611_v32 }
 0x2fc   : > { %v4488_v52 = vsel %vm3976_vm0, %v11904_v44, %v4456_v30  ;;  %5636 = vmatmul.bf16.gmra.mxu3 %v5432_v60  ;;  %v3878_v15 = vmul.f32 %v11808_v62, %v3842_v41  ;;  %v11984_v61 = vor.u32 %v4834_v29, %v4831_v4  ;;  %vm13614_vm0 = vmmov %vm13613_vm14  ;;  %v3945_v30 = vmax.f32 %v11941_v37, 0.0  ;;  %v10225_v41 = vld [vmem:[#allocation3 + $0x34] sm:$0xff]   ;;  %v9776_v60 = vld [vmem:[#allocation3 + $0x28] sm:$0xff]  }
 0x2fd   : > { %10410 = vtanh.f32 %v4488_v52  ;;  %v10407_v51 = vpop.eup %10406  ;;  %vm13615_vm13 = vmmov %vm13614_vm0  ;;  %v5443_v23 = vshrl.u32 %v10225_v41, 16  ;;  %v5446_v25 = vshll.u32 %v10225_v41, 16 }
 0x2fe   : > { %v4297_v57 = vadd.f32 1.0, %v10407_v51  ;;  %v10409_v5 = vpop.eup %10408  ;;  %v11978_v39 = vadd.f32 %v11814_v56, %v3878_v15  ;;  %v4300_v63 = vmul.f32 -0.5, %v10407_v51  ;;  %v11991_v58 = vsel %vm13614_vm0, %v11900_v33, %v11984_v61  ;;  %v3632_v52 = vpop.f32.mrf.mxu0 }
 0x2ff   : > { %v4551_v0 = vmul.f32 %v10409_v5, %v11888_v31  ;;  %v4303_v49 = vand.u32 2147483647, %v10407_v51  ;;  %5032 = vmatmul.bf16.gmra.mxu1 %v11991_v58  ;;  %v4841_v5 = vshll.u32 %v10198_v13, 16  ;;  %vm3977_vm0 = vcmp.ne.f32.partialorder %v11941_v37, %v11941_v37 }
 0x300   : > { %10412 = vlog2.f32 %v4297_v57  ;;  %v4042_v2 = vand.u32 2147483647, %v11978_v39  ;;  %v4301_v42 = vadd.f32 1.0, %v4300_v63  ;;  %v4838_v57 = vshrl.u32 %v10198_v13, 16  ;;  %v9777_v13 = vld [vmem:[#allocation3 + $0x30] sm:$0xff]  }
 0x301   : > { %vm4304_vm14 = vcmp.lt.f32.partialorder %v4303_v49, 0.0004427343  ;;  %v3054_v40 = vpop.f32.mrf.mxu2  ;;  %vm3978_vm9 = vcmp.ne.f32.partialorder %v11978_v39, %v11978_v39 }
 0x302   : > { %v4074_v22 = vsub.f32 0.0, %v4042_v2  ;;  %v4302_v35 = vmul.f32 %v10407_v51, %v4301_v42  ;;  %v4843_v2 = vrot.slane %v4841_v5, 4 }
 0x303   : > { %v10411_v53 = vpop.eup %10410  ;;  %5908 = vmatmul.bf16.gmra.mxu0 %v9775_v34 }
 0x304   : > { %v4552_v26 = vmul.f32 %v10411_v53, %v11904_v44  ;;  %v4123_v24 = vmul.f32 1.442695, %v4074_v22  ;;  %v11986_v44 = vor.u32 %v5439_v14, %v5436_v43  ;;  %v4840_v53 = vrot.slane %v4838_v57, 3 }
 0x305   : > { %5203 = vmatmul.bf16.gmra.mxu2 %v11842_v21  ;;  %v3212_v21 = vpop.f32.mrf.mxu3 }
 0x306   : > { %v9549_v10 = vpack.c.bf16 %v4552_v26, %v4551_v0  ;;  %v10413_v31 = vpop.eup %10412  ;;  %10414 = vpow2.f32 %v4123_v24  ;;  %v3213_v36 = vadd.f32 %v3212_v21, %v3052_v20  ;;  %v5441_v27 = vsel %vm13615_vm13, %v5431_v12, %v11986_v44  ;;  %v3635_v42 = vpop.f32.mrf.mxu0 }
 0x307   : > { %v4299_v8 = vmul.f32 0.6931472, %v10413_v31  ;;  %v5445_v0 = vrot.slane %v5443_v23, 3  ;;  %v5448_v26 = vrot.slane %v5446_v25, 4  ;;  %v12008_v24 = vor.u32 %v4843_v2, %v4840_v53 }
 0x308   : > { %9763 = vst [vmem:[#allocation3 + $0x48] sm:$0xff] %v9549_v10   ;;  %v3683_v1 = vadd.f32 %v3630_v28, %v3213_v36  ;;  %v355_v10 = vadd.s32 152, %v11132_v9 }
 0x309   : > { %v4305_v18 = vsel %vm4304_vm14, %v4302_v35, %v4299_v8  ;;  %v12010_v43 = vor.u32 %v5448_v26, %v5445_v0  ;;  %vm13616_vm14 = vsmask.f32 4352  ;;  %v13617_v8 = vmov 0 }
 0x30a   : > { %v3843_v33 = vadd.f32 %v3683_v1, %v11309_v11  ;;  %v4457_v12 = vadd.f32 %v4305_v18, %v3945_v30  ;;  %v505_v31 = vand.u32 15, %v355_v10  ;;  %v12016_v49 = vsel %vm13616_vm14, %v11984_v61, %v12008_v24 }
 0x30c   : > { %5641 = vmatmul.bf16.gmra.mxu3 %v5441_v27  ;;  %v10415_v19 = vpop.eup %10414  ;;  %v3879_v38 = vmul.f32 %v11808_v62, %v3843_v33  ;;  %v4489_v16 = vsel %vm3977_vm0, %v11941_v37, %v4457_v12  ;;  %vm12018_vm0 = vcmp.lt.s32.totalorder %v505_v31, 15  ;;  %v10227_v12 = vld [vmem:[#allocation3 + $0x3c] sm:$0xff]  }
 0x30d   : > { %v4306_v45 = vadd.f32 1.0, %v10415_v19  ;;  %v4309_v55 = vmul.f32 -0.5, %v10415_v19  ;;  %v4312_v11 = vand.u32 2147483647, %v10415_v19  ;;  %v3214_v63 = vpop.f32.mrf.mxu3  ;;  %v13618_v8 = vsel %vm12018_vm0, 4294967295, %v13617_v8 }
 0x30e   : > { %v12000_v15 = vadd.f32 %v11814_v56, %v3879_v38  ;;  %v3215_v29 = vadd.f32 %v3214_v63, %v3054_v40  ;;  %13619 = vst [vmem:[#allocation45_spill] sm:$0xff] %v13618_v8  ;;  %v3637_v38 = vpop.f32.mrf.mxu0 }
 0x30f   : > { %10416 = vlog2.f32 %v4306_v45  ;;  %v4310_v51 = vadd.f32 1.0, %v4309_v55  ;;  %vm4313_vm13 = vcmp.lt.f32.partialorder %v4312_v11, 0.0004427343  ;;  %5037 = vmatmul.bf16.gmra.mxu1 %v12016_v49 }
 0x310   : > { %v4043_v34 = vand.u32 2147483647, %v12000_v15  ;;  %10418 = vtanh.f32 %v4489_v16  ;;  %v3684_v20 = vadd.f32 %v3632_v52, %v3215_v29  ;;  %v10200_v52 = vld [vmem:[#allocation3 + $0x3c] sm:$0xff]   ;;  %v5455_v16 = vshll.u32 %v10227_v12, 16 }
 0x311   : > { %v4311_v22 = vmul.f32 %v10415_v19, %v4310_v51  ;;  %v3057_v19 = vpop.f32.mrf.mxu2  ;;  %v4847_v51 = vshrl.u32 %v10200_v52, 16  ;;  %v4850_v2 = vshll.u32 %v10200_v52, 16 }
 0x312   : > { %v4075_v46 = vsub.f32 0.0, %v4043_v34  ;;  %v3812_v36 = vsel %vm12018_vm0, %v3684_v20, 0.0  ;;  %v5457_v29 = vrot.slane %v5455_v16, 4 }
 0x313   : > { %5913 = vmatmul.bf16.gmra.mxu0 %v9776_v60  ;;  %v3844_v35 = vadd.f32 %v3812_v36, %v11315_v6  ;;  %v4849_v53 = vrot.slane %v4847_v51, 3  ;;  %v4852_v63 = vrot.slane %v4850_v2, 4 }
 0x314   : > { %v4125_v14 = vmul.f32 1.442695, %v4075_v46 }
 0x315   : > { %5208 = vmatmul.bf16.gmra.mxu2 %v11909_v47  ;;  %v10417_v3 = vpop.eup %10416  ;;  %v3946_v47 = vmax.f32 %v11978_v39, 0.0  ;;  %v3880_v1 = vmul.f32 %v11808_v62, %v3844_v35  ;;  %v3217_v18 = vpop.f32.mrf.mxu3 }
 0x316   : > { %v4308_v4 = vmul.f32 0.6931472, %v10417_v3  ;;  %10420 = vpow2.f32 %v4125_v14  ;;  %v10419_v45 = vpop.eup %10418  ;;  %v3218_v55 = vadd.f32 %v3217_v18, %v3057_v19  ;;  %v5452_v3 = vshrl.u32 %v10227_v12, 16 }
 0x317   : > { %v12034_v30 = vadd.f32 %v11814_v56, %v3880_v1  ;;  %v4553_v5 = vmul.f32 %v10419_v45, %v11941_v37  ;;  %v357_v37 = vadd.s32 168, %v11132_v9  ;;  %v12046_v14 = vor.u32 %v4852_v63, %v4849_v53 }
 0x318   : > { %v4314_v28 = vsel %vm4313_vm13, %v4311_v22, %v4308_v4  ;;  %vm13620_vm13 = vmmov %vm13616_vm14  ;;  %v3685_v60 = vadd.f32 %v3635_v42, %v3218_v55  ;;  %v5454_v4 = vrot.slane %v5452_v3, 3  ;;  %v3947_v18 = vmax.f32 %v12000_v15, 0.0 }
 0x319   : > { %v4458_v21 = vadd.f32 %v4314_v28, %v3946_v47  ;;  %v5450_v27 = vsel %vm13620_vm13, %v11986_v44, %v12010_v43  ;;  %v4044_v6 = vand.u32 2147483647, %v12034_v30  ;;  %v3059_v40 = vpop.f32.mrf.mxu2  ;;  %v3640_v47 = vpop.f32.mrf.mxu0  ;;  %v9303_v28 = vld [vmem:[#allocation8 + $0x68] sm:$0xff]  ;;  %vm13624_vm14 = vmmov %vm13620_vm13 }
 0x31a   : > { %v3845_v25 = vadd.f32 %v3685_v60, %v11324_v59  ;;  %v12058_v35 = vor.u32 %v5457_v29, %v5454_v4  ;;  %6031 = vmatpush.bf16.msrb.mxu1 %v9303_v28  ;;  %vm13625_vm0 = vmmov %vm13624_vm14 }
 0x31b   : > { %v4490_v61 = vsel %vm3978_vm9, %v11978_v39, %v4458_v21  ;;  %v4076_v34 = vsub.f32 0.0, %v4044_v6 }
 0x31c   : > { %5646 = vmatmul.bf16.gmra.mxu3 %v5450_v27  ;;  %10422 = vtanh.f32 %v4490_v61  ;;  %v10421_v33 = vpop.eup %10420  ;;  %v3881_v26 = vmul.f32 %v11808_v62, %v3845_v25  ;;  %v13621_v27 = vmov 0  ;;  %v12056_v61 = vsel %vm13624_vm14, %v12008_v24, %v12046_v14 }
 0x31d   : > { %v4315_v44 = vadd.f32 1.0, %v10421_v33  ;;  %v4318_v41 = vmul.f32 -0.5, %v10421_v33  ;;  %v4321_v23 = vand.u32 2147483647, %v10421_v33  ;;  %v4127_v46 = vmul.f32 1.442695, %v4076_v34  ;;  %v3219_v10 = vpop.f32.mrf.mxu3 }
 0x31e   : > { %v12044_v59 = vadd.f32 %v11814_v56, %v3881_v26  ;;  %v5459_v24 = vsel %vm13625_vm0, %v12010_v43, %v12058_v35  ;;  %vm3979_vm0 = vcmp.ne.f32.partialorder %v12000_v15, %v12000_v15  ;;  %v3948_v25 = vmax.f32 %v12034_v30, 0.0 }
 0x31f   : > { %10424 = vlog2.f32 %v4315_v44  ;;  %v4319_v0 = vadd.f32 1.0, %v4318_v41  ;;  %vm4322_vm13 = vcmp.lt.f32.partialorder %v4321_v23, 0.0004427343  ;;  %5042 = vmatmul.bf16.gmra.mxu1 %v12056_v61  ;;  %v9778_v23 = vld [vmem:[#allocation3 + $0x38] sm:$0xff]  }
 0x320   : > { %10426 = vpow2.f32 %v4127_v46  ;;  %v4045_v20 = vand.u32 2147483647, %v12044_v59 }
 0x321   : > { %v4320_v42 = vmul.f32 %v10421_v33, %v4319_v0  ;;  %v3062_v44 = vpop.f32.mrf.mxu2  ;;  %v3642_v51 = vpop.f32.mrf.mxu0 }
 0x322   : > { %v10423_v57 = vpop.eup %10422  ;;  %v4077_v1 = vsub.f32 0.0, %v4045_v20 }
 0x323   : > { %5918 = vmatmul.bf16.gmra.mxu0 %v9777_v13  ;;  %v4554_v11 = vmul.f32 %v10423_v57, %v11978_v39  ;;  %v3220_v39 = vadd.f32 %v3219_v10, %v3059_v40  ;;  %v10202_v57 = vld [vmem:[#allocation3 + $0x44] sm:$0xff]  }
 0x324   : > { %v4129_v52 = vmul.f32 1.442695, %v4077_v1  ;;  %v4856_v2 = vshrl.u32 %v10202_v57, 16  ;;  %v4859_v0 = vshll.u32 %v10202_v57, 16  ;;  %v3949_v57 = vmax.f32 %v12044_v59, 0.0 }
 0x325   : > { %5213 = vmatmul.bf16.gmra.mxu2 %v11991_v58  ;;  %v9554_v22 = vpack.c.bf16 %v4554_v11, %v4553_v5  ;;  %v519_v58 = vand.u32 15, %v357_v37  ;;  %v10425_v31 = vpop.eup %10424  ;;  %v3686_v21 = vadd.f32 %v3637_v38, %v3220_v39  ;;  %v3222_v41 = vpop.f32.mrf.mxu3  ;;  %v10229_v5 = vld [vmem:[#allocation3 + $0x44] sm:$0xff]   ;;  %v359_v39 = vadd.s32 184, %v11132_v9 }
 0x326   : > { %v4317_v36 = vmul.f32 0.6931472, %v10425_v31  ;;  %v10427_v33 = vpop.eup %10426  ;;  %v5461_v16 = vshrl.u32 %v10229_v5, 16  ;;  %v4858_v40 = vrot.slane %v4856_v2, 3  ;;  %v4861_v37 = vrot.slane %v4859_v0, 4 }
 0x327   : > { %9764 = vst [vmem:[#allocation3 + $0x50] sm:$0xff] %v9554_v22   ;;  %vm12049_vm9 = vcmp.lt.s32.totalorder %v519_v58, 15  ;;  %v4324_v60 = vadd.f32 1.0, %v10427_v33  ;;  %v4327_v12 = vmul.f32 -0.5, %v10427_v33  ;;  %v4330_v34 = vand.u32 2147483647, %v10427_v33 }
 0x328   : > { %v13622_v27 = vsel %vm12049_vm9, 4294967295, %v13621_v27  ;;  %v3814_v19 = vsel %vm12049_vm9, %v3686_v21, 0.0  ;;  %v4323_v45 = vsel %vm4322_vm13, %v4320_v42, %v4317_v36  ;;  %v5464_v22 = vshll.u32 %v10229_v5, 16 }
 0x329   : > { %13623 = vst [vmem:[#allocation46_spill] sm:$0xff] %v13622_v27  ;;  %v3846_v55 = vadd.f32 %v3814_v19, %v11330_v17  ;;  %v4459_v38 = vadd.f32 %v4323_v45, %v3947_v18  ;;  %v3223_v17 = vadd.f32 %v3222_v41, %v3062_v44  ;;  %10428 = vlog2.f32 %v4324_v60  ;;  %v3064_v63 = vpop.f32.mrf.mxu2  ;;  %v3645_v1 = vpop.f32.mrf.mxu0 }
 0x32a   : > { %10430 = vpow2.f32 %v4129_v52  ;;  %v4328_v26 = vadd.f32 1.0, %v4327_v12  ;;  %v5463_v29 = vrot.slane %v5461_v16, 3  ;;  %v5466_v58 = vrot.slane %v5464_v22, 4  ;;  %v13632_v12 = vld [vmem:[#allocation23_spill] sm:$0xff] }
 0x32b   : > { %v3882_v13 = vmul.f32 %v11808_v62, %v3846_v55  ;;  %v4491_v43 = vsel %vm3979_vm0, %v12000_v15, %v4459_v38  ;;  %v3687_v53 = vadd.f32 %v3640_v47, %v3223_v17  ;;  %vm12080_vm14 = vcmp.lt.f32.partialorder %v4330_v34, 0.0004427343  ;;  %v9779_v22 = vld [vmem:[#allocation3 + $0x40] sm:$0xff]  }
 0x32c   : > { %5651 = vmatmul.bf16.gmra.mxu3 %v5459_v24  ;;  %10432 = vtanh.f32 %v4491_v43  ;;  %v12085_v28 = vor.u32 %v4861_v37, %v4858_v40  ;;  %v4329_v21 = vmul.f32 %v10427_v33, %v4328_v26  ;;  %v533_v36 = vand.u32 15, %v359_v39 }
 0x32d   : > { %v12070_v6 = vadd.f32 %v11814_v56, %v3882_v13  ;;  %v3847_v46 = vadd.f32 %v3687_v53, %v11339_v7  ;;  %v3224_v4 = vpop.f32.mrf.mxu3  ;;  %v12090_v55 = vor.u32 %v5466_v58, %v5463_v29  ;;  %v13628_v38 = vmov 0  ;;  %v12118_v53 = vld [vmem:[%s13414_s2] ss:$0 sm:$0xff] }
 0x32e   : > { %v3225_v42 = vadd.f32 %v3224_v4, %v3064_v63  ;;  %vm12094_vm13 = vcmp.lt.s32.totalorder %v533_v36, 15  ;;  %vm13631_vm0 = vsmask.f32 4352  ;;  %vm3980_vm9 = vcmp.ne.f32.partialorder %v12034_v30, %v12034_v30  ;;  %v10204_v16 = vld [vmem:[#allocation3 + $0x4c] sm:$0xff]  }
 0x32f   : > { %v4046_v11 = vand.u32 2147483647, %v12070_v6  ;;  %v10429_v47 = vpop.eup %10428  ;;  %v13629_v38 = vsel %vm12094_vm13, 4294967295, %v13628_v38  ;;  %v12101_v33 = vsel %vm13631_vm0, %v12046_v14, %v12085_v28  ;;  %v4865_v29 = vshrl.u32 %v10204_v16, 16  ;;  %v10231_v58 = vld [vmem:[#allocation3 + $0x4c] sm:$0xff]  }
 0x330   : > { %v10431_v7 = vpop.eup %10430  ;;  %v4326_v20 = vmul.f32 0.6931472, %v10429_v47  ;;  %13630 = vst [vmem:[#allocation47_spill] sm:$0xff] %v13629_v38  ;;  %5047 = vmatmul.bf16.gmra.mxu1 %v12101_v33  ;;  %v3950_v31 = vmax.f32 %v12070_v6, 0.0 }
 0x331   : > { %v4078_v3 = vsub.f32 0.0, %v4046_v11  ;;  %v4333_v19 = vadd.f32 1.0, %v10431_v7  ;;  %v4336_v18 = vmul.f32 -0.5, %v10431_v7 }
 0x332   : > { %v4332_v24 = vsel %vm12080_vm14, %v4329_v21, %v4326_v20  ;;  %v10433_v52 = vpop.eup %10432  ;;  %vm13633_vm14 = vmmov %vm13631_vm0  ;;  %v13636_v21 = vld [vmem:[#allocation25_spill] sm:$0xff]  ;;  %v13641_v20 = vld [vmem:[#allocation26_spill] sm:$0xff] }
 0x333   : > { %5923 = vmatmul.bf16.gmra.mxu0 %v9778_v23  ;;  %v4131_v10 = vmul.f32 1.442695, %v4078_v3  ;;  %v4460_v13 = vadd.f32 %v4332_v24, %v3948_v25  ;;  %v4337_v60 = vadd.f32 1.0, %v4336_v18  ;;  %v5468_v14 = vsel %vm13633_vm14, %v12058_v35, %v12090_v55  ;;  %v3067_v23 = vpop.f32.mrf.mxu2  ;;  %v3647_v3 = vpop.f32.mrf.mxu0 }
 0x334   : > { %v4339_v25 = vand.u32 2147483647, %v10431_v7  ;;  %v4555_v47 = vmul.f32 %v10433_v52, %v12000_v15 }
 0x335   : > { %5218 = vmatmul.bf16.gmra.mxu2 %v12016_v49  ;;  %v3883_v49 = vmul.f32 %v11808_v62, %v3847_v46  ;;  %10434 = vpow2.f32 %v4131_v10  ;;  %v3688_v62 = vadd.f32 %v3642_v51, %v3225_v42  ;;  %v4492_v41 = vsel %vm3980_vm9, %v12034_v30, %v4460_v13  ;;  %v3227_v43 = vpop.f32.mrf.mxu3  ;;  %v12126_v10 = vld [vmem:[%s13415_s3] ss:$0 sm:$0xff] }
 0x336   : > { %10436 = vlog2.f32 %v4333_v19  ;;  %vm3981_vm9 = vcmp.ne.f32.partialorder %v12044_v59, %v12044_v59  ;;  %v3228_v26 = vadd.f32 %v3227_v43, %v3067_v23  ;;  %v4338_v40 = vmul.f32 %v10431_v7, %v4337_v60 }
 0x337   : > { %v12088_v45 = vadd.f32 %v11814_v56, %v3883_v49  ;;  %v3816_v44 = vsel %vm12094_vm13, %v3688_v62, 0.0  ;;  %10438 = vtanh.f32 %v4492_v41  ;;  %vm4340_vm0 = vcmp.lt.f32.partialorder %v4339_v25, 0.0004427343 }
 0x338   : > { %v3848_v17 = vadd.f32 %v3816_v44, %v13632_v12  ;;  %v3689_v4 = vadd.f32 %v3645_v1, %v3228_v26  ;;  %v4868_v19 = vshll.u32 %v10204_v16, 16  ;;  %v361_v13 = vadd.s32 200, %v11132_v9 }
 0x339   : > { %v4047_v56 = vand.u32 2147483647, %v12088_v45  ;;  %v4867_v44 = vrot.slane %v4865_v29, 3  ;;  %v5470_v41 = vshrl.u32 %v10231_v58, 16  ;;  %vm13668_vm13 = vsmask.f32 4352 }
 0x33a   : > { %v3884_v2 = vmul.f32 %v12118_v53, %v3848_v17  ;;  %v3849_v36 = vadd.f32 %v3689_v4, %v13636_v21  ;;  %vm13669_vm15 = vmmov %vm13668_vm13 }
 0x33b   : > { %v10435_v51 = vpop.eup %10434  ;;  %v4079_v5 = vsub.f32 0.0, %v4047_v56  ;;  %v3069_v52 = vpop.f32.mrf.mxu2  ;;  %v5472_v4 = vrot.slane %v5470_v41, 3 }
 0x33c   : > { %5656 = vmatmul.bf16.gmra.mxu3 %v5468_v14  ;;  %v4342_v11 = vadd.f32 1.0, %v10435_v51  ;;  %v4345_v34 = vmul.f32 -0.5, %v10435_v51  ;;  %v4348_v35 = vand.u32 2147483647, %v10435_v51  ;;  %v10437_v46 = vpop.eup %10436  ;;  %v12129_v63 = vadd.f32 %v12126_v10, %v3884_v2  ;;  %v3650_v43 = vpop.f32.mrf.mxu0 }
 0x33d   : > { %v4133_v0 = vmul.f32 1.442695, %v4079_v5  ;;  %v4335_v39 = vmul.f32 0.6931472, %v10437_v46  ;;  %v10439_v42 = vpop.eup %10438  ;;  %v3885_v62 = vmul.f32 %v12118_v53, %v3849_v36  ;;  %v3229_v56 = vpop.f32.mrf.mxu3  ;;  %v547_v5 = vand.u32 15, %v361_v13 }
 0x33e   : > { %10440 = vlog2.f32 %v4342_v11  ;;  %v4346_v37 = vadd.f32 1.0, %v4345_v34  ;;  %v4048_v49 = vand.u32 2147483647, %v12129_v63  ;;  %vm12134_vm14 = vcmp.lt.f32.partialorder %v4348_v35, 0.0004427343  ;;  %v9302_v35 = vld [vmem:[#allocation8 + $0x60] sm:$0xff] }
 0x33f   : > { %10442 = vpow2.f32 %v4133_v0  ;;  %v4341_v7 = vsel %vm4340_vm0, %v4338_v40, %v4335_v39  ;;  %v4556_v1 = vmul.f32 %v10439_v42, %v12034_v30  ;;  %v4870_v30 = vrot.slane %v4868_v19, 4  ;;  %6032 = vmatpush.bf16.msrb.mxu1 %v9302_v35 }
 0x340   : > { %v4461_v18 = vadd.f32 %v4341_v7, %v3949_v57  ;;  %v4347_v15 = vmul.f32 %v10435_v51, %v4346_v37  ;;  %v4080_v24 = vsub.f32 0.0, %v4048_v49  ;;  %v12148_v57 = vadd.f32 %v12126_v10, %v3885_v62 }
 0x341   : > { %v9559_v12 = vpack.c.bf16 %v4556_v1, %v4555_v47  ;;  %v3230_v23 = vadd.f32 %v3229_v56, %v3069_v52  ;;  %v5473_v34 = vshll.u32 %v10231_v58, 16  ;;  %vm12155_vm0 = vcmp.lt.s32.totalorder %v547_v5, 15 }
 0x342   : > { %v4135_v17 = vmul.f32 1.442695, %v4080_v24  ;;  %v4049_v0 = vand.u32 2147483647, %v12148_v57  ;;  %v13637_v46 = vmov 0  ;;  %v12159_v40 = vor.u32 %v4870_v30, %v4867_v44  ;;  %v9780_v24 = vld [vmem:[#allocation3 + $0x48] sm:$0xff]  }
 0x343   : > { %5928 = vmatmul.bf16.gmra.mxu0 %v9779_v22  ;;  %9765 = vst [vmem:[#allocation3 + $0x58] sm:$0xff] %v9559_v12   ;;  %v3690_v22 = vadd.f32 %v3647_v3, %v3230_v23  ;;  %v13638_v46 = vsel %vm12155_vm0, 4294967295, %v13637_v46  ;;  %v5475_v29 = vrot.slane %v5473_v34, 4  ;;  %v3951_v12 = vmax.f32 %v12088_v45, 0.0 }
 0x344   : > { %v10441_v60 = vpop.eup %10440  ;;  %10444 = vpow2.f32 %v4135_v17  ;;  %v4081_v16 = vsub.f32 0.0, %v4049_v0  ;;  %13639 = vst [vmem:[#allocation23_spill] sm:$0xff] %v13638_v46  ;;  %v13643_v17 = vld [vmem:[#allocation28_spill] sm:$0xff]  ;;  %v363_v0 = vadd.s32 216, %v11132_v9 }
 0x345   : > { %5223 = vmatmul.bf16.gmra.mxu2 %v12056_v61  ;;  %v4493_v61 = vsel %vm3981_vm9, %v12044_v59, %v4461_v18  ;;  %v10443_v14 = vpop.eup %10442  ;;  %v4344_v51 = vmul.f32 0.6931472, %v10441_v60  ;;  %vm3982_vm9 = vcmp.ne.f32.partialorder %v12070_v6, %v12070_v6  ;;  %v3818_v47 = vsel %vm12155_vm0, %v3690_v22, 0.0  ;;  %v3232_v49 = vpop.f32.mrf.mxu3 }
 0x346   : > { %v4351_v25 = vadd.f32 1.0, %v10443_v14  ;;  %v4354_v11 = vmul.f32 -0.5, %v10443_v14  ;;  %10446 = vtanh.f32 %v4493_v61  ;;  %v4137_v58 = vmul.f32 1.442695, %v4081_v16 }
 0x347   : > { %v4350_v2 = vsel %vm12134_vm14, %v4347_v15, %v4344_v51  ;;  %vm13640_vm14 = vsmask.f32 4352  ;;  %v4357_v7 = vand.u32 2147483647, %v10443_v14  ;;  %v3850_v21 = vadd.f32 %v3818_v47, %v13641_v20  ;;  %v12173_v15 = vpop.f32.mrf.mxu0 }
 0x348   : > { %v4462_v26 = vadd.f32 %v4350_v2, %v3950_v31  ;;  %10448 = vlog2.f32 %v4351_v25  ;;  %v4355_v39 = vadd.f32 1.0, %v4354_v11  ;;  %v12167_v3 = vsel %vm13640_vm14, %v12085_v28, %v12159_v40  ;;  %v3072_v31 = vpop.f32.mrf.mxu2 }
 0x349   : > { %5052 = vmatmul.bf16.gmra.mxu1 %v12167_v3  ;;  %v3233_v36 = vadd.f32 %v3232_v49, %v3072_v31  ;;  %v12171_v19 = vor.u32 %v5475_v29, %v5472_v4  ;;  %v3886_v52 = vmul.f32 %v12118_v53, %v3850_v21  ;;  %v3952_v4 = vmax.f32 %v12129_v63, 0.0 }
 0x34a   : > { %v4494_v37 = vsel %vm3982_vm9, %v12070_v6, %v4462_v26  ;;  %v10445_v42 = vpop.eup %10444  ;;  %vm13642_vm9 = vmmov %vm13640_vm14  ;;  %v4356_v41 = vmul.f32 %v10443_v14, %v4355_v39  ;;  %v10206_v60 = vld [vmem:[#allocation3 + $0x54] sm:$0xff]   ;;  %vm4358_vm14 = vcmp.lt.f32.partialorder %v4357_v7, 0.0004427343  ;;  %v12193_v39 = vpop.f32.mrf.mxu1  ;;  %v561_v20 = vand.u32 15, %v363_v0 }
 0x34b   : > { %10450 = vtanh.f32 %v4494_v37  ;;  %v4360_v18 = vadd.f32 1.0, %v10445_v42  ;;  %v4363_v28 = vmul.f32 -0.5, %v10445_v42  ;;  %v3691_v13 = vadd.f32 %v3650_v43, %v3233_v36 }
 0x34c   : > { %v10447_v1 = vpop.eup %10446  ;;  %10452 = vpow2.f32 %v4137_v58  ;;  %v5477_v56 = vsel %vm13642_vm9, %v12090_v55, %v12171_v19  ;;  %v12181_v61 = vadd.f32 %v12126_v10, %v3886_v52  ;;  %vm3983_vm9 = vcmp.ne.f32.partialorder %v12088_v45, %v12088_v45 }
 0x34d   : > { %10454 = vlog2.f32 %v4360_v18  ;;  %5661 = vmatmul.bf16.gmra.mxu3 %v5477_v56  ;;  %v3851_v30 = vadd.f32 %v3691_v13, %v13643_v17  ;;  %v4557_v5 = vmul.f32 %v10447_v1, %v12044_v59  ;;  %v4364_v43 = vadd.f32 1.0, %v4363_v28  ;;  %v3234_v59 = vpop.f32.mrf.mxu3 }
 0x34e   : > { %v10449_v62 = vpop.eup %10448  ;;  %v4366_v25 = vand.u32 2147483647, %v10445_v42  ;;  %v4050_v34 = vand.u32 2147483647, %v12181_v61  ;;  %v4874_v26 = vshrl.u32 %v10206_v60, 16  ;;  %v4877_v31 = vshll.u32 %v10206_v60, 16 }
 0x34f   : > { %v4353_v44 = vmul.f32 0.6931472, %v10449_v62  ;;  %v3887_v2 = vmul.f32 %v12118_v53, %v3851_v30  ;;  %v3655_v47 = vpop.f32.mrf.mxu0  ;;  %v4365_v7 = vmul.f32 %v10445_v42, %v4364_v43  ;;  %v13644_v52 = vmov 0 }
 0x350   : > { %v3074_v35 = vpop.f32.mrf.mxu2  ;;  %v4082_v29 = vsub.f32 0.0, %v4050_v34  ;;  %v4876_v36 = vrot.slane %v4874_v26, 3  ;;  %v4879_v13 = vrot.slane %v4877_v31, 4  ;;  %vm3984_vm0 = vcmp.ne.f32.partialorder %v12129_v63, %v12129_v63  ;;  %v13647_v34 = vld [vmem:[#allocation29_spill] sm:$0xff] }
 0x351   : > { %v10451_v51 = vpop.eup %10450  ;;  %v4359_v55 = vsel %vm4358_vm14, %v4356_v41, %v4353_v44  ;;  %v12197_v58 = vadd.f32 %v12126_v10, %v3887_v2  ;;  %vm4367_vm14 = vcmp.lt.f32.partialorder %v4366_v25, 0.0004427343  ;;  %v3235_v62 = vadd.f32 %v3234_v59, %v3074_v35  ;;  %v10233_v41 = vld [vmem:[#allocation3 + $0x54] sm:$0xff]  }
 0x352   : > { %v4558_v14 = vmul.f32 %v10451_v51, %v12070_v6  ;;  %v4463_v23 = vadd.f32 %v4359_v55, %v3951_v12  ;;  %v10453_v11 = vpop.eup %10452  ;;  %v4139_v21 = vmul.f32 1.442695, %v4082_v29  ;;  %v3953_v12 = vmax.f32 %v12148_v57, 0.0  ;;  %v12213_v43 = vpop.f32.mrf.mxu1 }
 0x353   : > { %5933 = vmatmul.bf16.gmra.mxu0 %v9780_v24  ;;  %v4369_v37 = vadd.f32 1.0, %v10453_v11  ;;  %v10455_v6 = vpop.eup %10454  ;;  %v4051_v24 = vand.u32 2147483647, %v12197_v58  ;;  %v4375_v42 = vand.u32 2147483647, %v10453_v11  ;;  %v3692_v44 = vadd.f32 %v12173_v15, %v3235_v62 }
 0x354   : > { %v9564_v16 = vpack.c.bf16 %v4558_v14, %v4557_v5  ;;  %v4495_v22 = vsel %vm3983_vm9, %v12088_v45, %v4463_v23  ;;  %v4362_v49 = vmul.f32 0.6931472, %v10455_v6  ;;  %vm12200_vm9 = vcmp.lt.s32.totalorder %v561_v20, 15  ;;  %v13649_v20 = vld [vmem:[#allocation31_spill] sm:$0xff] }
 0x355   : > { %5228 = vmatmul.bf16.gmra.mxu2 %v12101_v33  ;;  %v4372_v33 = vmul.f32 -0.5, %v10453_v11  ;;  %10456 = vlog2.f32 %v4369_v37  ;;  %v13645_v52 = vsel %vm12200_vm9, 4294967295, %v13644_v52  ;;  %v4083_v56 = vsub.f32 0.0, %v4051_v24  ;;  %v3237_v51 = vpop.f32.mrf.mxu3 }
 0x356   : > { %9766 = vst [vmem:[#allocation3 + $0x60] sm:$0xff] %v9564_v16   ;;  %10458 = vtanh.f32 %v4495_v22  ;;  %v4368_v1 = vsel %vm4367_vm14, %v4365_v7, %v4362_v49  ;;  %v12209_v17 = vor.u32 %v4879_v13, %v4876_v36  ;;  %v3820_v23 = vsel %vm12200_vm9, %v3692_v44, 0.0  ;;  %v9781_v16 = vld [vmem:[#allocation3 + $0x50] sm:$0xff]  }
 0x357   : > { %v4373_v18 = vadd.f32 1.0, %v4372_v33  ;;  %v4464_v28 = vadd.f32 %v4368_v1, %v3952_v4  ;;  %10460 = vpow2.f32 %v4139_v21  ;;  %13646 = vst [vmem:[#allocation25_spill] sm:$0xff] %v13645_v52  ;;  %v4141_v14 = vmul.f32 1.442695, %v4083_v56  ;;  %v3657_v59 = vpop.f32.mrf.mxu0  ;;  %v9791_v52 = vld [vmem:[#allocation3 + $0x28] sm:$0xff]  }
 0x358   : > { %v3077_v30 = vpop.f32.mrf.mxu2  ;;  %v3852_v2 = vadd.f32 %v3820_v23, %v13647_v34  ;;  %vm4376_vm14 = vcmp.lt.f32.partialorder %v4375_v42, 0.0004427343  ;;  %v5482_v22 = vshll.u32 %v10233_v41, 16  ;;  %v3954_v34 = vmax.f32 %v12181_v61, 0.0 }
 0x359   : > { %v4496_v60 = vsel %vm3984_vm0, %v12129_v63, %v4464_v28  ;;  %v4374_v55 = vmul.f32 %v10453_v11, %v4373_v18  ;;  %vm13648_vm0 = vsmask.f32 4352  ;;  %v3238_v0 = vadd.f32 %v3237_v51, %v3077_v30 }
 0x35a   : > { %10462 = vtanh.f32 %v4496_v60  ;;  %v12219_v35 = vsel %vm13648_vm0, %v12159_v40, %v12209_v17  ;;  %v5479_v11 = vshrl.u32 %v10233_v41, 16  ;;  %v3888_v6 = vmul.f32 %v12118_v53, %v3852_v2 }
 0x35b   : > { %v10457_v5 = vpop.eup %10456  ;;  %10464 = vpow2.f32 %v4141_v14  ;;  %5057 = vmatmul.bf16.gmra.mxu1 %v12219_v35  ;;  %v3693_v4 = vadd.f32 %v3655_v47, %v3238_v0  ;;  %vm3985_vm0 = vcmp.ne.f32.partialorder %v12148_v57, %v12148_v57  ;;  %v5484_v47 = vrot.slane %v5482_v22, 4 }
 0x35c   : > { %v10459_v25 = vpop.eup %10458  ;;  %v4371_v15 = vmul.f32 0.6931472, %v10457_v5  ;;  %v12226_v7 = vadd.f32 %v12126_v10, %v3888_v6  ;;  %v5481_v18 = vrot.slane %v5479_v11, 3  ;;  %vm13653_vm9 = vsmask.f32 4352 }
 0x35d   : > { %v10208_v26 = vld [vmem:[#allocation3 + $0x5c] sm:$0xff]   ;;  %v10461_v37 = vpop.eup %10460  ;;  %v3853_v21 = vadd.f32 %v3693_v4, %v13649_v20  ;;  %v4559_v1 = vmul.f32 %v10459_v25, %v12088_v45  ;;  %v3239_v13 = vpop.f32.mrf.mxu3 }
 0x35e   : > { %v4377_v33 = vsel %vm4376_vm14, %v4374_v55, %v4371_v15  ;;  %v4883_v29 = vshrl.u32 %v10208_v26, 16  ;;  %v4378_v31 = vadd.f32 1.0, %v10461_v37  ;;  %v4381_v40 = vmul.f32 -0.5, %v10461_v37  ;;  %v12237_v45 = vpop.f32.mrf.mxu1 }
 0x35f   : > { %v4465_v49 = vadd.f32 %v4377_v33, %v3953_v12  ;;  %v4384_v62 = vand.u32 2147483647, %v10461_v37  ;;  %v4886_v56 = vshll.u32 %v10208_v26, 16  ;;  %v4052_v60 = vand.u32 2147483647, %v12226_v7  ;;  %v3660_v55 = vpop.f32.mrf.mxu0 }
 0x360   : > { %v10463_v36 = vpop.eup %10462  ;;  %10466 = vlog2.f32 %v4378_v31  ;;  %v3079_v28 = vpop.f32.mrf.mxu2  ;;  %v4885_v42 = vrot.slane %v4883_v29, 3  ;;  %v4382_v41 = vadd.f32 1.0, %v4381_v40  ;;  %v365_v12 = vadd.s32 232, %v11132_v9 }
 0x361   : > { %v4560_v24 = vmul.f32 %v10463_v36, %v12129_v63  ;;  %v12232_v44 = vpop.eup %10464  ;;  %v4497_v63 = vsel %vm3985_vm0, %v12148_v57, %v4465_v49  ;;  %v4084_v14 = vsub.f32 0.0, %v4052_v60  ;;  %v3240_v15 = vadd.f32 %v3239_v13, %v3079_v28 }
 0x362   : > { %v4387_v51 = vadd.f32 1.0, %v12232_v44  ;;  %v4390_v5 = vmul.f32 -0.5, %v12232_v44  ;;  %v575_v25 = vand.u32 15, %v365_v12  ;;  %v4888_v2 = vrot.slane %v4886_v56, 4 }
 0x363   : > { %5938 = vmatmul.bf16.gmra.mxu0 %v9781_v16  ;;  %v12239_v30 = vpack.c.bf16 %v4560_v24, %v4559_v1  ;;  %v12252_v0 = vor.u32 %v5484_v47, %v5481_v18  ;;  %v4383_v16 = vmul.f32 %v10461_v37, %v4382_v41  ;;  %v4143_v11 = vmul.f32 1.442695, %v4084_v14  ;;  %v10235_v18 = vld [vmem:[#allocation3 + $0x5c] sm:$0xff]  }
 0x364   : > { %10468 = vlog2.f32 %v4387_v51  ;;  %v4391_v6 = vadd.f32 1.0, %v4390_v5  ;;  %v3694_v4 = vadd.f32 %v3657_v59, %v3240_v15  ;;  %vm12255_vm14 = vcmp.lt.s32.totalorder %v575_v25, 15 }
 0x365   : > { %5233 = vmatmul.bf16.gmra.mxu2 %v12167_v3  ;;  %v3889_v3 = vmul.f32 %v12118_v53, %v3853_v21  ;;  %9767 = vst [vmem:[#allocation3 + $0x68] sm:$0xff] %v12239_v30   ;;  %10470 = vtanh.f32 %v4497_v63  ;;  %v13650_v29 = vmov 0  ;;  %vm4385_vm0 = vcmp.lt.f32.partialorder %v4384_v62, 0.0004427343  ;;  %v9301_v21 = vld [vmem:[#allocation8 + $0x58] sm:$0xff]  ;;  %v3242_v1 = vpop.f32.mrf.mxu3  ;;  %v13654_v62 = vld [vmem:[#allocation32_spill] sm:$0xff] }
 0x366   : > { %v10467_v26 = vpop.eup %10466  ;;  %v13651_v29 = vsel %vm12255_vm14, 4294967295, %v13650_v29  ;;  %10472 = vpow2.f32 %v4143_v11  ;;  %v12259_v40 = vor.u32 %v4888_v2, %v4885_v42  ;;  %v4393_v20 = vand.u32 2147483647, %v12232_v44  ;;  %v12273_v42 = vpop.f32.mrf.mxu1  ;;  %6033 = vmatpush.bf16.msrb.mxu1 %v9301_v21 }
 0x367   : > { %v12248_v23 = vadd.f32 %v12126_v10, %v3889_v3  ;;  %v4380_v33 = vmul.f32 0.6931472, %v10467_v26  ;;  %13652 = vst [vmem:[#allocation26_spill] sm:$0xff] %v13651_v29  ;;  %v3822_v37 = vsel %vm12255_vm14, %v3694_v4, 0.0  ;;  %v5486_v59 = vsel %vm13653_vm9, %v12171_v19, %v12252_v0  ;;  %v3662_v60 = vpop.f32.mrf.mxu0  ;;  %v9782_v3 = vld [vmem:[#allocation3 + $0x58] sm:$0xff]  }
 0x368   : > { %v3082_v36 = vpop.f32.mrf.mxu2  ;;  %v3854_v28 = vadd.f32 %v3822_v37, %v13654_v62  ;;  %5666 = vmatmul.bf16.gmra.mxu3 %v5486_v59  ;;  %vm3986_vm14 = vcmp.ne.f32.partialorder %v12181_v61, %v12181_v61  ;;  %v4392_v19 = vmul.f32 %v12232_v44, %v4391_v6  ;;  %v5488_v14 = vshrl.u32 %v10235_v18, 16  ;;  %v13658_v6 = vld [vmem:[#allocation34_spill] sm:$0xff] }
 0x369   : > { %v4053_v22 = vand.u32 2147483647, %v12248_v23  ;;  %v4386_v49 = vsel %vm4385_vm0, %v4383_v16, %v4380_v33  ;;  %vm13655_vm0 = vmmov %vm13653_vm9  ;;  %v3243_v41 = vadd.f32 %v3242_v1, %v3082_v36  ;;  %v5491_v25 = vshll.u32 %v10235_v18, 16 }
 0x36a   : > { %v4466_v47 = vadd.f32 %v4386_v49, %v3954_v34  ;;  %v12271_v13 = vsel %vm13655_vm0, %v12209_v17, %v12259_v40  ;;  %v10469_v56 = vpop.eup %10468  ;;  %v3890_v17 = vmul.f32 %v12118_v53, %v3854_v28  ;;  %vm12281_vm9 = vcmp.lt.f32.partialorder %v4393_v20, 0.0004427343 }
 0x36b   : > { %v4085_v31 = vsub.f32 0.0, %v4053_v22  ;;  %v10471_v12 = vpop.eup %10470  ;;  %v4389_v51 = vmul.f32 0.6931472, %v10469_v56  ;;  %5062 = vmatmul.bf16.gmra.mxu1 %v12271_v13  ;;  %v3695_v5 = vadd.f32 %v3660_v55, %v3243_v41  ;;  %v3955_v2 = vmax.f32 %v12197_v58, 0.0 }
 0x36c   : > { %v4498_v63 = vsel %vm3986_vm14, %v12181_v61, %v4466_v47  ;;  %v10473_v15 = vpop.eup %10472  ;;  %v12286_v34 = vadd.f32 %v12126_v10, %v3890_v17  ;;  %v10210_v22 = vld [vmem:[#allocation3 + $0x64] sm:$0xff]   ;;  %vm3987_vm14 = vcmp.ne.f32.partialorder %v12197_v58, %v12197_v58  ;;  %v3956_v55 = vmax.f32 %v12226_v7, 0.0 }
 0x36d   : > { %v4145_v24 = vmul.f32 1.442695, %v4085_v31  ;;  %v4395_v26 = vsel %vm12281_vm9, %v4392_v19, %v4389_v51  ;;  %v4396_v16 = vadd.f32 1.0, %v10473_v15  ;;  %v4399_v11 = vmul.f32 -0.5, %v10473_v15  ;;  %v3244_v20 = vpop.f32.mrf.mxu3 }
 0x36e   : > { %v4054_v33 = vand.u32 2147483647, %v12286_v34  ;;  %v3855_v4 = vadd.f32 %v3695_v5, %v13658_v6  ;;  %v4561_v31 = vmul.f32 %v10471_v12, %v12148_v57  ;;  %v5490_v21 = vrot.slane %v5488_v14, 3  ;;  %v12302_v47 = vpop.f32.mrf.mxu1 }
 0x36f   : > { %10474 = vpow2.f32 %v4145_v24  ;;  %v5493_v37 = vrot.slane %v5491_v25, 4  ;;  %v4467_v36 = vadd.f32 %v4395_v26, %v3955_v2  ;;  %v367_v18 = vadd.s32 248, %v11132_v9  ;;  %v12305_v57 = vpop.f32.mrf.mxu0 }
 0x370   : > { %10476 = vtanh.f32 %v4498_v63  ;;  %v3084_v49 = vpop.f32.mrf.mxu2  ;;  %v3891_v1 = vmul.f32 %v12118_v53, %v3855_v4  ;;  %v4400_v62 = vadd.f32 1.0, %v4399_v11  ;;  %v4892_v56 = vshrl.u32 %v10210_v22, 16 }
 0x371   : > { %10478 = vlog2.f32 %v4396_v16  ;;  %v4895_v19 = vshll.u32 %v10210_v22, 16  ;;  %v589_v63 = vand.u32 15, %v367_v18  ;;  %v4402_v51 = vand.u32 2147483647, %v10473_v15 }
 0x372   : > { %v12309_v12 = vadd.f32 %v12126_v10, %v3891_v1  ;;  %v3245_v17 = vadd.f32 %v3244_v20, %v3084_v49  ;;  %v4499_v14 = vsel %vm3987_vm14, %v12197_v58, %v4467_v36  ;;  %v4401_v25 = vmul.f32 %v10473_v15, %v4400_v62  ;;  %v13662_v20 = vld [vmem:[#allocation35_spill] sm:$0xff] }
 0x373   : > { %5943 = vmatmul.bf16.gmra.mxu0 %v9782_v3  ;;  %vm12321_vm9 = vcmp.lt.s32.totalorder %v589_v63, 15  ;;  %v13659_v26 = vmov 0  ;;  %v4894_v11 = vrot.slane %v4892_v56, 3  ;;  %v4897_v22 = vrot.slane %v4895_v19, 4  ;;  %v9783_v19 = vld [vmem:[#allocation3 + $0x60] sm:$0xff]  }
 0x374   : > { %v4055_v44 = vand.u32 2147483647, %v12309_v12  ;;  %v3696_v2 = vadd.f32 %v3662_v60, %v3245_v17  ;;  %v13660_v26 = vsel %vm12321_vm9, 4294967295, %v13659_v26  ;;  %vm4403_vm14 = vcmp.lt.f32.partialorder %v4402_v51, 0.0004427343 }
 0x375   : > { %5238 = vmatmul.bf16.gmra.mxu2 %v12219_v35  ;;  %v12298_v59 = vpop.eup %10474  ;;  %v4086_v35 = vsub.f32 0.0, %v4054_v33  ;;  %13661 = vst [vmem:[#allocation28_spill] sm:$0xff] %v13660_v26  ;;  %v12326_v33 = vor.u32 %v5493_v37, %v5490_v21  ;;  %v5632_v49 = vpop.f32.mrf.mxu3  ;;  %v10237_v21 = vld [vmem:[#allocation3 + $0x64] sm:$0xff]  }
 0x376   : > { %v10477_v24 = vpop.eup %10476  ;;  %v4405_v28 = vadd.f32 1.0, %v12298_v59  ;;  %v4408_v9 = vmul.f32 -0.5, %v12298_v59  ;;  %v4087_v4 = vsub.f32 0.0, %v4055_v44  ;;  %v3824_v15 = vsel %vm12321_vm9, %v3696_v2, 0.0  ;;  %v12336_v18 = vpop.f32.mrf.mxu1 }
 0x377   : > { %v4562_v41 = vmul.f32 %v10477_v24, %v12181_v61  ;;  %v4147_v3 = vmul.f32 1.442695, %v4086_v35  ;;  %v10479_v61 = vpop.eup %10478  ;;  %v3856_v36 = vadd.f32 %v3824_v15, %v13662_v20  ;;  %v12331_v35 = vor.u32 %v4897_v22, %v4894_v11  ;;  %v12340_v56 = vpop.f32.mrf.mxu0 }
 0x378   : > { %10480 = vlog2.f32 %v4405_v28  ;;  %v4398_v16 = vmul.f32 0.6931472, %v10479_v61  ;;  %v4409_v6 = vadd.f32 1.0, %v4408_v9  ;;  %v5495_v1 = vsel %vm13655_vm0, %v12252_v0, %v12326_v33 }
 0x379   : > { %v12312_v5 = vpack.c.bf16 %v4562_v41, %v4561_v31  ;;  %10482 = vpow2.f32 %v4147_v3  ;;  %v5194_v31 = vpop.f32.mrf.mxu2  ;;  %v4411_v62 = vand.u32 2147483647, %v12298_v59  ;;  %5671 = vmatmul.bf16.gmra.mxu3 %v5495_v1  ;;  %v4149_v63 = vmul.f32 1.442695, %v4087_v4 }
 0x37a   : > { %v4404_v60 = vsel %vm4403_vm14, %v4401_v25, %v4398_v16  ;;  %10484 = vtanh.f32 %v4499_v14  ;;  %v5195_v28 = vadd.f32 %v5194_v31, %v12193_v39  ;;  %v3892_v51 = vmul.f32 %v12118_v53, %v3856_v36 }
 0x37b   : > { %9768 = vst [vmem:[#allocation3 + $0x70] sm:$0xff] %v12312_v5   ;;  %v4468_v24 = vadd.f32 %v4404_v60, %v3956_v55  ;;  %v12346_v0 = vsel %vm13655_vm0, %v12259_v40, %v12331_v35  ;;  %vm13663_vm14 = vcmp.ne.f32.partialorder %v12226_v7, %v12226_v7  ;;  %v4410_v39 = vmul.f32 %v12298_v59, %v4409_v6 }
 0x37c   : > { %5067 = vmatmul.bf16.gmra.mxu1 %v12346_v0  ;;  %v12355_v53 = vadd.f32 %v12126_v10, %v3892_v51  ;;  %v12357_v14 = vadd.f32 %v5632_v49, %v5195_v28  ;;  %v5497_v40 = vshrl.u32 %v10237_v21, 16  ;;  %vm12359_vm0 = vcmp.lt.f32.partialorder %v4411_v62, 0.0004427343 }
 0x37d   : > { %v4500_v55 = vsel %vm13663_vm14, %v12226_v7, %v4468_v24  ;;  %v5500_v44 = vshll.u32 %v10237_v21, 16  ;;  %v3957_v16 = vmax.f32 %v12248_v23, 0.0  ;;  %v5634_v6 = vpop.f32.mrf.mxu3  ;;  %vm3989_vm14 = vcmp.ne.f32.partialorder %v12248_v23, %v12248_v23 }
 0x37e   : > { %v10481_v37 = vpop.eup %10480  ;;  %10486 = vtanh.f32 %v4500_v55  ;;  %v4056_v2 = vand.u32 2147483647, %v12355_v53  ;;  %v12369_v49 = vpop.f32.mrf.mxu1  ;;  %v3958_v51 = vmax.f32 %v12286_v34, 0.0  ;;  %vm3990_vm9 = vcmp.ne.f32.partialorder %v12286_v34, %v12286_v34 }
 0x37f   : > { %v10483_v41 = vpop.eup %10482  ;;  %v4407_v3 = vmul.f32 0.6931472, %v10481_v37  ;;  %v12371_v1 = vpop.f32.mrf.mxu0  ;;  %v5502_v37 = vrot.slane %v5500_v44, 4 }
 0x380   : > { %v4414_v9 = vadd.f32 1.0, %v10483_v41  ;;  %v4417_v17 = vmul.f32 -0.5, %v10483_v41  ;;  %v10485_v10 = vpop.eup %10484  ;;  %v4088_v15 = vsub.f32 0.0, %v4056_v2  ;;  %v4420_v36 = vand.u32 2147483647, %v10483_v41 }
 0x381   : > { %v4413_v59 = vsel %vm12359_vm0, %v4410_v39, %v4407_v3  ;;  %v5196_v22 = vpop.f32.mrf.mxu2 }
 0x382   : > { %10488 = vlog2.f32 %v4414_v9  ;;  %v10212_v25 = vld [vmem:[#allocation3 + $0x6c] sm:$0xff]   ;;  %v4418_v11 = vadd.f32 1.0, %v4417_v17  ;;  %v5197_v31 = vadd.f32 %v5196_v22, %v12213_v43  ;;  %v4469_v20 = vadd.f32 %v4413_v59, %v3957_v16 }
 0x383   : > { %5948 = vmatmul.bf16.gmra.mxu0 %v9783_v19  ;;  %10490 = vpow2.f32 %v4149_v63  ;;  %v4901_v4 = vshrl.u32 %v10212_v25, 16  ;;  %v4904_v60 = vshll.u32 %v10212_v25, 16  ;;  %v4151_v62 = vmul.f32 1.442695, %v4088_v15  ;;  %v9300_v59 = vld [vmem:[#allocation8 + $0x50] sm:$0xff]  ;;  %v9299_v15 = vld [vmem:[#allocation8 + $0x48] sm:$0xff] }
 0x384   : > { %v10487_v24 = vpop.eup %10486  ;;  %v12375_v28 = vadd.f32 %v5634_v6, %v5197_v31  ;;  %v4563_v43 = vmul.f32 %v10485_v10, %v12197_v58  ;;  %v4419_v55 = vmul.f32 %v10483_v41, %v4418_v11  ;;  %v4501_v25 = vsel %vm3989_vm14, %v12248_v23, %v4469_v20  ;;  %6034 = vmatpush.bf16.msrb.mxu1 %v9300_v59 }
 0x385   : > { %5243 = vmatmul.bf16.gmra.mxu2 %v12271_v13  ;;  %v5499_v13 = vrot.slane %v5497_v40, 3  ;;  %v4903_v21 = vrot.slane %v4901_v4, 3  ;;  %v4906_v19 = vrot.slane %v4904_v60, 4  ;;  %v4564_v63 = vmul.f32 %v10487_v24, %v12226_v7  ;;  %v10239_v7 = vld [vmem:[#allocation3 + $0x6c] sm:$0xff]   ;;  %v5637_v16 = vpop.f32.mrf.mxu3 }
 0x386   : > { %10492 = vpow2.f32 %v4151_v62  ;;  %vm4421_vm0 = vcmp.lt.f32.partialorder %v4420_v36, 0.0004427343  ;;  %vm13666_vm14 = vsmask.f32 4352  ;;  %v12399_v4 = vpop.f32.mrf.mxu1 }
 0x387   : > { %v12380_v17 = vor.u32 %v4906_v19, %v4903_v21  ;;  %v12382_v40 = vor.u32 %v5502_v37, %v5499_v13  ;;  %v12384_v61 = vpack.c.bf16 %v4564_v63, %v4563_v43  ;;  %v12402_v60 = vpop.f32.mrf.mxu0  ;;  %v3959_v19 = vmax.f32 %v12309_v12, 0.0 }
 0x388   : > { %v10489_v3 = vpop.eup %10488  ;;  %6035 = vmatpush.bf16.msrb.mxu1 %v9299_v15 }
 0x389   : > { %v10491_v39 = vpop.eup %10490  ;;  %v4416_v9 = vmul.f32 0.6931472, %v10489_v3  ;;  %9769 = vst [vmem:[#allocation3 + $0x78] sm:$0xff] %v12384_v61   ;;  %v5199_v10 = vpop.f32.mrf.mxu2  ;;  %v12393_v11 = vsel %vm13666_vm14, %v12331_v35, %v12380_v17  ;;  %v5506_v35 = vshrl.u32 %v10239_v7, 16 }
 0x38a   : > { %v4423_v44 = vadd.f32 1.0, %v10491_v39  ;;  %v4426_v2 = vmul.f32 -0.5, %v10491_v39  ;;  %v5200_v6 = vadd.f32 %v5199_v10, %v12237_v45  ;;  %v4429_v21 = vand.u32 2147483647, %v10491_v39 }
 0x38b   : > { %v4422_v58 = vsel %vm4421_vm0, %v4419_v55, %v4416_v9  ;;  %vm13667_vm0 = vmmov %vm13666_vm14  ;;  %v5509_v45 = vshll.u32 %v10239_v7, 16  ;;  %v5508_v9 = vrot.slane %v5506_v35, 3  ;;  %vm3991_vm14 = vcmp.ne.f32.partialorder %v12309_v12, %v12309_v12 }
 0x38c   : > { %v4470_v41 = vadd.f32 %v4422_v58, %v3958_v51  ;;  %10494 = vlog2.f32 %v4423_v44  ;;  %v5504_v22 = vsel %vm13667_vm0, %v12326_v33, %v12382_v40  ;;  %v10493_v13 = vpop.eup %10492  ;;  %v4427_v20 = vadd.f32 1.0, %v4426_v2  ;;  %5072 = vmatmul.bf16.gmra.mxu1 %v12393_v11 }
 0x38d   : > { %10496 = vtanh.f32 %v4501_v25  ;;  %5676 = vmatmul.bf16.gmra.mxu3 %v5504_v22  ;;  %v12404_v36 = vadd.f32 %v5637_v16, %v5200_v6  ;;  %v4432_v33 = vadd.f32 1.0, %v10493_v13  ;;  %v4435_v37 = vmul.f32 -0.5, %v10493_v13  ;;  %v5639_v55 = vpop.f32.mrf.mxu3 }
 0x38e   : > { %v4502_v31 = vsel %vm3990_vm9, %v12286_v34, %v4470_v41  ;;  %v4428_v43 = vmul.f32 %v10491_v39, %v4427_v20  ;;  %vm4430_vm9 = vcmp.lt.f32.partialorder %v4429_v21, 0.0004427343  ;;  %v5511_v25 = vrot.slane %v5509_v45, 4  ;;  %v12411_v2 = vpop.f32.mrf.mxu1 }
 0x38f   : > { %10498 = vtanh.f32 %v4502_v31  ;;  %v4436_v51 = vadd.f32 1.0, %v4435_v37  ;;  %v4438_v16 = vand.u32 2147483647, %v10493_v13  ;;  %v12415_v22 = vpop.f32.mrf.mxu0  ;;  %v3960_v37 = vmax.f32 %v12355_v53, 0.0 }
 0x390   : > { %10500 = vlog2.f32 %v4432_v33  ;;  %v10214_v63 = vld [vmem:[#allocation3 + $0x74] sm:$0xff]  }
 0x391   : > { %v4910_v7 = vshrl.u32 %v10214_v63, 16  ;;  %v4437_v21 = vmul.f32 %v10493_v13, %v4436_v51  ;;  %vm4439_vm0 = vcmp.lt.f32.partialorder %v4438_v16, 0.0004427343 }
 0x392   : > { %v10495_v24 = vpop.eup %10494 }
 0x393   : > { %5953 = vmatmul.bf16.gmra.mxu0 %v12239_v30  ;;  %v10497_v62 = vpop.eup %10496  ;;  %v4425_v3 = vmul.f32 0.6931472, %v10495_v24  ;;  %v5201_v30 = vpop.f32.mrf.mxu2  ;;  %v4912_v15 = vrot.slane %v4910_v7, 3 }
 0x394   : > { %v5202_v58 = vadd.f32 %v5201_v30, %v12273_v42  ;;  %v4565_v41 = vmul.f32 %v10497_v62, %v12248_v23  ;;  %v5512_v23 = vor.u32 %v5511_v25, %v5508_v9 }
 0x395   : > { %5248 = vmatmul.bf16.gmra.mxu2 %v12346_v0  ;;  %v10499_v44 = vpop.eup %10498  ;;  %v4431_v59 = vsel %vm4430_vm9, %v4428_v43, %v4425_v3  ;;  %v4913_v0 = vshll.u32 %v10214_v63, 16  ;;  %vm3992_vm9 = vcmp.ne.f32.partialorder %v12355_v53, %v12355_v53  ;;  %v10241_v3 = vld [vmem:[#allocation3 + $0x74] sm:$0xff]  }
 0x396   : > { %v4566_v10 = vmul.f32 %v10499_v44, %v12286_v34  ;;  %v4471_v39 = vadd.f32 %v4431_v59, %v3959_v19  ;;  %v12417_v6 = vadd.f32 %v5639_v55, %v5202_v58  ;;  %v10501_v20 = vpop.eup %10500  ;;  %v5642_v19 = vpop.f32.mrf.mxu3  ;;  %v5513_v43 = vsel %vm13669_vm15, %v12382_v40, %v5512_v23  ;;  %vm13670_vm15 = vmmov %vm13668_vm13 }
 0x397   : > { %v4915_v31 = vrot.slane %v4913_v0, 4  ;;  %v4434_v42 = vmul.f32 0.6931472, %v10501_v20  ;;  %v12433_v51 = vpop.f32.mrf.mxu1  ;;  %v12436_v55 = vpop.f32.mrf.mxu0  ;;  %v5515_v25 = vshrl.u32 %v10241_v3, 16  ;;  %v5518_v59 = vshll.u32 %v10241_v3, 16 }
 0x398   : > { %v12419_v35 = vpack.c.bf16 %v4566_v10, %v4565_v41  ;;  %v4503_v34 = vsel %vm3991_vm14, %v12309_v12, %v4471_v39  ;;  %vm13671_vm14 = vmmov %vm13668_vm13 }
 0x399   : > { %v4916_v33 = vor.u32 %v4915_v31, %v4912_v15  ;;  %v4440_v45 = vsel %vm4439_vm0, %v4437_v21, %v4434_v42  ;;  %10502 = vtanh.f32 %v4503_v34  ;;  %v5517_v41 = vrot.slane %v5515_v25, 3  ;;  %vm13672_vm0 = vmmov %vm13668_vm13 }
 0x39a   : > { %9770 = vst [vmem:[#allocation3 + $0x80] sm:$0xff] %v12419_v35   ;;  %v4472_v24 = vadd.f32 %v4440_v45, %v3960_v37 }
 0x39b   : > { %v5204_v62 = vpop.f32.mrf.mxu2  ;;  %v4917_v13 = vsel %vm13668_vm13, %v12380_v17, %v4916_v33  ;;  %v9298_v17 = vld [vmem:[#allocation8 + $0x40] sm:$0xff] }
 0x39c   : > { %v5205_v63 = vadd.f32 %v5204_v62, %v12302_v47  ;;  %v4504_v30 = vsel %vm3992_vm9, %v12355_v53, %v4472_v24  ;;  %5077 = vmatmul.bf16.gmra.mxu1 %v4917_v13  ;;  %vm13673_vm9 = vmmov %vm13672_vm0 }
 0x39d   : > { %5681 = vmatmul.bf16.gmra.mxu3 %v5513_v43  ;;  %10504 = vtanh.f32 %v4504_v30  ;;  %6036 = vmatpush.bf16.msrb.mxu1 %v9298_v17  ;;  %v9654_v43 = vunpack.c.h.b16 %v12419_v35 }
 0x39e   : > { %v12438_v9 = vadd.f32 %v5642_v19, %v5205_v63  ;;  %v5644_v0 = vpop.f32.mrf.mxu3 }
 0x39f   : > { %v10503_v47 = vpop.eup %10502  ;;  %v12445_v42 = vpop.f32.mrf.mxu0 }
 0x3a0   : > { %v4567_v31 = vmul.f32 %v10503_v47, %v12309_v12  ;;  %v12449_v21 = vpop.f32.mrf.mxu1 }
 0x3a1   : > { %v10215_v44 = vld [vmem:[#allocation3 + $0x7c] sm:$0xff]  }
 0x3a2   : > { %v4919_v40 = vshrl.u32 %v10215_v44, 16  ;;  %v4922_v58 = vshll.u32 %v10215_v44, 16  ;;  %v10243_v3 = vld [vmem:[#allocation3 + $0x7c] sm:$0xff]  }
 0x3a3   : > { %5958 = vmatmul.bf16.gmra.mxu0 %v12312_v5  ;;  %v5206_v7 = vpop.f32.mrf.mxu2  ;;  %v10505_v10 = vpop.eup %10504  ;;  %v5520_v5 = vrot.slane %v5518_v59, 4  ;;  %v5524_v44 = vshrl.u32 %v10243_v3, 16  ;;  %v9321_v59 = vld [vmem:[#allocation8 + $0x1f8] sm:$0xff] }
 0x3a4   : > { %v5207_v39 = vadd.f32 %v5206_v7, %v12336_v18  ;;  %v4921_v16 = vrot.slane %v4919_v40, 3  ;;  %v4924_v15 = vrot.slane %v4922_v58, 4  ;;  %v4568_v20 = vmul.f32 %v10505_v10, %v12355_v53  ;;  %6215 = vmatpush.bf16.msra.mxu2 %v9321_v59 }
 0x3a5   : > { %5253 = vmatmul.bf16.gmra.mxu2 %v12393_v11  ;;  %v5521_v45 = vor.u32 %v5520_v5, %v5517_v41  ;;  %v5106_v59 = vpack.c.b16 %v9654_v43, %v9654_v43 }
 0x3a6   : > { %v12447_v11 = vadd.f32 %v5644_v0, %v5207_v39  ;;  %v12451_v34 = vpack.c.bf16 %v4568_v20, %v4567_v31  ;;  %v12453_v37 = vor.u32 %v4924_v15, %v4921_v16  ;;  %v5647_v62 = vpop.f32.mrf.mxu3  ;;  %v5526_v0 = vrot.slane %v5524_v44, 3 }
 0x3a7   : > { %v5522_v53 = vsel %vm13668_vm13, %v5512_v23, %v5521_v45  ;;  %v12462_v63 = vpop.f32.mrf.mxu0  ;;  %v9354_v23 = vld [vmem:[#allocation8 + $0x178] sm:$0xff]  ;;  %vm13675_vm13 = vmmov %vm13672_vm0 }
 0x3a8   : > { %9771 = vst [vmem:[#allocation3 + $0x88] sm:$0xff] %v12451_v34   ;;  %v9657_v18 = vunpack.c.l.b16 %v12451_v34  ;;  %v4926_v12 = vsel %vm13670_vm15, %v4916_v33, %v12453_v37  ;;  %v12466_v25 = vpop.f32.mrf.mxu1  ;;  %v5527_v33 = vshll.u32 %v10243_v3, 16  ;;  %6717 = vmatpush.bf16.msra.mxu3 %v9354_v23  ;;  %v9658_v31 = vunpack.c.h.b16 %v12451_v34  ;;  %vm13674_vm15 = vmmov %vm13672_vm0 }
 0x3aa   : > { %v4791_v17 = vpack.c.b16 %v9657_v18, %v9654_v43  ;;  %v5529_v41 = vrot.slane %v5527_v33, 4  ;;  %v4792_v44 = vpack.c.b16 %v9658_v31, %v9658_v31 }
 0x3ab   : > { %v5209_v24 = vpop.f32.mrf.mxu2 }
 0x3ac   : > { %v5210_v19 = vadd.f32 %v5209_v24, %v12369_v49  ;;  %5082 = vmatmul.bf16.gmra.mxu1 %v4926_v12  ;;  %v4928_v49 = vshrl.u32 %v4791_v17, 16  ;;  %v4931_v47 = vshll.u32 %v4791_v17, 16  ;;  %v5530_v15 = vor.u32 %v5529_v41, %v5526_v0  ;;  %v9345_v24 = vld [vmem:[#allocation8 + $0xb8] sm:$0xff]  ;;  %v9353_v0 = vld [vmem:[#allocation8 + $0x170] sm:$0xff] }
 0x3ad   : > { %5686 = vmatmul.bf16.gmra.mxu3 %v5522_v53  ;;  %6877 = vmatpush.bf16.msra.mxu0 %v9345_v24  ;;  %v9344_v41 = vld [vmem:[#allocation8 + $0xb0] sm:$0xff] }
 0x3ae   : > { %v12464_v30 = vadd.f32 %v5647_v62, %v5210_v19  ;;  %v5649_v58 = vpop.f32.mrf.mxu3  ;;  %v4930_v16 = vrot.slane %v4928_v49, 3  ;;  %v4937_v49 = vshrl.u32 %v4792_v44, 16  ;;  %6718 = vmatpush.bf16.msra.mxu3 %v9353_v0  ;;  %v9342_v0 = vld [vmem:[#allocation8 + $0xa0] sm:$0xff] }
 0x3af   : > { %v12470_v10 = vpop.f32.mrf.mxu0  ;;  %v10245_v53 = vld [vmem:[#allocation3 + $0x84] sm:$0xff]  }
 0x3b0   : > { %v5533_v23 = vshrl.u32 %v10245_v53, 16  ;;  %v4939_v43 = vrot.slane %v4937_v49, 3 }
 0x3b1   : > { %6878 = vmatpush.bf16.msra.mxu0 %v9344_v41 }
 0x3b3   : > { %5963 = vmatmul.bf16.gmra.mxu0 %v12384_v61  ;;  %v5211_v40 = vpop.f32.mrf.mxu2  ;;  %v12474_v61 = vpop.f32.mrf.mxu1 }
 0x3b4   : > { %v5212_v7 = vadd.f32 %v5211_v40, %v12399_v4  ;;  %v5531_v4 = vsel %vm13671_vm14, %v5521_v45, %v5530_v15  ;;  %v9378_v45 = vld [vmem:[#allocation8 + $0x238] sm:$0xff]  ;;  %vm13676_vm14 = vmmov %vm13672_vm0 }
 0x3b5   : > { %5258 = vmatmul.bf16.gmra.mxu2 %v4917_v13  ;;  %v4933_v13 = vrot.slane %v4931_v47, 4  ;;  %7295 = vmatpush.bf16.msra.mxu1 %v9378_v45  ;;  %v4940_v47 = vshll.u32 %v4792_v44, 16 }
 0x3b6   : > { %v12472_v39 = vadd.f32 %v5649_v58, %v5212_v7  ;;  %v5652_v18 = vpop.f32.mrf.mxu3  ;;  %v9320_v7 = vld [vmem:[#allocation8 + $0x1f0] sm:$0xff] }
 0x3b7   : > { %v12476_v5 = vor.u32 %v4933_v13, %v4930_v16  ;;  %v12481_v19 = vpop.f32.mrf.mxu0  ;;  %v5535_v13 = vrot.slane %v5533_v23, 3  ;;  %6216 = vmatpush.bf16.msra.mxu2 %v9320_v7  ;;  %v9318_v7 = vld [vmem:[#allocation8 + $0x1e0] sm:$0xff] }
 0x3b9   : > { %v4935_v3 = vsel %vm13672_vm0, %v12453_v37, %v12476_v5  ;;  %vm13677_vm0 = vsmask.f32 7424 }
 0x3bb   : > { %v5214_v20 = vpop.f32.mrf.mxu2  ;;  %v12489_v33 = vpop.f32.mrf.mxu1 }
 0x3bc   : > { %v5215_v62 = vadd.f32 %v5214_v20, %v12411_v2  ;;  %5087 = vmatmul.bf16.gmra.mxu1 %v4935_v3  ;;  %v5536_v2 = vshll.u32 %v10245_v53, 16  ;;  %v9319_v20 = vld [vmem:[#allocation8 + $0x1e8] sm:$0xff]  ;;  %v5129_v53 = vshll.u32 %v5106_v59, 16 }
 0x3bd   : > { %5691 = vmatmul.bf16.gmra.mxu3 %v5531_v4  ;;  %v4942_v4 = vrot.slane %v4940_v47, 4  ;;  %6217 = vmatpush.bf16.msra.mxu2 %v9319_v20  ;;  %v10246_v47 = vld [vmem:[#allocation3 + $0x8c] sm:$0xff]   ;;  %v9317_v20 = vld [vmem:[#allocation8 + $0x1d8] sm:$0xff] }
 0x3be   : > { %v12486_v17 = vadd.f32 %v5652_v18, %v5215_v62  ;;  %v5654_v58 = vpop.f32.mrf.mxu3  ;;  %v9352_v18 = vld [vmem:[#allocation8 + $0x168] sm:$0xff]  ;;  %v5131_v23 = vrot.slane %v5129_v53, 4 }
 0x3bf   : > { %v12492_v31 = vpop.f32.mrf.mxu0  ;;  %v9343_v62 = vld [vmem:[#allocation8 + $0xa8] sm:$0xff]  ;;  %6719 = vmatpush.bf16.msra.mxu3 %v9352_v18  ;;  %v9341_v18 = vld [vmem:[#allocation8 + $0x98] sm:$0xff] }
 0x3c0   : > { %6879 = vmatpush.bf16.msra.mxu0 %v9343_v62 }
 0x3c1   : > { %6218 = vmatpush.bf16.msra.mxu2 %v9318_v7 }
 0x3c3   : > { %5968 = vmatmul.bf16.gmra.mxu0 %v12419_v35  ;;  %v5216_v40 = vpop.f32.mrf.mxu2  ;;  %v5538_v35 = vrot.slane %v5536_v2, 4 }
 0x3c4   : > { %v5217_v16 = vadd.f32 %v5216_v40, %v12433_v51  ;;  %v4943_v51 = vor.u32 %v4942_v4, %v4939_v43  ;;  %6880 = vmatpush.bf16.msra.mxu0 %v9342_v0 }
 0x3c5   : > { %5263 = vmatmul.bf16.gmra.mxu2 %v4926_v12  ;;  %v5126_v12 = vshrl.u32 %v5106_v59, 16  ;;  %v12496_v3 = vor.u32 %v5538_v35, %v5535_v13 }
 0x3c6   : > { %v12494_v24 = vadd.f32 %v5654_v58, %v5217_v16  ;;  %v12498_v44 = vpop.f32.mrf.mxu1  ;;  %v5657_v40 = vpop.f32.mrf.mxu3  ;;  %v9351_v58 = vld [vmem:[#allocation8 + $0x160] sm:$0xff]  ;;  %v4944_v16 = vsel %vm13674_vm15, %v12476_v5, %v4943_v51  ;;  %v9322_v5 = vld [vmem:[#allocation3 + $0x8] sm:$0xff]  ;;  %6219 = vmatpush.bf16.msra.mxu2 %v9317_v20  ;;  %v9316_v51 = vld [vmem:[#allocation8 + $0x1d0] sm:$0xff] }
 0x3c7   : > { %v5128_v45 = vrot.slane %v5126_v12, 3  ;;  %v5540_v49 = vsel %vm13673_vm9, %v5530_v15, %v12496_v3  ;;  %v12503_v41 = vpop.f32.mrf.mxu0  ;;  %6720 = vmatpush.bf16.msra.mxu3 %v9351_v58  ;;  %v9350_v15 = vld [vmem:[#allocation8 + $0x158] sm:$0xff]  ;;  %v5545_v12 = vshll.u32 %v10246_v47, 16  ;;  %v12517_v58 = vld [vmem:[#allocation3 + $0x90] sm:$0xff]   ;;  %v6817_v0 = vshll.u32 %v9322_v5, 16  ;;  %vm13678_vm15 = vmmov %vm13677_vm0 }
 0x3c8   : > { %6881 = vmatpush.bf16.msra.mxu0 %v9341_v18 }
 0x3c9   : > { %v5132_v35 = vor.u32 %v5131_v23, %v5128_v45  ;;  %v9349_v45 = vld [vmem:[#allocation8 + $0x150] sm:$0xff]  ;;  %v6819_v18 = vrot.slane %v6817_v0, 1 }
 0x3ca   : > { %6220 = vmatpush.bf16.msra.mxu2 %v9316_v51 }
 0x3cb   : > { %v5219_v2 = vpop.f32.mrf.mxu2  ;;  %v5133_v43 = vsel %vm13675_vm13, %v12453_v37, %v5132_v35  ;;  %6721 = vmatpush.bf16.msra.mxu3 %v9350_v15  ;;  %v12519_v37 = vld [vmem:[#allocation3 + $0x10] sm:$0xff]  ;;  %v6815_v15 = vshrl.u32 %v9322_v5, 16  ;;  %vm13679_vm13 = vmmov %vm13677_vm0 }
 0x3cc   : > { %v5220_v59 = vadd.f32 %v5219_v2, %v12449_v21  ;;  %5092 = vmatmul.bf16.gmra.mxu1 %v4944_v16  ;;  %v5542_v21 = vshrl.u32 %v10246_v47, 16  ;;  %v9348_v47 = vld [vmem:[#allocation8 + $0x148] sm:$0xff]  ;;  %v6524_v20 = vshll.u32 %v12519_v37, 16 }
 0x3cd   : > { %5696 = vmatmul.bf16.gmra.mxu3 %v5540_v49  ;;  %v9339_v16 = vld [vmem:[#allocation8 + $0x88] sm:$0xff] }
 0x3ce   : > { %v12507_v13 = vadd.f32 %v5657_v40, %v5220_v59  ;;  %v12512_v4 = vpop.f32.mrf.mxu1  ;;  %v5659_v53 = vpop.f32.mrf.mxu3  ;;  %v5544_v2 = vrot.slane %v5542_v21, 3  ;;  %v5547_v40 = vrot.slane %v5545_v12, 4  ;;  %v9315_v59 = vld [vmem:[#allocation8 + $0x1c8] sm:$0xff]  ;;  %v6526_v5 = vrot.slane %v6524_v20, 1 }
 0x3cf   : > { %v12515_v7 = vpop.f32.mrf.mxu0  ;;  %6722 = vmatpush.bf16.msra.mxu3 %v9349_v45  ;;  %6221 = vmatpush.bf16.msra.mxu2 %v9315_v59  ;;  %v9314_v45 = vld [vmem:[#allocation8 + $0x1c0] sm:$0xff]  ;;  %v10704_v59 = vld [vmem:[#allocation3 + $0x8] sm:$0xff]  }
 0x3d0   : > { %v5548_v35 = vor.u32 %v5547_v40, %v5544_v2  ;;  %v6820_v40 = vor.u32 %v6819_v18, %v6815_v15 }
 0x3d3   : > { %5973 = vmatmul.bf16.gmra.mxu0 %v12451_v34  ;;  %v5221_v62 = vpop.f32.mrf.mxu2  ;;  %v9340_v34 = vld [vmem:[#allocation8 + $0x90] sm:$0xff]  ;;  %6723 = vmatpush.bf16.msra.mxu3 %v9348_v47 }
 0x3d4   : > { %v5222_v23 = vadd.f32 %v5221_v62, %v12466_v25  ;;  %6882 = vmatpush.bf16.msra.mxu0 %v9340_v34  ;;  %v9722_v25 = vunpack.c.h.b16 %v12517_v58  ;;  %v9347_v34 = vld [vmem:[#allocation8 + $0x140] sm:$0xff]  ;;  %6222 = vmatpush.bf16.msra.mxu2 %v9314_v45  ;;  %v9324_v45 = vld [vmem:[#allocation3 + $0x18] sm:$0xff] }
 0x3d5   : > { %5268 = vmatmul.bf16.gmra.mxu2 %v5133_v43  ;;  %v5549_v43 = vsel %vm13676_vm14, %v12496_v3, %v5548_v35  ;;  %v9377_v3 = vld [vmem:[#allocation8 + $0x230] sm:$0xff]  ;;  %vm13681_vm14 = vmmov %vm13677_vm0 }
 0x3d6   : > { %v12521_v49 = vadd.f32 %v5659_v53, %v5222_v23  ;;  %v5662_v53 = vpop.f32.mrf.mxu3  ;;  %v5406_v51 = vpack.c.b16 %v9722_v25, %v9722_v25  ;;  %v9338_v23 = vld [vmem:[#allocation8 + $0x80] sm:$0xff]  ;;  %v6821_v25 = vsel %vm13677_vm0, %v6820_v40, %v6526_v5  ;;  %7296 = vmatpush.bf16.msra.mxu1 %v9377_v3 }
 0x3d7   : > { %v12530_v2 = vpop.f32.mrf.mxu0  ;;  %6724 = vmatpush.bf16.msra.mxu3 %v9347_v34 }
 0x3d8   : > { %v12525_v21 = vpop.f32.mrf.mxu1  ;;  %6883 = vmatpush.bf16.msra.mxu0 %v9339_v16  ;;  %v5551_v47 = vshrl.u32 %v5406_v51, 16  ;;  %v9789_v16 = vld [vmem:[#allocation3 + $0x18] sm:$0xff]  }
 0x3da   : > { %v5553_v15 = vrot.slane %v5551_v47, 3 }
 0x3db   : > { %v5224_v12 = vpop.f32.mrf.mxu2 }
 0x3dc   : > { %v5225_v62 = vadd.f32 %v5224_v12, %v12474_v61  ;;  %6037 = vmatmul.bf16.vlgmr.msrb.gmra.mxu1 %v10704_v59  ;;  %6884 = vmatpush.bf16.msra.mxu0 %v9338_v23  ;;  %v5554_v61 = vshll.u32 %v5406_v51, 16  ;;  %v6529_v51 = vshll.u32 %v9324_v45, 16 }
 0x3dd   : > { %5701 = vmatmul.bf16.gmra.mxu3 %v5549_v43 }
 0x3de   : > { %v12532_v0 = vadd.f32 %v5662_v53, %v5225_v62  ;;  %v5556_v18 = vrot.slane %v5554_v61, 4  ;;  %v5664_v62 = vpop.f32.mrf.mxu3  ;;  %v6531_v47 = vrot.slane %v6529_v51, 1  ;;  %v10705_v61 = vld [vmem:[#allocation3 + $0x10] sm:$0xff] }
 0x3df   : > { %v12536_v53 = vpop.f32.mrf.mxu0 }
 0x3e0   : > { %v5060_v12 = vpop.f32.mrf.mxu1  ;;  %v5557_v23 = vor.u32 %v5556_v18, %v5553_v15  ;;  %v9790_v15 = vld [vmem:[#allocation3 + $0x20] sm:$0xff]  }
 0x3e2   : > { %v5558_v40 = vsel %vm13673_vm9, %v5548_v35, %v5557_v23  ;;  %vm13690_vm9 = vmmov %vm13677_vm0 }
 0x3e3   : > { %6885 = vmatmul.bf16.vlgmr.msra.gmra.mxu0 %v6821_v25  ;;  %v5226_v43 = vpop.f32.mrf.mxu2 }
 0x3e4   : > { %v5227_v20 = vadd.f32 %v5226_v43, %v12489_v33  ;;  %v6522_v33 = vshrl.u32 %v12519_v37, 16 }
 0x3e5   : > { %6223 = vmatmul.bf16.vlgmr.msra.gmra.mxu2 %v9789_v16 }
 0x3e6   : > { %v12538_v34 = vadd.f32 %v5664_v62, %v5227_v20  ;;  %v6527_v26 = vor.u32 %v6526_v5, %v6522_v33 }
 0x3e7   : > { %v12542_v25 = vpop.f32.mrf.mxu0 }
 0x3e8   : > { %v5063_v59 = vpop.f32.mrf.mxu1  ;;  %v6532_v18 = vsel %vm13678_vm15, %v6527_v26, %v6531_v47  ;;  %v6533_v26 = vshrl.u32 %v9324_v45, 16  ;;  %v9326_v45 = vld [vmem:[#allocation3 + $0x28] sm:$0xff]  ;;  %vm13695_vm15 = vmmov %vm13677_vm0 }
 0x3ea   : > { %v6535_v29 = vor.u32 %v6533_v26, %v6531_v47  ;;  %v6545_v47 = vshll.u32 %v9326_v45, 16 }
 0x3eb   : > { %v5229_v16 = vpop.f32.mrf.mxu2  ;;  %v5667_v43 = vpop.f32.mrf.mxu3 }
 0x3ec   : > { %v5230_v3 = vadd.f32 %v5229_v16, %v12498_v44  ;;  %6042 = vmatmul.bf16.gmra.mxu1 %v10705_v61  ;;  %v9325_v16 = vld [vmem:[#allocation3 + $0x20] sm:$0xff] }
 0x3ed   : > { %5706 = vmatmul.bf16.gmra.mxu3 %v5558_v40  ;;  %v6537_v40 = vshll.u32 %v9325_v16, 16 }
 0x3ee   : > { %v12545_v20 = vadd.f32 %v5667_v43, %v5230_v3 }
 0x3ef   : > { %v12549_v23 = vpop.f32.mrf.mxu0  ;;  %v6539_v43 = vrot.slane %v6537_v40, 1 }
 0x3f0   : > { %v5065_v35 = vpop.f32.mrf.mxu1 }
 0x3f3   : > { %6890 = vmatmul.bf16.gmra.mxu0 %v6532_v18  ;;  %v5231_v62 = vpop.f32.mrf.mxu2  ;;  %v5669_v37 = vpop.f32.mrf.mxu3 }
 0x3f4   : > { %v5232_v44 = vadd.f32 %v5231_v62, %v12512_v4  ;;  %v9376_v4 = vld [vmem:[#allocation8 + $0x228] sm:$0xff] }
 0x3f5   : > { %6228 = vmatmul.bf16.gmra.mxu2 %v9790_v15  ;;  %v10706_v15 = vld [vmem:[#allocation3 + $0x18] sm:$0xff]   ;;  %7297 = vmatpush.bf16.msra.mxu1 %v9376_v4  ;;  %v10707_v4 = vld [vmem:[#allocation3 + $0x20] sm:$0xff]  }
 0x3f6   : > { %v12551_v51 = vadd.f32 %v5669_v37, %v5232_v44  ;;  %v6540_v44 = vsel %vm13679_vm13, %v6535_v29, %v6539_v43  ;;  %v6541_v29 = vshrl.u32 %v9325_v16, 16  ;;  %vm13700_vm13 = vmmov %vm13677_vm0 }
 0x3f7   : > { %v12554_v33 = vpop.f32.mrf.mxu0 }
 0x3f9   : > { %v5068_v5 = vpop.f32.mrf.mxu1  ;;  %7298 = vmatpush.bf16.msra.mxu1 %v9375_v48  ;;  %v10709_v48 = vld [vmem:[#allocation3 + $0x30] sm:$0xff]  }
 0x3fb   : > { %v5234_v61 = vpop.f32.mrf.mxu2 }
 0x3fc   : > { %v5235_v3 = vadd.f32 %v5234_v61, %v12525_v21  ;;  %6047 = vmatmul.bf16.gmra.mxu1 %v10706_v15  ;;  %v5672_v62 = vpop.f32.mrf.mxu3 }
 0x3fd   : > { %6725 = vmatmul.bf16.vlgmr.msra.gmra.mxu3 %v6532_v18 }
 0x3fe   : > { %v12556_v46 = vadd.f32 %v5672_v62, %v5235_v3  ;;  %v6543_v62 = vor.u32 %v6541_v29, %v6539_v43 }
 0x3ff   : > { %v12559_v61 = vpop.f32.mrf.mxu0 }
 0x401   : > { %v5070_v21 = vpop.f32.mrf.mxu1 }
 0x403   : > { %6895 = vmatmul.bf16.gmra.mxu0 %v6540_v44  ;;  %v5236_v37 = vpop.f32.mrf.mxu2 }
 0x404   : > { %v5237_v18 = vadd.f32 %v5236_v37, %v5060_v12  ;;  %v5674_v40 = vpop.f32.mrf.mxu3  ;;  %v9792_v12 = vld [vmem:[#allocation3 + $0x30] sm:$0xff]  }
 0x405   : > { %6233 = vmatmul.bf16.gmra.mxu2 %v9791_v52  ;;  %v6547_v52 = vrot.slane %v6545_v47, 1 }
 0x406   : > { %v12561_v38 = vadd.f32 %v5674_v40, %v5237_v18 }
 0x407   : > { %v12563_v3 = vpop.f32.mrf.mxu0  ;;  %v6548_v32 = vsel %vm13681_vm14, %v6543_v62, %v6547_v52  ;;  %vm13705_vm14 = vmmov %vm13677_vm0 }
 0x408   : > { %13680 = vst [vmem:[#allocation29_spill] sm:$0xff] %v12563_v3  ;;  %v9799_v3 = vld [vmem:[#allocation3 + $0x68] sm:$0xff]  }
 0x409   : > { %v5073_v15 = vpop.f32.mrf.mxu1 }
 0x40b   : > { %v5239_v26 = vpop.f32.mrf.mxu2 }
 0x40c   : > { %v5240_v27 = vadd.f32 %v5239_v26, %v5063_v59  ;;  %6052 = vmatmul.bf16.gmra.mxu1 %v10707_v4 }
 0x40d   : > { %6730 = vmatmul.bf16.gmra.mxu3 %v6540_v44  ;;  %v9327_v44 = vld [vmem:[#allocation3 + $0x30] sm:$0xff] }
 0x40e   : > { %v6553_v47 = vshll.u32 %v9327_v44, 16 }
 0x40f   : > { %v12568_v59 = vpop.f32.mrf.mxu0 }
 0x410   : > { %v5677_v8 = vpop.f32.mrf.mxu3  ;;  %13682 = vst [vmem:[#allocation31_spill] sm:$0xff] %v12568_v59  ;;  %v6555_v62 = vrot.slane %v6553_v47, 1 }
 0x411   : > { %v12565_v37 = vadd.f32 %v5677_v8, %v5240_v27  ;;  %v5075_v40 = vpop.f32.mrf.mxu1  ;;  %v6549_v27 = vshrl.u32 %v9326_v45, 16  ;;  %v9328_v45 = vld [vmem:[#allocation3 + $0x38] sm:$0xff] }
 0x413   : > { %6900 = vmatmul.bf16.gmra.mxu0 %v6548_v32  ;;  %v5241_v18 = vpop.f32.mrf.mxu2  ;;  %v6551_v54 = vor.u32 %v6549_v27, %v6547_v52  ;;  %v6561_v52 = vshll.u32 %v9328_v45, 16 }
 0x414   : > { %v5242_v50 = vadd.f32 %v5241_v18, %v5065_v35  ;;  %v9793_v18 = vld [vmem:[#allocation3 + $0x38] sm:$0xff]  }
 0x415   : > { %6238 = vmatmul.bf16.gmra.mxu2 %v9792_v12  ;;  %v10708_v12 = vld [vmem:[#allocation3 + $0x28] sm:$0xff]  }
 0x417   : > { %v12572_v8 = vpop.f32.mrf.mxu0 }
 0x418   : > { %v5679_v26 = vpop.f32.mrf.mxu3  ;;  %13684 = vst [vmem:[#allocation34_spill] sm:$0xff] %v12572_v8 }
 0x419   : > { %v12570_v16 = vadd.f32 %v5679_v26, %v5242_v50  ;;  %v5078_v43 = vpop.f32.mrf.mxu1  ;;  %v6556_v50 = vsel %vm13677_vm0, %v6551_v54, %v6555_v62  ;;  %v6557_v54 = vshrl.u32 %v9327_v44, 16 }
 0x41b   : > { %13683 = vst [vmem:[#allocation32_spill] sm:$0xff] %v12570_v16  ;;  %v5244_v4 = vpop.f32.mrf.mxu2 }
 0x41c   : > { %v5245_v29 = vadd.f32 %v5244_v4, %v5068_v5  ;;  %6057 = vmatmul.bf16.gmra.mxu1 %v10708_v12 }
 0x41d   : > { %6735 = vmatmul.bf16.gmra.mxu3 %v6548_v32 }
 0x41f   : > { %v12577_v4 = vpop.f32.mrf.mxu0 }
 0x420   : > { %v5682_v35 = vpop.f32.mrf.mxu3  ;;  %13686 = vst [vmem:[#allocation48_spill] sm:$0xff] %v12577_v4 }
 0x421   : > { %v12574_v59 = vadd.f32 %v5682_v35, %v5245_v29  ;;  %v5080_v5 = vpop.f32.mrf.mxu1  ;;  %v6563_v35 = vrot.slane %v6561_v52, 1 }
 0x423   : > { %13685 = vst [vmem:[#allocation35_spill] sm:$0xff] %v12574_v59  ;;  %6905 = vmatmul.bf16.gmra.mxu0 %v6556_v50  ;;  %v5246_v26 = vpop.f32.mrf.mxu2 }
 0x424   : > { %v5247_v32 = vadd.f32 %v5246_v26, %v5070_v21  ;;  %v9794_v21 = vld [vmem:[#allocation3 + $0x40] sm:$0xff]  }
 0x425   : > { %6243 = vmatmul.bf16.gmra.mxu2 %v9793_v18  ;;  %v6559_v18 = vor.u32 %v6557_v54, %v6555_v62 }
 0x427   : > { %v12581_v29 = vpop.f32.mrf.mxu0  ;;  %v6564_v4 = vsel %vm13690_vm9, %v6559_v18, %v6563_v35  ;;  %vm13712_vm9 = vmmov %vm13677_vm0 }
 0x428   : > { %v5684_v47 = vpop.f32.mrf.mxu3  ;;  %13688 = vst [vmem:[#allocation50_spill] sm:$0xff] %v12581_v29 }
 0x429   : > { %v12579_v8 = vadd.f32 %v5684_v47, %v5247_v32  ;;  %v5083_v12 = vpop.f32.mrf.mxu1 }
 0x42b   : > { %13687 = vst [vmem:[#allocation49_spill] sm:$0xff] %v12579_v8  ;;  %v5249_v27 = vpop.f32.mrf.mxu2 }
 0x42c   : > { %v5250_v16 = vadd.f32 %v5249_v27, %v5073_v15  ;;  %6062 = vmatmul.bf16.gmra.mxu1 %v10709_v48 }
 0x42d   : > { %6740 = vmatmul.bf16.gmra.mxu3 %v6556_v50  ;;  %v9329_v50 = vld [vmem:[#allocation3 + $0x40] sm:$0xff] }
 0x42e   : > { %v6569_v52 = vshll.u32 %v9329_v50, 16 }
 0x42f   : > { %v12586_v15 = vpop.f32.mrf.mxu0 }
 0x430   : > { %v5687_v59 = vpop.f32.mrf.mxu3  ;;  %13691 = vst [vmem:[#allocation52_spill] sm:$0xff] %v12586_v15  ;;  %v6571_v18 = vrot.slane %v6569_v52, 1 }
 0x431   : > { %v12583_v26 = vadd.f32 %v5687_v59, %v5250_v16  ;;  %v5085_v47 = vpop.f32.mrf.mxu1  ;;  %v6565_v16 = vshrl.u32 %v9328_v45, 16  ;;  %v9330_v45 = vld [vmem:[#allocation3 + $0x48] sm:$0xff] }
 0x433   : > { %13689 = vst [vmem:[#allocation51_spill] sm:$0xff] %v12583_v26  ;;  %6910 = vmatmul.bf16.gmra.mxu0 %v6564_v4  ;;  %v5251_v32 = vpop.f32.mrf.mxu2  ;;  %v6567_v29 = vor.u32 %v6565_v16, %v6563_v35  ;;  %v9374_v26 = vld [vmem:[#allocation8 + $0x218] sm:$0xff]  ;;  %v6577_v35 = vshll.u32 %v9330_v45, 16 }
 0x434   : > { %v5252_v8 = vadd.f32 %v5251_v32, %v5075_v40  ;;  %v9795_v32 = vld [vmem:[#allocation3 + $0x48] sm:$0xff]   ;;  %7299 = vmatpush.bf16.msra.mxu1 %v9374_v26  ;;  %v10711_v26 = vld [vmem:[#allocation3 + $0x40] sm:$0xff]  }
 0x435   : > { %6248 = vmatmul.bf16.gmra.mxu2 %v9794_v21  ;;  %v10710_v21 = vld [vmem:[#allocation3 + $0x38] sm:$0xff]  }
 0x437   : > { %v12590_v59 = vpop.f32.mrf.mxu0 }
 0x438   : > { %v5689_v27 = vpop.f32.mrf.mxu3  ;;  %13693 = vst [vmem:[#allocation54_spill] sm:$0xff] %v12590_v59 }
 0x439   : > { %v12588_v44 = vadd.f32 %v5689_v27, %v5252_v8  ;;  %v5088_v62 = vpop.f32.mrf.mxu1  ;;  %v6572_v8 = vsel %vm13695_vm15, %v6567_v29, %v6571_v18  ;;  %v6573_v29 = vshrl.u32 %v9329_v50, 16  ;;  %vm13725_vm15 = vmmov %vm13677_vm0 }
 0x43b   : > { %13692 = vst [vmem:[#allocation53_spill] sm:$0xff] %v12588_v44  ;;  %v5254_v48 = vpop.f32.mrf.mxu2 }
 0x43c   : > { %v5255_v54 = vadd.f32 %v5254_v48, %v5078_v43  ;;  %6067 = vmatmul.bf16.gmra.mxu1 %v10710_v21 }
 0x43d   : > { %6745 = vmatmul.bf16.gmra.mxu3 %v6564_v4 }
 0x43f   : > { %v12595_v48 = vpop.f32.mrf.mxu0 }
 0x440   : > { %v5692_v40 = vpop.f32.mrf.mxu3  ;;  %13696 = vst [vmem:[#allocation56_spill] sm:$0xff] %v12595_v48 }
 0x441   : > { %v12592_v15 = vadd.f32 %v5692_v40, %v5255_v54  ;;  %v5090_v43 = vpop.f32.mrf.mxu1  ;;  %v6579_v40 = vrot.slane %v6577_v35, 1 }
 0x443   : > { %13694 = vst [vmem:[#allocation55_spill] sm:$0xff] %v12592_v15  ;;  %6915 = vmatmul.bf16.gmra.mxu0 %v6572_v8  ;;  %v5256_v27 = vpop.f32.mrf.mxu2 }
 0x444   : > { %v5257_v4 = vadd.f32 %v5256_v27, %v5080_v5  ;;  %v9796_v5 = vld [vmem:[#allocation3 + $0x50] sm:$0xff]  }
 0x445   : > { %6253 = vmatmul.bf16.gmra.mxu2 %v9795_v32  ;;  %v6575_v32 = vor.u32 %v6573_v29, %v6571_v18 }
 0x447   : > { %v12599_v54 = vpop.f32.mrf.mxu0  ;;  %v6580_v48 = vsel %vm13700_vm13, %v6575_v32, %v6579_v40  ;;  %vm13728_vm13 = vmmov %vm13677_vm0 }
 0x448   : > { %v5694_v52 = vpop.f32.mrf.mxu3  ;;  %13698 = vst [vmem:[#allocation58_spill] sm:$0xff] %v12599_v54 }
 0x449   : > { %v12597_v59 = vadd.f32 %v5694_v52, %v5257_v4  ;;  %v5093_v21 = vpop.f32.mrf.mxu1 }
 0x44b   : > { %13697 = vst [vmem:[#allocation57_spill] sm:$0xff] %v12597_v59  ;;  %v5259_v16 = vpop.f32.mrf.mxu2 }
 0x44c   : > { %v5260_v44 = vadd.f32 %v5259_v16, %v5083_v12  ;;  %6072 = vmatmul.bf16.gmra.mxu1 %v10711_v26 }
 0x44d   : > { %6750 = vmatmul.bf16.gmra.mxu3 %v6572_v8  ;;  %v9331_v8 = vld [vmem:[#allocation3 + $0x50] sm:$0xff] }
 0x44e   : > { %v6585_v35 = vshll.u32 %v9331_v8, 16 }
 0x44f   : > { %v12604_v12 = vpop.f32.mrf.mxu0 }
 0x450   : > { %v5697_v15 = vpop.f32.mrf.mxu3  ;;  %13701 = vst [vmem:[#allocation60_spill] sm:$0xff] %v12604_v12  ;;  %v6587_v32 = vrot.slane %v6585_v35, 1 }
 0x451   : > { %v12601_v27 = vadd.f32 %v5697_v15, %v5260_v44  ;;  %v5095_v52 = vpop.f32.mrf.mxu1  ;;  %v6581_v44 = vshrl.u32 %v9330_v45, 16  ;;  %v9332_v45 = vld [vmem:[#allocation3 + $0x58] sm:$0xff] }
 0x453   : > { %13699 = vst [vmem:[#allocation59_spill] sm:$0xff] %v12601_v27  ;;  %6920 = vmatmul.bf16.gmra.mxu0 %v6580_v48  ;;  %v5261_v4 = vpop.f32.mrf.mxu2  ;;  %v6583_v54 = vor.u32 %v6581_v44, %v6579_v40  ;;  %v9373_v27 = vld [vmem:[#allocation8 + $0x210] sm:$0xff]  ;;  %v6593_v40 = vshll.u32 %v9332_v45, 16 }
 0x454   : > { %v5262_v59 = vadd.f32 %v5261_v4, %v5085_v47  ;;  %v9797_v4 = vld [vmem:[#allocation3 + $0x58] sm:$0xff]   ;;  %7300 = vmatpush.bf16.msra.mxu1 %v9373_v27  ;;  %v10713_v27 = vld [vmem:[#allocation3 + $0x50] sm:$0xff]  }
 0x455   : > { %6258 = vmatmul.bf16.gmra.mxu2 %v9796_v5  ;;  %v10712_v5 = vld [vmem:[#allocation3 + $0x48] sm:$0xff]  }
 0x457   : > { %v12608_v15 = vpop.f32.mrf.mxu0 }
 0x458   : > { %v5699_v16 = vpop.f32.mrf.mxu3  ;;  %13703 = vst [vmem:[#allocation62_spill] sm:$0xff] %v12608_v15 }
 0x459   : > { %v12606_v50 = vadd.f32 %v5699_v16, %v5262_v59  ;;  %v6038_v18 = vpop.f32.mrf.mxu1  ;;  %v6588_v59 = vsel %vm13705_vm14, %v6583_v54, %v6587_v32  ;;  %v6589_v54 = vshrl.u32 %v9331_v8, 16  ;;  %vm13745_vm14 = vmmov %vm13677_vm0 }
 0x45b   : > { %13702 = vst [vmem:[#allocation61_spill] sm:$0xff] %v12606_v50  ;;  %v5264_v26 = vpop.f32.mrf.mxu2 }
 0x45c   : > { %v5265_v29 = vadd.f32 %v5264_v26, %v5088_v62  ;;  %6077 = vmatmul.bf16.gmra.mxu1 %v10712_v5 }
 0x45d   : > { %6755 = vmatmul.bf16.gmra.mxu3 %v6580_v48 }
 0x45f   : > { %v12613_v26 = vpop.f32.mrf.mxu0 }
 0x460   : > { %v5702_v47 = vpop.f32.mrf.mxu3  ;;  %13706 = vst [vmem:[#allocation64_spill] sm:$0xff] %v12613_v26 }
 0x461   : > { %v12610_v12 = vadd.f32 %v5702_v47, %v5265_v29  ;;  %v6040_v62 = vpop.f32.mrf.mxu1  ;;  %v6595_v47 = vrot.slane %v6593_v40, 1  ;;  %v6039_v40 = vadd.f32 %v6038_v18, %v12305_v57 }
 0x463   : > { %13704 = vst [vmem:[#allocation63_spill] sm:$0xff] %v12610_v12  ;;  %6925 = vmatmul.bf16.gmra.mxu0 %v6588_v59  ;;  %v5266_v16 = vpop.f32.mrf.mxu2 }
 0x464   : > { %v5267_v48 = vadd.f32 %v5266_v16, %v5090_v43  ;;  %v9798_v43 = vld [vmem:[#allocation3 + $0x60] sm:$0xff]  }
 0x465   : > { %6263 = vmatmul.bf16.gmra.mxu2 %v9797_v4  ;;  %v6591_v4 = vor.u32 %v6589_v54, %v6587_v32 }
 0x467   : > { %v12617_v29 = vpop.f32.mrf.mxu0  ;;  %v6596_v26 = vsel %vm13677_vm0, %v6591_v4, %v6595_v47 }
 0x468   : > { %v5704_v35 = vpop.f32.mrf.mxu3  ;;  %13708 = vst [vmem:[#allocation66_spill] sm:$0xff] %v12617_v29 }
 0x469   : > { %v12615_v15 = vadd.f32 %v5704_v35, %v5267_v48  ;;  %v6043_v5 = vpop.f32.mrf.mxu1 }
 0x46b   : > { %13707 = vst [vmem:[#allocation65_spill] sm:$0xff] %v12615_v15  ;;  %v5269_v44 = vpop.f32.mrf.mxu2 }
 0x46c   : > { %v5270_v50 = vadd.f32 %v5269_v44, %v5093_v21  ;;  %6082 = vmatmul.bf16.gmra.mxu1 %v10713_v27 }
 0x46d   : > { %6760 = vmatmul.bf16.gmra.mxu3 %v6588_v59  ;;  %v9333_v59 = vld [vmem:[#allocation3 + $0x60] sm:$0xff] }
 0x46e   : > { %v6601_v8 = vshll.u32 %v9333_v59, 16 }
 0x46f   : > { %v6886_v21 = vpop.f32.mrf.mxu0 }
 0x470   : > { %v5707_v12 = vpop.f32.mrf.mxu3 }
 0x471   : > { %v12619_v16 = vadd.f32 %v5707_v12, %v5270_v50  ;;  %v6045_v35 = vpop.f32.mrf.mxu1  ;;  %v5744_v50 = vsel %vm11142_vm1, %v12357_v14, 0.0  ;;  %v6041_v14 = vadd.f32 %v6040_v62, %v12340_v56  ;;  %v5746_v62 = vsel %vm11161_vm2, %v12404_v36, 0.0  ;;  %vm13714_vm1 = vmmov %vm13677_vm0 }
 0x472   : > { %vm13716_vm2 = vmmov %vm13677_vm0 }
 0x473   : > { %13709 = vst [vmem:[#allocation67_spill] sm:$0xff] %v12619_v16  ;;  %6930 = vmatmul.bf16.gmra.mxu0 %v6596_v26  ;;  %v5271_v48 = vpop.f32.mrf.mxu2  ;;  %v6603_v16 = vrot.slane %v6601_v8, 1 }
 0x474   : > { %v5272_v15 = vadd.f32 %v5271_v48, %v5095_v52  ;;  %v10714_v48 = vld [vmem:[#allocation3 + $0x58] sm:$0xff]  }
 0x475   : > { %6268 = vmatmul.bf16.gmra.mxu2 %v9798_v43  ;;  %v6597_v43 = vshrl.u32 %v9332_v45, 16 }
 0x477   : > { %v6888_v4 = vpop.f32.mrf.mxu0 }
 0x478   : > { %v5709_v44 = vpop.f32.mrf.mxu3 }
 0x479   : > { %v12622_v29 = vadd.f32 %v5709_v44, %v5272_v15  ;;  %v6048_v54 = vpop.f32.mrf.mxu1  ;;  %v6599_v15 = vor.u32 %v6597_v43, %v6595_v47  ;;  %v9372_v44 = vld [vmem:[#allocation8 + $0x208] sm:$0xff] }
 0x47a   : > { %7301 = vmatpush.bf16.msra.mxu1 %v9372_v44 }
 0x47b   : > { %13710 = vst [vmem:[#allocation68_spill] sm:$0xff] %v12622_v29  ;;  %v6224_v32 = vpop.f32.mrf.mxu2  ;;  %v6604_v18 = vsel %vm13712_vm9, %v6599_v15, %v6603_v16  ;;  %vm13752_vm9 = vmmov %vm13714_vm1 }
 0x47c   : > { %v6304_v27 = vadd.f32 %v6224_v32, %v6039_v40  ;;  %6087 = vmatmul.bf16.gmra.mxu1 %v10714_v48  ;;  %v9334_v40 = vld [vmem:[#allocation3 + $0x68] sm:$0xff]  ;;  %v6605_v48 = vshrl.u32 %v9333_v59, 16 }
 0x47d   : > { %6765 = vmatmul.bf16.gmra.mxu3 %v6596_v26 }
 0x47e   : > { %v12628_v52 = vadd.f32 %v6304_v27, %v5744_v50 }
 0x47f   : > { %v6891_v47 = vpop.f32.mrf.mxu0 }
 0x480   : > { %v6726_v29 = vpop.f32.mrf.mxu3 }
 0x481   : > { %v12630_v57 = vadd.f32 %v6886_v21, %v6726_v29  ;;  %v6050_v45 = vpop.f32.mrf.mxu1  ;;  %v6609_v29 = vshll.u32 %v9334_v40, 16  ;;  %v6044_v21 = vadd.f32 %v6043_v5, %v12371_v1  ;;  %v6046_v5 = vadd.f32 %v6045_v35, %v12402_v60 }
 0x482   : > { %v5748_v35 = vsel %vm11180_vm3, %v12438_v9, 0.0  ;;  %vm13718_vm3 = vmmov %vm13677_vm0 }
 0x483   : > { %6935 = vmatmul.bf16.gmra.mxu0 %v6604_v18  ;;  %v6226_v26 = vpop.f32.mrf.mxu2  ;;  %v6611_v15 = vrot.slane %v6609_v29, 1  ;;  %v9335_v29 = vld [vmem:[#allocation3 + $0x70] sm:$0xff] }
 0x484   : > { %v6305_v8 = vadd.f32 %v6226_v26, %v6041_v14  ;;  %v6607_v14 = vor.u32 %v6605_v48, %v6603_v16 }
 0x485   : > { %6273 = vmatmul.bf16.gmra.mxu2 %v9799_v3 }
 0x486   : > { %v12635_v32 = vadd.f32 %v6305_v8, %v12375_v28  ;;  %v10715_v28 = vld [vmem:[#allocation3 + $0x60] sm:$0xff]   ;;  %v9800_v8 = vld [vmem:[#allocation3 + $0x70] sm:$0xff]   ;;  %v6612_v1 = vsel %vm13714_vm1, %v6607_v14, %v6611_v15  ;;  %v6613_v14 = vshrl.u32 %v9334_v40, 16 }
 0x487   : > { %v6893_v26 = vpop.f32.mrf.mxu0 }
 0x488   : > { %v6728_v27 = vpop.f32.mrf.mxu3 }
 0x489   : > { %v12637_v12 = vadd.f32 %v6888_v4, %v6728_v27  ;;  %v6053_v3 = vpop.f32.mrf.mxu1 }
 0x48a   : > { %v6054_v60 = vadd.f32 %v6053_v3, %v12445_v42 }
 0x48b   : > { %v6229_v50 = vpop.f32.mrf.mxu2 }
 0x48c   : > { %v6306_v43 = vadd.f32 %v6229_v50, %v6044_v21  ;;  %6092 = vmatmul.bf16.gmra.mxu1 %v10715_v28 }
 0x48d   : > { %6770 = vmatmul.bf16.gmra.mxu3 %v6604_v18 }
 0x48e   : > { %v12643_v44 = vadd.f32 %v6306_v43, %v5746_v62  ;;  %v6617_v43 = vshll.u32 %v9335_v29, 16 }
 0x48f   : > { %v6896_v56 = vpop.f32.mrf.mxu0 }
 0x490   : > { %v6731_v4 = vpop.f32.mrf.mxu3 }
 0x491   : > { %v12645_v27 = vadd.f32 %v6891_v47, %v6731_v4  ;;  %v6055_v18 = vpop.f32.mrf.mxu1  ;;  %v6049_v47 = vadd.f32 %v6048_v54, %v12415_v22  ;;  %v6619_v4 = vrot.slane %v6617_v43, 1 }
 0x492   : > { %v6056_v3 = vadd.f32 %v6055_v18, %v12462_v63  ;;  %v5752_v18 = vsel %vm11218_vm5, %v12486_v17, 0.0  ;;  %vm13722_vm5 = vmmov %vm13677_vm0 }
 0x493   : > { %6940 = vmatmul.bf16.gmra.mxu0 %v6612_v1  ;;  %v6231_v36 = vpop.f32.mrf.mxu2 }
 0x494   : > { %v6307_v59 = vadd.f32 %v6231_v36, %v6046_v5  ;;  %v9371_v5 = vld [vmem:[#allocation8 + $0x200] sm:$0xff] }
 0x495   : > { %6278 = vmatmul.bf16.gmra.mxu2 %v9800_v8  ;;  %7302 = vmatpush.bf16.msra.mxu1 %v9371_v5 }
 0x496   : > { %v12650_v21 = vadd.f32 %v6307_v59, %v12417_v6  ;;  %v10716_v6 = vld [vmem:[#allocation3 + $0x68] sm:$0xff]  ;;  %v9801_v59 = vld [vmem:[#allocation3 + $0x78] sm:$0xff]  }
 0x497   : > { %v6898_v40 = vpop.f32.mrf.mxu0 }
 0x498   : > { %v6733_v50 = vpop.f32.mrf.mxu3 }
 0x499   : > { %v12652_v16 = vadd.f32 %v6893_v26, %v6733_v50  ;;  %v6058_v48 = vpop.f32.mrf.mxu1  ;;  %v6615_v26 = vor.u32 %v6613_v14, %v6611_v15  ;;  %v6051_v50 = vadd.f32 %v6050_v45, %v12436_v55  ;;  %v5750_v45 = vsel %vm11199_vm4, %v12464_v30, 0.0  ;;  %vm13720_vm4 = vmmov %vm13677_vm0 }
 0x49a   : > { %v6059_v55 = vadd.f32 %v6058_v48, %v12470_v10 }
 0x49b   : > { %v6234_v62 = vpop.f32.mrf.mxu2  ;;  %v6620_v54 = vsel %vm13716_vm2, %v6615_v26, %v6619_v4  ;;  %v6621_v26 = vshrl.u32 %v9335_v29, 16 }
 0x49c   : > { %v6308_v28 = vadd.f32 %v6234_v62, %v6049_v47  ;;  %6097 = vmatmul.bf16.gmra.mxu1 %v10716_v6  ;;  %v9336_v47 = vld [vmem:[#allocation3 + $0x78] sm:$0xff] }
 0x49d   : > { %6775 = vmatmul.bf16.gmra.mxu3 %v6612_v1 }
 0x49e   : > { %v12658_v8 = vadd.f32 %v6308_v28, %v5748_v35 }
 0x4a0   : > { %v6736_v36 = vpop.f32.mrf.mxu3 }
 0x4a1   : > { %v12660_v22 = vadd.f32 %v6896_v56, %v6736_v36  ;;  %v6060_v1 = vpop.f32.mrf.mxu1  ;;  %v6625_v56 = vshll.u32 %v9336_v47, 16  ;;  %v6901_v36 = vpop.f32.mrf.mxu0 }
 0x4a2   : > { %v6061_v48 = vadd.f32 %v6060_v1, %v12481_v19 }
 0x4a3   : > { %6945 = vmatmul.bf16.gmra.mxu0 %v6620_v54  ;;  %v6236_v9 = vpop.f32.mrf.mxu2  ;;  %v6627_v5 = vrot.slane %v6625_v56, 1 }
 0x4a4   : > { %v6309_v43 = vadd.f32 %v6236_v9, %v6051_v50  ;;  %v6623_v50 = vor.u32 %v6621_v26, %v6619_v4 }
 0x4a5   : > { %6283 = vmatmul.bf16.gmra.mxu2 %v9801_v59 }
 0x4a6   : > { %v12665_v62 = vadd.f32 %v6309_v43, %v12447_v11  ;;  %v10717_v11 = vld [vmem:[#allocation3 + $0x70] sm:$0xff]  ;;  %v6628_v42 = vsel %vm13718_vm3, %v6623_v50, %v6627_v5  ;;  %vm13761_vm3 = vmmov %vm13716_vm2 }
 0x4a8   : > { %v6738_v15 = vpop.f32.mrf.mxu3 }
 0x4a9   : > { %v12667_v28 = vadd.f32 %v6898_v40, %v6738_v15  ;;  %v6063_v14 = vpop.f32.mrf.mxu1  ;;  %v9802_v40 = vld [vmem:[#allocation3 + $0x80] sm:$0xff]  }
 0x4aa   : > { %v9337_v15 = vld [vmem:[#allocation3 + $0x80] sm:$0xff] }
 0x4ab   : > { %v6239_v35 = vpop.f32.mrf.mxu2  ;;  %v6637_v19 = vshrl.u32 %v9337_v15, 16 }
 0x4ac   : > { %v6310_v6 = vadd.f32 %v6239_v35, %v6054_v60  ;;  %6102 = vmatmul.bf16.gmra.mxu1 %v10717_v11  ;;  %v6903_v60 = vpop.f32.mrf.mxu0  ;;  %v6629_v11 = vshrl.u32 %v9336_v47, 16 }
 0x4ad   : > { %6780 = vmatmul.bf16.gmra.mxu3 %v6620_v54 }
 0x4ae   : > { %v12673_v59 = vadd.f32 %v6310_v6, %v5750_v45  ;;  %v6633_v6 = vshll.u32 %v9337_v15, 16 }
 0x4b0   : > { %v6741_v9 = vpop.f32.mrf.mxu3  ;;  %v6635_v50 = vrot.slane %v6633_v6, 1 }
 0x4b1   : > { %v12675_v43 = vadd.f32 %v6901_v36, %v6741_v9  ;;  %v6065_v54 = vpop.f32.mrf.mxu1 }
 0x4b3   : > { %6950 = vmatmul.bf16.gmra.mxu0 %v6628_v42  ;;  %v6241_v30 = vpop.f32.mrf.mxu2 }
 0x4b4   : > { %v6311_v29 = vadd.f32 %v6241_v30, %v6056_v3  ;;  %v6631_v3 = vor.u32 %v6629_v11, %v6627_v5  ;;  %v9803_v30 = vld [vmem:[#allocation3 + $0x88] sm:$0xff]  }
 0x4b5   : > { %6288 = vmatmul.bf16.gmra.mxu2 %v9802_v40  ;;  %v10718_v40 = vld [vmem:[#allocation3 + $0x78] sm:$0xff] }
 0x4b6   : > { %v12680_v56 = vadd.f32 %v6311_v29, %v12472_v39  ;;  %v6400_v39 = vld [vmem:[#allocation3 + $0x88] sm:$0x1]  ;;  %v6636_v29 = vsel %vm13720_vm4, %v6631_v3, %v6635_v50  ;;  %v9355_v3 = vld [vmem:[#allocation3 + $0x18] sm:$0xff] }
 0x4b7   : > { %v6811_v10 = vunpack.c.l.b16 %v6400_v39  ;;  %v10719_v39 = vld [vmem:[#allocation3 + $0x80] sm:$0xff] }
 0x4b8   : > { %v6743_v35 = vpop.f32.mrf.mxu3 }
 0x4b9   : > { %v12682_v4 = vadd.f32 %v6903_v60, %v6743_v35  ;;  %v6068_v26 = vpop.f32.mrf.mxu1 }
 0x4bb   : > { %v6244_v45 = vpop.f32.mrf.mxu2 }
 0x4bc   : > { %v6312_v36 = vadd.f32 %v6244_v45, %v6059_v55  ;;  %6107 = vmatmul.bf16.gmra.mxu1 %v10718_v40  ;;  %v6064_v55 = vadd.f32 %v6063_v14, %v12492_v31  ;;  %v6639_v40 = vor.u32 %v6637_v19, %v6635_v50  ;;  %v6066_v14 = vadd.f32 %v6065_v54, %v12503_v41 }
 0x4bd   : > { %6785 = vmatmul.bf16.gmra.mxu3 %v6628_v42  ;;  %v6813_v42 = vpack.c.b16 %v6811_v10, %v6811_v10 }
 0x4be   : > { %v12688_v9 = vadd.f32 %v6312_v36, %v5752_v18  ;;  %v5754_v18 = vsel %vm11234_vm6, %v12507_v13, 0.0  ;;  %vm13723_vm6 = vmmov %vm13677_vm0 }
 0x4bf   : > { %v6823_v6 = vshll.u32 %v6813_v42, 16 }
 0x4c1   : > { %v6070_v35 = vpop.f32.mrf.mxu1  ;;  %v6825_v1 = vrot.slane %v6823_v6, 1  ;;  %v6420_v6 = vld [vmem:[#allocation3 + $0x90] sm:$0x1] }
 0x4c2   : > { %v6503_v19 = vunpack.c.l.b16 %v6420_v6 }
 0x4c3   : > { %6955 = vmatmul.bf16.gmra.mxu0 %v6636_v29  ;;  %v6246_v60 = vpop.f32.mrf.mxu2  ;;  %v6826_v31 = vsel %vm13722_vm5, %v6639_v40, %v6825_v1 }
 0x4c4   : > { %v6313_v17 = vadd.f32 %v6246_v60, %v6061_v48  ;;  %v7102_v48 = vshll.u32 %v9355_v3, 16 }
 0x4c5   : > { %6293 = vmatmul.bf16.gmra.mxu2 %v9803_v30  ;;  %v9356_v30 = vld [vmem:[#allocation3 + $0x20] sm:$0xff] }
 0x4c6   : > { %v12693_v47 = vadd.f32 %v6313_v17, %v12494_v24  ;;  %v9346_v24 = vld [vmem:[#allocation3 + $0x88] sm:$0xff]  ;;  %v7107_v17 = vshll.u32 %v9356_v30, 16  ;;  %v7104_v42 = vrot.slane %v7102_v48, 1 }
 0x4c7   : > { %v6641_v15 = vshll.u32 %v9346_v24, 16  ;;  %v6645_v48 = vshrl.u32 %v9346_v24, 16 }
 0x4c9   : > { %v6073_v5 = vpop.f32.mrf.mxu1  ;;  %v6643_v50 = vrot.slane %v6641_v15, 1 }
 0x4ca   : > { %v6074_v6 = vadd.f32 %v6073_v5, %v12536_v53  ;;  %v9358_v5 = vld [vmem:[#allocation3 + $0x30] sm:$0xff] }
 0x4cb   : > { %v6249_v45 = vpop.f32.mrf.mxu2  ;;  %v6644_v54 = vsel %vm13723_vm6, %v6639_v40, %v6643_v50  ;;  %vm13768_vm6 = vmmov %vm13716_vm2 }
 0x4cc   : > { %v6314_v36 = vadd.f32 %v6249_v45, %v6064_v55  ;;  %6112 = vmatmul.bf16.gmra.mxu1 %v10719_v39  ;;  %v7100_v55 = vshrl.u32 %v9355_v3, 16  ;;  %v7109_v45 = vrot.slane %v7107_v17, 1  ;;  %v9357_v3 = vld [vmem:[#allocation3 + $0x28] sm:$0xff] }
 0x4cd   : > { %6790 = vmatmul.bf16.gmra.mxu3 %v6636_v29  ;;  %v7115_v17 = vshll.u32 %v9357_v3, 16 }
 0x4ce   : > { %v12699_v11 = vadd.f32 %v6314_v36, %v5754_v18  ;;  %v7105_v63 = vor.u32 %v7104_v42, %v7100_v55 }
 0x4cf   : > { %v7117_v55 = vrot.slane %v7115_v17, 1 }
 0x4d0   : > { %v7110_v39 = vsel %vm13725_vm15, %v7105_v63, %v7109_v45 }
 0x4d1   : > { %v6075_v13 = vpop.f32.mrf.mxu1 }
 0x4d2   : > { %v6076_v53 = vadd.f32 %v6075_v13, %v12542_v25  ;;  %v5760_v25 = vsel %vm11285_vm10, %v12556_v46, 0.0  ;;  %vm13732_vm10 = vmmov %vm13677_vm0 }
 0x4d3   : > { %6960 = vmatmul.bf16.gmra.mxu0 %v6826_v31  ;;  %v6251_v10 = vpop.f32.mrf.mxu2 }
 0x4d4   : > { %v6315_v29 = vadd.f32 %v6251_v10, %v6066_v14 }
 0x4d5   : > { %6298 = vmatmul.bf16.gmra.mxu2 %v12517_v58  ;;  %v6069_v58 = vadd.f32 %v6068_v26, %v12515_v7  ;;  %v6520_v7 = vpack.c.b16 %v6503_v19, %v6503_v19  ;;  %v6071_v26 = vadd.f32 %v6070_v35, %v12530_v2  ;;  %v5758_v19 = vsel %vm11267_vm8, %v12545_v20, 0.0  ;;  %vm13730_vm8 = vmmov %vm13677_vm0 }
 0x4d6   : > { %v12705_v60 = vadd.f32 %v6315_v29, %v12521_v49  ;;  %v5756_v49 = vsel %vm11249_vm7, %v12532_v0, 0.0  ;;  %v6647_v0 = vor.u32 %v6645_v48, %v6643_v50  ;;  %vm13726_vm7 = vmmov %vm13677_vm0 }
 0x4d7   : > { %v6649_v29 = vshll.u32 %v6520_v7, 16  ;;  %v7119_v7 = vshrl.u32 %v9357_v3, 16 }
 0x4d9   : > { %v6078_v41 = vpop.f32.mrf.mxu1  ;;  %v6651_v42 = vrot.slane %v6649_v29, 1 }
 0x4db   : > { %v6254_v36 = vpop.f32.mrf.mxu2  ;;  %v6652_v2 = vsel %vm13726_vm7, %v6647_v0, %v6651_v42  ;;  %v9359_v0 = vld [vmem:[#allocation3 + $0x38] sm:$0xff]  ;;  %vm13771_vm7 = vmmov %vm13716_vm2 }
 0x4dc   : > { %v6316_v18 = vadd.f32 %v6254_v36, %v6069_v58  ;;  %7303 = vmatmul.bf16.vlgmr.msra.gmra.mxu1 %v7110_v39  ;;  %v7111_v58 = vshrl.u32 %v9356_v30, 16  ;;  %v6079_v39 = vadd.f32 %v6078_v41, %v12549_v23 }
 0x4dd   : > { %6795 = vmatmul.bf16.gmra.mxu3 %v6644_v54 }
 0x4de   : > { %v12713_v31 = vadd.f32 %v6316_v18, %v5756_v49  ;;  %v7113_v35 = vor.u32 %v7111_v58, %v7109_v45  ;;  %v7123_v45 = vshll.u32 %v9358_v5, 16 }
 0x4e0   : > { %v7125_v20 = vrot.slane %v7123_v45, 1 }
 0x4e1   : > { %v6080_v10 = vpop.f32.mrf.mxu1 }
 0x4e3   : > { %v6256_v14 = vpop.f32.mrf.mxu2 }
 0x4e4   : > { %v6317_v40 = vadd.f32 %v6256_v14, %v6071_v26 }
 0x4e6   : > { %v12717_v15 = vadd.f32 %v6317_v40, %v12538_v34  ;;  %v7118_v34 = vsel %vm13728_vm13, %v7113_v35, %v7117_v55  ;;  %v7121_v40 = vor.u32 %v7119_v7, %v7117_v55  ;;  %v7127_v55 = vshrl.u32 %v9358_v5, 16  ;;  %v13734_v5 = vld [vmem:[#allocation32_spill] sm:$0xff] }
 0x4e8   : > { %v7126_v13 = vsel %vm13730_vm8, %v7121_v40, %v7125_v20  ;;  %v7129_v35 = vor.u32 %v7127_v55, %v7125_v20  ;;  %v7135_v20 = vshrl.u32 %v9359_v0, 16  ;;  %vm8192_vm8 = vcmask 64512  }
 0x4e9   : > { %v6083_v54 = vpop.f32.mrf.mxu1 }
 0x4ea   : > { %v6084_v58 = vadd.f32 %v6083_v54, %v12559_v61 }
 0x4eb   : > { %v6259_v36 = vpop.f32.mrf.mxu2 }
 0x4ec   : > { %v6318_v63 = vadd.f32 %v6259_v36, %v6074_v6  ;;  %7308 = vmatmul.bf16.gmra.mxu1 %v7118_v34  ;;  %v7131_v6 = vshll.u32 %v9359_v0, 16 }
 0x4ed   : > { %6800 = vmatmul.bf16.gmra.mxu3 %v6652_v2 }
 0x4ee   : > { %v12725_v24 = vadd.f32 %v6318_v63, %v5758_v19  ;;  %v7133_v36 = vrot.slane %v7131_v6, 1 }
 0x4f1   : > { %v6085_v50 = vpop.f32.mrf.mxu1 }
 0x4f3   : > { %v6261_v30 = vpop.f32.mrf.mxu2 }
 0x4f4   : > { %v6319_v1 = vadd.f32 %v6261_v30, %v6076_v53  ;;  %v9360_v53 = vld [vmem:[#allocation3 + $0x40] sm:$0xff] }
 0x4f5   : > { %v7139_v45 = vshll.u32 %v9360_v53, 16 }
 0x4f6   : > { %v12729_v49 = vadd.f32 %v6319_v1, %v12551_v51  ;;  %v6081_v51 = vadd.f32 %v6080_v10, %v12554_v33  ;;  %v5762_v33 = vsel %vm11302_vm11, %v12565_v37, 0.0  ;;  %v7134_v10 = vsel %vm13732_vm10, %v7129_v35, %v7133_v36  ;;  %vm13738_vm11 = vmmov %vm13677_vm0 }
 0x4f9   : > { %v6088_v14 = vpop.f32.mrf.mxu1 }
 0x4fb   : > { %v6264_v26 = vpop.f32.mrf.mxu2 }
 0x4fc   : > { %v6320_v29 = vadd.f32 %v6264_v26, %v6079_v39  ;;  %7313 = vmatmul.bf16.gmra.mxu1 %v7126_v13  ;;  %v13735_v39 = vld [vmem:[#allocation31_spill] sm:$0xff]  ;;  %v7141_v26 = vrot.slane %v7139_v45, 1  ;;  %v13743_v45 = vld [vmem:[#allocation22_spill] sm:$0xff] }
 0x4fd   : > { %v6089_v7 = vadd.f32 %v6088_v14, %v13735_v39 }
 0x4fe   : > { %v12736_v17 = vadd.f32 %v6320_v29, %v5760_v25  ;;  %v7137_v29 = vor.u32 %v7135_v20, %v7133_v36  ;;  %v13736_v25 = vld [vmem:[#allocation35_spill] sm:$0xff]  ;;  %v13746_v20 = vld [vmem:[#allocation50_spill] sm:$0xff] }
 0x501   : > { %v6090_v23 = vpop.f32.mrf.mxu1 }
 0x503   : > { %v6266_v42 = vpop.f32.mrf.mxu2 }
 0x504   : > { %v6321_v41 = vadd.f32 %v6266_v42, %v6081_v51  ;;  %v7142_v51 = vsel %vm13738_vm11, %v7137_v29, %v7141_v26  ;;  %v9362_v29 = vld [vmem:[#allocation3 + $0x50] sm:$0xff] }
 0x506   : > { %v12740_v3 = vadd.f32 %v6321_v41, %v12561_v38  ;;  %v13733_v38 = vld [vmem:[#allocation29_spill] sm:$0xff]  ;;  %v13739_v41 = vld [vmem:[#allocation34_spill] sm:$0xff] }
 0x507   : > { %v6086_v34 = vadd.f32 %v6085_v50, %v13733_v38  ;;  %v5764_v50 = vsel %vm11317_vm12, %v13736_v25, 0.0  ;;  %v6091_v6 = vadd.f32 %v6090_v23, %v13739_v41  ;;  %vm13744_vm12 = vnez %v13743_v45  ;;  %v13747_v25 = vld [vmem:[#allocation53_spill] sm:$0xff] }
 0x509   : > { %v6093_v2 = vpop.f32.mrf.mxu1 }
 0x50b   : > { %v6269_v46 = vpop.f32.mrf.mxu2 }
 0x50c   : > { %v6322_v63 = vadd.f32 %v6269_v46, %v6084_v58  ;;  %7318 = vmatmul.bf16.gmra.mxu1 %v7134_v10  ;;  %v9361_v58 = vld [vmem:[#allocation3 + $0x48] sm:$0xff]  ;;  %v13740_v46 = vld [vmem:[#allocation49_spill] sm:$0xff] }
 0x50d   : > { %v7147_v36 = vshll.u32 %v9361_v58, 16  ;;  %v7151_v41 = vshrl.u32 %v9361_v58, 16 }
 0x50e   : > { %v12747_v19 = vadd.f32 %v6322_v63, %v5762_v33  ;;  %v13741_v63 = vld [vmem:[#allocation48_spill] sm:$0xff]  ;;  %v7143_v33 = vshrl.u32 %v9360_v53, 16 }
 0x50f   : > { %v6094_v18 = vadd.f32 %v6093_v2, %v13741_v63  ;;  %v7149_v10 = vrot.slane %v7147_v36, 1  ;;  %v13749_v63 = vld [vmem:[#allocation55_spill] sm:$0xff] }
 0x511   : > { %v6095_v61 = vpop.f32.mrf.mxu1 }
 0x513   : > { %v6271_v30 = vpop.f32.mrf.mxu2 }
 0x514   : > { %v6323_v54 = vadd.f32 %v6271_v30, %v6086_v34  ;;  %v7145_v30 = vor.u32 %v7143_v33, %v7141_v26  ;;  %v7155_v26 = vshll.u32 %v9362_v29, 16 }
 0x516   : > { %v12751_v1 = vadd.f32 %v6323_v54, %v13734_v5  ;;  %v13742_v5 = vld [vmem:[#allocation51_spill] sm:$0xff]  ;;  %v7150_v39 = vsel %vm13745_vm14, %v7145_v30, %v7149_v10  ;;  %v13753_v30 = vld [vmem:[#allocation54_spill] sm:$0xff]  ;;  %vm13778_vm14 = vmmov %vm13716_vm2 }
 0x517   : > { %v5766_v23 = vsel %vm13744_vm12, %v13742_v5, 0.0  ;;  %v9363_v5 = vld [vmem:[#allocation3 + $0x58] sm:$0xff] }
 0x519   : > { %v6098_v40 = vpop.f32.mrf.mxu1 }
 0x51b   : > { %v6274_v37 = vpop.f32.mrf.mxu2 }
 0x51c   : > { %v6324_v48 = vadd.f32 %v6274_v37, %v6089_v7  ;;  %7323 = vmatmul.bf16.gmra.mxu1 %v7142_v51  ;;  %v6096_v37 = vadd.f32 %v6095_v61, %v13746_v20  ;;  %v13755_v20 = vld [vmem:[#allocation56_spill] sm:$0xff] }
 0x51e   : > { %v12758_v42 = vadd.f32 %v6324_v48, %v5764_v50  ;;  %v13748_v50 = vld [vmem:[#allocation52_spill] sm:$0xff] }
 0x51f   : > { %v6099_v51 = vadd.f32 %v6098_v40, %v13748_v50 }
 0x521   : > { %v6100_v14 = vpop.f32.mrf.mxu1 }
 0x523   : > { %v6276_v55 = vpop.f32.mrf.mxu2 }
 0x524   : > { %v6325_v0 = vadd.f32 %v6276_v55, %v6091_v6  ;;  %v7157_v6 = vrot.slane %v7155_v26, 1 }
 0x526   : > { %v12762_v35 = vadd.f32 %v6325_v0, %v13740_v46  ;;  %v7153_v46 = vor.u32 %v7151_v41, %v7149_v10  ;;  %v7163_v10 = vshll.u32 %v9363_v5, 16  ;;  %v13756_v41 = vld [vmem:[#allocation59_spill] sm:$0xff] }
 0x528   : > { %v7158_v33 = vsel %vm13752_vm9, %v7153_v46, %v7157_v6 }
 0x529   : > { %v6103_v34 = vpop.f32.mrf.mxu1 }
 0x52b   : > { %v6279_v38 = vpop.f32.mrf.mxu2 }
 0x52c   : > { %v6326_v54 = vadd.f32 %v6279_v38, %v6094_v18  ;;  %7328 = vmatmul.bf16.gmra.mxu1 %v7150_v39  ;;  %v13750_v18 = vld [vmem:[#allocation24_spill] sm:$0xff] }
 0x52d   : > { %vm13751_vm0 = vnez %v13750_v18 }
 0x52e   : > { %v12769_v7 = vadd.f32 %v6326_v54, %v5766_v23  ;;  %v5768_v61 = vsel %vm13751_vm0, %v13749_v63, 0.0  ;;  %v6101_v54 = vadd.f32 %v6100_v14, %v13753_v30  ;;  %v13754_v23 = vld [vmem:[#allocation57_spill] sm:$0xff]  ;;  %v13757_v14 = vld [vmem:[#allocation27_spill] sm:$0xff]  ;;  %v13759_v63 = vld [vmem:[#allocation58_spill] sm:$0xff] }
 0x52f   : > { %vm13758_vm1 = vnez %v13757_v14  ;;  %v13760_v30 = vld [vmem:[#allocation61_spill] sm:$0xff]  ;;  %v13762_v14 = vld [vmem:[#allocation60_spill] sm:$0xff] }
 0x531   : > { %v6105_v2 = vpop.f32.mrf.mxu1 }
 0x532   : > { %v6106_v18 = vadd.f32 %v6105_v2, %v13759_v63 }
 0x533   : > { %v6281_v48 = vpop.f32.mrf.mxu2 }
 0x534   : > { %v6327_v53 = vadd.f32 %v6281_v48, %v6096_v37  ;;  %v6104_v37 = vadd.f32 %v6103_v34, %v13755_v20  ;;  %v7159_v48 = vshrl.u32 %v9362_v29, 16 }
 0x536   : > { %v12773_v13 = vadd.f32 %v6327_v53, %v13747_v25  ;;  %v7165_v53 = vrot.slane %v7163_v10, 1  ;;  %v7161_v50 = vor.u32 %v7159_v48, %v7157_v6 }
 0x538   : > { %v7166_v46 = vsel %vm13716_vm2, %v7161_v50, %v7165_v53 }
 0x539   : > { %v6108_v0 = vpop.f32.mrf.mxu1 }
 0x53b   : > { %v6284_v55 = vpop.f32.mrf.mxu2 }
 0x53c   : > { %v6328_v36 = vadd.f32 %v6284_v55, %v6099_v51  ;;  %7333 = vmatmul.bf16.gmra.mxu1 %v7158_v33  ;;  %v5770_v55 = vsel %vm13758_vm1, %v13756_v41, 0.0  ;;  %vm13781_vm1 = vmmov %vm13716_vm2 }
 0x53e   : > { %v12780_v38 = vadd.f32 %v6328_v36, %v5768_v61  ;;  %v9364_v61 = vld [vmem:[#allocation3 + $0x60] sm:$0xff] }
 0x53f   : > { %v7171_v6 = vshll.u32 %v9364_v61, 16  ;;  %v7175_v63 = vshrl.u32 %v9364_v61, 16 }
 0x541   : > { %v12783_v40 = vpop.f32.mrf.mxu1 }
 0x543   : > { %v6286_v45 = vpop.f32.mrf.mxu2 }
 0x544   : > { %v6329_v58 = vadd.f32 %v6286_v45, %v6101_v54  ;;  %v7167_v45 = vshrl.u32 %v9363_v5, 16 }
 0x546   : > { %v12786_v39 = vadd.f32 %v6329_v58, %v13754_v23  ;;  %v7173_v58 = vrot.slane %v7171_v6, 1  ;;  %v7169_v10 = vor.u32 %v7167_v45, %v7165_v53  ;;  %v9365_v53 = vld [vmem:[#allocation3 + $0x68] sm:$0xff]  ;;  %v13764_v6 = vld [vmem:[#allocation30_spill] sm:$0xff] }
 0x547   : > { %vm13765_vm4 = vnez %v13764_v6 }
 0x548   : > { %v7174_v2 = vsel %vm13761_vm3, %v7169_v10, %v7173_v58  ;;  %v7177_v10 = vor.u32 %v7175_v63, %v7173_v58 }
 0x549   : > { %v12789_v26 = vpop.f32.mrf.mxu1 }
 0x54b   : > { %v6289_v25 = vpop.f32.mrf.mxu2 }
 0x54c   : > { %v6330_v51 = vadd.f32 %v6289_v25, %v6104_v37  ;;  %7338 = vmatmul.bf16.gmra.mxu1 %v7166_v46  ;;  %v12807_v37 = vld [vmem:[%s13417_s5] ss:$0 sm:$0xff] }
 0x54d   : > { %v12814_v25 = vld [vmem:[%s13418_s6] ss:$0 sm:$0xff] }
 0x54e   : > { %v12795_v36 = vadd.f32 %v6330_v51, %v5770_v55  ;;  %v7179_v51 = vshll.u32 %v9365_v53, 16  ;;  %v6109_v55 = vadd.f32 %v6108_v0, %v13762_v14 }
 0x551   : > { %v12798_v29 = vpop.f32.mrf.mxu1 }
 0x553   : > { %v6291_v34 = vpop.f32.mrf.mxu2 }
 0x554   : > { %v6331_v33 = vadd.f32 %v6291_v34, %v6106_v18  ;;  %v7181_v18 = vrot.slane %v7179_v51, 1 }
 0x556   : > { %v12801_v54 = vadd.f32 %v6331_v33, %v13760_v30  ;;  %v13763_v30 = vld [vmem:[#allocation63_spill] sm:$0xff]  ;;  %v7182_v0 = vsel %vm13768_vm6, %v7177_v10, %v7181_v18 }
 0x557   : > { %v5772_v45 = vsel %vm13765_vm4, %v13763_v30, 0.0 }
 0x559   : > { %v7304_v23 = vpop.f32.mrf.mxu1 }
 0x55a   : > { %v7384_v20 = vadd.f32 %v7304_v23, %v12630_v57 }
 0x55c   : > { %v7448_v48 = vadd.f32 %v7384_v20, %v12628_v52  ;;  %7343 = vmatmul.bf16.gmra.mxu1 %v7174_v2  ;;  %v6294_v52 = vpop.f32.mrf.mxu2  ;;  %v13766_v2 = vld [vmem:[#allocation36_spill] sm:$0xff] }
 0x55d   : > { %v6332_v34 = vadd.f32 %v6294_v52, %v6109_v55  ;;  %vm13767_vm5 = vnez %v13766_v2 }
 0x55e   : > { %v7484_v5 = vmul.f32 %v12807_v37, %v7448_v48 }
 0x55f   : > { %v12826_v20 = vadd.f32 %v6332_v34, %v5772_v45  ;;  %v13769_v34 = vld [vmem:[#allocation62_spill] sm:$0xff]  ;;  %v7183_v45 = vshrl.u32 %v9365_v53, 16 }
 0x560   : > { %v12818_v57 = vadd.f32 %v12814_v25, %v7484_v5 }
 0x561   : > { %v7306_v33 = vpop.f32.mrf.mxu1 }
 0x562   : > { %v7648_v50 = vand.u32 2147483647, %v12818_v57  ;;  %v7385_v23 = vadd.f32 %v7306_v33, %v12637_v12  ;;  %vm7584_vm13 = vcmp.ne.f32.partialorder %v12818_v57, %v12818_v57 }
 0x564   : > { %v7680_v41 = vsub.f32 0.0, %v7648_v50  ;;  %v7417_v48 = vsel %vm13767_vm5, %v7385_v23, 0.0  ;;  %v6296_v6 = vpop.f32.mrf.mxu2  ;;  %vm13784_vm5 = vmmov %vm13781_vm1 }
 0x565   : > { %v7449_v61 = vadd.f32 %v7417_v48, %v12635_v32  ;;  %v6111_v32 = vadd.f32 %v12783_v40, %v13769_v34  ;;  %v13770_v40 = vld [vmem:[#allocation65_spill] sm:$0xff]  ;;  %v12855_v34 = vld [vmem:[#allocation3 + $0x78] sm:$0xff] }
 0x566   : > { %v7712_v46 = vmul.f32 1.442695, %v7680_v41  ;;  %v9366_v41 = vld [vmem:[#allocation3 + $0x70] sm:$0xff] }
 0x567   : > { %v7485_v50 = vmul.f32 %v12807_v37, %v7449_v61  ;;  %v7187_v58 = vshll.u32 %v9366_v41, 16  ;;  %v6333_v48 = vadd.f32 %v6296_v6, %v6111_v32  ;;  %v7552_v61 = vmax.f32 %v12818_v57, 0.0 }
 0x568   : > { %10506 = vpow2.f32 %v7712_v46 }
 0x569   : > { %v12834_v55 = vadd.f32 %v12814_v25, %v7485_v50  ;;  %v7189_v23 = vrot.slane %v7187_v58, 1 }
 0x56b   : > { %v7649_v12 = vand.u32 2147483647, %v12834_v55  ;;  %vm7585_vm0 = vcmp.ne.f32.partialorder %v12834_v55, %v12834_v55 }
 0x56c   : > { %7348 = vmatmul.bf16.gmra.mxu1 %v7182_v0  ;;  %v7309_v0 = vpop.f32.mrf.mxu1 }
 0x56d   : > { %v7681_v52 = vsub.f32 0.0, %v7649_v12  ;;  %v7386_v50 = vadd.f32 %v7309_v0, %v12645_v27  ;;  %v12843_v12 = vadd.f32 %v6333_v48, %v13770_v40  ;;  %v7191_v48 = vshrl.u32 %v9366_v41, 16  ;;  %v13772_v0 = vld [vmem:[#allocation64_spill] sm:$0xff] }
 0x56e   : > { %v10507_v5 = vpop.eup %10506  ;;  %v7553_v41 = vmax.f32 %v12834_v55, 0.0 }
 0x56f   : > { %v7776_v51 = vadd.f32 1.0, %v10507_v5  ;;  %v7779_v14 = vmul.f32 -0.5, %v10507_v5  ;;  %v7782_v63 = vand.u32 2147483647, %v10507_v5  ;;  %v7714_v33 = vmul.f32 1.442695, %v7681_v52 }
 0x570   : > { %v7450_v53 = vadd.f32 %v7386_v50, %v12643_v44  ;;  %v7193_v40 = vor.u32 %v7191_v48, %v7189_v23 }
 0x571   : > { %10508 = vlog2.f32 %v7776_v51  ;;  %v7780_v46 = vadd.f32 1.0, %v7779_v14  ;;  %vm7783_vm15 = vcmp.lt.f32.partialorder %v7782_v63, 0.0004427343  ;;  %v7185_v51 = vor.u32 %v7183_v45, %v7181_v18 }
 0x572   : > { %10510 = vpow2.f32 %v7714_v33  ;;  %v7195_v33 = vshll.u32 %v12855_v34, 16 }
 0x573   : > { %v7781_v2 = vmul.f32 %v10507_v5, %v7780_v46  ;;  %v7190_v5 = vsel %vm13771_vm7, %v7185_v51, %v7189_v23  ;;  %v7486_v46 = vmul.f32 %v12807_v37, %v7450_v53  ;;  %v13776_v23 = vld [vmem:[#allocation37_spill] sm:$0xff]  ;;  %vm13785_vm7 = vmmov %vm13781_vm1 }
 0x574   : > { %vm13777_vm12 = vnez %v13776_v23 }
 0x575   : > { %v12853_v63 = vadd.f32 %v12814_v25, %v7486_v46  ;;  %v7311_v46 = vpop.f32.mrf.mxu1 }
 0x577   : > { %v10509_v30 = vpop.eup %10508  ;;  %v7650_v32 = vand.u32 2147483647, %v12853_v63  ;;  %vm7586_vm2 = vcmp.ne.f32.partialorder %v12853_v63, %v12853_v63 }
 0x578   : > { %v7778_v10 = vmul.f32 0.6931472, %v10509_v30  ;;  %v10511_v27 = vpop.eup %10510 }
 0x579   : > { %v7785_v18 = vadd.f32 1.0, %v10511_v27  ;;  %v7788_v44 = vmul.f32 -0.5, %v10511_v27  ;;  %v7682_v45 = vsub.f32 0.0, %v7650_v32 }
 0x57a   : > { %v7784_v14 = vsel %vm7783_vm15, %v7781_v2, %v7778_v10  ;;  %v7791_v2 = vand.u32 2147483647, %v10511_v27 }
 0x57b   : > { %v8064_v52 = vadd.f32 %v7784_v14, %v7552_v61  ;;  %v7789_v6 = vadd.f32 1.0, %v7788_v44  ;;  %v6114_v61 = vadd.f32 %v12789_v26, %v13772_v0  ;;  %v7716_v50 = vmul.f32 1.442695, %v7682_v45  ;;  %v6299_v14 = vpop.f32.mrf.mxu2  ;;  %v13774_v44 = vld [vmem:[#allocation33_spill] sm:$0xff]  ;;  %v12884_v0 = vld [vmem:[#allocation3 + $0x80] sm:$0xff] }
 0x57c   : > { %7353 = vmatmul.bf16.gmra.mxu1 %v7190_v5  ;;  %vm13775_vm10 = vnez %v13774_v44  ;;  %vm7792_vm11 = vcmp.lt.f32.partialorder %v7791_v2, 0.0004427343  ;;  %v7387_v26 = vadd.f32 %v7311_v46, %v12652_v16  ;;  %v13779_v46 = vld [vmem:[#allocation66_spill] sm:$0xff] }
 0x57d   : > { %v8096_v58 = vsel %vm7584_vm13, %v12818_v57, %v8064_v52  ;;  %v7197_v52 = vrot.slane %v7195_v33, 1  ;;  %v7790_v5 = vmul.f32 %v10511_v27, %v7789_v6 }
 0x57e   : > { %10512 = vtanh.f32 %v8096_v58  ;;  %v6334_v58 = vadd.f32 %v6299_v14, %v6114_v61  ;;  %v7419_v33 = vsel %vm13777_vm12, %v7387_v26, 0.0  ;;  %v7199_v26 = vshrl.u32 %v12855_v34, 16 }
 0x57f   : > { %10514 = vlog2.f32 %v7785_v18  ;;  %v13773_v18 = vld [vmem:[#allocation67_spill] sm:$0xff]  ;;  %v7198_v27 = vsel %vm13778_vm14, %v7193_v40, %v7197_v52  ;;  %v7451_v6 = vadd.f32 %v7419_v33, %v12650_v21  ;;  %v7203_v21 = vshll.u32 %v12884_v0, 16 }
 0x580   : > { %10516 = vpow2.f32 %v7716_v50 }
 0x581   : > { %v7487_v16 = vmul.f32 %v12807_v37, %v7451_v6  ;;  %v7554_v6 = vmax.f32 %v12853_v63, 0.0 }
 0x583   : > { %v12887_v50 = vadd.f32 %v12814_v25, %v7487_v16  ;;  %v13780_v16 = vld [vmem:[#allocation68_spill] sm:$0xff] }
 0x584   : > { %v10513_v30 = vpop.eup %10512 }
 0x585   : > { %v8160_v10 = vmul.f32 %v10513_v30, %v12818_v57  ;;  %v10515_v51 = vpop.eup %10514  ;;  %v5774_v57 = vsel %vm13775_vm10, %v13773_v18, 0.0  ;;  %v6116_v18 = vadd.f32 %v12798_v29, %v13779_v46  ;;  %vm7587_vm6 = vcmp.ne.f32.partialorder %v12887_v50, %v12887_v50 }
 0x586   : > { %v7787_v53 = vmul.f32 0.6931472, %v10515_v51  ;;  %v12874_v30 = vadd.f32 %v6334_v58, %v5774_v57  ;;  %v10517_v2 = vpop.eup %10516  ;;  %v7651_v51 = vand.u32 2147483647, %v12887_v50 }
 0x587   : > { %8193 = vst.msk [vmem:[%s12862_s10] sm:$0xff] %vm8192_vm8, %v8160_v10  ;;  %v7794_v48 = vadd.f32 1.0, %v10517_v2  ;;  %v7797_v61 = vmul.f32 -0.5, %v10517_v2  ;;  %v7800_v58 = vand.u32 2147483647, %v10517_v2 }
 0x588   : > { %v7793_v32 = vsel %vm7792_vm11, %v7790_v5, %v7787_v53  ;;  %v7683_v53 = vsub.f32 0.0, %v7651_v51 }
 0x589   : > { %v8065_v45 = vadd.f32 %v7793_v32, %v7553_v41  ;;  %v7798_v40 = vadd.f32 1.0, %v7797_v61  ;;  %v6301_v41 = vpop.f32.mrf.mxu2  ;;  %v7205_v32 = vrot.slane %v7203_v21, 1  ;;  %vm7801_vm9 = vcmp.lt.f32.partialorder %v7800_v58, 0.0004427343 }
 0x58a   : > { %v7718_v44 = vmul.f32 1.442695, %v7683_v53  ;;  %v6335_v33 = vadd.f32 %v6301_v41, %v6116_v18 }
 0x58b   : > { %v8097_v10 = vsel %vm7585_vm0, %v12834_v55, %v8065_v45  ;;  %v7799_v23 = vmul.f32 %v10517_v2, %v7798_v40  ;;  %v9369_v40 = vld [vmem:[#allocation3 + $0x88] sm:$0xff] }
 0x58c   : > { %7358 = vmatmul.bf16.gmra.mxu1 %v7198_v27  ;;  %10518 = vtanh.f32 %v8097_v10  ;;  %v7314_v27 = vpop.f32.mrf.mxu1  ;;  %v7201_v10 = vor.u32 %v7199_v26, %v7197_v52 }
 0x58d   : > { %10520 = vlog2.f32 %v7794_v48  ;;  %v12900_v48 = vadd.f32 %v6335_v33, %v13780_v16 }
 0x58e   : > { %10522 = vpow2.f32 %v7718_v44  ;;  %v7206_v34 = vsel %vm13781_vm1, %v7201_v10, %v7205_v32  ;;  %v7555_v10 = vmax.f32 %v12887_v50, 0.0 }
 0x592   : > { %v10519_v14 = vpop.eup %10518 }
 0x593   : > { %v8161_v5 = vmul.f32 %v10519_v14, %v12834_v55  ;;  %v10521_v57 = vpop.eup %10520  ;;  %v7388_v55 = vadd.f32 %v7314_v27, %v12660_v22 }
 0x594   : > { %v7796_v45 = vmul.f32 0.6931472, %v10521_v57  ;;  %v10523_v14 = vpop.eup %10522 }
 0x595   : > { %8194 = vst.msk [vmem:[%s12862_s10 + $0x8] sm:$0xff] %vm8192_vm8, %v8161_v5  ;;  %v7452_v51 = vadd.f32 %v7388_v55, %v12658_v8  ;;  %v7803_v22 = vadd.f32 1.0, %v10523_v14  ;;  %v7806_v53 = vmul.f32 -0.5, %v10523_v14  ;;  %v7211_v5 = vshll.u32 %v9369_v40, 16 }
 0x596   : > { %v7802_v29 = vsel %vm7801_vm9, %v7799_v23, %v7796_v45  ;;  %v7809_v57 = vand.u32 2147483647, %v10523_v14  ;;  %v7316_v45 = vpop.f32.mrf.mxu1  ;;  %v7207_v23 = vshrl.u32 %v12884_v0, 16 }
 0x597   : > { %v8066_v61 = vadd.f32 %v7802_v29, %v7554_v6  ;;  %v7488_v21 = vmul.f32 %v12807_v37, %v7452_v51  ;;  %v7807_v46 = vadd.f32 1.0, %v7806_v53  ;;  %v7213_v33 = vrot.slane %v7211_v5, 1 }
 0x598   : > { %v7389_v55 = vadd.f32 %v7316_v45, %v12667_v28  ;;  %vm7810_vm3 = vcmp.lt.f32.partialorder %v7809_v57, 0.0004427343  ;;  %v7209_v29 = vor.u32 %v7207_v23, %v7205_v32  ;;  %v7215_v57 = vshrl.u32 %v9369_v40, 16 }
 0x599   : > { %v8098_v2 = vsel %vm7586_vm2, %v12853_v63, %v8066_v61  ;;  %v12909_v52 = vadd.f32 %v12814_v25, %v7488_v21  ;;  %v7808_v6 = vmul.f32 %v10523_v14, %v7807_v46 }
 0x59a   : > { %10524 = vtanh.f32 %v8098_v2  ;;  %v7214_v2 = vsel %vm13784_vm5, %v7209_v29, %v7213_v33  ;;  %v7217_v23 = vor.u32 %v7215_v57, %v7213_v33 }
 0x59b   : > { %10526 = vlog2.f32 %v7803_v22  ;;  %v7652_v8 = vand.u32 2147483647, %v12909_v52  ;;  %v12929_v22 = vld [vmem:[#allocation3 + $0x90] sm:$0xff]  ;;  %v7556_v29 = vmax.f32 %v12909_v52, 0.0  ;;  %vm7588_vm13 = vcmp.ne.f32.partialorder %v12909_v52, %v12909_v52 }
 0x59c   : > { %7363 = vmatmul.bf16.gmra.mxu1 %v7206_v34 }
 0x59d   : > { %v7684_v18 = vsub.f32 0.0, %v7652_v8  ;;  %v7219_v8 = vshll.u32 %v12929_v22, 16 }
 0x59e   : > { %v7319_v45 = vpop.f32.mrf.mxu1 }
 0x59f   : > { %v7720_v41 = vmul.f32 1.442695, %v7684_v18 }
 0x5a0   : > { %v10525_v58 = vpop.eup %10524 }
 0x5a1   : > { %v8162_v44 = vmul.f32 %v10525_v58, %v12853_v63  ;;  %v10527_v26 = vpop.eup %10526  ;;  %10528 = vpow2.f32 %v7720_v41  ;;  %v13782_v63 = vld [vmem:[#allocation38_spill] sm:$0xff] }
 0x5a2   : > { %v7805_v27 = vmul.f32 0.6931472, %v10527_v26  ;;  %vm13783_vm4 = vnez %v13782_v63 }
 0x5a3   : > { %8195 = vst.msk [vmem:[%s12862_s10 + $0x10] sm:$0xff] %vm8192_vm8, %v8162_v44  ;;  %v7421_v61 = vsel %vm13783_vm4, %v7389_v55, 0.0 }
 0x5a4   : > { %v7811_v16 = vsel %vm7810_vm3, %v7808_v6, %v7805_v27  ;;  %v7453_v34 = vadd.f32 %v7421_v61, %v12665_v62  ;;  %v12936_v27 = vrot.slane %v7219_v8, 1 }
 0x5a5   : > { %v8067_v51 = vadd.f32 %v7811_v16, %v7555_v10  ;;  %v7390_v10 = vadd.f32 %v7319_v45, %v12675_v43 }
 0x5a6   : > { %v7489_v28 = vmul.f32 %v12807_v37, %v7453_v34  ;;  %v7222_v63 = vsel %vm13785_vm7, %v7217_v23, %v12936_v27  ;;  %v7321_v8 = vpop.f32.mrf.mxu1 }
 0x5a7   : > { %v8099_v0 = vsel %vm7587_vm6, %v12887_v50, %v8067_v51  ;;  %v10529_v21 = vpop.eup %10528 }
 0x5a8   : > { %10530 = vtanh.f32 %v8099_v0  ;;  %v7812_v32 = vadd.f32 1.0, %v10529_v21  ;;  %v12927_v14 = vadd.f32 %v12814_v25, %v7489_v28  ;;  %v7815_v62 = vmul.f32 -0.5, %v10529_v21 }
 0x5a9   : > { %v7818_v44 = vand.u32 2147483647, %v10529_v21 }
 0x5aa   : > { %10532 = vlog2.f32 %v7812_v32  ;;  %v7653_v53 = vand.u32 2147483647, %v12927_v14  ;;  %v7816_v58 = vadd.f32 1.0, %v7815_v62  ;;  %v7557_v45 = vmax.f32 %v12927_v14, 0.0 }
 0x5ab   : > { %vm7819_vm15 = vcmp.lt.f32.partialorder %v7818_v44, 0.0004427343  ;;  %vm7589_vm12 = vcmp.ne.f32.partialorder %v12927_v14, %v12927_v14 }
 0x5ac   : > { %7368 = vmatmul.bf16.gmra.mxu1 %v7214_v2  ;;  %v7685_v46 = vsub.f32 0.0, %v7653_v53  ;;  %v7817_v55 = vmul.f32 %v10529_v21, %v7816_v58  ;;  %v7391_v58 = vadd.f32 %v7321_v8, %v12682_v4 }
 0x5ae   : > { %v10531_v5 = vpop.eup %10530  ;;  %v7722_v41 = vmul.f32 1.442695, %v7685_v46 }
 0x5af   : > { %v8163_v18 = vmul.f32 %v10531_v5, %v12887_v50  ;;  %v7454_v50 = vadd.f32 %v7390_v10, %v12673_v59  ;;  %v6746_v5 = vpop.f32.mrf.mxu3 }
 0x5b0   : > { %v10533_v26 = vpop.eup %10532  ;;  %10534 = vpow2.f32 %v7722_v41  ;;  %v13786_v41 = vld [vmem:[#allocation39_spill] sm:$0xff] }
 0x5b1   : > { %8196 = vst.msk [vmem:[%s12862_s10 + $0x18] sm:$0xff] %vm8192_vm8, %v8163_v18  ;;  %v7814_v6 = vmul.f32 0.6931472, %v10533_v26  ;;  %v7490_v33 = vmul.f32 %v12807_v37, %v7454_v50  ;;  %v6906_v18 = vpop.f32.mrf.mxu0  ;;  %vm13787_vm10 = vnez %v13786_v41 }
 0x5b2   : > { %v7423_v26 = vsel %vm13787_vm10, %v7391_v58, 0.0 }
 0x5b3   : > { %v7820_v16 = vsel %vm7819_vm15, %v7817_v55, %v7814_v6  ;;  %v12948_v43 = vadd.f32 %v12814_v25, %v7490_v33 }
 0x5b4   : > { %v8068_v40 = vadd.f32 %v7820_v16, %v7556_v29 }
 0x5b5   : > { %v7654_v2 = vand.u32 2147483647, %v12948_v43  ;;  %v7558_v8 = vmax.f32 %v12948_v43, 0.0  ;;  %vm7590_vm0 = vcmp.ne.f32.partialorder %v12948_v43, %v12948_v43 }
 0x5b6   : > { %v8100_v61 = vsel %vm7588_vm13, %v12909_v52, %v8068_v40  ;;  %v10535_v51 = vpop.eup %10534 }
 0x5b7   : > { %10536 = vtanh.f32 %v8100_v61  ;;  %v7821_v34 = vadd.f32 1.0, %v10535_v51  ;;  %v7824_v59 = vmul.f32 -0.5, %v10535_v51  ;;  %v7686_v0 = vsub.f32 0.0, %v7654_v2  ;;  %v6748_v40 = vpop.f32.mrf.mxu3 }
 0x5b8   : > { %v7827_v53 = vand.u32 2147483647, %v10535_v51 }
 0x5b9   : > { %10538 = vlog2.f32 %v7821_v34  ;;  %v7825_v21 = vadd.f32 1.0, %v7824_v59  ;;  %v7724_v32 = vmul.f32 1.442695, %v7686_v0  ;;  %v6907_v59 = vadd.f32 %v6906_v18, %v6746_v5 }
 0x5ba   : > { %vm7828_vm11 = vcmp.lt.f32.partialorder %v7827_v53, 0.0004427343 }
 0x5bb   : > { %10540 = vpow2.f32 %v7724_v32  ;;  %v7826_v57 = vmul.f32 %v10535_v51, %v7825_v21  ;;  %v7324_v21 = vpop.f32.mrf.mxu1 }
 0x5bc   : > { %7373 = vmatmul.bf16.gmra.mxu1 %v7222_v63  ;;  %v6908_v63 = vpop.f32.mrf.mxu0  ;;  %v7392_v53 = vadd.f32 %v7324_v21, %v6907_v59 }
 0x5bd   : > { %v10537_v28 = vpop.eup %10536 }
 0x5be   : > { %v8164_v62 = vmul.f32 %v10537_v28, %v12909_v52  ;;  %v7455_v52 = vadd.f32 %v7423_v26, %v12680_v56 }
 0x5bf   : > { %v10539_v46 = vpop.eup %10538 }
 0x5c0   : > { %8197 = vst.msk [vmem:[%s12862_s10 + $0x20] sm:$0xff] %vm8192_vm8, %v8164_v62  ;;  %v7823_v44 = vmul.f32 0.6931472, %v10539_v46  ;;  %v7491_v55 = vmul.f32 %v12807_v37, %v7455_v52  ;;  %v7456_v46 = vadd.f32 %v7392_v53, %v12688_v9 }
 0x5c1   : > { %v10541_v10 = vpop.eup %10540 }
 0x5c2   : > { %v7829_v23 = vsel %vm7828_vm11, %v7826_v57, %v7823_v44  ;;  %v7830_v29 = vadd.f32 1.0, %v10541_v10  ;;  %v7833_v16 = vmul.f32 -0.5, %v10541_v10  ;;  %v12964_v50 = vadd.f32 %v12814_v25, %v7491_v55  ;;  %v6751_v57 = vpop.f32.mrf.mxu3 }
 0x5c3   : > { %v8069_v6 = vadd.f32 %v7829_v23, %v7557_v45  ;;  %v7836_v51 = vand.u32 2147483647, %v10541_v10  ;;  %v6909_v55 = vadd.f32 %v6908_v63, %v6748_v40 }
 0x5c4   : > { %v7655_v56 = vand.u32 2147483647, %v12964_v50  ;;  %v7834_v33 = vadd.f32 1.0, %v7833_v16  ;;  %v6911_v41 = vpop.f32.mrf.mxu0  ;;  %v7559_v40 = vmax.f32 %v12964_v50, 0.0  ;;  %vm7591_vm2 = vcmp.ne.f32.partialorder %v12964_v50, %v12964_v50 }
 0x5c5   : > { %v8101_v4 = vsel %vm7589_vm12, %v12927_v14, %v8069_v6  ;;  %vm7837_vm14 = vcmp.lt.f32.partialorder %v7836_v51, 0.0004427343 }
 0x5c6   : > { %10542 = vtanh.f32 %v8101_v4  ;;  %v7687_v61 = vsub.f32 0.0, %v7655_v56  ;;  %v7835_v62 = vmul.f32 %v10541_v10, %v7834_v33  ;;  %v7326_v56 = vpop.f32.mrf.mxu1 }
 0x5c7   : > { %10544 = vlog2.f32 %v7830_v29 }
 0x5c8   : > { %v7726_v2 = vmul.f32 1.442695, %v7687_v61  ;;  %v7393_v61 = vadd.f32 %v7326_v56, %v6909_v55 }
 0x5ca   : > { %10546 = vpow2.f32 %v7726_v2  ;;  %v6753_v33 = vpop.f32.mrf.mxu3 }
 0x5cc   : > { %v10543_v34 = vpop.eup %10542 }
 0x5cd   : > { %v10545_v0 = vpop.eup %10544  ;;  %v8165_v28 = vmul.f32 %v10543_v34, %v12927_v14  ;;  %v7492_v14 = vmul.f32 %v12807_v37, %v7456_v46  ;;  %v6913_v34 = vpop.f32.mrf.mxu0 }
 0x5ce   : > { %v7832_v32 = vmul.f32 0.6931472, %v10545_v0  ;;  %v13788_v0 = vld [vmem:[#allocation40_spill] sm:$0xff] }
 0x5cf   : > { %8198 = vst.msk [vmem:[%s12862_s10 + $0x28] sm:$0xff] %vm8192_vm8, %v8165_v28  ;;  %v12977_v26 = vadd.f32 %v12814_v25, %v7492_v14  ;;  %vm13789_vm9 = vnez %v13788_v0 }
 0x5d0   : > { %v7838_v58 = vsel %vm7837_vm14, %v7835_v62, %v7832_v32  ;;  %v10547_v18 = vpop.eup %10546  ;;  %v7425_v28 = vsel %vm13789_vm9, %v7393_v61, 0.0  ;;  %vm13794_vm14 = vsmask.f32 7424 }
 0x5d1   : > { %v8070_v44 = vadd.f32 %v7838_v58, %v7558_v8  ;;  %v7839_v45 = vadd.f32 1.0, %v10547_v18  ;;  %v7842_v52 = vmul.f32 -0.5, %v10547_v18  ;;  %v7656_v9 = vand.u32 2147483647, %v12977_v26 }
 0x5d2   : > { %v7845_v16 = vand.u32 2147483647, %v10547_v18  ;;  %v7457_v63 = vadd.f32 %v7425_v28, %v12693_v47  ;;  %v7560_v56 = vmax.f32 %v12977_v26, 0.0  ;;  %vm7592_vm4 = vcmp.ne.f32.partialorder %v12977_v26, %v12977_v26 }
 0x5d3   : > { %v8102_v5 = vsel %vm7590_vm0, %v12948_v43, %v8070_v44  ;;  %v7688_v23 = vsub.f32 0.0, %v7656_v9  ;;  %v7843_v10 = vadd.f32 1.0, %v7842_v52  ;;  %v12994_v44 = vpop.f32.mrf.mxu3  ;;  %v6912_v9 = vadd.f32 %v6911_v41, %v6751_v57 }
 0x5d4   : > { %10548 = vtanh.f32 %v8102_v5  ;;  %vm7846_vm1 = vcmp.lt.f32.partialorder %v7845_v16, 0.0004427343  ;;  %v7493_v32 = vmul.f32 %v12807_v37, %v7457_v63 }
 0x5d5   : > { %10550 = vlog2.f32 %v7839_v45  ;;  %v7728_v4 = vmul.f32 1.442695, %v7688_v23  ;;  %v7844_v2 = vmul.f32 %v10547_v18, %v7843_v10  ;;  %v12997_v14 = vpop.f32.mrf.mxu0  ;;  %v7329_v10 = vpop.f32.mrf.mxu1 }
 0x5d6   : > { %v12992_v46 = vadd.f32 %v12814_v25, %v7493_v32  ;;  %v7394_v16 = vadd.f32 %v7329_v10, %v6912_v9  ;;  %v6914_v32 = vadd.f32 %v6913_v34, %v6753_v33 }
 0x5d7   : > { %10552 = vpow2.f32 %v7728_v4 }
 0x5d8   : > { %v7657_v47 = vand.u32 2147483647, %v12992_v46  ;;  %v7561_v34 = vmax.f32 %v12992_v46, 0.0  ;;  %vm7593_vm15 = vcmp.ne.f32.partialorder %v12992_v46, %v12992_v46 }
 0x5da   : > { %v10549_v6 = vpop.eup %10548  ;;  %v7689_v18 = vsub.f32 0.0, %v7657_v47 }
 0x5db   : > { %v8166_v29 = vmul.f32 %v10549_v6, %v12948_v43  ;;  %v10551_v51 = vpop.eup %10550 }
 0x5dc   : > { %v7841_v59 = vmul.f32 0.6931472, %v10551_v51  ;;  %v7730_v23 = vmul.f32 1.442695, %v7689_v18  ;;  %v7458_v51 = vadd.f32 %v7394_v16, %v12699_v11 }
 0x5dd   : > { %8199 = vst.msk [vmem:[%s12862_s10 + $0x30] sm:$0xff] %vm8192_vm8, %v8166_v29  ;;  %v10553_v62 = vpop.eup %10552  ;;  %v13010_v0 = vpop.f32.mrf.mxu0 }
 0x5de   : > { %v7847_v43 = vsel %vm7846_vm1, %v7844_v2, %v7841_v59  ;;  %v7848_v8 = vadd.f32 1.0, %v10553_v62  ;;  %v7851_v58 = vmul.f32 -0.5, %v10553_v62  ;;  %v7854_v45 = vand.u32 2147483647, %v10553_v62  ;;  %v13004_v2 = vpop.f32.mrf.mxu3  ;;  %v7331_v47 = vpop.f32.mrf.mxu1 }
 0x5df   : > { %v8071_v21 = vadd.f32 %v7847_v43, %v7559_v40  ;;  %v7395_v18 = vadd.f32 %v7331_v47, %v6914_v32 }
 0x5e0   : > { %v7852_v5 = vadd.f32 1.0, %v7851_v58  ;;  %vm7855_vm3 = vcmp.lt.f32.partialorder %v7854_v45, 0.0004427343 }
 0x5e1   : > { %v8103_v53 = vsel %vm7591_vm2, %v12964_v50, %v8071_v21 }
 0x5e2   : > { %10554 = vtanh.f32 %v8103_v53  ;;  %v7853_v29 = vmul.f32 %v10553_v62, %v7852_v5 }
 0x5e3   : > { %10556 = vlog2.f32 %v7848_v8 }
 0x5e4   : > { %10558 = vpow2.f32 %v7730_v23 }
 0x5e6   : > { %v13017_v5 = vpop.f32.mrf.mxu3 }
 0x5e8   : > { %v10555_v52 = vpop.eup %10554 }
 0x5e9   : > { %v10557_v6 = vpop.eup %10556  ;;  %v8167_v55 = vmul.f32 %v10555_v52, %v12964_v50  ;;  %v7494_v50 = vmul.f32 %v12807_v37, %v7458_v51  ;;  %v13021_v52 = vpop.f32.mrf.mxu0 }
 0x5ea   : > { %v7850_v4 = vmul.f32 0.6931472, %v10557_v6  ;;  %v10559_v41 = vpop.eup %10558  ;;  %v13790_v6 = vld [vmem:[#allocation41_spill] sm:$0xff] }
 0x5eb   : > { %8200 = vst.msk [vmem:[%s12862_s10 + $0x38] sm:$0xff] %vm8192_vm8, %v8167_v55  ;;  %v13013_v28 = vadd.f32 %v12814_v25, %v7494_v50  ;;  %v7857_v40 = vadd.f32 1.0, %v10559_v41  ;;  %v7860_v11 = vmul.f32 -0.5, %v10559_v41  ;;  %v7863_v58 = vand.u32 2147483647, %v10559_v41 }
 0x5ec   : > { %v7856_v61 = vsel %vm7855_vm3, %v7853_v29, %v7850_v4  ;;  %vm13791_vm5 = vnez %v13790_v6 }
 0x5ed   : > { %v8072_v59 = vadd.f32 %v7856_v61, %v7560_v56  ;;  %v7658_v63 = vand.u32 2147483647, %v13013_v28  ;;  %v7861_v62 = vadd.f32 1.0, %v7860_v11  ;;  %v7427_v33 = vsel %vm13791_vm5, %v7395_v18, 0.0 }
 0x5ee   : > { %vm7864_vm6 = vcmp.lt.f32.partialorder %v7863_v58, 0.0004427343  ;;  %v7562_v47 = vmax.f32 %v13013_v28, 0.0  ;;  %vm7594_vm13 = vcmp.ne.f32.partialorder %v13013_v28, %v13013_v28 }
 0x5ef   : > { %v8104_v57 = vsel %vm7592_vm4, %v12977_v26, %v8072_v59  ;;  %v7690_v43 = vsub.f32 0.0, %v7658_v63  ;;  %v7862_v23 = vmul.f32 %v10559_v41, %v7861_v62  ;;  %v13034_v59 = vpop.f32.mrf.mxu3  ;;  %v6917_v63 = vadd.f32 %v12997_v14, %v12994_v44  ;;  %v7334_v62 = vpop.f32.mrf.mxu1 }
 0x5f0   : > { %10560 = vtanh.f32 %v8104_v57 }
 0x5f1   : > { %10562 = vlog2.f32 %v7857_v40  ;;  %v7732_v53 = vmul.f32 1.442695, %v7690_v43  ;;  %v13037_v50 = vpop.f32.mrf.mxu0  ;;  %v7396_v58 = vadd.f32 %v7334_v62, %v6917_v63  ;;  %v13792_v63 = vld [vmem:[#allocation42_spill] sm:$0xff] }
 0x5f2   : > { %vm13793_vm10 = vnez %v13792_v63 }
 0x5f3   : > { %10564 = vpow2.f32 %v7732_v53 }
 0x5f6   : > { %v10561_v21 = vpop.eup %10560 }
 0x5f7   : > { %v8168_v8 = vmul.f32 %v10561_v21, %v12977_v26  ;;  %v10563_v45 = vpop.eup %10562  ;;  %v7459_v26 = vadd.f32 %v7427_v33, %v12705_v60 }
 0x5f8   : > { %v7859_v9 = vmul.f32 0.6931472, %v10563_v45  ;;  %v7460_v45 = vadd.f32 %v7396_v58, %v12713_v31  ;;  %v7223_v58 = vshrl.u32 %v12929_v22, 16 }
 0x5f9   : > { %8201 = vst.msk [vmem:[%s12862_s10 + $0x40] sm:$0xff] %vm8192_vm8, %v8168_v8  ;;  %v7495_v4 = vmul.f32 %v12807_v37, %v7459_v26  ;;  %v10565_v29 = vpop.eup %10564  ;;  %v13052_v6 = vpop.f32.mrf.mxu0 }
 0x5fa   : > { %v7865_v55 = vsel %vm7864_vm6, %v7862_v23, %v7859_v9  ;;  %v7866_v56 = vadd.f32 1.0, %v10565_v29  ;;  %v7869_v61 = vmul.f32 -0.5, %v10565_v29  ;;  %v7872_v40 = vand.u32 2147483647, %v10565_v29  ;;  %v13046_v23 = vpop.f32.mrf.mxu3 }
 0x5fb   : > { %v8073_v10 = vadd.f32 %v7865_v55, %v7561_v34  ;;  %v13032_v51 = vadd.f32 %v12814_v25, %v7495_v4  ;;  %v6919_v55 = vadd.f32 %v13010_v0, %v13004_v2  ;;  %v7336_v4 = vpop.f32.mrf.mxu1 }
 0x5fc   : > { %v7870_v57 = vadd.f32 1.0, %v7869_v61  ;;  %vm7873_vm7 = vcmp.lt.f32.partialorder %v7872_v40, 0.0004427343 }
 0x5fd   : > { %v8105_v16 = vsel %vm7593_vm15, %v12992_v46, %v8073_v10  ;;  %v7659_v60 = vand.u32 2147483647, %v13032_v51  ;;  %v7397_v61 = vadd.f32 %v7336_v4, %v6919_v55  ;;  %v7563_v62 = vmax.f32 %v13032_v51, 0.0 }
 0x5fe   : > { %10566 = vtanh.f32 %v8105_v16  ;;  %v7871_v8 = vmul.f32 %v10565_v29, %v7870_v57  ;;  %vm7595_vm12 = vcmp.ne.f32.partialorder %v13032_v51, %v13032_v51 }
 0x5ff   : > { %10568 = vlog2.f32 %v7866_v56  ;;  %v7691_v41 = vsub.f32 0.0, %v7659_v60  ;;  %v6998_v60 = vld [vmem:[#allocation3 + $0x98] sm:$0x1] }
 0x600   : > { %v7081_v40 = vunpack.c.l.b16 %v6998_v60 }
 0x601   : > { %v7734_v43 = vmul.f32 1.442695, %v7691_v41 }
 0x602   : > { %v7098_v0 = vpack.c.b16 %v7081_v40, %v7081_v40 }
 0x603   : > { %10570 = vpow2.f32 %v7734_v43  ;;  %v7429_v43 = vsel %vm13793_vm10, %v7397_v61, 0.0 }
 0x604   : > { %v10567_v11 = vpop.eup %10566  ;;  %v7461_v2 = vadd.f32 %v7429_v43, %v12717_v15 }
 0x605   : > { %v10569_v21 = vpop.eup %10568  ;;  %v8169_v32 = vmul.f32 %v10567_v11, %v12992_v46  ;;  %v7496_v46 = vmul.f32 %v12807_v37, %v7460_v45  ;;  %v13061_v11 = vpop.f32.mrf.mxu3 }
 0x606   : > { %v7868_v53 = vmul.f32 0.6931472, %v10569_v21 }
 0x607   : > { %8202 = vst.msk [vmem:[%s12862_s10 + $0x48] sm:$0xff] %vm8192_vm8, %v8169_v32  ;;  %v13055_v33 = vadd.f32 %v12814_v25, %v7496_v46  ;;  %v13068_v32 = vpop.f32.mrf.mxu0  ;;  %v7339_v46 = vpop.f32.mrf.mxu1 }
 0x608   : > { %v7874_v18 = vsel %vm7873_vm7, %v7871_v8, %v7868_v53  ;;  %v7497_v8 = vmul.f32 %v12807_v37, %v7461_v2 }
 0x609   : > { %v8074_v9 = vadd.f32 %v7874_v18, %v7562_v47  ;;  %v10571_v14 = vpop.eup %10570  ;;  %v7660_v31 = vand.u32 2147483647, %v13055_v33  ;;  %v7227_v47 = vshll.u32 %v7098_v0, 16  ;;  %v6922_v18 = vadd.f32 %v13021_v52, %v13017_v5 }
 0x60a   : > { %v7875_v34 = vadd.f32 1.0, %v10571_v14  ;;  %v7878_v26 = vmul.f32 -0.5, %v10571_v14  ;;  %v7881_v41 = vand.u32 2147483647, %v10571_v14  ;;  %v13076_v15 = vadd.f32 %v12814_v25, %v7497_v8 }
 0x60b   : > { %v8106_v44 = vsel %vm7594_vm13, %v13013_v28, %v8074_v9  ;;  %v7692_v10 = vsub.f32 0.0, %v7660_v31  ;;  %vm7596_vm1 = vcmp.ne.f32.partialorder %v13055_v33, %v13055_v33 }
 0x60c   : > { %10572 = vtanh.f32 %v8106_v44  ;;  %v7879_v16 = vadd.f32 1.0, %v7878_v26  ;;  %vm7882_vm11 = vcmp.lt.f32.partialorder %v7881_v41, 0.0004427343  ;;  %v7229_v26 = vrot.slane %v7227_v47, 1 }
 0x60d   : > { %10574 = vlog2.f32 %v7875_v34  ;;  %v7736_v56 = vmul.f32 1.442695, %v7692_v10  ;;  %v7225_v34 = vor.u32 %v7223_v58, %v12936_v27  ;;  %v7661_v5 = vand.u32 2147483647, %v13076_v15  ;;  %v13084_v10 = vpop.f32.mrf.mxu3 }
 0x60e   : > { %v6924_v27 = vadd.f32 %v13037_v50, %v13034_v59  ;;  %v13795_v50 = vld [vmem:[#allocation43_spill] sm:$0xff]  ;;  %vm7597_vm4 = vcmp.ne.f32.partialorder %v13076_v15, %v13076_v15 }
 0x60f   : > { %10576 = vpow2.f32 %v7736_v56  ;;  %v7693_v4 = vsub.f32 0.0, %v7661_v5  ;;  %v13090_v56 = vpop.f32.mrf.mxu0  ;;  %vm13796_vm0 = vnez %v13795_v50  ;;  %v13797_v50 = vld [vmem:[#allocation44_spill] sm:$0xff] }
 0x610   : > { %vm13798_vm3 = vnez %v13797_v50 }
 0x611   : > { %v7738_v60 = vmul.f32 1.442695, %v7693_v4 }
 0x612   : > { %v10573_v29 = vpop.eup %10572 }
 0x613   : > { %v8170_v57 = vmul.f32 %v10573_v29, %v13013_v28  ;;  %v10575_v21 = vpop.eup %10574  ;;  %v7880_v28 = vmul.f32 %v10571_v14, %v7879_v16  ;;  %v7398_v14 = vadd.f32 %v7339_v46, %v6922_v18  ;;  %v7230_v29 = vsel %vm13794_vm14, %v7225_v34, %v7229_v26 }
 0x614   : > { %v7877_v53 = vmul.f32 0.6931472, %v10575_v21  ;;  %7378 = vmatmul.bf16.gmra.mxu1 %v7230_v29  ;;  %v6929_v29 = vadd.f32 %v13068_v32, %v13061_v11 }
 0x615   : > { %8203 = vst.msk [vmem:[%s12862_s10 + $0x50] sm:$0xff] %vm8192_vm8, %v8170_v57  ;;  %v10577_v44 = vpop.eup %10576  ;;  %v7462_v52 = vadd.f32 %v7398_v14, %v12725_v24  ;;  %v7341_v24 = vpop.f32.mrf.mxu1 }
 0x616   : > { %v7883_v45 = vsel %vm7882_vm11, %v7880_v28, %v7877_v53  ;;  %v7884_v31 = vadd.f32 1.0, %v10577_v44  ;;  %v7887_v55 = vmul.f32 -0.5, %v10577_v44  ;;  %v7890_v57 = vand.u32 2147483647, %v10577_v44 }
 0x617   : > { %v8075_v9 = vadd.f32 %v7883_v45, %v7563_v62  ;;  %v7498_v16 = vmul.f32 %v12807_v37, %v7462_v52  ;;  %v7399_v63 = vadd.f32 %v7341_v24, %v6924_v27  ;;  %v7564_v53 = vmax.f32 %v13055_v33, 0.0  ;;  %v13111_v26 = vpop.f32.mrf.mxu0  ;;  %v13121_v52 = vld [vmem:[%s13417_s5] ss:$0 sm:$0xff] }
 0x618   : > { %v7888_v61 = vadd.f32 1.0, %v7887_v55  ;;  %vm7891_vm9 = vcmp.lt.f32.partialorder %v7890_v57, 0.0004427343  ;;  %v6927_v45 = vadd.f32 %v13052_v6, %v13046_v23 }
 0x619   : > { %v8107_v22 = vsel %vm7595_vm12, %v13032_v51, %v8075_v9  ;;  %v13093_v41 = vadd.f32 %v12814_v25, %v7498_v16  ;;  %v7431_v62 = vsel %vm13796_vm0, %v7399_v63, 0.0  ;;  %v13106_v9 = vpop.f32.mrf.mxu3 }
 0x61a   : > { %10578 = vtanh.f32 %v8107_v22  ;;  %v7889_v59 = vmul.f32 %v10577_v44, %v7888_v61  ;;  %v7463_v8 = vadd.f32 %v7431_v62, %v12729_v49 }
 0x61b   : > { %10580 = vlog2.f32 %v7884_v31  ;;  %v7662_v2 = vand.u32 2147483647, %v13093_v41  ;;  %vm7598_vm6 = vcmp.ne.f32.partialorder %v13093_v41, %v13093_v41 }
 0x61c   : > { %10582 = vpow2.f32 %v7738_v60  ;;  %v7499_v18 = vmul.f32 %v12807_v37, %v7463_v8 }
 0x61d   : > { %v7694_v28 = vsub.f32 0.0, %v7662_v2  ;;  %v7344_v34 = vpop.f32.mrf.mxu1 }
 0x61e   : > { %v13114_v37 = vadd.f32 %v12814_v25, %v7499_v18  ;;  %v7400_v22 = vadd.f32 %v7344_v34, %v6927_v45 }
 0x61f   : > { %v7740_v46 = vmul.f32 1.442695, %v7694_v28 }
 0x620   : > { %v10579_v40 = vpop.eup %10578  ;;  %v7663_v23 = vand.u32 2147483647, %v13114_v37  ;;  %v7464_v6 = vadd.f32 %v7400_v22, %v12736_v17  ;;  %v13130_v17 = vld [vmem:[%s13418_s6] ss:$0 sm:$0xff]  ;;  %vm7599_vm13 = vcmp.ne.f32.partialorder %v13114_v37, %v13114_v37 }
 0x621   : > { %v10581_v43 = vpop.eup %10580  ;;  %v8171_v21 = vmul.f32 %v10579_v40, %v13032_v51  ;;  %v13135_v40 = vpop.f32.mrf.mxu3 }
 0x622   : > { %v7886_v0 = vmul.f32 0.6931472, %v10581_v43  ;;  %v10583_v51 = vpop.eup %10582  ;;  %v7695_v55 = vsub.f32 0.0, %v7663_v23  ;;  %v7500_v4 = vmul.f32 %v13121_v52, %v7464_v6 }
 0x623   : > { %8204 = vst.msk [vmem:[%s12862_s10 + $0x58] sm:$0xff] %vm8192_vm8, %v8171_v21  ;;  %v7893_v14 = vadd.f32 1.0, %v10583_v51  ;;  %v7896_v49 = vmul.f32 -0.5, %v10583_v51  ;;  %v7899_v5 = vand.u32 2147483647, %v10583_v51  ;;  %v13140_v21 = vpop.f32.mrf.mxu0 }
 0x624   : > { %v7892_v58 = vsel %vm7891_vm9, %v7889_v59, %v7886_v0  ;;  %v7742_v16 = vmul.f32 1.442695, %v7695_v55  ;;  %v13133_v60 = vadd.f32 %v13130_v17, %v7500_v4  ;;  %v7566_v55 = vmax.f32 %v13093_v41, 0.0 }
 0x625   : > { %v8076_v47 = vadd.f32 %v7892_v58, %v7564_v53  ;;  %v7897_v31 = vadd.f32 1.0, %v7896_v49  ;;  %v7346_v57 = vpop.f32.mrf.mxu1  ;;  %vm7900_vm2 = vcmp.lt.f32.partialorder %v7899_v5, 0.0004427343  ;;  %v6932_v58 = vadd.f32 %v13090_v56, %v13084_v10 }
 0x626   : > { %v7401_v11 = vadd.f32 %v7346_v57, %v6929_v29  ;;  %v7664_v59 = vand.u32 2147483647, %v13133_v60  ;;  %vm7600_vm11 = vcmp.ne.f32.partialorder %v13133_v60, %v13133_v60 }
 0x627   : > { %v8108_v44 = vsel %vm7596_vm1, %v13055_v33, %v8076_v47  ;;  %v7898_v43 = vmul.f32 %v10583_v51, %v7897_v31 }
 0x628   : > { %10584 = vtanh.f32 %v8108_v44  ;;  %v7433_v62 = vsel %vm13798_vm3, %v7401_v11, 0.0  ;;  %v7696_v28 = vsub.f32 0.0, %v7664_v59  ;;  %v6934_v11 = vadd.f32 %v13111_v26, %v13106_v9 }
 0x629   : > { %10586 = vlog2.f32 %v7893_v14  ;;  %v7465_v8 = vadd.f32 %v7433_v62, %v12740_v3  ;;  %v13155_v10 = vpop.f32.mrf.mxu3  ;;  %v7567_v9 = vmax.f32 %v13114_v37, 0.0 }
 0x62a   : > { %10588 = vpow2.f32 %v7740_v46  ;;  %v7744_v45 = vmul.f32 1.442695, %v7696_v28 }
 0x62b   : > { %10590 = vpow2.f32 %v7742_v16  ;;  %v7501_v46 = vmul.f32 %v13121_v52, %v7465_v8  ;;  %v13160_v29 = vpop.f32.mrf.mxu0 }
 0x62d   : > { %v7349_v49 = vpop.f32.mrf.mxu1  ;;  %v13153_v22 = vadd.f32 %v13130_v17, %v7501_v46 }
 0x62e   : > { %v10585_v25 = vpop.eup %10584  ;;  %v7402_v3 = vadd.f32 %v7349_v49, %v6932_v58  ;;  %v13799_v58 = vld [vmem:[#allocation45_spill] sm:$0xff]  ;;  %v6937_v49 = vadd.f32 %v13140_v21, %v13135_v40  ;;  %v7568_v40 = vmax.f32 %v13133_v60, 0.0 }
 0x62f   : > { %v10587_v27 = vpop.eup %10586  ;;  %v8172_v61 = vmul.f32 %v10585_v25, %v13055_v33  ;;  %v7565_v33 = vmax.f32 %v13076_v15, 0.0  ;;  %v7665_v31 = vand.u32 2147483647, %v13153_v22  ;;  %vm13800_vm7 = vnez %v13799_v58 }
 0x630   : > { %v10589_v24 = vpop.eup %10588  ;;  %v7895_v63 = vmul.f32 0.6931472, %v10587_v27  ;;  %v7466_v4 = vadd.f32 %v7402_v3, %v12747_v19  ;;  %vm7601_vm0 = vcmp.ne.f32.partialorder %v13153_v22, %v13153_v22 }
 0x631   : > { %8205 = vst.msk [vmem:[%s12862_s10 + $0x60] sm:$0xff] %vm8192_vm8, %v8172_v61  ;;  %v7902_v32 = vadd.f32 1.0, %v10589_v24  ;;  %v7905_v0 = vmul.f32 -0.5, %v10589_v24  ;;  %v10591_v18 = vpop.eup %10590  ;;  %v7908_v44 = vand.u32 2147483647, %v10589_v24  ;;  %v7697_v27 = vsub.f32 0.0, %v7665_v31 }
 0x632   : > { %v7901_v2 = vsel %vm7900_vm2, %v7898_v43, %v7895_v63  ;;  %v7911_v14 = vadd.f32 1.0, %v10591_v18  ;;  %v7914_v34 = vmul.f32 -0.5, %v10591_v18  ;;  %v7917_v63 = vand.u32 2147483647, %v10591_v18 }
 0x633   : > { %v8077_v53 = vadd.f32 %v7901_v2, %v7565_v33  ;;  %10592 = vlog2.f32 %v7902_v32  ;;  %v7906_v51 = vadd.f32 1.0, %v7905_v0  ;;  %vm7909_vm5 = vcmp.lt.f32.partialorder %v7908_v44, 0.0004427343  ;;  %v6941_v3 = vpop.f32.mrf.mxu0 }
 0x634   : > { %v7915_v5 = vadd.f32 1.0, %v7914_v34  ;;  %v7746_v33 = vmul.f32 1.442695, %v7697_v27  ;;  %vm7918_vm15 = vcmp.lt.f32.partialorder %v7917_v63, 0.0004427343 }
 0x635   : > { %v8109_v47 = vsel %vm7597_vm4, %v13076_v15, %v8077_v53  ;;  %v7907_v6 = vmul.f32 %v10589_v24, %v7906_v51  ;;  %v7502_v24 = vmul.f32 %v13121_v52, %v7466_v4  ;;  %v7351_v59 = vpop.f32.mrf.mxu1 }
 0x636   : > { %10594 = vtanh.f32 %v8109_v47  ;;  %v7916_v2 = vmul.f32 %v10591_v18, %v7915_v5  ;;  %v7403_v53 = vadd.f32 %v7351_v59, %v6934_v11  ;;  %v13178_v18 = vpop.f32.mrf.mxu3  ;;  %v6939_v59 = vadd.f32 %v13160_v29, %v13155_v10  ;;  %v13801_v29 = vld [vmem:[#allocation46_spill] sm:$0xff] }
 0x637   : > { %10596 = vpow2.f32 %v7744_v45  ;;  %v13172_v62 = vadd.f32 %v13130_v17, %v7502_v24  ;;  %vm13802_vm14 = vnez %v13801_v29 }
 0x638   : > { %10598 = vlog2.f32 %v7911_v14  ;;  %v7435_v47 = vsel %vm13800_vm7, %v7403_v53, 0.0 }
 0x639   : > { %v10593_v23 = vpop.eup %10592  ;;  %v7666_v8 = vand.u32 2147483647, %v13172_v62  ;;  %v7467_v45 = vadd.f32 %v7435_v47, %v12751_v1  ;;  %vm7602_vm1 = vcmp.ne.f32.partialorder %v13172_v62, %v13172_v62 }
 0x63a   : > { %v7904_v56 = vmul.f32 0.6931472, %v10593_v23 }
 0x63b   : > { %v7698_v14 = vsub.f32 0.0, %v7666_v8  ;;  %v7503_v23 = vmul.f32 %v13121_v52, %v7467_v45 }
 0x63c   : > { %v10595_v25 = vpop.eup %10594  ;;  %v7910_v16 = vsel %vm7909_vm5, %v7907_v6, %v7904_v56 }
 0x63d   : > { %v8173_v61 = vmul.f32 %v10595_v25, %v13076_v15  ;;  %v8078_v57 = vadd.f32 %v7910_v16, %v7566_v55  ;;  %v10597_v43 = vpop.eup %10596  ;;  %v7748_v31 = vmul.f32 1.442695, %v7698_v14  ;;  %v7354_v55 = vpop.f32.mrf.mxu1  ;;  %v13189_v25 = vadd.f32 %v13130_v17, %v7503_v23 }
 0x63e   : > { %v10599_v19 = vpop.eup %10598  ;;  %v7920_v0 = vadd.f32 1.0, %v10597_v43  ;;  %v7923_v15 = vmul.f32 -0.5, %v10597_v43  ;;  %v7926_v44 = vand.u32 2147483647, %v10597_v43  ;;  %v7404_v16 = vadd.f32 %v7354_v55, %v6937_v49 }
 0x63f   : > { %8206 = vst.msk [vmem:[%s12862_s10 + $0x68] sm:$0xff] %vm8192_vm8, %v8173_v61  ;;  %v8110_v32 = vsel %vm7598_vm6, %v13093_v41, %v8078_v57  ;;  %v7913_v50 = vmul.f32 0.6931472, %v10599_v19  ;;  %v13200_v19 = vpop.f32.mrf.mxu3  ;;  %vm7603_vm4 = vcmp.ne.f32.partialorder %v13189_v25, %v13189_v25 }
 0x640   : > { %10600 = vtanh.f32 %v8110_v32  ;;  %v7924_v51 = vadd.f32 1.0, %v7923_v15  ;;  %vm7927_vm10 = vcmp.lt.f32.partialorder %v7926_v44, 0.0004427343 }
 0x641   : > { %10602 = vlog2.f32 %v7920_v0  ;;  %v7919_v26 = vsel %vm7918_vm15, %v7916_v2, %v7913_v50 }
 0x642   : > { %10604 = vpow2.f32 %v7746_v33  ;;  %v8079_v28 = vadd.f32 %v7919_v26, %v7567_v9  ;;  %v7925_v4 = vmul.f32 %v10597_v43, %v7924_v51  ;;  %v7468_v43 = vadd.f32 %v7404_v16, %v12758_v42  ;;  %v6943_v42 = vpop.f32.mrf.mxu0 }
 0x643   : > { %v7569_v51 = vmax.f32 %v13153_v22, 0.0 }
 0x644   : > { %v8111_v46 = vsel %vm7599_vm13, %v13114_v37, %v8079_v28  ;;  %v7504_v0 = vmul.f32 %v13121_v52, %v7468_v43 }
 0x645   : > { %10606 = vtanh.f32 %v8111_v46  ;;  %v7356_v53 = vpop.f32.mrf.mxu1 }
 0x646   : > { %v10601_v34 = vpop.eup %10600  ;;  %10608 = vpow2.f32 %v7748_v31  ;;  %v13208_v28 = vadd.f32 %v13130_v17, %v7504_v0  ;;  %v7405_v8 = vadd.f32 %v7356_v53, %v6939_v59  ;;  %v6942_v31 = vadd.f32 %v6941_v3, %v13178_v18 }
 0x647   : > { %v10603_v56 = vpop.eup %10602  ;;  %v8174_v6 = vmul.f32 %v10601_v34, %v13093_v41  ;;  %v7667_v41 = vand.u32 2147483647, %v13189_v25  ;;  %v6944_v59 = vadd.f32 %v6943_v42, %v13200_v19  ;;  %v7571_v19 = vmax.f32 %v13189_v25, 0.0 }
 0x648   : > { %v10605_v5 = vpop.eup %10604  ;;  %v7922_v1 = vmul.f32 0.6931472, %v10603_v56  ;;  %v7668_v10 = vand.u32 2147483647, %v13208_v28  ;;  %v7437_v45 = vsel %vm13802_vm14, %v7405_v8, 0.0  ;;  %vm7604_vm6 = vcmp.ne.f32.partialorder %v13208_v28, %v13208_v28 }
 0x649   : > { %8207 = vst.msk [vmem:[%s12862_s10 + $0x70] sm:$0xff] %vm8192_vm8, %v8174_v6  ;;  %v7929_v21 = vadd.f32 1.0, %v10605_v5  ;;  %v7932_v61 = vmul.f32 -0.5, %v10605_v5  ;;  %v7699_v24 = vsub.f32 0.0, %v7667_v41  ;;  %v7935_v50 = vand.u32 2147483647, %v10605_v5 }
 0x64a   : > { %v7928_v27 = vsel %vm7927_vm10, %v7925_v4, %v7922_v1  ;;  %v7469_v14 = vadd.f32 %v7437_v45, %v12762_v35  ;;  %v7700_v56 = vsub.f32 0.0, %v7668_v10  ;;  %v6946_v41 = vpop.f32.mrf.mxu0 }
 0x64b   : > { %v8080_v57 = vadd.f32 %v7928_v27, %v7568_v40  ;;  %10610 = vlog2.f32 %v7929_v21  ;;  %v10607_v63 = vpop.eup %10606  ;;  %v7933_v32 = vadd.f32 1.0, %v7932_v61  ;;  %v7750_v2 = vmul.f32 1.442695, %v7699_v24  ;;  %v6786_v40 = vpop.f32.mrf.mxu3 }
 0x64c   : > { %v8175_v11 = vmul.f32 %v10607_v63, %v13114_v37  ;;  %v10609_v15 = vpop.eup %10608  ;;  %vm7936_vm12 = vcmp.lt.f32.partialorder %v7935_v50, 0.0004427343  ;;  %v7752_v21 = vmul.f32 1.442695, %v7700_v56 }
 0x64d   : > { %v8112_v33 = vsel %vm7600_vm11, %v13133_v60, %v8080_v57  ;;  %v7938_v9 = vadd.f32 1.0, %v10609_v15  ;;  %v7941_v26 = vmul.f32 -0.5, %v10609_v15  ;;  %v7934_v47 = vmul.f32 %v10605_v5, %v7933_v32  ;;  %v7359_v16 = vpop.f32.mrf.mxu1 }
 0x64e   : > { %10612 = vtanh.f32 %v8112_v33  ;;  %8208 = vst.msk [vmem:[%s12862_s10 + $0x78] sm:$0xff] %vm8192_vm8, %v8175_v11  ;;  %v7944_v55 = vand.u32 2147483647, %v10609_v15  ;;  %v7505_v5 = vmul.f32 %v13121_v52, %v7469_v14  ;;  %v7406_v18 = vadd.f32 %v7359_v16, %v6942_v31 }
 0x64f   : > { %10614 = vpow2.f32 %v7750_v2  ;;  %v7942_v23 = vadd.f32 1.0, %v7941_v26  ;;  %v7570_v57 = vmax.f32 %v13172_v62, 0.0 }
 0x650   : > { %10616 = vlog2.f32 %v7938_v9  ;;  %v13224_v27 = vadd.f32 %v13130_v17, %v7505_v5  ;;  %vm7945_vm9 = vcmp.lt.f32.partialorder %v7944_v55, 0.0004427343  ;;  %v7470_v43 = vadd.f32 %v7406_v18, %v12769_v7 }
 0x651   : > { %v10611_v37 = vpop.eup %10610  ;;  %v7943_v61 = vmul.f32 %v10609_v15, %v7942_v23 }
 0x652   : > { %v7931_v58 = vmul.f32 0.6931472, %v10611_v37  ;;  %v7669_v63 = vand.u32 2147483647, %v13224_v27  ;;  %v7506_v0 = vmul.f32 %v13121_v52, %v7470_v43  ;;  %vm7605_vm13 = vcmp.ne.f32.partialorder %v13224_v27, %v13224_v27 }
 0x653   : > { %v6788_v29 = vpop.f32.mrf.mxu3 }
 0x654   : > { %v10613_v46 = vpop.eup %10612  ;;  %v7937_v44 = vsel %vm7936_vm12, %v7934_v47, %v7931_v58  ;;  %v7701_v32 = vsub.f32 0.0, %v7669_v63  ;;  %v13236_v7 = vadd.f32 %v13130_v17, %v7506_v0 }
 0x655   : > { %v8176_v34 = vmul.f32 %v10613_v46, %v13133_v60  ;;  %v8081_v49 = vadd.f32 %v7937_v44, %v7569_v51  ;;  %v10615_v6 = vpop.eup %10614  ;;  %v7361_v26 = vpop.f32.mrf.mxu1  ;;  %v13803_v46 = vld [vmem:[#allocation47_spill] sm:$0xff] }
 0x656   : > { %v7947_v4 = vadd.f32 1.0, %v10615_v6  ;;  %v7950_v35 = vmul.f32 -0.5, %v10615_v6  ;;  %v10617_v60 = vpop.eup %10616  ;;  %v7953_v2 = vand.u32 2147483647, %v10615_v6  ;;  %v7754_v53 = vmul.f32 1.442695, %v7701_v32 }
 0x657   : > { %8209 = vst.msk [vmem:[%s12862_s10 + $0x80] sm:$0xff] %vm8192_vm8, %v8176_v34  ;;  %v8113_v1 = vsel %vm7601_vm0, %v13153_v22, %v8081_v49  ;;  %v7940_v3 = vmul.f32 0.6931472, %v10617_v60  ;;  %v7407_v51 = vadd.f32 %v7361_v26, %v6944_v59  ;;  %vm13804_vm3 = vnez %v13803_v46  ;;  %v6948_v34 = vpop.f32.mrf.mxu0  ;;  %v13805_v46 = vld [vmem:[#allocation23_spill] sm:$0xff] }
 0x658   : > { %10618 = vtanh.f32 %v8113_v1  ;;  %v7951_v33 = vadd.f32 1.0, %v7950_v35  ;;  %vm7954_vm2 = vcmp.lt.f32.partialorder %v7953_v2, 0.0004427343  ;;  %vm13806_vm7 = vnez %v13805_v46 }
 0x659   : > { %10620 = vlog2.f32 %v7947_v4  ;;  %v7946_v24 = vsel %vm7945_vm9, %v7943_v61, %v7940_v3  ;;  %v7439_v44 = vsel %vm13804_vm3, %v7407_v51, 0.0  ;;  %vm7606_vm11 = vcmp.ne.f32.partialorder %v13236_v7, %v13236_v7 }
 0x65a   : > { %10622 = vpow2.f32 %v7752_v21  ;;  %v8082_v11 = vadd.f32 %v7946_v24, %v7570_v57  ;;  %v7952_v47 = vmul.f32 %v10615_v6, %v7951_v33  ;;  %v7471_v23 = vadd.f32 %v7439_v44, %v12773_v13 }
 0x65b   : > { %v6947_v6 = vadd.f32 %v6946_v41, %v6786_v40  ;;  %v7572_v57 = vmax.f32 %v13208_v28, 0.0 }
 0x65c   : > { %v8114_v50 = vsel %vm7602_vm1, %v13172_v62, %v8082_v11  ;;  %v7507_v35 = vmul.f32 %v13121_v52, %v7471_v23  ;;  %v6791_v11 = vpop.f32.mrf.mxu3 }
 0x65d   : > { %10624 = vtanh.f32 %v8114_v50  ;;  %v7364_v18 = vpop.f32.mrf.mxu1 }
 0x65e   : > { %v10619_v15 = vpop.eup %10618  ;;  %10626 = vpow2.f32 %v7754_v53  ;;  %v13253_v13 = vadd.f32 %v13130_v17, %v7507_v35  ;;  %v7408_v40 = vadd.f32 %v7364_v18, %v6947_v6  ;;  %v6949_v53 = vadd.f32 %v6948_v34, %v6788_v29 }
 0x65f   : > { %v10621_v9 = vpop.eup %10620  ;;  %v8177_v37 = vmul.f32 %v10619_v15, %v13153_v22  ;;  %v7670_v22 = vand.u32 2147483647, %v13236_v7 }
 0x660   : > { %v10623_v8 = vpop.eup %10622  ;;  %v7949_v58 = vmul.f32 0.6931472, %v10621_v9  ;;  %v7472_v24 = vadd.f32 %v7408_v40, %v12780_v38  ;;  %v6951_v9 = vpop.f32.mrf.mxu0  ;;  %vm7607_vm0 = vcmp.ne.f32.partialorder %v13253_v13, %v13253_v13 }
 0x661   : > { %8210 = vst.msk [vmem:[%s12862_s10 + $0x88] sm:$0xff] %vm8192_vm8, %v8177_v37  ;;  %v7956_v42 = vadd.f32 1.0, %v10623_v8  ;;  %v7959_v10 = vmul.f32 -0.5, %v10623_v8  ;;  %v7702_v49 = vsub.f32 0.0, %v7670_v22  ;;  %v7962_v16 = vand.u32 2147483647, %v10623_v8 }
 0x662   : > { %v7955_v45 = vsel %vm7954_vm2, %v7952_v47, %v7949_v58  ;;  %v7508_v59 = vmul.f32 %v13121_v52, %v7472_v24 }
 0x663   : > { %v8083_v14 = vadd.f32 %v7955_v45, %v7571_v19  ;;  %10628 = vlog2.f32 %v7956_v42  ;;  %v10625_v56 = vpop.eup %10624  ;;  %v7960_v55 = vadd.f32 1.0, %v7959_v10  ;;  %v7756_v4 = vmul.f32 1.442695, %v7702_v49 }
 0x664   : > { %v10627_v5 = vpop.eup %10626  ;;  %v8178_v1 = vmul.f32 %v10625_v56, %v13172_v62  ;;  %v7671_v62 = vand.u32 2147483647, %v13253_v13  ;;  %vm7963_vm5 = vcmp.lt.f32.partialorder %v7962_v16, 0.0004427343  ;;  %v13266_v19 = vadd.f32 %v13130_v17, %v7508_v59 }
 0x665   : > { %v8115_v31 = vsel %vm7603_vm4, %v13189_v25, %v8083_v14  ;;  %v7965_v60 = vadd.f32 1.0, %v10627_v5  ;;  %v7968_v21 = vmul.f32 -0.5, %v10627_v5  ;;  %v7961_v41 = vmul.f32 %v10623_v8, %v7960_v55  ;;  %v6793_v55 = vpop.f32.mrf.mxu3 }
 0x666   : > { %10630 = vtanh.f32 %v8115_v31  ;;  %8211 = vst.msk [vmem:[%s12862_s10 + $0x90] sm:$0xff] %vm8192_vm8, %v8178_v1  ;;  %v7703_v32 = vsub.f32 0.0, %v7671_v62  ;;  %v7971_v15 = vand.u32 2147483647, %v10627_v5  ;;  %v7573_v10 = vmax.f32 %v13224_v27, 0.0 }
 0x667   : > { %10632 = vpow2.f32 %v7756_v4  ;;  %v7969_v63 = vadd.f32 1.0, %v7968_v21  ;;  %v7672_v22 = vand.u32 2147483647, %v13266_v19  ;;  %v6952_v31 = vadd.f32 %v6951_v9, %v6791_v11 }
 0x668   : > { %10634 = vlog2.f32 %v7965_v60  ;;  %v7758_v37 = vmul.f32 1.442695, %v7703_v32  ;;  %vm7972_vm15 = vcmp.lt.f32.partialorder %v7971_v15, 0.0004427343  ;;  %v6953_v21 = vpop.f32.mrf.mxu0  ;;  %vm7608_vm1 = vcmp.ne.f32.partialorder %v13266_v19, %v13266_v19 }
 0x669   : > { %v10629_v3 = vpop.eup %10628  ;;  %v7970_v8 = vmul.f32 %v10627_v5, %v7969_v63  ;;  %v7704_v56 = vsub.f32 0.0, %v7672_v22 }
 0x66a   : > { %v7958_v61 = vmul.f32 0.6931472, %v10629_v3 }
 0x66b   : > { %v7760_v35 = vmul.f32 1.442695, %v7704_v56 }
 0x66c   : > { %v10631_v43 = vpop.eup %10630  ;;  %v7964_v33 = vsel %vm7963_vm5, %v7961_v41, %v7958_v61  ;;  %v7574_v61 = vmax.f32 %v13236_v7, 0.0 }
 0x66d   : > { %v8179_v2 = vmul.f32 %v10631_v43, %v13189_v25  ;;  %v8084_v0 = vadd.f32 %v7964_v33, %v7572_v57  ;;  %v10633_v50 = vpop.eup %10632  ;;  %v7366_v25 = vpop.f32.mrf.mxu1 }
 0x66e   : > { %v10635_v26 = vpop.eup %10634  ;;  %v7974_v58 = vadd.f32 1.0, %v10633_v50  ;;  %v7977_v47 = vmul.f32 -0.5, %v10633_v50  ;;  %v7409_v42 = vadd.f32 %v7366_v25, %v6949_v53  ;;  %v7980_v23 = vand.u32 2147483647, %v10633_v50 }
 0x66f   : > { %8212 = vst.msk [vmem:[%s12862_s10 + $0x98] sm:$0xff] %vm8192_vm8, %v8179_v2  ;;  %v8116_v38 = vsel %vm7604_vm6, %v13208_v28, %v8084_v0  ;;  %v7967_v51 = vmul.f32 0.6931472, %v10635_v26 }
 0x670   : > { %10636 = vtanh.f32 %v8116_v38  ;;  %v7441_v44 = vsel %vm13806_vm7, %v7409_v42, 0.0  ;;  %v7978_v14 = vadd.f32 1.0, %v7977_v47  ;;  %vm7981_vm10 = vcmp.lt.f32.partialorder %v7980_v23, 0.0004427343 }
 0x671   : > { %10638 = vlog2.f32 %v7974_v58  ;;  %v7973_v29 = vsel %vm7972_vm15, %v7970_v8, %v7967_v51  ;;  %v7473_v34 = vadd.f32 %v7441_v44, %v12786_v39  ;;  %v6956_v58 = vpop.f32.mrf.mxu0  ;;  %v7575_v51 = vmax.f32 %v13253_v13, 0.0 }
 0x672   : > { %10640 = vpow2.f32 %v7758_v37  ;;  %v8085_v45 = vadd.f32 %v7973_v29, %v7573_v10  ;;  %v7979_v39 = vmul.f32 %v10633_v50, %v7978_v14  ;;  %v6954_v50 = vadd.f32 %v6953_v21, %v6793_v55  ;;  %v6796_v37 = vpop.f32.mrf.mxu3  ;;  %v13807_v10 = vld [vmem:[#allocation25_spill] sm:$0xff] }
 0x673   : > { %v7509_v5 = vmul.f32 %v13121_v52, %v7473_v34  ;;  %vm13808_vm14 = vnez %v13807_v10  ;;  %v6957_v56 = vadd.f32 %v6956_v58, %v6796_v37  ;;  %v13809_v58 = vld [vmem:[#allocation26_spill] sm:$0xff] }
 0x674   : > { %v8117_v49 = vsel %vm7605_vm13, %v13224_v27, %v8085_v45  ;;  %vm13810_vm3 = vnez %v13809_v58 }
 0x675   : > { %10642 = vtanh.f32 %v8117_v49  ;;  %v7369_v16 = vpop.f32.mrf.mxu1  ;;  %v13279_v40 = vadd.f32 %v13130_v17, %v7509_v5 }
 0x676   : > { %v10637_v6 = vpop.eup %10636  ;;  %v7410_v3 = vadd.f32 %v7369_v16, %v6952_v31  ;;  %10644 = vpow2.f32 %v7760_v35 }
 0x677   : > { %v10639_v1 = vpop.eup %10638  ;;  %v8180_v4 = vmul.f32 %v10637_v6, %v13208_v28  ;;  %v7673_v28 = vand.u32 2147483647, %v13279_v40  ;;  %vm7609_vm4 = vcmp.ne.f32.partialorder %v13279_v40, %v13279_v40 }
 0x678   : > { %v10641_v60 = vpop.eup %10640  ;;  %v7976_v18 = vmul.f32 0.6931472, %v10639_v1  ;;  %v7474_v11 = vadd.f32 %v7410_v3, %v12795_v36 }
 0x679   : > { %8213 = vst.msk [vmem:[%s12862_s10 + $0xa0] sm:$0xff] %vm8192_vm8, %v8180_v4  ;;  %v7983_v41 = vadd.f32 1.0, %v10641_v60  ;;  %v7986_v57 = vmul.f32 -0.5, %v10641_v60  ;;  %v7705_v43 = vsub.f32 0.0, %v7673_v28  ;;  %v7989_v53 = vand.u32 2147483647, %v10641_v60 }
 0x67a   : > { %v7982_v62 = vsel %vm7981_vm10, %v7979_v39, %v7976_v18  ;;  %v7510_v15 = vmul.f32 %v13121_v52, %v7474_v11  ;;  %v6798_v18 = vpop.f32.mrf.mxu3  ;;  %v7576_v39 = vmax.f32 %v13266_v19, 0.0 }
 0x67b   : > { %v8086_v63 = vadd.f32 %v7982_v62, %v7574_v61  ;;  %10646 = vlog2.f32 %v7983_v41  ;;  %v10643_v24 = vpop.eup %10642  ;;  %v7987_v2 = vadd.f32 1.0, %v7986_v57  ;;  %v7762_v0 = vmul.f32 1.442695, %v7705_v43  ;;  %v6958_v62 = vpop.f32.mrf.mxu0 }
 0x67c   : > { %v8181_v33 = vmul.f32 %v10643_v24, %v13224_v27  ;;  %v10645_v59 = vpop.eup %10644  ;;  %v13294_v27 = vadd.f32 %v13130_v17, %v7510_v15  ;;  %vm7990_vm12 = vcmp.lt.f32.partialorder %v7989_v53, 0.0004427343 }
 0x67d   : > { %v8118_v32 = vsel %vm7606_vm11, %v13236_v7, %v8086_v63  ;;  %v7371_v9 = vpop.f32.mrf.mxu1  ;;  %v7992_v26 = vadd.f32 1.0, %v10645_v59  ;;  %v7995_v36 = vmul.f32 -0.5, %v10645_v59  ;;  %v7988_v25 = vmul.f32 %v10641_v60, %v7987_v2 }
 0x67e   : > { %10648 = vtanh.f32 %v8118_v32  ;;  %8214 = vst.msk [vmem:[%s12862_s10 + $0xa8] sm:$0xff] %vm8192_vm8, %v8181_v33  ;;  %v7411_v8 = vadd.f32 %v7371_v9, %v6954_v50  ;;  %v7674_v42 = vand.u32 2147483647, %v13294_v27  ;;  %v7998_v6 = vand.u32 2147483647, %v10645_v59 }
 0x67f   : > { %10650 = vpow2.f32 %v7762_v0  ;;  %v7996_v34 = vadd.f32 1.0, %v7995_v36  ;;  %v6959_v33 = vadd.f32 %v6958_v62, %v6798_v18  ;;  %vm7610_vm6 = vcmp.ne.f32.partialorder %v13294_v27, %v13294_v27 }
 0x680   : > { %10652 = vlog2.f32 %v7992_v26  ;;  %v7443_v29 = vsel %vm13808_vm14, %v7411_v8, 0.0  ;;  %v7706_v49 = vsub.f32 0.0, %v7674_v42  ;;  %vm7999_vm9 = vcmp.lt.f32.partialorder %v7998_v6, 0.0004427343 }
 0x681   : > { %v10647_v38 = vpop.eup %10646  ;;  %v7475_v46 = vadd.f32 %v7443_v29, %v12801_v54  ;;  %v7997_v21 = vmul.f32 %v10645_v59, %v7996_v34  ;;  %v7577_v26 = vmax.f32 %v13279_v40, 0.0 }
 0x682   : > { %v7985_v47 = vmul.f32 0.6931472, %v10647_v38 }
 0x683   : > { %v7511_v31 = vmul.f32 %v13121_v52, %v7475_v46 }
 0x684   : > { %v10649_v45 = vpop.eup %10648  ;;  %v7991_v22 = vsel %vm7990_vm12, %v7988_v25, %v7985_v47 }
 0x685   : > { %v8182_v44 = vmul.f32 %v10649_v45, %v13236_v7  ;;  %v8087_v14 = vadd.f32 %v7991_v22, %v7575_v51  ;;  %v10651_v23 = vpop.eup %10650  ;;  %v7374_v54 = vpop.f32.mrf.mxu1  ;;  %v7764_v7 = vmul.f32 1.442695, %v7706_v49  ;;  %v13309_v35 = vadd.f32 %v13130_v17, %v7511_v31 }
 0x686   : > { %v8001_v5 = vadd.f32 1.0, %v10651_v23  ;;  %v8004_v1 = vmul.f32 -0.5, %v10651_v23  ;;  %v10653_v4 = vpop.eup %10652  ;;  %v7412_v16 = vadd.f32 %v7374_v54, %v6957_v56  ;;  %v8007_v24 = vand.u32 2147483647, %v10651_v23  ;;  %v6801_v51 = vpop.f32.mrf.mxu3 }
 0x687   : > { %8215 = vst.msk [vmem:[%s12862_s10 + $0xb0] sm:$0xff] %vm8192_vm8, %v8182_v44  ;;  %v8119_v55 = vsel %vm7607_vm0, %v13253_v13, %v8087_v14  ;;  %v7994_v60 = vmul.f32 0.6931472, %v10653_v4  ;;  %v7675_v3 = vand.u32 2147483647, %v13309_v35  ;;  %v6961_v44 = vpop.f32.mrf.mxu0  ;;  %v7578_v4 = vmax.f32 %v13294_v27, 0.0 }
 0x688   : > { %10654 = vtanh.f32 %v8119_v55  ;;  %v7476_v41 = vadd.f32 %v7412_v16, %v12826_v20  ;;  %v8005_v28 = vadd.f32 1.0, %v8004_v1  ;;  %vm8008_vm2 = vcmp.lt.f32.partialorder %v8007_v24, 0.0004427343 }
 0x689   : > { %10656 = vlog2.f32 %v8001_v5  ;;  %v8000_v61 = vsel %vm7999_vm9, %v7997_v21, %v7994_v60  ;;  %v7707_v63 = vsub.f32 0.0, %v7675_v3  ;;  %v6962_v55 = vadd.f32 %v6961_v44, %v6801_v51 }
 0x68a   : > { %10658 = vpow2.f32 %v7764_v7  ;;  %v8088_v57 = vadd.f32 %v8000_v61, %v7576_v39  ;;  %v7512_v43 = vmul.f32 %v13121_v52, %v7476_v41  ;;  %v8006_v9 = vmul.f32 %v10651_v23, %v8005_v28 }
 0x68b   : > { %v7766_v2 = vmul.f32 1.442695, %v7707_v63  ;;  %vm7611_vm7 = vcmp.ne.f32.partialorder %v13309_v35, %v13309_v35 }
 0x68c   : > { %v8120_v32 = vsel %vm7608_vm1, %v13266_v19, %v8088_v57  ;;  %v13320_v20 = vadd.f32 %v13130_v17, %v7512_v43 }
 0x68d   : > { %10660 = vtanh.f32 %v8120_v32  ;;  %v7376_v59 = vpop.f32.mrf.mxu1 }
 0x68e   : > { %v10655_v11 = vpop.eup %10654  ;;  %10662 = vpow2.f32 %v7766_v2  ;;  %v7413_v37 = vadd.f32 %v7376_v59, %v6959_v33  ;;  %v6803_v57 = vpop.f32.mrf.mxu3  ;;  %v7580_v44 = vmax.f32 %v13320_v20, 0.0  ;;  %vm7612_vm11 = vcmp.ne.f32.partialorder %v13320_v20, %v13320_v20 }
 0x68f   : > { %v10657_v0 = vpop.eup %10656  ;;  %v8183_v15 = vmul.f32 %v10655_v11, %v13253_v13  ;;  %v7676_v13 = vand.u32 2147483647, %v13320_v20  ;;  %v6963_v33 = vpop.f32.mrf.mxu0 }
 0x690   : > { %v10659_v50 = vpop.eup %10658  ;;  %v8003_v53 = vmul.f32 0.6931472, %v10657_v0  ;;  %v7445_v47 = vsel %vm13810_vm3, %v7413_v37, 0.0  ;;  %v7579_v0 = vmax.f32 %v13309_v35, 0.0 }
 0x691   : > { %8216 = vst.msk [vmem:[%s12862_s10 + $0xb8] sm:$0xff] %vm8192_vm8, %v8183_v15  ;;  %v8010_v38 = vadd.f32 1.0, %v10659_v50  ;;  %v8013_v36 = vmul.f32 -0.5, %v10659_v50  ;;  %v7708_v42 = vsub.f32 0.0, %v7676_v13  ;;  %v7477_v10 = vadd.f32 %v7445_v47, %v12843_v12 }
 0x692   : > { %v8009_v8 = vsel %vm8008_vm2, %v8006_v9, %v8003_v53  ;;  %v8016_v23 = vand.u32 2147483647, %v10659_v50 }
 0x693   : > { %v8089_v25 = vadd.f32 %v8009_v8, %v7577_v26  ;;  %10664 = vlog2.f32 %v8010_v38  ;;  %v10661_v29 = vpop.eup %10660  ;;  %v8014_v22 = vadd.f32 1.0, %v8013_v36  ;;  %v7768_v34 = vmul.f32 1.442695, %v7708_v42  ;;  %v13811_v8 = vld [vmem:[#allocation28_spill] sm:$0xff] }
 0x694   : > { %v10663_v46 = vpop.eup %10662  ;;  %v8184_v14 = vmul.f32 %v10661_v29, %v13266_v19  ;;  %v7513_v49 = vmul.f32 %v13121_v52, %v7477_v10  ;;  %vm8017_vm5 = vcmp.lt.f32.partialorder %v8016_v23, 0.0004427343  ;;  %vm13812_vm13 = vnez %v13811_v8 }
 0x695   : > { %v8121_v45 = vsel %vm7609_vm4, %v13279_v40, %v8089_v25  ;;  %v8019_v56 = vadd.f32 1.0, %v10663_v46  ;;  %v8022_v6 = vmul.f32 -0.5, %v10663_v46  ;;  %v8015_v1 = vmul.f32 %v10659_v50, %v8014_v22  ;;  %v7379_v54 = vpop.f32.mrf.mxu1 }
 0x696   : > { %10666 = vtanh.f32 %v8121_v45  ;;  %8217 = vst.msk [vmem:[%s12862_s10 + $0xc0] sm:$0xff] %vm8192_vm8, %v8184_v14  ;;  %v13337_v12 = vadd.f32 %v13130_v17, %v7513_v49  ;;  %v7414_v16 = vadd.f32 %v7379_v54, %v6962_v55  ;;  %v8025_v61 = vand.u32 2147483647, %v10663_v46 }
 0x697   : > { %10668 = vpow2.f32 %v7768_v34  ;;  %v8023_v7 = vadd.f32 1.0, %v8022_v6 }
 0x698   : > { %10670 = vlog2.f32 %v8019_v56  ;;  %v7677_v19 = vand.u32 2147483647, %v13337_v12  ;;  %v7478_v41 = vadd.f32 %v7414_v16, %v12874_v30  ;;  %v6964_v30 = vadd.f32 %v6963_v33, %v6803_v57 }
 0x699   : > { %v10665_v31 = vpop.eup %10664  ;;  %v8024_v43 = vmul.f32 %v10663_v46, %v8023_v7  ;;  %vm8026_vm15 = vcmp.lt.f32.partialorder %v8025_v61, 0.0004427343  ;;  %vm7613_vm14 = vcmp.ne.f32.partialorder %v13337_v12, %v13337_v12 }
 0x69a   : > { %v8012_v5 = vmul.f32 0.6931472, %v10665_v31  ;;  %v7709_v18 = vsub.f32 0.0, %v7677_v19  ;;  %v7514_v2 = vmul.f32 %v13121_v52, %v7478_v41 }
 0x69c   : > { %v10667_v60 = vpop.eup %10666  ;;  %v8018_v21 = vsel %vm8017_vm5, %v8015_v1, %v8012_v5  ;;  %v7770_v28 = vmul.f32 1.442695, %v7709_v18  ;;  %v13351_v59 = vadd.f32 %v13130_v17, %v7514_v2 }
 0x69d   : > { %v8185_v39 = vmul.f32 %v10667_v60, %v13279_v40  ;;  %v8090_v3 = vadd.f32 %v8018_v21, %v7578_v4  ;;  %v10669_v62 = vpop.eup %10668  ;;  %v7381_v50 = vpop.f32.mrf.mxu1  ;;  %v7581_v60 = vmax.f32 %v13337_v12, 0.0 }
 0x69e   : > { %v10671_v63 = vpop.eup %10670  ;;  %v8028_v11 = vadd.f32 1.0, %v10669_v62  ;;  %v8031_v32 = vmul.f32 -0.5, %v10669_v62  ;;  %v7415_v9 = vadd.f32 %v7381_v50, %v6964_v30  ;;  %v7678_v26 = vand.u32 2147483647, %v13351_v59 }
 0x69f   : > { %8218 = vst.msk [vmem:[%s12862_s10 + $0xc8] sm:$0xff] %vm8192_vm8, %v8185_v39  ;;  %v8122_v24 = vsel %vm7610_vm6, %v13294_v27, %v8090_v3  ;;  %v8021_v40 = vmul.f32 0.6931472, %v10671_v63  ;;  %v8034_v36 = vand.u32 2147483647, %v10669_v62  ;;  %vm7614_vm9 = vcmp.ne.f32.partialorder %v13351_v59, %v13351_v59 }
 0x6a0   : > { %10672 = vtanh.f32 %v8122_v24  ;;  %v8032_v37 = vadd.f32 1.0, %v8031_v32  ;;  %v7447_v13 = vsel %vm13812_vm13, %v7415_v9, 0.0  ;;  %v7710_v47 = vsub.f32 0.0, %v7678_v26 }
 0x6a1   : > { %10674 = vlog2.f32 %v8028_v11  ;;  %v8027_v15 = vsel %vm8026_vm15, %v8024_v43, %v8021_v40  ;;  %v7479_v25 = vadd.f32 %v7447_v13, %v12900_v48  ;;  %vm8035_vm10 = vcmp.lt.f32.partialorder %v8034_v36, 0.0004427343 }
 0x6a2   : > { %10676 = vpow2.f32 %v7770_v28  ;;  %v8091_v53 = vadd.f32 %v8027_v15, %v7579_v0  ;;  %v8033_v45 = vmul.f32 %v10669_v62, %v8032_v37  ;;  %v7772_v22 = vmul.f32 1.442695, %v7710_v47 }
 0x6a3   : > { %v7515_v46 = vmul.f32 %v13121_v52, %v7479_v25 }
 0x6a4   : > { %v8123_v38 = vsel %vm7611_vm7, %v13309_v35, %v8091_v53 }
 0x6a5   : > { %10678 = vtanh.f32 %v8123_v38  ;;  %v13366_v48 = vadd.f32 %v13130_v17, %v7515_v46 }
 0x6a6   : > { %v10673_v58 = vpop.eup %10672  ;;  %10680 = vpow2.f32 %v7772_v22 }
 0x6a7   : > { %v10675_v51 = vpop.eup %10674  ;;  %v8186_v42 = vmul.f32 %v10673_v58, %v13294_v27  ;;  %v7679_v52 = vand.u32 2147483647, %v13366_v48  ;;  %v7583_v9 = vmax.f32 %v13366_v48, 0.0  ;;  %vm7615_vm2 = vcmp.ne.f32.partialorder %v13366_v48, %v13366_v48 }
 0x6a8   : > { %v10677_v10 = vpop.eup %10676  ;;  %v8030_v29 = vmul.f32 0.6931472, %v10675_v51 }
 0x6a9   : > { %8219 = vst.msk [vmem:[%s12862_s10 + $0xd0] sm:$0xff] %vm8192_vm8, %v8186_v42  ;;  %v8037_v14 = vadd.f32 1.0, %v10677_v10  ;;  %v8040_v49 = vmul.f32 -0.5, %v10677_v10  ;;  %v7711_v55 = vsub.f32 0.0, %v7679_v52  ;;  %v8043_v5 = vand.u32 2147483647, %v10677_v10 }
 0x6aa   : > { %v8036_v34 = vsel %vm8035_vm10, %v8033_v45, %v8030_v29 }
 0x6ab   : > { %v8092_v27 = vadd.f32 %v8036_v34, %v7580_v44  ;;  %10682 = vlog2.f32 %v8037_v14  ;;  %v10679_v23 = vpop.eup %10678  ;;  %v8041_v31 = vadd.f32 1.0, %v8040_v49  ;;  %v7774_v1 = vmul.f32 1.442695, %v7711_v55 }
 0x6ac   : > { %v8187_v56 = vmul.f32 %v10679_v23, %v13309_v35  ;;  %v10681_v17 = vpop.eup %10680  ;;  %vm8044_vm12 = vcmp.lt.f32.partialorder %v8043_v5, 0.0004427343 }
 0x6ad   : > { %v8124_v6 = vsel %vm7612_vm11, %v13320_v20, %v8092_v27  ;;  %v8046_v54 = vadd.f32 1.0, %v10681_v17  ;;  %v8042_v7 = vmul.f32 %v10677_v10, %v8041_v31  ;;  %v8049_v16 = vmul.f32 -0.5, %v10681_v17 }
 0x6ae   : > { %10684 = vtanh.f32 %v8124_v6  ;;  %8220 = vst.msk [vmem:[%s12862_s10 + $0xd8] sm:$0xff] %vm8192_vm8, %v8187_v56  ;;  %v8052_v41 = vand.u32 2147483647, %v10681_v17 }
 0x6af   : > { %10686 = vpow2.f32 %v7774_v1  ;;  %v8050_v3 = vadd.f32 1.0, %v8049_v16 }
 0x6b0   : > { %10688 = vlog2.f32 %v8046_v54  ;;  %vm8053_vm0 = vcmp.lt.f32.partialorder %v8052_v41, 0.0004427343 }
 0x6b1   : > { %v10683_v19 = vpop.eup %10682  ;;  %v8051_v24 = vmul.f32 %v10681_v17, %v8050_v3 }
 0x6b2   : > { %v8039_v4 = vmul.f32 0.6931472, %v10683_v19 }
 0x6b4   : > { %v10685_v35 = vpop.eup %10684  ;;  %v8045_v21 = vsel %vm8044_vm12, %v8042_v7, %v8039_v4 }
 0x6b5   : > { %v8188_v18 = vmul.f32 %v10685_v35, %v13320_v20  ;;  %v8093_v39 = vadd.f32 %v8045_v21, %v7581_v60  ;;  %v10687_v62 = vpop.eup %10686  ;;  %v7582_v20 = vmax.f32 %v13351_v59, 0.0 }
 0x6b6   : > { %v10689_v57 = vpop.eup %10688  ;;  %v8055_v28 = vadd.f32 1.0, %v10687_v62  ;;  %v8058_v43 = vmul.f32 -0.5, %v10687_v62  ;;  %v8061_v0 = vand.u32 2147483647, %v10687_v62 }
 0x6b7   : > { %8221 = vst.msk [vmem:[%s12862_s10 + $0xe0] sm:$0xff] %vm8192_vm8, %v8188_v18  ;;  %v8125_v61 = vsel %vm7613_vm14, %v13337_v12, %v8093_v39  ;;  %v8048_v63 = vmul.f32 0.6931472, %v10689_v57 }
 0x6b8   : > { %10690 = vtanh.f32 %v8125_v61  ;;  %v8059_v32 = vadd.f32 1.0, %v8058_v43  ;;  %vm8062_vm1 = vcmp.lt.f32.partialorder %v8061_v0, 0.0004427343 }
 0x6b9   : > { %10692 = vlog2.f32 %v8055_v28  ;;  %v8054_v11 = vsel %vm8053_vm0, %v8051_v24, %v8048_v63 }
 0x6ba   : > { %v8094_v33 = vadd.f32 %v8054_v11, %v7582_v20  ;;  %v8060_v53 = vmul.f32 %v10687_v62, %v8059_v32 }
 0x6bc   : > { %v8126_v30 = vsel %vm7614_vm9, %v13351_v59, %v8094_v33 }
 0x6bd   : > { %10694 = vtanh.f32 %v8126_v30 }
 0x6be   : > { %v10691_v40 = vpop.eup %10690 }
 0x6bf   : > { %v8189_v2 = vmul.f32 %v10691_v40, %v13337_v12  ;;  %v10693_v15 = vpop.eup %10692 }
 0x6c0   : > { %v8057_v50 = vmul.f32 0.6931472, %v10693_v15 }
 0x6c1   : > { %8222 = vst.msk [vmem:[%s12862_s10 + $0xe8] sm:$0xff] %vm8192_vm8, %v8189_v2 }
 0x6c2   : > { %v8063_v37 = vsel %vm8062_vm1, %v8060_v53, %v8057_v50 }
 0x6c3   : > { %v8095_v26 = vadd.f32 %v8063_v37, %v7583_v9  ;;  %v10695_v38 = vpop.eup %10694 }
 0x6c4   : > { %v8190_v12 = vmul.f32 %v10695_v38, %v13351_v59 }
 0x6c5   : > { %v8127_v36 = vsel %vm7615_vm2, %v13366_v48, %v8095_v26 }
 0x6c6   : > { %10696 = vtanh.f32 %v8127_v36  ;;  %8223 = vst.msk [vmem:[%s12862_s10 + $0xf0] sm:$0xff] %vm8192_vm8, %v8190_v12 }
 0x6cc   : > { %v10697_v8 = vpop.eup %10696 }
 0x6cd   : > { %v8191_v13 = vmul.f32 %v10697_v8, %v13366_v48 }
 0x6cf   : > { %8224 = vst.msk [vmem:[%s12862_s10 + $0xf8] sm:$0xff] %vm8192_vm8, %v8191_v13 }
 0x6d0 PF: > { %s13813_s15 = smov %s10959_s24  ;;  %p18_p4 = scmp.ge.s32.totalorder %s10949_s20, 4  }
 0x6d1   : > { %s13814_s24 = smov %s10842_s25  ;;  %s13815_s25 = smov %s10846_s26 }
 0x6d2   : > { %s13816_s26 = smov %s13813_s15  ;;  %s13817_s27 = smov %s10949_s20 }
 0x6d3   :  { %20 = sbr.rel (!%p18_p4) target bundleno = 4 (0x4), region = 112 }
 0x6d8   :  { %8246 = vsyncpa [#allocation5], 1 }
 0x6d9   :  { %8248 = vsyncpa [#allocation5 + $0x1], 1 }
 0x6da   :  { %8249 = vsyncpa [#allocation7], 1 }

</bundles_post_ra>
